<compile_context>
chip_gen: v7x
topology: tpu7x:2x2x1
jax: 0.10.0
libtpu: 0.0.40
codegen_flags: <defaults>
</compile_context>

<pallas_src>
import jax
import jax.numpy as jnp
from jax import lax
from jax.experimental import pallas as pl
from jax.experimental.pallas import tpu as pltpu


def _round_up(x, m):
    return (x + m - 1) // m * m


# ----------------------------------------------------------------------------
# Fused Stage1 kernel: one grid step processes `nb` whole images through
# BTNK1 + BTNK2 + BTNK2.
# ----------------------------------------------------------------------------
def _stage1_kernel(x_ref,
                   w1s_ref, b1s_ref, w2a_ref, b2a_ref, w3a_ref, b3a_ref,
                   w1b_ref, b1b_ref, w2b_ref, b2b_ref, w3b_ref, b3b_ref,
                   w1c_ref, b1c_ref, w2c_ref, b2c_ref, w3c_ref, b3c_ref,
                   o_ref, pad_ref):
    nb, H, W, Cin = x_ref.shape
    Cp = w2a_ref.shape[-1]          # padded mid channels (multiple of 128)
    Cout = w3a_ref.shape[1]
    M = nb * H * W
    f32 = jnp.float32
    bf16 = jnp.bfloat16

    # ---- zero the 1-element halo of the shared 3x3 scratch once per step
    # (per-step rather than first-step so it stays correct when the parallel
    # grid axis is split across TensorCores). Interior writes never touch it.
    Wp = pad_ref.shape[2]
    zrow = jnp.zeros((nb, 1, Wp, Cp), pad_ref.dtype)
    zcol = jnp.zeros((nb, H, 1, Cp), pad_ref.dtype)
    pad_ref[:, 0:1, :, :] = zrow
    pad_ref[:, H + 1:H + 2, :, :] = zrow
    pad_ref[:, 1:H + 1, 0:1, :] = zcol
    pad_ref[:, 1:H + 1, W + 1:W + 2, :] = zcol

    def conv3x3_relu(t1, w2_ref, b2_ref):
        """t1: (M, Cp) f32 (already ReLU'd).  3x3 SAME conv as 9 K=Cp matmuls
        over slices of the bf16 padded scratch; returns (M, Cp) f32 ReLU'd."""
        pad_ref[:, 1:H + 1, 1:W + 1, :] = (
            t1.astype(pad_ref.dtype).reshape(nb, H, W, Cp))
        # accumulator starts from the broadcast bias: no zeros init and no
        # separate full-width bias add afterwards.
        acc = jnp.broadcast_to(b2_ref[...], (M, Cp)).astype(f32)
        for dy in range(3):
            for dx in range(3):
                tap = pad_ref[:, dy:dy + H, dx:dx + W, :].reshape(M, Cp)
                acc = acc + jnp.dot(tap, w2_ref[dy, dx],
                                    preferred_element_type=f32)
        return jnp.maximum(acc, 0.0)

    # ---------------- BTNK1: fused (1x1 main || 1x1 projection shortcut) ----
    x_bf = x_ref[...].reshape(M, Cin).astype(bf16)
    r = jnp.dot(x_bf, w1s_ref[...], preferred_element_type=f32) + b1s_ref[...]
    t1 = jnp.maximum(r[:, :Cp], 0.0)          # main branch      (M, Cp)
    sc = r[:, Cp:]                            # projection SC    (M, Cout)
    t2 = conv3x3_relu(t1, w2a_ref, b2a_ref)
    t3 = jnp.dot(t2.astype(bf16), w3a_ref[...],
                 preferred_element_type=f32) + b3a_ref[...]
    y = jnp.maximum(sc + t3, 0.0)             # (M, Cout) f32

    # ---------------- 2x BTNK2 (identity shortcut) ---------------------------
    def btnk2(y, w1_ref, b1_ref, w2_ref, b2_ref, w3_ref, b3_ref):
        t1 = jnp.maximum(
            jnp.dot(y.astype(bf16), w1_ref[...],
                    preferred_element_type=f32) + b1_ref[...], 0.0)
        t2 = conv3x3_relu(t1, w2_ref, b2_ref)
        t3 = jnp.dot(t2.astype(bf16), w3_ref[...],
                     preferred_element_type=f32) + b3_ref[...]
        return jnp.maximum(y + t3, 0.0)

    y = btnk2(y, w1b_ref, b1b_ref, w2b_ref, b2b_ref, w3b_ref, b3b_ref)
    y = btnk2(y, w1c_ref, b1c_ref, w2c_ref, b2c_ref, w3c_ref, b3c_ref)

    o_ref[...] = y.reshape(nb, H, W, Cout).astype(o_ref.dtype)


# ----------------------------------------------------------------------------
# Stage wrapper
# ----------------------------------------------------------------------------
def stage1_forward_nhwc(x, packed):
    """x: (N, H, W, Cin_p) f32 NHWC, channels already padded to w1s rows."""
    N, H, W, Cin = x.shape
    w1s, _, w2a, _, w3a = packed[0], packed[1], packed[2], packed[3], packed[4]
    Cp = w2a.shape[-1]
    Cout = w3a.shape[1]
    assert w1s.shape[0] == Cin and w1s.shape[1] == Cp + Cout

    # Batch elements per grid step: keep matmul M = nb*H*W >= 256 rows, but
    # keep at least 2 grid steps when the batch allows (v7x has 2 TCs).
    hw = H * W
    if hw >= 256:
        nb = 1
    else:
        nb = min(N, -(-256 // hw))
        if N >= 2:
            nb = min(nb, max(1, N // 2))
    while N % nb:
        nb -= 1
    grid = (N // nb,)

    # bf16 sublane-aligned row pitch for the 3x3 padded scratch.
    Wp = _round_up(W + 2, 16)

    def cspec(arr):
        nd = arr.ndim
        return pl.BlockSpec(arr.shape, lambda n, _nd=nd: (0,) * _nd)

    in_specs = [pl.BlockSpec((nb, H, W, Cin), lambda n: (n, 0, 0, 0))]
    in_specs += [cspec(a) for a in packed]

    # TODO(synk): at real ResNet-50 Stage1 sizes (56x56, larger nb) re-derive
    # the VMEM budget and set vmem_limit_bytes explicitly (64 MiB on v7x).
    return pl.pallas_call(
        _stage1_kernel,
        out_shape=jax.ShapeDtypeStruct((N, H, W, Cout), x.dtype),
        grid_spec=pltpu.PrefetchScalarGridSpec(
            num_scalar_prefetch=0,
            grid=grid,
            in_specs=in_specs,
            out_specs=pl.BlockSpec((nb, H, W, Cout), lambda n: (n, 0, 0, 0)),
            scratch_shapes=[pltpu.VMEM((nb, H + 2, Wp, Cp), jnp.bfloat16)],
        ),
        compiler_params=pltpu.CompilerParams(
            dimension_semantics=("parallel",)),
    )(x, *packed)


@jax.jit
def stage1_forward(x_nchw, packed_params):
    """NCHW in / NCHW out (matches the PyTorch module interface). The layout
    transpose and the Cin->128 channel padding are done once for the stage."""
    x = jnp.transpose(x_nchw, (0, 2, 3, 1))
    cin_p = packed_params[0].shape[0]
    pad_c = cin_p - x.shape[-1]
    if pad_c:
        x = jnp.pad(x, ((0, 0), (0, 0), (0, 0), (0, pad_c)))
    y = stage1_forward_nhwc(x, packed_params)
    return jnp.transpose(y, (0, 3, 1, 2))


# ----------------------------------------------------------------------------
# Parameters: synthetic conv+BN, folded to inference-mode conv weight/bias
# ----------------------------------------------------------------------------
def _conv_bn_folded(key, w_shape):
    kw, kb, kg, kbeta, km, kv = jax.random.split(key, 6)
    cout = w_shape[-1]
    fan_in = 1
    for d in w_shape[:-1]:
        fan_in *= d
    w = jax.random.normal(kw, w_shape, jnp.float32) / jnp.sqrt(float(fan_in))
    b = 0.1 * jax.random.normal(kb, (cout,), jnp.float32)
    gamma = 1.0 + 0.1 * jax.random.normal(kg, (cout,), jnp.float32)
    beta = 0.1 * jax.random.normal(kbeta, (cout,), jnp.float32)
    mean = 0.1 * jax.random.normal(km, (cout,), jnp.float32)
    var = 1.0 + 0.1 * jnp.abs(jax.random.normal(kv, (cout,), jnp.float32))
    scale = gamma / jnp.sqrt(var + 1e-5)
    return w * scale, (b - mean) * scale + beta


def init_stage1_params(key, in_channels=64, c1=64):
    k1, k2, k3 = jax.random.split(key, 3)
    cout = 4 * c1

    def block(k, cin, cm, co, has_proj):
        ks = jax.random.split(k, 4)
        p = {"w1": _conv_bn_folded(ks[0], (cin, cm)),
             "w2": _conv_bn_folded(ks[1], (3, 3, cm, cm)),
             "w3": _conv_bn_folded(ks[2], (cm, co))}
        if has_proj:
            p["ws"] = _conv_bn_folded(ks[3], (cin, co))
        return p

    return [block(k1, in_channels, c1, cout, True),
            block(k2, cout, cout // 4, cout, False),
            block(k3, cout, cout // 4, cout, False)]


def pack_stage1_params(raw_params, in_channels):
    """Zero-pad mid channels to a multiple of 128, pad block-1 input channels
    to 128, fuse the BTNK1 projection with its first 1x1 conv, cast matmul
    weights to bf16, reshape biases to (1, C)."""
    p1, p2, p3 = raw_params
    bf = jnp.bfloat16
    cin_p = _round_up(in_channels, 128)

    def pack_common(p):
        w2, b2 = p["w2"]
        w3, b3 = p["w3"]
        cm = w2.shape[2]
        cp = _round_up(cm, 128)
        d = cp - cm
        w2p = jnp.pad(w2, ((0, 0), (0, 0), (0, d), (0, d))).astype(bf)
        b2p = jnp.pad(b2, (0, d)).reshape(1, cp)
        w3p = jnp.pad(w3, ((0, d), (0, 0))).astype(bf)
        b3p = b3.reshape(1, -1)
        return cp, w2p, b2p, w3p, b3p

    # --- block 1 (projection): fuse main 1x1 + shortcut 1x1, pad rows to 128
    w1, b1 = p1["w1"]
    ws, bs = p1["ws"]
    cp1, w2a, b2a, w3a, b3a = pack_common(p1)
    w1f = jnp.pad(w1, ((0, cin_p - w1.shape[0]), (0, cp1 - w1.shape[1])))
    wsf = jnp.pad(ws, ((0, cin_p - ws.shape[0]), (0, 0)))
    w1s = jnp.concatenate([w1f, wsf], axis=1).astype(bf)       # (cin_p, cp+cout)
    b1s = jnp.concatenate(
        [jnp.pad(b1, (0, cp1 - b1.shape[0])), bs]).reshape(1, -1)

    # --- blocks 2 & 3 (identity shortcut)
    def pack_identity(p):
        w1, b1 = p["w1"]
        cp, w2p, b2p, w3p, b3p = pack_common(p)
        w1p = jnp.pad(w1, ((0, 0), (0, cp - w1.shape[1]))).astype(bf)
        b1p = jnp.pad(b1, (0, cp - b1.shape[0])).reshape(1, cp)
        return w1p, b1p, w2p, b2p, w3p, b3p

    return ((w1s, b1s, w2a, b2a, w3a, b3a)
            + pack_identity(p2) + pack_identity(p3))


# ----------------------------------------------------------------------------
# Pure-JAX reference (same folded-BN math, mirrored bf16 matmul inputs)
# ----------------------------------------------------------------------------
def _ref_block(x, p):
    dn = ("NHWC", "HWIO", "NHWC")
    bf = jnp.bfloat16
    w1, b1 = p["w1"]
    w2, b2 = p["w2"]
    w3, b3 = p["w3"]
    xb = x.astype(bf)
    t = lax.conv_general_dilated(xb, w1[None, None].astype(bf), (1, 1), "VALID",
                                 dimension_numbers=dn,
                                 preferred_element_type=jnp.float32)
    t = jnp.maximum(t + b1.reshape(1, 1, 1, -1), 0.0)
    t = lax.conv_general_dilated(t.astype(bf), w2.astype(bf), (1, 1), "SAME",
                                 dimension_numbers=dn,
                                 preferred_element_type=jnp.float32)
    t = jnp.maximum(t + b2.reshape(1, 1, 1, -1), 0.0)
    t = lax.conv_general_dilated(t.astype(bf), w3[None, None].astype(bf),
                                 (1, 1), "VALID", dimension_numbers=dn,
                                 preferred_element_type=jnp.float32)
    t = t + b3.reshape(1, 1, 1, -1)
    if "ws" in p:
        ws, bs = p["ws"]
        s = lax.conv_general_dilated(xb, ws[None, None].astype(bf), (1, 1),
                                     "VALID", dimension_numbers=dn,
                                     preferred_element_type=jnp.float32)
        s = s + bs.reshape(1, 1, 1, -1)
    else:
        s = x
    return jnp.maximum(s + t, 0.0)


def reference_stage1(x_nchw, raw_params):
    x = jnp.transpose(x_nchw, (0, 2, 3, 1))
    for p in raw_params:
        x = _ref_block(x, p)
    return jnp.transpose(x, (0, 3, 1, 2))


# ----------------------------------------------------------------------------
if __name__ == "__main__":
    key = jax.random.PRNGKey(0)
    kx, kp = jax.random.split(key)

    # Stage1 defaults: in_channels=64, C1=64 -> output channels 256.
    N, Cin, H, W = 2, 64, 16, 16
    x = jax.random.normal(kx, (N, Cin, H, W), jnp.float32)

    raw_params = init_stage1_params(kp, in_channels=Cin, c1=64)
    packed_params = pack_stage1_params(raw_params, Cin)

    out = jax.block_until_ready(stage1_forward(x, packed_params))
    assert out.shape == (N, 256, H, W), out.shape

    ref = reference_stage1(x, raw_params)
    err = float(jnp.max(jnp.abs(out - ref)))
    scale = float(jnp.max(jnp.abs(ref))) + 1e-6
    assert err / scale < 2e-2, f"relative error {err / scale:.3e}"

    print("KERNEL_OK")
</pallas_src>

<mosaic_0001>
module attributes {stable_mosaic.version = 11 : i64} {
  func.func @_stage1_kernel(%arg0: i32, %arg1: memref<1x16x16x128xf32, #tpu.memory_space<vmem>>, %arg2: memref<128x384xbf16, #tpu.memory_space<vmem>>, %arg3: memref<1x384xf32, #tpu.memory_space<vmem>>, %arg4: memref<3x3x128x128xbf16, #tpu.memory_space<vmem>>, %arg5: memref<1x128xf32, #tpu.memory_space<vmem>>, %arg6: memref<128x256xbf16, #tpu.memory_space<vmem>>, %arg7: memref<1x256xf32, #tpu.memory_space<vmem>>, %arg8: memref<256x128xbf16, #tpu.memory_space<vmem>>, %arg9: memref<1x128xf32, #tpu.memory_space<vmem>>, %arg10: memref<3x3x128x128xbf16, #tpu.memory_space<vmem>>, %arg11: memref<1x128xf32, #tpu.memory_space<vmem>>, %arg12: memref<128x256xbf16, #tpu.memory_space<vmem>>, %arg13: memref<1x256xf32, #tpu.memory_space<vmem>>, %arg14: memref<256x128xbf16, #tpu.memory_space<vmem>>, %arg15: memref<1x128xf32, #tpu.memory_space<vmem>>, %arg16: memref<3x3x128x128xbf16, #tpu.memory_space<vmem>>, %arg17: memref<1x128xf32, #tpu.memory_space<vmem>>, %arg18: memref<128x256xbf16, #tpu.memory_space<vmem>>, %arg19: memref<1x256xf32, #tpu.memory_space<vmem>>, %arg20: memref<1x16x16x256xf32, #tpu.memory_space<vmem>>, %arg21: memref<1x18x32x128xbf16, #tpu.memory_space<vmem>>) attributes {dimension_semantics = [#tpu.dimension_semantics<parallel>], iteration_bounds = array<i64: 2>, scalar_prefetch = 0 : i64, scratch_operands = 1 : i64, tpu.core_type = #tpu.core_type<tc>, window_params = [{transform_indices = @transform_0, window_bounds = array<i64: 1, 16, 16, 128>}, {pipeline_mode = #tpu.pipeline_mode<synchronous>, transform_indices = @transform_1, window_bounds = array<i64: 128, 384>}, {pipeline_mode = #tpu.pipeline_mode<synchronous>, transform_indices = @transform_2, window_bounds = array<i64: 1, 384>}, {pipeline_mode = #tpu.pipeline_mode<synchronous>, transform_indices = @transform_3, window_bounds = array<i64: 3, 3, 128, 128>}, {pipeline_mode = #tpu.pipeline_mode<synchronous>, transform_indices = @transform_4, window_bounds = array<i64: 1, 128>}, {pipeline_mode = #tpu.pipeline_mode<synchronous>, transform_indices = @transform_5, window_bounds = array<i64: 128, 256>}, {pipeline_mode = #tpu.pipeline_mode<synchronous>, transform_indices = @transform_6, window_bounds = array<i64: 1, 256>}, {pipeline_mode = #tpu.pipeline_mode<synchronous>, transform_indices = @transform_7, window_bounds = array<i64: 256, 128>}, {pipeline_mode = #tpu.pipeline_mode<synchronous>, transform_indices = @transform_8, window_bounds = array<i64: 1, 128>}, {pipeline_mode = #tpu.pipeline_mode<synchronous>, transform_indices = @transform_9, window_bounds = array<i64: 3, 3, 128, 128>}, {pipeline_mode = #tpu.pipeline_mode<synchronous>, transform_indices = @transform_10, window_bounds = array<i64: 1, 128>}, {pipeline_mode = #tpu.pipeline_mode<synchronous>, transform_indices = @transform_11, window_bounds = array<i64: 128, 256>}, {pipeline_mode = #tpu.pipeline_mode<synchronous>, transform_indices = @transform_12, window_bounds = array<i64: 1, 256>}, {pipeline_mode = #tpu.pipeline_mode<synchronous>, transform_indices = @transform_13, window_bounds = array<i64: 256, 128>}, {pipeline_mode = #tpu.pipeline_mode<synchronous>, transform_indices = @transform_14, window_bounds = array<i64: 1, 128>}, {pipeline_mode = #tpu.pipeline_mode<synchronous>, transform_indices = @transform_15, window_bounds = array<i64: 3, 3, 128, 128>}, {pipeline_mode = #tpu.pipeline_mode<synchronous>, transform_indices = @transform_16, window_bounds = array<i64: 1, 128>}, {pipeline_mode = #tpu.pipeline_mode<synchronous>, transform_indices = @transform_17, window_bounds = array<i64: 128, 256>}, {pipeline_mode = #tpu.pipeline_mode<synchronous>, transform_indices = @transform_18, window_bounds = array<i64: 1, 256>}, {transform_indices = @transform_19, window_bounds = array<i64: 1, 16, 16, 256>}]} {
    %cst = arith.constant 0.000000e+00 : bf16
    %0 = vector.broadcast %cst : bf16 to vector<1x1x32x128xbf16>
    %cst_0 = arith.constant 0.000000e+00 : bf16
    %1 = vector.broadcast %cst_0 : bf16 to vector<1x16x1x128xbf16>
    %c0 = arith.constant 0 : index
    %c0_1 = arith.constant 0 : index
    %c0_2 = arith.constant 0 : index
    %c0_3 = arith.constant 0 : index
    %2 = vector.load %arg21[%c0, %c0_1, %c0_2, %c0_3] : memref<1x18x32x128xbf16, #tpu.memory_space<vmem>>, vector<1x1x32x128xbf16>
    tpu.vector_store %arg21[%c0, %c0_1, %c0_2, %c0_3], %0 {strides = array<i32>} : memref<1x18x32x128xbf16, #tpu.memory_space<vmem>>, vector<1x1x32x128xbf16>,
    %c0_4 = arith.constant 0 : index
    %c17 = arith.constant 17 : index
    %c0_5 = arith.constant 0 : index
    %c0_6 = arith.constant 0 : index
    %3 = vector.load %arg21[%c0_4, %c17, %c0_5, %c0_6] : memref<1x18x32x128xbf16, #tpu.memory_space<vmem>>, vector<1x1x32x128xbf16>
    tpu.vector_store %arg21[%c0_4, %c17, %c0_5, %c0_6], %0 {strides = array<i32>} : memref<1x18x32x128xbf16, #tpu.memory_space<vmem>>, vector<1x1x32x128xbf16>,
    %c0_7 = arith.constant 0 : index
    %c1 = arith.constant 1 : index
    %c0_8 = arith.constant 0 : index
    %c0_9 = arith.constant 0 : index
    %4 = vector.load %arg21[%c0_7, %c1, %c0_8, %c0_9] : memref<1x18x32x128xbf16, #tpu.memory_space<vmem>>, vector<1x16x1x128xbf16>
    tpu.vector_store %arg21[%c0_7, %c1, %c0_8, %c0_9], %1 {strides = array<i32>} : memref<1x18x32x128xbf16, #tpu.memory_space<vmem>>, vector<1x16x1x128xbf16>,
    %c0_10 = arith.constant 0 : index
    %c1_11 = arith.constant 1 : index
    %c17_12 = arith.constant 17 : index
    %c0_13 = arith.constant 0 : index
    %5 = vector.load %arg21[%c0_10, %c1_11, %c17_12, %c0_13] : memref<1x18x32x128xbf16, #tpu.memory_space<vmem>>, vector<1x16x1x128xbf16>
    tpu.vector_store %arg21[%c0_10, %c1_11, %c17_12, %c0_13], %1 {strides = array<i32>} : memref<1x18x32x128xbf16, #tpu.memory_space<vmem>>, vector<1x16x1x128xbf16>,
    %c0_14 = arith.constant 0 : index
    %c0_15 = arith.constant 0 : index
    %c0_16 = arith.constant 0 : index
    %c0_17 = arith.constant 0 : index
    %6 = vector.load %arg1[%c0_14, %c0_15, %c0_16, %c0_17] : memref<1x16x16x128xf32, #tpu.memory_space<vmem>>, vector<1x16x16x128xf32>
    %7 = vector.shape_cast %6 : vector<1x16x16x128xf32> to vector<256x128xf32>
    %8 = arith.truncf %7 : vector<256x128xf32> to vector<256x128xbf16>
    %c0_18 = arith.constant 0 : index
    %c0_19 = arith.constant 0 : index
    %9 = vector.load %arg2[%c0_18, %c0_19] : memref<128x384xbf16, #tpu.memory_space<vmem>>, vector<128x384xbf16>
    %cst_20 = arith.constant dense<0.000000e+00> : vector<256x384xf32>
    %10 = tpu.matmul %8, %9, %cst_20 {dimension_numbers = #tpu.dot_dimension_numbers<[1], [0], [0], [1], [0, 0, 1, 1], [], []>} : vector<256x128xbf16>, vector<128x384xbf16>, vector<256x384xf32> -> vector<256x384xf32>
    %c0_21 = arith.constant 0 : index
    %c0_22 = arith.constant 0 : index
    %11 = vector.load %arg3[%c0_21, %c0_22] : memref<1x384xf32, #tpu.memory_space<vmem>>, vector<1x384xf32>
    %12 = vector.broadcast %11 : vector<1x384xf32> to vector<256x384xf32>
    %13 = arith.addf %10, %12 : vector<256x384xf32>
    %14 = vector.extract_strided_slice %13 {offsets = [0, 0], sizes = [256, 128], strides = [1, 1]} : vector<256x384xf32> to vector<256x128xf32>
    %cst_23 = arith.constant 0.000000e+00 : f32
    %15 = vector.broadcast %cst_23 : f32 to vector<256x128xf32>
    %16 = arith.maximumf %14, %15 : vector<256x128xf32>
    %17 = vector.extract_strided_slice %13 {offsets = [0, 128], sizes = [256, 256], strides = [1, 1]} : vector<256x384xf32> to vector<256x256xf32>
    %18 = arith.truncf %16 : vector<256x128xf32> to vector<256x128xbf16>
    %19 = vector.shape_cast %18 : vector<256x128xbf16> to vector<1x16x16x128xbf16>
    %c0_24 = arith.constant 0 : index
    %c1_25 = arith.constant 1 : index
    %c1_26 = arith.constant 1 : index
    %c0_27 = arith.constant 0 : index
    %20 = vector.load %arg21[%c0_24, %c1_25, %c1_26, %c0_27] : memref<1x18x32x128xbf16, #tpu.memory_space<vmem>>, vector<1x16x16x128xbf16>
    tpu.vector_store %arg21[%c0_24, %c1_25, %c1_26, %c0_27], %19 {strides = array<i32>} : memref<1x18x32x128xbf16, #tpu.memory_space<vmem>>, vector<1x16x16x128xbf16>,
    %c0_28 = arith.constant 0 : index
    %c0_29 = arith.constant 0 : index
    %21 = vector.load %arg5[%c0_28, %c0_29] : memref<1x128xf32, #tpu.memory_space<vmem>>, vector<1x128xf32>
    %22 = vector.shape_cast %21 : vector<1x128xf32> to vector<1x128xf32>
    %23 = vector.broadcast %22 : vector<1x128xf32> to vector<256x128xf32>
    %c0_30 = arith.constant 0 : index
    %c0_31 = arith.constant 0 : index
    %c0_32 = arith.constant 0 : index
    %c0_33 = arith.constant 0 : index
    %24 = vector.load %arg21[%c0_30, %c0_31, %c0_32, %c0_33] : memref<1x18x32x128xbf16, #tpu.memory_space<vmem>>, vector<1x16x16x128xbf16>
    %25 = vector.shape_cast %24 : vector<1x16x16x128xbf16> to vector<256x128xbf16>
    %c0_34 = arith.constant 0 : index
    %c0_35 = arith.constant 0 : index
    %c0_36 = arith.constant 0 : index
    %c0_37 = arith.constant 0 : index
    %26 = vector.load %arg4[%c0_34, %c0_35, %c0_36, %c0_37] : memref<3x3x128x128xbf16, #tpu.memory_space<vmem>>, vector<1x1x128x128xbf16>
    %27 = vector.shape_cast %26 : vector<1x1x128x128xbf16> to vector<128x128xbf16>
    %cst_38 = arith.constant dense<0.000000e+00> : vector<256x128xf32>
    %28 = tpu.matmul %25, %27, %cst_38 {dimension_numbers = #tpu.dot_dimension_numbers<[1], [0], [0], [1], [0, 0, 1, 1], [], []>} : vector<256x128xbf16>, vector<128x128xbf16>, vector<256x128xf32> -> vector<256x128xf32>
    %29 = arith.addf %23, %28 : vector<256x128xf32>
    %c0_39 = arith.constant 0 : index
    %c0_40 = arith.constant 0 : index
    %c1_41 = arith.constant 1 : index
    %c0_42 = arith.constant 0 : index
    %30 = vector.load %arg21[%c0_39, %c0_40, %c1_41, %c0_42] : memref<1x18x32x128xbf16, #tpu.memory_space<vmem>>, vector<1x16x16x128xbf16>
    %31 = vector.shape_cast %30 : vector<1x16x16x128xbf16> to vector<256x128xbf16>
    %c0_43 = arith.constant 0 : index
    %c1_44 = arith.constant 1 : index
    %c0_45 = arith.constant 0 : index
    %c0_46 = arith.constant 0 : index
    %32 = vector.load %arg4[%c0_43, %c1_44, %c0_45, %c0_46] : memref<3x3x128x128xbf16, #tpu.memory_space<vmem>>, vector<1x1x128x128xbf16>
    %33 = vector.shape_cast %32 : vector<1x1x128x128xbf16> to vector<128x128xbf16>
    %cst_47 = arith.constant dense<0.000000e+00> : vector<256x128xf32>
    %34 = tpu.matmul %31, %33, %cst_47 {dimension_numbers = #tpu.dot_dimension_numbers<[1], [0], [0], [1], [0, 0, 1, 1], [], []>} : vector<256x128xbf16>, vector<128x128xbf16>, vector<256x128xf32> -> vector<256x128xf32>
    %35 = arith.addf %29, %34 : vector<256x128xf32>
    %c0_48 = arith.constant 0 : index
    %c0_49 = arith.constant 0 : index
    %c2 = arith.constant 2 : index
    %c0_50 = arith.constant 0 : index
    %36 = vector.load %arg21[%c0_48, %c0_49, %c2, %c0_50] : memref<1x18x32x128xbf16, #tpu.memory_space<vmem>>, vector<1x16x16x128xbf16>
    %37 = vector.shape_cast %36 : vector<1x16x16x128xbf16> to vector<256x128xbf16>
    %c0_51 = arith.constant 0 : index
    %c2_52 = arith.constant 2 : index
    %c0_53 = arith.constant 0 : index
    %c0_54 = arith.constant 0 : index
    %38 = vector.load %arg4[%c0_51, %c2_52, %c0_53, %c0_54] : memref<3x3x128x128xbf16, #tpu.memory_space<vmem>>, vector<1x1x128x128xbf16>
    %39 = vector.shape_cast %38 : vector<1x1x128x128xbf16> to vector<128x128xbf16>
    %cst_55 = arith.constant dense<0.000000e+00> : vector<256x128xf32>
    %40 = tpu.matmul %37, %39, %cst_55 {dimension_numbers = #tpu.dot_dimension_numbers<[1], [0], [0], [1], [0, 0, 1, 1], [], []>} : vector<256x128xbf16>, vector<128x128xbf16>, vector<256x128xf32> -> vector<256x128xf32>
    %41 = arith.addf %35, %40 : vector<256x128xf32>
    %c0_56 = arith.constant 0 : index
    %c1_57 = arith.constant 1 : index
    %c0_58 = arith.constant 0 : index
    %c0_59 = arith.constant 0 : index
    %42 = vector.load %arg21[%c0_56, %c1_57, %c0_58, %c0_59] : memref<1x18x32x128xbf16, #tpu.memory_space<vmem>>, vector<1x16x16x128xbf16>
    %43 = vector.shape_cast %42 : vector<1x16x16x128xbf16> to vector<256x128xbf16>
    %c1_60 = arith.constant 1 : index
    %c0_61 = arith.constant 0 : index
    %c0_62 = arith.constant 0 : index
    %c0_63 = arith.constant 0 : index
    %44 = vector.load %arg4[%c1_60, %c0_61, %c0_62, %c0_63] : memref<3x3x128x128xbf16, #tpu.memory_space<vmem>>, vector<1x1x128x128xbf16>
    %45 = vector.shape_cast %44 : vector<1x1x128x128xbf16> to vector<128x128xbf16>
    %cst_64 = arith.constant dense<0.000000e+00> : vector<256x128xf32>
    %46 = tpu.matmul %43, %45, %cst_64 {dimension_numbers = #tpu.dot_dimension_numbers<[1], [0], [0], [1], [0, 0, 1, 1], [], []>} : vector<256x128xbf16>, vector<128x128xbf16>, vector<256x128xf32> -> vector<256x128xf32>
    %47 = arith.addf %41, %46 : vector<256x128xf32>
    %c0_65 = arith.constant 0 : index
    %c1_66 = arith.constant 1 : index
    %c1_67 = arith.constant 1 : index
    %c0_68 = arith.constant 0 : index
    %48 = vector.load %arg21[%c0_65, %c1_66, %c1_67, %c0_68] : memref<1x18x32x128xbf16, #tpu.memory_space<vmem>>, vector<1x16x16x128xbf16>
    %49 = vector.shape_cast %48 : vector<1x16x16x128xbf16> to vector<256x128xbf16>
    %c1_69 = arith.constant 1 : index
    %c1_70 = arith.constant 1 : index
    %c0_71 = arith.constant 0 : index
    %c0_72 = arith.constant 0 : index
    %50 = vector.load %arg4[%c1_69, %c1_70, %c0_71, %c0_72] : memref<3x3x128x128xbf16, #tpu.memory_space<vmem>>, vector<1x1x128x128xbf16>
    %51 = vector.shape_cast %50 : vector<1x1x128x128xbf16> to vector<128x128xbf16>
    %cst_73 = arith.constant dense<0.000000e+00> : vector<256x128xf32>
    %52 = tpu.matmul %49, %51, %cst_73 {dimension_numbers = #tpu.dot_dimension_numbers<[1], [0], [0], [1], [0, 0, 1, 1], [], []>} : vector<256x128xbf16>, vector<128x128xbf16>, vector<256x128xf32> -> vector<256x128xf32>
    %53 = arith.addf %47, %52 : vector<256x128xf32>
    %c0_74 = arith.constant 0 : index
    %c1_75 = arith.constant 1 : index
    %c2_76 = arith.constant 2 : index
    %c0_77 = arith.constant 0 : index
    %54 = vector.load %arg21[%c0_74, %c1_75, %c2_76, %c0_77] : memref<1x18x32x128xbf16, #tpu.memory_space<vmem>>, vector<1x16x16x128xbf16>
    %55 = vector.shape_cast %54 : vector<1x16x16x128xbf16> to vector<256x128xbf16>
    %c1_78 = arith.constant 1 : index
    %c2_79 = arith.constant 2 : index
    %c0_80 = arith.constant 0 : index
    %c0_81 = arith.constant 0 : index
    %56 = vector.load %arg4[%c1_78, %c2_79, %c0_80, %c0_81] : memref<3x3x128x128xbf16, #tpu.memory_space<vmem>>, vector<1x1x128x128xbf16>
    %57 = vector.shape_cast %56 : vector<1x1x128x128xbf16> to vector<128x128xbf16>
    %cst_82 = arith.constant dense<0.000000e+00> : vector<256x128xf32>
    %58 = tpu.matmul %55, %57, %cst_82 {dimension_numbers = #tpu.dot_dimension_numbers<[1], [0], [0], [1], [0, 0, 1, 1], [], []>} : vector<256x128xbf16>, vector<128x128xbf16>, vector<256x128xf32> -> vector<256x128xf32>
    %59 = arith.addf %53, %58 : vector<256x128xf32>
    %c0_83 = arith.constant 0 : index
    %c2_84 = arith.constant 2 : index
    %c0_85 = arith.constant 0 : index
    %c0_86 = arith.constant 0 : index
    %60 = vector.load %arg21[%c0_83, %c2_84, %c0_85, %c0_86] : memref<1x18x32x128xbf16, #tpu.memory_space<vmem>>, vector<1x16x16x128xbf16>
    %61 = vector.shape_cast %60 : vector<1x16x16x128xbf16> to vector<256x128xbf16>
    %c2_87 = arith.constant 2 : index
    %c0_88 = arith.constant 0 : index
    %c0_89 = arith.constant 0 : index
    %c0_90 = arith.constant 0 : index
    %62 = vector.load %arg4[%c2_87, %c0_88, %c0_89, %c0_90] : memref<3x3x128x128xbf16, #tpu.memory_space<vmem>>, vector<1x1x128x128xbf16>
    %63 = vector.shape_cast %62 : vector<1x1x128x128xbf16> to vector<128x128xbf16>
    %cst_91 = arith.constant dense<0.000000e+00> : vector<256x128xf32>
    %64 = tpu.matmul %61, %63, %cst_91 {dimension_numbers = #tpu.dot_dimension_numbers<[1], [0], [0], [1], [0, 0, 1, 1], [], []>} : vector<256x128xbf16>, vector<128x128xbf16>, vector<256x128xf32> -> vector<256x128xf32>
    %65 = arith.addf %59, %64 : vector<256x128xf32>
    %c0_92 = arith.constant 0 : index
    %c2_93 = arith.constant 2 : index
    %c1_94 = arith.constant 1 : index
    %c0_95 = arith.constant 0 : index
    %66 = vector.load %arg21[%c0_92, %c2_93, %c1_94, %c0_95] : memref<1x18x32x128xbf16, #tpu.memory_space<vmem>>, vector<1x16x16x128xbf16>
    %67 = vector.shape_cast %66 : vector<1x16x16x128xbf16> to vector<256x128xbf16>
    %c2_96 = arith.constant 2 : index
    %c1_97 = arith.constant 1 : index
    %c0_98 = arith.constant 0 : index
    %c0_99 = arith.constant 0 : index
    %68 = vector.load %arg4[%c2_96, %c1_97, %c0_98, %c0_99] : memref<3x3x128x128xbf16, #tpu.memory_space<vmem>>, vector<1x1x128x128xbf16>
    %69 = vector.shape_cast %68 : vector<1x1x128x128xbf16> to vector<128x128xbf16>
    %cst_100 = arith.constant dense<0.000000e+00> : vector<256x128xf32>
    %70 = tpu.matmul %67, %69, %cst_100 {dimension_numbers = #tpu.dot_dimension_numbers<[1], [0], [0], [1], [0, 0, 1, 1], [], []>} : vector<256x128xbf16>, vector<128x128xbf16>, vector<256x128xf32> -> vector<256x128xf32>
    %71 = arith.addf %65, %70 : vector<256x128xf32>
    %c0_101 = arith.constant 0 : index
    %c2_102 = arith.constant 2 : index
    %c2_103 = arith.constant 2 : index
    %c0_104 = arith.constant 0 : index
    %72 = vector.load %arg21[%c0_101, %c2_102, %c2_103, %c0_104] : memref<1x18x32x128xbf16, #tpu.memory_space<vmem>>, vector<1x16x16x128xbf16>
    %73 = vector.shape_cast %72 : vector<1x16x16x128xbf16> to vector<256x128xbf16>
    %c2_105 = arith.constant 2 : index
    %c2_106 = arith.constant 2 : index
    %c0_107 = arith.constant 0 : index
    %c0_108 = arith.constant 0 : index
    %74 = vector.load %arg4[%c2_105, %c2_106, %c0_107, %c0_108] : memref<3x3x128x128xbf16, #tpu.memory_space<vmem>>, vector<1x1x128x128xbf16>
    %75 = vector.shape_cast %74 : vector<1x1x128x128xbf16> to vector<128x128xbf16>
    %cst_109 = arith.constant dense<0.000000e+00> : vector<256x128xf32>
    %76 = tpu.matmul %73, %75, %cst_109 {dimension_numbers = #tpu.dot_dimension_numbers<[1], [0], [0], [1], [0, 0, 1, 1], [], []>} : vector<256x128xbf16>, vector<128x128xbf16>, vector<256x128xf32> -> vector<256x128xf32>
    %77 = arith.addf %71, %76 : vector<256x128xf32>
    %cst_110 = arith.constant 0.000000e+00 : f32
    %78 = vector.broadcast %cst_110 : f32 to vector<256x128xf32>
    %79 = arith.maximumf %77, %78 : vector<256x128xf32>
    %80 = arith.truncf %79 : vector<256x128xf32> to vector<256x128xbf16>
    %c0_111 = arith.constant 0 : index
    %c0_112 = arith.constant 0 : index
    %81 = vector.load %arg6[%c0_111, %c0_112] : memref<128x256xbf16, #tpu.memory_space<vmem>>, vector<128x256xbf16>
    %cst_113 = arith.constant dense<0.000000e+00> : vector<256x256xf32>
    %82 = tpu.matmul %80, %81, %cst_113 {dimension_numbers = #tpu.dot_dimension_numbers<[1], [0], [0], [1], [0, 0, 1, 1], [], []>} : vector<256x128xbf16>, vector<128x256xbf16>, vector<256x256xf32> -> vector<256x256xf32>
    %c0_114 = arith.constant 0 : index
    %c0_115 = arith.constant 0 : index
    %83 = vector.load %arg7[%c0_114, %c0_115] : memref<1x256xf32, #tpu.memory_space<vmem>>, vector<1x256xf32>
    %84 = vector.broadcast %83 : vector<1x256xf32> to vector<256x256xf32>
    %85 = arith.addf %82, %84 : vector<256x256xf32>
    %86 = arith.addf %17, %85 : vector<256x256xf32>
    %cst_116 = arith.constant 0.000000e+00 : f32
    %87 = vector.broadcast %cst_116 : f32 to vector<256x256xf32>
    %88 = arith.maximumf %86, %87 : vector<256x256xf32>
    %89 = arith.truncf %88 : vector<256x256xf32> to vector<256x256xbf16>
    %c0_117 = arith.constant 0 : index
    %c0_118 = arith.constant 0 : index
    %90 = vector.load %arg8[%c0_117, %c0_118] : memref<256x128xbf16, #tpu.memory_space<vmem>>, vector<256x128xbf16>
    %cst_119 = arith.constant dense<0.000000e+00> : vector<256x128xf32>
    %91 = tpu.matmul %89, %90, %cst_119 {dimension_numbers = #tpu.dot_dimension_numbers<[1], [0], [0], [1], [0, 0, 1, 1], [], []>} : vector<256x256xbf16>, vector<256x128xbf16>, vector<256x128xf32> -> vector<256x128xf32>
    %c0_120 = arith.constant 0 : index
    %c0_121 = arith.constant 0 : index
    %92 = vector.load %arg9[%c0_120, %c0_121] : memref<1x128xf32, #tpu.memory_space<vmem>>, vector<1x128xf32>
    %93 = vector.broadcast %92 : vector<1x128xf32> to vector<256x128xf32>
    %94 = arith.addf %91, %93 : vector<256x128xf32>
    %cst_122 = arith.constant 0.000000e+00 : f32
    %95 = vector.broadcast %cst_122 : f32 to vector<256x128xf32>
    %96 = arith.maximumf %94, %95 : vector<256x128xf32>
    %97 = arith.truncf %96 : vector<256x128xf32> to vector<256x128xbf16>
    %98 = vector.shape_cast %97 : vector<256x128xbf16> to vector<1x16x16x128xbf16>
    %c0_123 = arith.constant 0 : index
    %c1_124 = arith.constant 1 : index
    %c1_125 = arith.constant 1 : index
    %c0_126 = arith.constant 0 : index
    %99 = vector.load %arg21[%c0_123, %c1_124, %c1_125, %c0_126] : memref<1x18x32x128xbf16, #tpu.memory_space<vmem>>, vector<1x16x16x128xbf16>
    tpu.vector_store %arg21[%c0_123, %c1_124, %c1_125, %c0_126], %98 {strides = array<i32>} : memref<1x18x32x128xbf16, #tpu.memory_space<vmem>>, vector<1x16x16x128xbf16>,
    %c0_127 = arith.constant 0 : index
    %c0_128 = arith.constant 0 : index
    %100 = vector.load %arg11[%c0_127, %c0_128] : memref<1x128xf32, #tpu.memory_space<vmem>>, vector<1x128xf32>
    %101 = vector.shape_cast %100 : vector<1x128xf32> to vector<1x128xf32>
    %102 = vector.broadcast %101 : vector<1x128xf32> to vector<256x128xf32>
    %c0_129 = arith.constant 0 : index
    %c0_130 = arith.constant 0 : index
    %c0_131 = arith.constant 0 : index
    %c0_132 = arith.constant 0 : index
    %103 = vector.load %arg21[%c0_129, %c0_130, %c0_131, %c0_132] : memref<1x18x32x128xbf16, #tpu.memory_space<vmem>>, vector<1x16x16x128xbf16>
    %104 = vector.shape_cast %103 : vector<1x16x16x128xbf16> to vector<256x128xbf16>
    %c0_133 = arith.constant 0 : index
    %c0_134 = arith.constant 0 : index
    %c0_135 = arith.constant 0 : index
    %c0_136 = arith.constant 0 : index
    %105 = vector.load %arg10[%c0_133, %c0_134, %c0_135, %c0_136] : memref<3x3x128x128xbf16, #tpu.memory_space<vmem>>, vector<1x1x128x128xbf16>
    %106 = vector.shape_cast %105 : vector<1x1x128x128xbf16> to vector<128x128xbf16>
    %cst_137 = arith.constant dense<0.000000e+00> : vector<256x128xf32>
    %107 = tpu.matmul %104, %106, %cst_137 {dimension_numbers = #tpu.dot_dimension_numbers<[1], [0], [0], [1], [0, 0, 1, 1], [], []>} : vector<256x128xbf16>, vector<128x128xbf16>, vector<256x128xf32> -> vector<256x128xf32>
    %108 = arith.addf %102, %107 : vector<256x128xf32>
    %c0_138 = arith.constant 0 : index
    %c0_139 = arith.constant 0 : index
    %c1_140 = arith.constant 1 : index
    %c0_141 = arith.constant 0 : index
    %109 = vector.load %arg21[%c0_138, %c0_139, %c1_140, %c0_141] : memref<1x18x32x128xbf16, #tpu.memory_space<vmem>>, vector<1x16x16x128xbf16>
    %110 = vector.shape_cast %109 : vector<1x16x16x128xbf16> to vector<256x128xbf16>
    %c0_142 = arith.constant 0 : index
    %c1_143 = arith.constant 1 : index
    %c0_144 = arith.constant 0 : index
    %c0_145 = arith.constant 0 : index
    %111 = vector.load %arg10[%c0_142, %c1_143, %c0_144, %c0_145] : memref<3x3x128x128xbf16, #tpu.memory_space<vmem>>, vector<1x1x128x128xbf16>
    %112 = vector.shape_cast %111 : vector<1x1x128x128xbf16> to vector<128x128xbf16>
    %cst_146 = arith.constant dense<0.000000e+00> : vector<256x128xf32>
    %113 = tpu.matmul %110, %112, %cst_146 {dimension_numbers = #tpu.dot_dimension_numbers<[1], [0], [0], [1], [0, 0, 1, 1], [], []>} : vector<256x128xbf16>, vector<128x128xbf16>, vector<256x128xf32> -> vector<256x128xf32>
    %114 = arith.addf %108, %113 : vector<256x128xf32>
    %c0_147 = arith.constant 0 : index
    %c0_148 = arith.constant 0 : index
    %c2_149 = arith.constant 2 : index
    %c0_150 = arith.constant 0 : index
    %115 = vector.load %arg21[%c0_147, %c0_148, %c2_149, %c0_150] : memref<1x18x32x128xbf16, #tpu.memory_space<vmem>>, vector<1x16x16x128xbf16>
    %116 = vector.shape_cast %115 : vector<1x16x16x128xbf16> to vector<256x128xbf16>
    %c0_151 = arith.constant 0 : index
    %c2_152 = arith.constant 2 : index
    %c0_153 = arith.constant 0 : index
    %c0_154 = arith.constant 0 : index
    %117 = vector.load %arg10[%c0_151, %c2_152, %c0_153, %c0_154] : memref<3x3x128x128xbf16, #tpu.memory_space<vmem>>, vector<1x1x128x128xbf16>
    %118 = vector.shape_cast %117 : vector<1x1x128x128xbf16> to vector<128x128xbf16>
    %cst_155 = arith.constant dense<0.000000e+00> : vector<256x128xf32>
    %119 = tpu.matmul %116, %118, %cst_155 {dimension_numbers = #tpu.dot_dimension_numbers<[1], [0], [0], [1], [0, 0, 1, 1], [], []>} : vector<256x128xbf16>, vector<128x128xbf16>, vector<256x128xf32> -> vector<256x128xf32>
    %120 = arith.addf %114, %119 : vector<256x128xf32>
    %c0_156 = arith.constant 0 : index
    %c1_157 = arith.constant 1 : index
    %c0_158 = arith.constant 0 : index
    %c0_159 = arith.constant 0 : index
    %121 = vector.load %arg21[%c0_156, %c1_157, %c0_158, %c0_159] : memref<1x18x32x128xbf16, #tpu.memory_space<vmem>>, vector<1x16x16x128xbf16>
    %122 = vector.shape_cast %121 : vector<1x16x16x128xbf16> to vector<256x128xbf16>
    %c1_160 = arith.constant 1 : index
    %c0_161 = arith.constant 0 : index
    %c0_162 = arith.constant 0 : index
    %c0_163 = arith.constant 0 : index
    %123 = vector.load %arg10[%c1_160, %c0_161, %c0_162, %c0_163] : memref<3x3x128x128xbf16, #tpu.memory_space<vmem>>, vector<1x1x128x128xbf16>
    %124 = vector.shape_cast %123 : vector<1x1x128x128xbf16> to vector<128x128xbf16>
    %cst_164 = arith.constant dense<0.000000e+00> : vector<256x128xf32>
    %125 = tpu.matmul %122, %124, %cst_164 {dimension_numbers = #tpu.dot_dimension_numbers<[1], [0], [0], [1], [0, 0, 1, 1], [], []>} : vector<256x128xbf16>, vector<128x128xbf16>, vector<256x128xf32> -> vector<256x128xf32>
    %126 = arith.addf %120, %125 : vector<256x128xf32>
    %c0_165 = arith.constant 0 : index
    %c1_166 = arith.constant 1 : index
    %c1_167 = arith.constant 1 : index
    %c0_168 = arith.constant 0 : index
    %127 = vector.load %arg21[%c0_165, %c1_166, %c1_167, %c0_168] : memref<1x18x32x128xbf16, #tpu.memory_space<vmem>>, vector<1x16x16x128xbf16>
    %128 = vector.shape_cast %127 : vector<1x16x16x128xbf16> to vector<256x128xbf16>
    %c1_169 = arith.constant 1 : index
    %c1_170 = arith.constant 1 : index
    %c0_171 = arith.constant 0 : index
    %c0_172 = arith.constant 0 : index
    %129 = vector.load %arg10[%c1_169, %c1_170, %c0_171, %c0_172] : memref<3x3x128x128xbf16, #tpu.memory_space<vmem>>, vector<1x1x128x128xbf16>
    %130 = vector.shape_cast %129 : vector<1x1x128x128xbf16> to vector<128x128xbf16>
    %cst_173 = arith.constant dense<0.000000e+00> : vector<256x128xf32>
    %131 = tpu.matmul %128, %130, %cst_173 {dimension_numbers = #tpu.dot_dimension_numbers<[1], [0], [0], [1], [0, 0, 1, 1], [], []>} : vector<256x128xbf16>, vector<128x128xbf16>, vector<256x128xf32> -> vector<256x128xf32>
    %132 = arith.addf %126, %131 : vector<256x128xf32>
    %c0_174 = arith.constant 0 : index
    %c1_175 = arith.constant 1 : index
    %c2_176 = arith.constant 2 : index
    %c0_177 = arith.constant 0 : index
    %133 = vector.load %arg21[%c0_174, %c1_175, %c2_176, %c0_177] : memref<1x18x32x128xbf16, #tpu.memory_space<vmem>>, vector<1x16x16x128xbf16>
    %134 = vector.shape_cast %133 : vector<1x16x16x128xbf16> to vector<256x128xbf16>
    %c1_178 = arith.constant 1 : index
    %c2_179 = arith.constant 2 : index
    %c0_180 = arith.constant 0 : index
    %c0_181 = arith.constant 0 : index
    %135 = vector.load %arg10[%c1_178, %c2_179, %c0_180, %c0_181] : memref<3x3x128x128xbf16, #tpu.memory_space<vmem>>, vector<1x1x128x128xbf16>
    %136 = vector.shape_cast %135 : vector<1x1x128x128xbf16> to vector<128x128xbf16>
    %cst_182 = arith.constant dense<0.000000e+00> : vector<256x128xf32>
    %137 = tpu.matmul %134, %136, %cst_182 {dimension_numbers = #tpu.dot_dimension_numbers<[1], [0], [0], [1], [0, 0, 1, 1], [], []>} : vector<256x128xbf16>, vector<128x128xbf16>, vector<256x128xf32> -> vector<256x128xf32>
    %138 = arith.addf %132, %137 : vector<256x128xf32>
    %c0_183 = arith.constant 0 : index
    %c2_184 = arith.constant 2 : index
    %c0_185 = arith.constant 0 : index
    %c0_186 = arith.constant 0 : index
    %139 = vector.load %arg21[%c0_183, %c2_184, %c0_185, %c0_186] : memref<1x18x32x128xbf16, #tpu.memory_space<vmem>>, vector<1x16x16x128xbf16>
    %140 = vector.shape_cast %139 : vector<1x16x16x128xbf16> to vector<256x128xbf16>
    %c2_187 = arith.constant 2 : index
    %c0_188 = arith.constant 0 : index
    %c0_189 = arith.constant 0 : index
    %c0_190 = arith.constant 0 : index
    %141 = vector.load %arg10[%c2_187, %c0_188, %c0_189, %c0_190] : memref<3x3x128x128xbf16, #tpu.memory_space<vmem>>, vector<1x1x128x128xbf16>
    %142 = vector.shape_cast %141 : vector<1x1x128x128xbf16> to vector<128x128xbf16>
    %cst_191 = arith.constant dense<0.000000e+00> : vector<256x128xf32>
    %143 = tpu.matmul %140, %142, %cst_191 {dimension_numbers = #tpu.dot_dimension_numbers<[1], [0], [0], [1], [0, 0, 1, 1], [], []>} : vector<256x128xbf16>, vector<128x128xbf16>, vector<256x128xf32> -> vector<256x128xf32>
    %144 = arith.addf %138, %143 : vector<256x128xf32>
    %c0_192 = arith.constant 0 : index
    %c2_193 = arith.constant 2 : index
    %c1_194 = arith.constant 1 : index
    %c0_195 = arith.constant 0 : index
    %145 = vector.load %arg21[%c0_192, %c2_193, %c1_194, %c0_195] : memref<1x18x32x128xbf16, #tpu.memory_space<vmem>>, vector<1x16x16x128xbf16>
    %146 = vector.shape_cast %145 : vector<1x16x16x128xbf16> to vector<256x128xbf16>
    %c2_196 = arith.constant 2 : index
    %c1_197 = arith.constant 1 : index
    %c0_198 = arith.constant 0 : index
    %c0_199 = arith.constant 0 : index
    %147 = vector.load %arg10[%c2_196, %c1_197, %c0_198, %c0_199] : memref<3x3x128x128xbf16, #tpu.memory_space<vmem>>, vector<1x1x128x128xbf16>
    %148 = vector.shape_cast %147 : vector<1x1x128x128xbf16> to vector<128x128xbf16>
    %cst_200 = arith.constant dense<0.000000e+00> : vector<256x128xf32>
    %149 = tpu.matmul %146, %148, %cst_200 {dimension_numbers = #tpu.dot_dimension_numbers<[1], [0], [0], [1], [0, 0, 1, 1], [], []>} : vector<256x128xbf16>, vector<128x128xbf16>, vector<256x128xf32> -> vector<256x128xf32>
    %150 = arith.addf %144, %149 : vector<256x128xf32>
    %c0_201 = arith.constant 0 : index
    %c2_202 = arith.constant 2 : index
    %c2_203 = arith.constant 2 : index
    %c0_204 = arith.constant 0 : index
    %151 = vector.load %arg21[%c0_201, %c2_202, %c2_203, %c0_204] : memref<1x18x32x128xbf16, #tpu.memory_space<vmem>>, vector<1x16x16x128xbf16>
    %152 = vector.shape_cast %151 : vector<1x16x16x128xbf16> to vector<256x128xbf16>
    %c2_205 = arith.constant 2 : index
    %c2_206 = arith.constant 2 : index
    %c0_207 = arith.constant 0 : index
    %c0_208 = arith.constant 0 : index
    %153 = vector.load %arg10[%c2_205, %c2_206, %c0_207, %c0_208] : memref<3x3x128x128xbf16, #tpu.memory_space<vmem>>, vector<1x1x128x128xbf16>
    %154 = vector.shape_cast %153 : vector<1x1x128x128xbf16> to vector<128x128xbf16>
    %cst_209 = arith.constant dense<0.000000e+00> : vector<256x128xf32>
    %155 = tpu.matmul %152, %154, %cst_209 {dimension_numbers = #tpu.dot_dimension_numbers<[1], [0], [0], [1], [0, 0, 1, 1], [], []>} : vector<256x128xbf16>, vector<128x128xbf16>, vector<256x128xf32> -> vector<256x128xf32>
    %156 = arith.addf %150, %155 : vector<256x128xf32>
    %cst_210 = arith.constant 0.000000e+00 : f32
    %157 = vector.broadcast %cst_210 : f32 to vector<256x128xf32>
    %158 = arith.maximumf %156, %157 : vector<256x128xf32>
    %159 = arith.truncf %158 : vector<256x128xf32> to vector<256x128xbf16>
    %c0_211 = arith.constant 0 : index
    %c0_212 = arith.constant 0 : index
    %160 = vector.load %arg12[%c0_211, %c0_212] : memref<128x256xbf16, #tpu.memory_space<vmem>>, vector<128x256xbf16>
    %cst_213 = arith.constant dense<0.000000e+00> : vector<256x256xf32>
    %161 = tpu.matmul %159, %160, %cst_213 {dimension_numbers = #tpu.dot_dimension_numbers<[1], [0], [0], [1], [0, 0, 1, 1], [], []>} : vector<256x128xbf16>, vector<128x256xbf16>, vector<256x256xf32> -> vector<256x256xf32>
    %c0_214 = arith.constant 0 : index
    %c0_215 = arith.constant 0 : index
    %162 = vector.load %arg13[%c0_214, %c0_215] : memref<1x256xf32, #tpu.memory_space<vmem>>, vector<1x256xf32>
    %163 = vector.broadcast %162 : vector<1x256xf32> to vector<256x256xf32>
    %164 = arith.addf %161, %163 : vector<256x256xf32>
    %165 = arith.addf %88, %164 : vector<256x256xf32>
    %cst_216 = arith.constant 0.000000e+00 : f32
    %166 = vector.broadcast %cst_216 : f32 to vector<256x256xf32>
    %167 = arith.maximumf %165, %166 : vector<256x256xf32>
    %168 = arith.truncf %167 : vector<256x256xf32> to vector<256x256xbf16>
    %c0_217 = arith.constant 0 : index
    %c0_218 = arith.constant 0 : index
    %169 = vector.load %arg14[%c0_217, %c0_218] : memref<256x128xbf16, #tpu.memory_space<vmem>>, vector<256x128xbf16>
    %cst_219 = arith.constant dense<0.000000e+00> : vector<256x128xf32>
    %170 = tpu.matmul %168, %169, %cst_219 {dimension_numbers = #tpu.dot_dimension_numbers<[1], [0], [0], [1], [0, 0, 1, 1], [], []>} : vector<256x256xbf16>, vector<256x128xbf16>, vector<256x128xf32> -> vector<256x128xf32>
    %c0_220 = arith.constant 0 : index
    %c0_221 = arith.constant 0 : index
    %171 = vector.load %arg15[%c0_220, %c0_221] : memref<1x128xf32, #tpu.memory_space<vmem>>, vector<1x128xf32>
    %172 = vector.broadcast %171 : vector<1x128xf32> to vector<256x128xf32>
    %173 = arith.addf %170, %172 : vector<256x128xf32>
    %cst_222 = arith.constant 0.000000e+00 : f32
    %174 = vector.broadcast %cst_222 : f32 to vector<256x128xf32>
    %175 = arith.maximumf %173, %174 : vector<256x128xf32>
    %176 = arith.truncf %175 : vector<256x128xf32> to vector<256x128xbf16>
    %177 = vector.shape_cast %176 : vector<256x128xbf16> to vector<1x16x16x128xbf16>
    %c0_223 = arith.constant 0 : index
    %c1_224 = arith.constant 1 : index
    %c1_225 = arith.constant 1 : index
    %c0_226 = arith.constant 0 : index
    %178 = vector.load %arg21[%c0_223, %c1_224, %c1_225, %c0_226] : memref<1x18x32x128xbf16, #tpu.memory_space<vmem>>, vector<1x16x16x128xbf16>
    tpu.vector_store %arg21[%c0_223, %c1_224, %c1_225, %c0_226], %177 {strides = array<i32>} : memref<1x18x32x128xbf16, #tpu.memory_space<vmem>>, vector<1x16x16x128xbf16>,
    %c0_227 = arith.constant 0 : index
    %c0_228 = arith.constant 0 : index
    %179 = vector.load %arg17[%c0_227, %c0_228] : memref<1x128xf32, #tpu.memory_space<vmem>>, vector<1x128xf32>
    %180 = vector.shape_cast %179 : vector<1x128xf32> to vector<1x128xf32>
    %181 = vector.broadcast %180 : vector<1x128xf32> to vector<256x128xf32>
    %c0_229 = arith.constant 0 : index
    %c0_230 = arith.constant 0 : index
    %c0_231 = arith.constant 0 : index
    %c0_232 = arith.constant 0 : index
    %182 = vector.load %arg21[%c0_229, %c0_230, %c0_231, %c0_232] : memref<1x18x32x128xbf16, #tpu.memory_space<vmem>>, vector<1x16x16x128xbf16>
    %183 = vector.shape_cast %182 : vector<1x16x16x128xbf16> to vector<256x128xbf16>
    %c0_233 = arith.constant 0 : index
    %c0_234 = arith.constant 0 : index
    %c0_235 = arith.constant 0 : index
    %c0_236 = arith.constant 0 : index
    %184 = vector.load %arg16[%c0_233, %c0_234, %c0_235, %c0_236] : memref<3x3x128x128xbf16, #tpu.memory_space<vmem>>, vector<1x1x128x128xbf16>
    %185 = vector.shape_cast %184 : vector<1x1x128x128xbf16> to vector<128x128xbf16>
    %cst_237 = arith.constant dense<0.000000e+00> : vector<256x128xf32>
    %186 = tpu.matmul %183, %185, %cst_237 {dimension_numbers = #tpu.dot_dimension_numbers<[1], [0], [0], [1], [0, 0, 1, 1], [], []>} : vector<256x128xbf16>, vector<128x128xbf16>, vector<256x128xf32> -> vector<256x128xf32>
    %187 = arith.addf %181, %186 : vector<256x128xf32>
    %c0_238 = arith.constant 0 : index
    %c0_239 = arith.constant 0 : index
    %c1_240 = arith.constant 1 : index
    %c0_241 = arith.constant 0 : index
    %188 = vector.load %arg21[%c0_238, %c0_239, %c1_240, %c0_241] : memref<1x18x32x128xbf16, #tpu.memory_space<vmem>>, vector<1x16x16x128xbf16>
    %189 = vector.shape_cast %188 : vector<1x16x16x128xbf16> to vector<256x128xbf16>
    %c0_242 = arith.constant 0 : index
    %c1_243 = arith.constant 1 : index
    %c0_244 = arith.constant 0 : index
    %c0_245 = arith.constant 0 : index
    %190 = vector.load %arg16[%c0_242, %c1_243, %c0_244, %c0_245] : memref<3x3x128x128xbf16, #tpu.memory_space<vmem>>, vector<1x1x128x128xbf16>
    %191 = vector.shape_cast %190 : vector<1x1x128x128xbf16> to vector<128x128xbf16>
    %cst_246 = arith.constant dense<0.000000e+00> : vector<256x128xf32>
    %192 = tpu.matmul %189, %191, %cst_246 {dimension_numbers = #tpu.dot_dimension_numbers<[1], [0], [0], [1], [0, 0, 1, 1], [], []>} : vector<256x128xbf16>, vector<128x128xbf16>, vector<256x128xf32> -> vector<256x128xf32>
    %193 = arith.addf %187, %192 : vector<256x128xf32>
    %c0_247 = arith.constant 0 : index
    %c0_248 = arith.constant 0 : index
    %c2_249 = arith.constant 2 : index
    %c0_250 = arith.constant 0 : index
    %194 = vector.load %arg21[%c0_247, %c0_248, %c2_249, %c0_250] : memref<1x18x32x128xbf16, #tpu.memory_space<vmem>>, vector<1x16x16x128xbf16>
    %195 = vector.shape_cast %194 : vector<1x16x16x128xbf16> to vector<256x128xbf16>
    %c0_251 = arith.constant 0 : index
    %c2_252 = arith.constant 2 : index
    %c0_253 = arith.constant 0 : index
    %c0_254 = arith.constant 0 : index
    %196 = vector.load %arg16[%c0_251, %c2_252, %c0_253, %c0_254] : memref<3x3x128x128xbf16, #tpu.memory_space<vmem>>, vector<1x1x128x128xbf16>
    %197 = vector.shape_cast %196 : vector<1x1x128x128xbf16> to vector<128x128xbf16>
    %cst_255 = arith.constant dense<0.000000e+00> : vector<256x128xf32>
    %198 = tpu.matmul %195, %197, %cst_255 {dimension_numbers = #tpu.dot_dimension_numbers<[1], [0], [0], [1], [0, 0, 1, 1], [], []>} : vector<256x128xbf16>, vector<128x128xbf16>, vector<256x128xf32> -> vector<256x128xf32>
    %199 = arith.addf %193, %198 : vector<256x128xf32>
    %c0_256 = arith.constant 0 : index
    %c1_257 = arith.constant 1 : index
    %c0_258 = arith.constant 0 : index
    %c0_259 = arith.constant 0 : index
    %200 = vector.load %arg21[%c0_256, %c1_257, %c0_258, %c0_259] : memref<1x18x32x128xbf16, #tpu.memory_space<vmem>>, vector<1x16x16x128xbf16>
    %201 = vector.shape_cast %200 : vector<1x16x16x128xbf16> to vector<256x128xbf16>
    %c1_260 = arith.constant 1 : index
    %c0_261 = arith.constant 0 : index
    %c0_262 = arith.constant 0 : index
    %c0_263 = arith.constant 0 : index
    %202 = vector.load %arg16[%c1_260, %c0_261, %c0_262, %c0_263] : memref<3x3x128x128xbf16, #tpu.memory_space<vmem>>, vector<1x1x128x128xbf16>
    %203 = vector.shape_cast %202 : vector<1x1x128x128xbf16> to vector<128x128xbf16>
    %cst_264 = arith.constant dense<0.000000e+00> : vector<256x128xf32>
    %204 = tpu.matmul %201, %203, %cst_264 {dimension_numbers = #tpu.dot_dimension_numbers<[1], [0], [0], [1], [0, 0, 1, 1], [], []>} : vector<256x128xbf16>, vector<128x128xbf16>, vector<256x128xf32> -> vector<256x128xf32>
    %205 = arith.addf %199, %204 : vector<256x128xf32>
    %c0_265 = arith.constant 0 : index
    %c1_266 = arith.constant 1 : index
    %c1_267 = arith.constant 1 : index
    %c0_268 = arith.constant 0 : index
    %206 = vector.load %arg21[%c0_265, %c1_266, %c1_267, %c0_268] : memref<1x18x32x128xbf16, #tpu.memory_space<vmem>>, vector<1x16x16x128xbf16>
    %207 = vector.shape_cast %206 : vector<1x16x16x128xbf16> to vector<256x128xbf16>
    %c1_269 = arith.constant 1 : index
    %c1_270 = arith.constant 1 : index
    %c0_271 = arith.constant 0 : index
    %c0_272 = arith.constant 0 : index
    %208 = vector.load %arg16[%c1_269, %c1_270, %c0_271, %c0_272] : memref<3x3x128x128xbf16, #tpu.memory_space<vmem>>, vector<1x1x128x128xbf16>
    %209 = vector.shape_cast %208 : vector<1x1x128x128xbf16> to vector<128x128xbf16>
    %cst_273 = arith.constant dense<0.000000e+00> : vector<256x128xf32>
    %210 = tpu.matmul %207, %209, %cst_273 {dimension_numbers = #tpu.dot_dimension_numbers<[1], [0], [0], [1], [0, 0, 1, 1], [], []>} : vector<256x128xbf16>, vector<128x128xbf16>, vector<256x128xf32> -> vector<256x128xf32>
    %211 = arith.addf %205, %210 : vector<256x128xf32>
    %c0_274 = arith.constant 0 : index
    %c1_275 = arith.constant 1 : index
    %c2_276 = arith.constant 2 : index
    %c0_277 = arith.constant 0 : index
    %212 = vector.load %arg21[%c0_274, %c1_275, %c2_276, %c0_277] : memref<1x18x32x128xbf16, #tpu.memory_space<vmem>>, vector<1x16x16x128xbf16>
    %213 = vector.shape_cast %212 : vector<1x16x16x128xbf16> to vector<256x128xbf16>
    %c1_278 = arith.constant 1 : index
    %c2_279 = arith.constant 2 : index
    %c0_280 = arith.constant 0 : index
    %c0_281 = arith.constant 0 : index
    %214 = vector.load %arg16[%c1_278, %c2_279, %c0_280, %c0_281] : memref<3x3x128x128xbf16, #tpu.memory_space<vmem>>, vector<1x1x128x128xbf16>
    %215 = vector.shape_cast %214 : vector<1x1x128x128xbf16> to vector<128x128xbf16>
    %cst_282 = arith.constant dense<0.000000e+00> : vector<256x128xf32>
    %216 = tpu.matmul %213, %215, %cst_282 {dimension_numbers = #tpu.dot_dimension_numbers<[1], [0], [0], [1], [0, 0, 1, 1], [], []>} : vector<256x128xbf16>, vector<128x128xbf16>, vector<256x128xf32> -> vector<256x128xf32>
    %217 = arith.addf %211, %216 : vector<256x128xf32>
    %c0_283 = arith.constant 0 : index
    %c2_284 = arith.constant 2 : index
    %c0_285 = arith.constant 0 : index
    %c0_286 = arith.constant 0 : index
    %218 = vector.load %arg21[%c0_283, %c2_284, %c0_285, %c0_286] : memref<1x18x32x128xbf16, #tpu.memory_space<vmem>>, vector<1x16x16x128xbf16>
    %219 = vector.shape_cast %218 : vector<1x16x16x128xbf16> to vector<256x128xbf16>
    %c2_287 = arith.constant 2 : index
    %c0_288 = arith.constant 0 : index
    %c0_289 = arith.constant 0 : index
    %c0_290 = arith.constant 0 : index
    %220 = vector.load %arg16[%c2_287, %c0_288, %c0_289, %c0_290] : memref<3x3x128x128xbf16, #tpu.memory_space<vmem>>, vector<1x1x128x128xbf16>
    %221 = vector.shape_cast %220 : vector<1x1x128x128xbf16> to vector<128x128xbf16>
    %cst_291 = arith.constant dense<0.000000e+00> : vector<256x128xf32>
    %222 = tpu.matmul %219, %221, %cst_291 {dimension_numbers = #tpu.dot_dimension_numbers<[1], [0], [0], [1], [0, 0, 1, 1], [], []>} : vector<256x128xbf16>, vector<128x128xbf16>, vector<256x128xf32> -> vector<256x128xf32>
    %223 = arith.addf %217, %222 : vector<256x128xf32>
    %c0_292 = arith.constant 0 : index
    %c2_293 = arith.constant 2 : index
    %c1_294 = arith.constant 1 : index
    %c0_295 = arith.constant 0 : index
    %224 = vector.load %arg21[%c0_292, %c2_293, %c1_294, %c0_295] : memref<1x18x32x128xbf16, #tpu.memory_space<vmem>>, vector<1x16x16x128xbf16>
    %225 = vector.shape_cast %224 : vector<1x16x16x128xbf16> to vector<256x128xbf16>
    %c2_296 = arith.constant 2 : index
    %c1_297 = arith.constant 1 : index
    %c0_298 = arith.constant 0 : index
    %c0_299 = arith.constant 0 : index
    %226 = vector.load %arg16[%c2_296, %c1_297, %c0_298, %c0_299] : memref<3x3x128x128xbf16, #tpu.memory_space<vmem>>, vector<1x1x128x128xbf16>
    %227 = vector.shape_cast %226 : vector<1x1x128x128xbf16> to vector<128x128xbf16>
    %cst_300 = arith.constant dense<0.000000e+00> : vector<256x128xf32>
    %228 = tpu.matmul %225, %227, %cst_300 {dimension_numbers = #tpu.dot_dimension_numbers<[1], [0], [0], [1], [0, 0, 1, 1], [], []>} : vector<256x128xbf16>, vector<128x128xbf16>, vector<256x128xf32> -> vector<256x128xf32>
    %229 = arith.addf %223, %228 : vector<256x128xf32>
    %c0_301 = arith.constant 0 : index
    %c2_302 = arith.constant 2 : index
    %c2_303 = arith.constant 2 : index
    %c0_304 = arith.constant 0 : index
    %230 = vector.load %arg21[%c0_301, %c2_302, %c2_303, %c0_304] : memref<1x18x32x128xbf16, #tpu.memory_space<vmem>>, vector<1x16x16x128xbf16>
    %231 = vector.shape_cast %230 : vector<1x16x16x128xbf16> to vector<256x128xbf16>
    %c2_305 = arith.constant 2 : index
    %c2_306 = arith.constant 2 : index
    %c0_307 = arith.constant 0 : index
    %c0_308 = arith.constant 0 : index
    %232 = vector.load %arg16[%c2_305, %c2_306, %c0_307, %c0_308] : memref<3x3x128x128xbf16, #tpu.memory_space<vmem>>, vector<1x1x128x128xbf16>
    %233 = vector.shape_cast %232 : vector<1x1x128x128xbf16> to vector<128x128xbf16>
    %cst_309 = arith.constant dense<0.000000e+00> : vector<256x128xf32>
    %234 = tpu.matmul %231, %233, %cst_309 {dimension_numbers = #tpu.dot_dimension_numbers<[1], [0], [0], [1], [0, 0, 1, 1], [], []>} : vector<256x128xbf16>, vector<128x128xbf16>, vector<256x128xf32> -> vector<256x128xf32>
    %235 = arith.addf %229, %234 : vector<256x128xf32>
    %cst_310 = arith.constant 0.000000e+00 : f32
    %236 = vector.broadcast %cst_310 : f32 to vector<256x128xf32>
    %237 = arith.maximumf %235, %236 : vector<256x128xf32>
    %238 = arith.truncf %237 : vector<256x128xf32> to vector<256x128xbf16>
    %c0_311 = arith.constant 0 : index
    %c0_312 = arith.constant 0 : index
    %239 = vector.load %arg18[%c0_311, %c0_312] : memref<128x256xbf16, #tpu.memory_space<vmem>>, vector<128x256xbf16>
    %cst_313 = arith.constant dense<0.000000e+00> : vector<256x256xf32>
    %240 = tpu.matmul %238, %239, %cst_313 {dimension_numbers = #tpu.dot_dimension_numbers<[1], [0], [0], [1], [0, 0, 1, 1], [], []>} : vector<256x128xbf16>, vector<128x256xbf16>, vector<256x256xf32> -> vector<256x256xf32>
    %c0_314 = arith.constant 0 : index
    %c0_315 = arith.constant 0 : index
    %241 = vector.load %arg19[%c0_314, %c0_315] : memref<1x256xf32, #tpu.memory_space<vmem>>, vector<1x256xf32>
    %242 = vector.broadcast %241 : vector<1x256xf32> to vector<256x256xf32>
    %243 = arith.addf %240, %242 : vector<256x256xf32>
    %244 = arith.addf %167, %243 : vector<256x256xf32>
    %cst_316 = arith.constant 0.000000e+00 : f32
    %245 = vector.broadcast %cst_316 : f32 to vector<256x256xf32>
    %246 = arith.maximumf %244, %245 : vector<256x256xf32>
    %247 = vector.shape_cast %246 : vector<256x256xf32> to vector<1x16x16x256xf32>
    %c0_317 = arith.constant 0 : index
    %c0_318 = arith.constant 0 : index
    %c0_319 = arith.constant 0 : index
    %c0_320 = arith.constant 0 : index
    %248 = vector.load %arg20[%c0_317, %c0_318, %c0_319, %c0_320] : memref<1x16x16x256xf32, #tpu.memory_space<vmem>>, vector<1x16x16x256xf32>
    tpu.vector_store %arg20[%c0_317, %c0_318, %c0_319, %c0_320], %247 {strides = array<i32>} : memref<1x16x16x256xf32, #tpu.memory_space<vmem>>, vector<1x16x16x256xf32>,
    return
  }
  func.func @transform_0(%arg0: i32) -> (i32, i32, i32, i32) {
    %c0_i32 = arith.constant 0 : i32
    %c0_i32_0 = arith.constant 0 : i32
    %c0_i32_1 = arith.constant 0 : i32
    %c0_i32_2 = arith.constant 0 : i32
    return %arg0, %c0_i32, %c0_i32_0, %c0_i32_1 : i32, i32, i32, i32
  }
  func.func @transform_1(%arg0: i32) -> (i32, i32) {
    %c0_i32 = arith.constant 0 : i32
    %c0_i32_0 = arith.constant 0 : i32
    %c0_i32_1 = arith.constant 0 : i32
    return %c0_i32, %c0_i32_0 : i32, i32
  }
  func.func @transform_2(%arg0: i32) -> (i32, i32) {
    %c0_i32 = arith.constant 0 : i32
    %c0_i32_0 = arith.constant 0 : i32
    %c0_i32_1 = arith.constant 0 : i32
    return %c0_i32, %c0_i32_0 : i32, i32
  }
  func.func @transform_3(%arg0: i32) -> (i32, i32, i32, i32) {
    %c0_i32 = arith.constant 0 : i32
    %c0_i32_0 = arith.constant 0 : i32
    %c0_i32_1 = arith.constant 0 : i32
    %c0_i32_2 = arith.constant 0 : i32
    %c0_i32_3 = arith.constant 0 : i32
    return %c0_i32, %c0_i32_0, %c0_i32_1, %c0_i32_2 : i32, i32, i32, i32
  }
  func.func @transform_4(%arg0: i32) -> (i32, i32) {
    %c0_i32 = arith.constant 0 : i32
    %c0_i32_0 = arith.constant 0 : i32
    %c0_i32_1 = arith.constant 0 : i32
    return %c0_i32, %c0_i32_0 : i32, i32
  }
  func.func @transform_5(%arg0: i32) -> (i32, i32) {
    %c0_i32 = arith.constant 0 : i32
    %c0_i32_0 = arith.constant 0 : i32
    %c0_i32_1 = arith.constant 0 : i32
    return %c0_i32, %c0_i32_0 : i32, i32
  }
  func.func @transform_6(%arg0: i32) -> (i32, i32) {
    %c0_i32 = arith.constant 0 : i32
    %c0_i32_0 = arith.constant 0 : i32
    %c0_i32_1 = arith.constant 0 : i32
    return %c0_i32, %c0_i32_0 : i32, i32
  }
  func.func @transform_7(%arg0: i32) -> (i32, i32) {
    %c0_i32 = arith.constant 0 : i32
    %c0_i32_0 = arith.constant 0 : i32
    %c0_i32_1 = arith.constant 0 : i32
    return %c0_i32, %c0_i32_0 : i32, i32
  }
  func.func @transform_8(%arg0: i32) -> (i32, i32) {
    %c0_i32 = arith.constant 0 : i32
    %c0_i32_0 = arith.constant 0 : i32
    %c0_i32_1 = arith.constant 0 : i32
    return %c0_i32, %c0_i32_0 : i32, i32
  }
  func.func @transform_9(%arg0: i32) -> (i32, i32, i32, i32) {
    %c0_i32 = arith.constant 0 : i32
    %c0_i32_0 = arith.constant 0 : i32
    %c0_i32_1 = arith.constant 0 : i32
    %c0_i32_2 = arith.constant 0 : i32
    %c0_i32_3 = arith.constant 0 : i32
    return %c0_i32, %c0_i32_0, %c0_i32_1, %c0_i32_2 : i32, i32, i32, i32
  }
  func.func @transform_10(%arg0: i32) -> (i32, i32) {
    %c0_i32 = arith.constant 0 : i32
    %c0_i32_0 = arith.constant 0 : i32
    %c0_i32_1 = arith.constant 0 : i32
    return %c0_i32, %c0_i32_0 : i32, i32
  }
  func.func @transform_11(%arg0: i32) -> (i32, i32) {
    %c0_i32 = arith.constant 0 : i32
    %c0_i32_0 = arith.constant 0 : i32
    %c0_i32_1 = arith.constant 0 : i32
    return %c0_i32, %c0_i32_0 : i32, i32
  }
  func.func @transform_12(%arg0: i32) -> (i32, i32) {
    %c0_i32 = arith.constant 0 : i32
    %c0_i32_0 = arith.constant 0 : i32
    %c0_i32_1 = arith.constant 0 : i32
    return %c0_i32, %c0_i32_0 : i32, i32
  }
  func.func @transform_13(%arg0: i32) -> (i32, i32) {
    %c0_i32 = arith.constant 0 : i32
    %c0_i32_0 = arith.constant 0 : i32
    %c0_i32_1 = arith.constant 0 : i32
    return %c0_i32, %c0_i32_0 : i32, i32
  }
  func.func @transform_14(%arg0: i32) -> (i32, i32) {
    %c0_i32 = arith.constant 0 : i32
    %c0_i32_0 = arith.constant 0 : i32
    %c0_i32_1 = arith.constant 0 : i32
    return %c0_i32, %c0_i32_0 : i32, i32
  }
  func.func @transform_15(%arg0: i32) -> (i32, i32, i32, i32) {
    %c0_i32 = arith.constant 0 : i32
    %c0_i32_0 = arith.constant 0 : i32
    %c0_i32_1 = arith.constant 0 : i32
    %c0_i32_2 = arith.constant 0 : i32
    %c0_i32_3 = arith.constant 0 : i32
    return %c0_i32, %c0_i32_0, %c0_i32_1, %c0_i32_2 : i32, i32, i32, i32
  }
  func.func @transform_16(%arg0: i32) -> (i32, i32) {
    %c0_i32 = arith.constant 0 : i32
    %c0_i32_0 = arith.constant 0 : i32
    %c0_i32_1 = arith.constant 0 : i32
    return %c0_i32, %c0_i32_0 : i32, i32
  }
  func.func @transform_17(%arg0: i32) -> (i32, i32) {
    %c0_i32 = arith.constant 0 : i32
    %c0_i32_0 = arith.constant 0 : i32
    %c0_i32_1 = arith.constant 0 : i32
    return %c0_i32, %c0_i32_0 : i32, i32
  }
  func.func @transform_18(%arg0: i32) -> (i32, i32) {
    %c0_i32 = arith.constant 0 : i32
    %c0_i32_0 = arith.constant 0 : i32
    %c0_i32_1 = arith.constant 0 : i32
    return %c0_i32, %c0_i32_0 : i32, i32
  }
  func.func @transform_19(%arg0: i32) -> (i32, i32, i32, i32) {
    %c0_i32 = arith.constant 0 : i32
    %c0_i32_0 = arith.constant 0 : i32
    %c0_i32_1 = arith.constant 0 : i32
    %c0_i32_2 = arith.constant 0 : i32
    return %arg0, %c0_i32, %c0_i32_0, %c0_i32_1 : i32, i32, i32, i32
  }
}

</mosaic_0001>

<bundles_post_ra>
// kernel: stage1_forward.1
= control target key start
LH: loop header
LB: loop body
LE: loop exit
PB: predicated region body
PF: predicated region fallthrough
CT: control target
= control target key end

     0   :  { %s23537_s0 = inlined_call_operand.vmem [shape: f32[2,16,16,128], index: 0, kind: input, shape index: {}]   ;;  %s23538_s1 = inlined_call_operand.vmem [shape: bf16[128,384], index: 1, kind: input, shape index: {}]   ;;  %s23539_s2 = inlined_call_operand.vmem [shape: f32[1,384], index: 2, kind: input, shape index: {}]   ;;  %s23540_s3 = inlined_call_operand.vmem [shape: bf16[3,3,128,128], index: 3, kind: input, shape index: {}]   ;;  %s23541_s4 = inlined_call_operand.vmem [shape: f32[1,128], index: 4, kind: input, shape index: {}]   ;;  %s23542_s5 = inlined_call_operand.vmem [shape: bf16[128,256], index: 5, kind: input, shape index: {}]   ;;  %s23543_s6 = inlined_call_operand.vmem [shape: f32[1,256], index: 6, kind: input, shape index: {}]   ;;  %s23544_s7 = inlined_call_operand.vmem [shape: bf16[256,128], index: 7, kind: input, shape index: {}]   ;;  %s23545_s8 = inlined_call_operand.vmem [shape: f32[1,128], index: 8, kind: input, shape index: {}]   ;;  %s23546_s9 = inlined_call_operand.hbm [shape: bf16[3,3,128,128], index: 9, kind: input, shape index: {}]   ;;  %s23547_s10 = inlined_call_operand.vmem [shape: f32[1,128], index: 10, kind: input, shape index: {}]   ;;  %s23548_s11 = inlined_call_operand.hbm [shape: bf16[128,256], index: 11, kind: input, shape index: {}]   ;;  %s23549_s12 = inlined_call_operand.vmem [shape: f32[1,256], index: 12, kind: input, shape index: {}]   ;;  %s23550_s13 = inlined_call_operand.hbm [shape: bf16[256,128], index: 13, kind: input, shape index: {}]   ;;  %s23551_s14 = inlined_call_operand.vmem [shape: f32[1,128], index: 14, kind: input, shape index: {}]   ;;  %s23552_s15 = inlined_call_operand.hbm [shape: bf16[3,3,128,128], index: 15, kind: input, shape index: {}]   ;;  %s23553_s16 = inlined_call_operand.vmem [shape: f32[1,128], index: 16, kind: input, shape index: {}]   ;;  %s23554_s17 = inlined_call_operand.hbm [shape: bf16[128,256], index: 17, kind: input, shape index: {}]   ;;  %s23555_s18 = inlined_call_operand.vmem [shape: f32[1,256], index: 18, kind: input, shape index: {}]   ;;  %s23556_s19 = inlined_call_operand.hbm [shape: f32[2,16,16,256], index: 19, kind: output, shape index: {}]  }
   0x1   :  { %23830 = sst [smem:[#allocation87_spill]] %s23537_s0 }
   0x2   :  { %23831 = sst [smem:[#allocation88_spill]] %s23538_s1 }
   0x3   :  { %23832 = sst [smem:[#allocation89_spill]] %s23539_s2 }
   0x4   :  { %23833 = sst [smem:[#allocation90_spill]] %s23540_s3 }
   0x5   :  { %23834 = sst [smem:[#allocation91_spill]] %s23551_s14 }
   0x6   :  { %23835 = sst [smem:[#allocation92_spill]] %s23553_s16 }
   0x7   :  { %23836 = sst [smem:[#allocation93_spill]] %s23555_s18 }
   0x8   :  { %23837 = sst [smem:[#allocation94_spill]] %s23556_s19 }
   0x9   :  { %24 = vsyncpa [#allocation4], 0 }
   0xa   :  { %25 = vsyncpa [#allocation7], 0 }
   0xb   :  { %26 = vsyncpa [#allocation10], 0 }
   0xc   :  { %27 = vsyncpa [#allocation5], 0 }
   0xd   :  { %29 = vsyncpa [#allocation5 + $0x1], 0  ;;  %s19171_s0 = smov 0   ;;  %s19173_s30 = smov 0  }
   0xe   :  { %s19175_s20 = smov 0   ;;  %s19177_s21 = smov 0  }
   0xf LB: > { %23838 = sst [smem:[#allocation17_spill]] %s19044_s0  ;;  %s19192_s1 = sadd.s32 4294967295, %s19056_s21   ;;  %s19056_s21 = sphi %s19177_s21, %s24348_s21   ;;  %s19052_s20 = sphi %s19175_s20, %s24351_s20   ;;  %s19048_s30 = sphi %s19173_s30, %s24350_s30   ;;  %s19044_s0 = sphi %s19171_s0, %s24349_s0  }
  0x10   : > { %23839 = sst [smem:[#allocation18_spill]] %s19048_s30  ;;  %s14801_s22 = sadd.s32 4294967294, %s19056_s21  }
  0x11   : > { %23840 = sst [smem:[#allocation19_spill]] %s19052_s20  ;;  %s19196_s2 = sadd.s32 1, %s19056_s21  }
  0x12   : > { %23841 = sst [smem:[#allocation20_spill]] %s19056_s21  ;;  %s446_s23 = sadd.s32 1, %s19052_s20 }
  0x13   : > { %23842 = sst [smem:[#allocation21_spill]] %s19196_s2  ;;  %s443_s24 = ssub.s32 %s19056_s21, %s19196_s2 }
  0x14   : > { %p456_p0 = scmp.ne.s32.totalorder %s19052_s20, %s19048_s30  ;;  %p444_p1 = scmp.eq.s32.totalorder %s443_s24, 0 }
  0x15   : > { %p457_p2 = scmp.eq.s32.totalorder %s19192_s1, 1  ;;  %p462_p3 = scmp.ne.s32.totalorder %s19048_s30, %s19044_s0 }
  0x16   : > { %p463_p4 = scmp.eq.s32.totalorder %s14801_s22, 1  ;;  %p14802_p7 = scmp.ge.s32.totalorder %s19056_s21, 1 }
  0x17   : > { %s19207_s25 = scalar_select %p444_p1, %s19052_s20, %s446_s23  }
  0x18   : > { %p19209_p5 = por %p457_p2, %p456_p0  ;;  %p19213_p6 = por %p463_p4, %p462_p3 }
  0x19   : > { %23843 = sst [smem:[#allocation22_spill]] %s19207_s25  ;;  %p470_p8 = scmp.lt.s32.totalorder %s19056_s21, 3 }
  0x1a   : > { %s23844_s3 = scalar_select %p19209_p5, 1, 0 }
  0x1b   : > { %s23846_s26 = scalar_select %p19213_p6, 1, 0 }
  0x1c   : > { %23845 = sst [smem:[#allocation23_spill]] %s23844_s3  ;;  %p23567_p9 = scmp.eq.s32.totalorder %s19192_s1, 0 }
  0x1d   : > { %23847 = sst [smem:[#allocation24_spill]] %s23846_s26  ;;  %p19220_p10 = pnand %p14802_p7, %p470_p8 }
  0x1e   : > { %s19058_s28 = smov [#allocation6]   ;;  %s19059_s23 = smov [#allocation9]  }
  0x1f   : > { %s23848_s27 = scalar_select %p19220_p10, 1, 0 }
  0x20   : > { %s522_s29 = sshll.u32 %s19058_s28, 4  ;;  %p18404_p11 = pneg %p19220_p10  ;;  %s523_s29 = int_to_ptr.vmem [resolvable:$true] %s522_s29 }
  0x21   : > { %s554_s24 = sshll.u32 %s19059_s23, 4  ;;  %s18842_s2 = scalar_lea.hbm %s23548_s11, 2048  ;;  %s555_s24 = int_to_ptr.vmem [resolvable:$true] %s554_s24 }
  0x22   : > { %p19228_p12 = pnand %p23567_p9, %p18404_p11  ;;  %p18843_p13 = scmp.ne.s32.totalorder %s23548_s11, %s18842_s2 }
  0x23   : > { %p18849_p3 = scmp.lt.u32.totalorder %s18842_s2, %s23548_s11 }
  0x24   : > { %p19240_p0 = pneg %p19228_p12 }
  0x26   : > { %p18845_p1 = pnand %p19240_p0, %p18843_p13 }
  0x28   : > { %p18846_p2 = pneg %p18845_p1 }
  0x2a   : > { %p18851_p4 = pnand %p18849_p3, %p18846_p2 }
  0x2c   : > { %18854 = shalt.err (!%p18851_p4)
}
  0x2d   : > { %s18855_s20 = scalar_lea.vmem %s523_s29, 2048  ;;  %p18863_p9 = scmp.lt.s32.totalorder %s523_s29, %s523_s29 }
  0x2e   : > { %p18856_p7 = scmp.ne.s32.totalorder %s523_s29, %s18855_s20  ;;  %p18864_p6 = scmp.lt.s32.totalorder %s18855_s20, %s18855_s20 }
  0x30   : > { %p18858_p8 = pnand %p18856_p7, %p19240_p0  ;;  %p18865_p5 = por %p18864_p6, %p18863_p9 }
  0x32   : > { %p18859_p11 = pneg %p18858_p8 }
  0x34   : > { %p18866_p10 = pnand %p18865_p5, %p18859_p11 }
  0x36   : > { %18869 = shalt.err (!%p18866_p10)
}
  0x37   : > { %s23574_s0 = smov 128   ;;  %s23575_s25 = smov 8  }
  0x38   : > { %18410 = dma.hbm_to_vmem [thread:$0]  (!%p19228_p12), %s23548_s11, 2048, %s523_s29, [#allocation7], %s23574_s0, %s23574_s0, %s23575_s25  }
  0x39   : > { %s19062_s2 = smov [#allocation3]   ;;  %s18870_s3 = scalar_lea.hbm %s23552_s15, 9216 }
  0x3a   : > { %s506_s26 = sshll.u32 %s19062_s2, 4  ;;  %p18871_p5 = scmp.ne.s32.totalorder %s23552_s15, %s18870_s3  ;;  %s507_s26 = int_to_ptr.vmem [resolvable:$true] %s506_s26 }
  0x3b   : > { %p18877_p10 = scmp.lt.u32.totalorder %s18870_s3, %s23552_s15 }
  0x3c   : > { %p18873_p6 = pnand %p18871_p5, %p19240_p0 }
  0x3e   : > { %p18874_p9 = pneg %p18873_p6 }
  0x40   : > { %p18879_p13 = pnand %p18877_p10, %p18874_p9 }
  0x42   : > { %18882 = shalt.err (!%p18879_p13)
}
  0x43   : > { %s18883_s29 = scalar_lea.vmem %s555_s24, 9216  ;;  %p18891_p4 = scmp.lt.s32.totalorder %s555_s24, %s555_s24 }
  0x44   : > { %p18884_p1 = scmp.ne.s32.totalorder %s555_s24, %s18883_s29  ;;  %p18892_p7 = scmp.lt.s32.totalorder %s18883_s29, %s18883_s29 }
  0x46   : > { %p18886_p2 = pnand %p18884_p1, %p19240_p0  ;;  %p18893_p8 = por %p18892_p7, %p18891_p4 }
  0x48   : > { %p18887_p3 = pneg %p18886_p2 }
  0x4a   : > { %p18894_p11 = pnand %p18893_p8, %p18887_p3 }
  0x4c   : > { %18897 = shalt.err (!%p18894_p11)
}
  0x4d   : > { %s19063_s18 = smov 64   ;;  %s19064_s30 = smov 4  }
  0x4e   : > { %18416 = dma.hbm_to_vmem [thread:$0]  (!%p19228_p12), %s23552_s15, 9216, %s555_s24, [#allocation10], %s19063_s18, %s19063_s18, %s19064_s30  }
  0x4f   : > { %s18898_s21 = scalar_lea.hbm %s23546_s9, 9216 }
  0x50   : > { %p18899_p5 = scmp.ne.s32.totalorder %s23546_s9, %s18898_s21  ;;  %p18905_p10 = scmp.lt.u32.totalorder %s18898_s21, %s23546_s9 }
  0x52   : > { %p18901_p6 = pnand %p18899_p5, %p19240_p0 }
  0x54   : > { %p18902_p9 = pneg %p18901_p6 }
  0x56   : > { %p18907_p13 = pnand %p18905_p10, %p18902_p9 }
  0x58   : > { %18910 = shalt.err (!%p18907_p13)
}
  0x59   : > { %s18911_s14 = scalar_lea.vmem %s507_s26, 9216  ;;  %p18919_p4 = scmp.lt.s32.totalorder %s507_s26, %s507_s26 }
  0x5a   : > { %p18912_p1 = scmp.ne.s32.totalorder %s507_s26, %s18911_s14  ;;  %p18920_p7 = scmp.lt.s32.totalorder %s18911_s14, %s18911_s14 }
  0x5c   : > { %p18914_p2 = pnand %p18912_p1, %p19240_p0  ;;  %p18921_p8 = por %p18920_p7, %p18919_p4 }
  0x5e   : > { %p18915_p3 = pneg %p18914_p2 }
  0x60   : > { %p18922_p11 = pnand %p18921_p8, %p18915_p3 }
  0x62   : > { %18925 = shalt.err (!%p18922_p11)
}
  0x63   : > { %18407 = dma.hbm_to_vmem [thread:$0]  (!%p19228_p12), %s23546_s9, 9216, %s507_s26, [#allocation4], %s19063_s18, %s19063_s18, %s19064_s30  }
  0x64   : > { %s19065_s3 = smov [#allocation8]   ;;  %s19066_s21 = smov [#allocation11]  }
  0x65   : > { %s538_s19 = sshll.u32 %s19065_s3, 4  ;;  %s570_s2 = sshll.u32 %s19066_s21, 4  ;;  %s539_s19 = int_to_ptr.vmem [resolvable:$true] %s538_s19  ;;  %s571_s2 = int_to_ptr.vmem [resolvable:$true] %s570_s2 }
  0x66   : > { %s18926_s29 = scalar_lea.hbm %s23550_s13, 2048 }
  0x67   : > { %p18927_p5 = scmp.ne.s32.totalorder %s23550_s13, %s18926_s29  ;;  %p18933_p10 = scmp.lt.u32.totalorder %s18926_s29, %s23550_s13 }
  0x69   : > { %p18929_p6 = pnand %p18927_p5, %p19240_p0 }
  0x6b   : > { %p18930_p9 = pneg %p18929_p6 }
  0x6d   : > { %p18935_p13 = pnand %p18933_p10, %p18930_p9 }
  0x6f   : > { %18938 = shalt.err (!%p18935_p13)
}
  0x70   : > { %s18939_s26 = scalar_lea.vmem %s539_s19, 2048  ;;  %p18947_p4 = scmp.lt.s32.totalorder %s539_s19, %s539_s19 }
  0x71   : > { %p18940_p1 = scmp.ne.s32.totalorder %s539_s19, %s18939_s26  ;;  %p18948_p7 = scmp.lt.s32.totalorder %s18939_s26, %s18939_s26 }
  0x73   : > { %p18942_p2 = pnand %p18940_p1, %p19240_p0  ;;  %p18949_p8 = por %p18948_p7, %p18947_p4 }
  0x75   : > { %p18943_p3 = pneg %p18942_p2 }
  0x77   : > { %p18950_p11 = pnand %p18949_p8, %p18943_p3 }
  0x79   : > { %18953 = shalt.err (!%p18950_p11)
}
  0x7a   : > { %18413 = dma.hbm_to_vmem [thread:$0]  (!%p19228_p12), %s23550_s13, 2048, %s539_s19, [#allocation7], %s19063_s18, %s19063_s18, %s19064_s30  }
  0x7b   : > { %s18954_s21 = scalar_lea.hbm %s23554_s17, 2048 }
  0x7c   : > { %p18955_p5 = scmp.ne.s32.totalorder %s23554_s17, %s18954_s21  ;;  %p18961_p10 = scmp.lt.u32.totalorder %s18954_s21, %s23554_s17 }
  0x7e   : > { %p18957_p6 = pnand %p18955_p5, %p19240_p0 }
  0x80   : > { %p18958_p9 = pneg %p18957_p6 }
  0x82   : > { %p18963_p13 = pnand %p18961_p10, %p18958_p9 }
  0x84   : > { %18966 = shalt.err (!%p18963_p13)
}
  0x85   : > { %s18967_s24 = scalar_lea.vmem %s571_s2, 2048  ;;  %p18975_p4 = scmp.lt.s32.totalorder %s571_s2, %s571_s2 }
  0x86   : > { %p18968_p1 = scmp.ne.s32.totalorder %s571_s2, %s18967_s24  ;;  %p18976_p7 = scmp.lt.s32.totalorder %s18967_s24, %s18967_s24 }
  0x88   : > { %p18970_p2 = pnand %p18968_p1, %p19240_p0  ;;  %p18977_p8 = por %p18976_p7, %p18975_p4 }
  0x8a   : > { %p18971_p3 = pneg %p18970_p2 }
  0x8c   : > { %p18978_p11 = pnand %p18977_p8, %p18971_p3 }
  0x8e   : > { %18981 = shalt.err (!%p18978_p11)
}
  0x8f   : > { %s23851_s18 = smov 8   ;;  %s23852_s30 = smov 128  }
  0x90   : > { %18419 = dma.hbm_to_vmem [thread:$0]  (!%p19228_p12), %s23554_s17, 2048, %s571_s2, [#allocation10], %s23852_s30, %s23852_s30, %s23851_s18  }
  0x91   : > { %p23853_p5 = scmp.ne.s32.totalorder %s23848_s27, 0 }
  0x93   : > { %597 = sbr.rel (%p23853_p5) target bundleno = 4060 (0xfdc), region = 96 }
  0x9a   : > { %p23854_p0 = scmp.eq.s32.totalorder %s19192_s1, 0 }
  0x9c   : > { %19027 = dma.done.wait (%p23854_p0), [#allocation4], 9216   ;;  %p23855_p6 = pmov %p23854_p0 }
  0x9d   : > { %p23856_p9 = pmov %p23854_p0 }
  0x9e   : > { %19029 = vsyncadd (%p23855_p6), [#allocation4], 4294958080 }
  0x9f   : > { %19031 = dma.done.wait (%p23856_p9), [#allocation7], 4096   ;;  %p23857_p10 = pmov %p23854_p0 }
  0xa0   : > { %p23858_p13 = pmov %p23854_p0 }
  0xa1   : > { %19033 = vsyncadd (%p23857_p10), [#allocation7], 4294963200 }
  0xa2   : > { %19035 = dma.done.wait (%p23858_p13), [#allocation10], 11264   ;;  %p23859_p12 = pmov %p23854_p0 }
  0xa3   : > { %v19067_v0 = vmov 0   ;;  %s23860_s28 = sld [smem:[#allocation88_spill]]  ;;  %p669_p1 = scmp.lt.s32.totalorder %s19192_s1, 1  ;;  %vm681_vm0 = vcmask 1040384   ;;  %vm732_vm1 = vsmask.f32 7938 }
  0xa4   : > { %19037 = vsyncadd (%p23859_p12), [#allocation10], 4294956032  ;;  %1039 = vmatprep.mubr.bf16.mxu0 %v19067_v0  ;;  %675 = vst [vmem:[#allocation2] sm:$0xff] %v19067_v0  ;;  %16238 = vmatprep.mubr.bf16.mxu1 %v19067_v0  ;;  %s23861_s19 = sld [smem:[#allocation90_spill]]  ;;  %vm682_vm2 = vsmask.f32 256 }
  0xa5   : > { %676 = vst [vmem:[#allocation2 + $0x8] sm:$0xff] %v19067_v0  ;;  %678 = vst [vmem:[#allocation2 + $0x110] sm:$0xff] %v19067_v0  ;;  %s670_s0 = scalar_select %p669_p1, %s19192_s1, 1  ;;  %v684_v59 = vld [vmem:[#allocation2 + $0x10] sm:$0x1]  ;;  %vm1553_vm5 = vcmask 1047552  }
  0xa6   : > { %679 = vst [vmem:[#allocation2 + $0x118] sm:$0xff] %v19067_v0  ;;  %vm19507_vm3 = vmand %vm681_vm0, %vm732_vm1  ;;  %v734_v61 = vld [vmem:[#allocation2 + $0x18] sm:$0x1]  ;;  %vm1963_vm7 = vsmask.f32 7424  ;;  %vm2478_vm8 = vcmask 1046528  }
  0xa7   : > { %s15276_s23 = sshll.u32 %s670_s0, 8  ;;  %s23862_s0 = sld [smem:[#allocation87_spill]]  ;;  %vm19513_vm4 = vmand %vm681_vm0, %vm682_vm2 }
  0xa8   : > { %vm19636_vm6 = vmand %vm1553_vm5, %vm732_vm1  ;;  %s24211_s16 = sld [smem:[#allocation91_spill]]  ;;  %s24215_s20 = sld [smem:[#allocation18_spill]] }
  0xa9   : > { %v18479_v1 = vld [vmem:[%s23860_s28 + $0x4] ss:$12 sps:$4 sm:$0xff]   ;;  %v18481_v2 = vld [vmem:[%s23860_s28] ss:$12 sps:$4 sm:$0xff]   ;;  %v18482_v3 = vld [vmem:[%s23860_s28 + $0x1c] ss:$12 sps:$4 sm:$0xff]  }
  0xaa   : > { %1007 = vmatprep.subr.bf16.mxu0 %v18479_v1  ;;  %v18484_v4 = vld [vmem:[%s23860_s28 + $0x18] ss:$12 sps:$4 sm:$0xff]   ;;  %v18485_v5 = vld [vmem:[%s23860_s28 + $0x34] ss:$12 sps:$4 sm:$0xff]   ;;  %v18487_v6 = vld [vmem:[%s23860_s28 + $0x30] ss:$12 sps:$4 sm:$0xff]  }
  0xab   : > { %1008 = vmatpush1.bf16.msra.mxu0 %v18481_v2  ;;  %v18488_v7 = vld [vmem:[%s23860_s28 + $0x4c] ss:$12 sps:$4 sm:$0xff]   ;;  %v18490_v8 = vld [vmem:[%s23860_s28 + $0x48] ss:$12 sps:$4 sm:$0xff]   ;;  %v18491_v9 = vld [vmem:[%s23860_s28 + $0x64] ss:$12 sps:$4 sm:$0xff]  }
  0xac   : > { %1009 = vmatprep.subr.bf16.mxu0 %v18482_v3  ;;  %v18493_v10 = vld [vmem:[%s23860_s28 + $0x60] ss:$12 sps:$4 sm:$0xff]   ;;  %v18494_v11 = vld [vmem:[%s23860_s28 + $0x7c] ss:$12 sps:$4 sm:$0xff]   ;;  %v18496_v12 = vld [vmem:[%s23860_s28 + $0x78] ss:$12 sps:$4 sm:$0xff]  }
  0xad   : > { %v18497_v13 = vld [vmem:[%s23860_s28 + $0x94] ss:$12 sps:$4 sm:$0xff]   ;;  %v18499_v14 = vld [vmem:[%s23860_s28 + $0x90] ss:$12 sps:$4 sm:$0xff]   ;;  %v18500_v16 = vld [vmem:[%s23860_s28 + $0xac] ss:$12 sps:$4 sm:$0xff]   ;;  %s19416_s25 = scalar_lea.vmem %s23862_s0, %s15276_s23 }
  0xae   : > { %v18503_v15 = vld [vmem:[%s23861_s19] sm:$0xff]   ;;  %v18504_v17 = vld [vmem:[%s23861_s19 + $0x8] sm:$0xff]   ;;  %v784_v22 = vld [vmem:[%s19416_s25 + $0x10] sm:$0xff]  ;;  %v23868_v1 = vmov 0  ;;  %v735_v2 = vsel %vm19507_vm3, 0, %v734_v61  ;;  %v685_v3 = vsel %vm19513_vm4, 0, %v684_v59 }
  0xaf   : > { %1010 = vmatpush1.bf16.msra.mxu0 %v18484_v4  ;;  %16222 = vmatprep.subr.bf16.mxu1 %v18503_v15  ;;  %v18502_v18 = vld [vmem:[%s23860_s28 + $0xa8] ss:$12 sps:$4 sm:$0xff]   ;;  %v782_v19 = vld [vmem:[%s19416_s25] sm:$0xff]  ;;  %v785_v23 = vld [vmem:[%s19416_s25 + $0x18] sm:$0xff]  ;;  %v23869_v1 = vsel %vm19513_vm4, 4294967295, %v23868_v1  ;;  %s23877_s23 = sld [smem:[#allocation89_spill]] }
  0xb0   : > { %1011 = vmatprep.subr.bf16.mxu0 %v18485_v5  ;;  %16223 = vmatpush3.bf16.msra.mxu1 %v18503_v15  ;;  %v783_v20 = vld [vmem:[%s19416_s25 + $0x8] sm:$0xff]  ;;  %v19432_v24 = vpack.c.bf16 %v785_v23, %v784_v22  ;;  %v786_v25 = vld [vmem:[%s19416_s25 + $0x20] sm:$0xff]  ;;  %v788_v28 = vld [vmem:[%s19416_s25 + $0x30] sm:$0xff]  ;;  %23870 = vst [vmem:[#allocation28_spill] sm:$0xff] %v23869_v1  ;;  %s24216_s24 = sld [smem:[#allocation93_spill]]  ;;  %s666_s18 = sand.u32 1, %s24215_s20  }
  0xb1   : > { %16224 = vmatprep.subr.bf16.mxu1 %v18504_v17  ;;  %v19426_v21 = vpack.c.bf16 %v783_v20, %v782_v19  ;;  %v787_v26 = vld [vmem:[%s19416_s25 + $0x28] sm:$0xff]  ;;  %v789_v29 = vld [vmem:[%s19416_s25 + $0x38] sm:$0xff]  ;;  %v790_v31 = vld [vmem:[%s19416_s25 + $0x40] sm:$0xff]  ;;  %736 = vst [vmem:[#allocation2 + $0x18] sm:$0x1] %v735_v2  ;;  %s14815_s30 = sshll.u32 %s666_s18, 9 }
  0xb2   : > { %v19438_v27 = vpack.c.bf16 %v787_v26, %v786_v25  ;;  %v19444_v30 = vpack.c.bf16 %v789_v29, %v788_v28  ;;  %v791_v32 = vld [vmem:[%s19416_s25 + $0x48] sm:$0xff]  ;;  %v792_v34 = vld [vmem:[%s19416_s25 + $0x50] sm:$0xff]  ;;  %v793_v35 = vld [vmem:[%s19416_s25 + $0x58] sm:$0xff]  ;;  %686 = vst [vmem:[#allocation2 + $0x10] sm:$0x1] %v685_v3  ;;  %s23239_s26 = scalar_lea.vmem [#allocation12], %s14815_s30 }
  0xb3   : > { %1012 = vmatpush1.bf16.msra.mxu0 %v18487_v6  ;;  %v19450_v33 = vpack.c.bf16 %v791_v32, %v790_v31  ;;  %v19456_v36 = vpack.c.bf16 %v793_v35, %v792_v34  ;;  %v794_v37 = vld [vmem:[%s19416_s25 + $0x60] sm:$0xff]  ;;  %v795_v38 = vld [vmem:[%s19416_s25 + $0x68] sm:$0xff]  ;;  %v796_v40 = vld [vmem:[%s19416_s25 + $0x70] sm:$0xff]  ;;  %s15277_s27 = sshll.u32 %s19192_s1, 13  ;;  %s14689_s22 = sshll.u32 %s23239_s26, 4  ;;  %s23489_s22 = int_to_ptr.vmem [resolvable:$true] %s14689_s22 }
  0xb4   : > { %1013 = vmatprep.subr.bf16.mxu0 %v18488_v7  ;;  %16225 = vmatpush3.bf16.msra.mxu1 %v18504_v17  ;;  %v19462_v39 = vpack.c.bf16 %v795_v38, %v794_v37  ;;  %v797_v41 = vld [vmem:[%s19416_s25 + $0x78] sm:$0xff]  ;;  %v798_v43 = vld [vmem:[%s19416_s25 + $0x80] sm:$0xff]  ;;  %v799_v44 = vld [vmem:[%s19416_s25 + $0x88] sm:$0xff]  ;;  %s24337_s2 = sld [smem:[#allocation23_spill]]  ;;  %s24342_s3 = sld [smem:[#allocation94_spill]] }
  0xb5   : > { %v19468_v42 = vpack.c.bf16 %v797_v41, %v796_v40  ;;  %v19474_v45 = vpack.c.bf16 %v799_v44, %v798_v43  ;;  %v800_v46 = vld [vmem:[%s19416_s25 + $0x90] sm:$0xff]  ;;  %v801_v47 = vld [vmem:[%s19416_s25 + $0x98] sm:$0xff]  ;;  %v802_v49 = vld [vmem:[%s19416_s25 + $0xa0] sm:$0xff]  ;;  %s23496_s1 = scalar_lea.sflag [#allocation5], %s666_s18  ;;  %s19068_s29 = smov [#allocation12]  }
  0xb6   : > { %v19480_v48 = vpack.c.bf16 %v801_v47, %v800_v46  ;;  %v803_v50 = vld [vmem:[%s19416_s25 + $0xa8] sm:$0xff]  ;;  %v18505_v51 = vld [vmem:[%s23861_s19 + $0x10] sm:$0xff]   ;;  %v18506_v53 = vld [vmem:[%s23861_s19 + $0x18] sm:$0xff]   ;;  %s18986_s14 = sshll.u32 %s19068_s29, 4  ;;  %s18987_s14 = int_to_ptr.vmem [resolvable:$false] %s18986_s14 }
  0xb7   : > { %1014 = vmatpush1.bf16.msra.mxu0 %v18490_v8  ;;  %16226 = vmatprep.subr.bf16.mxu1 %v18505_v51  ;;  %v19489_v52 = vpack.c.bf16 %v803_v50, %v802_v49  ;;  %v804_v54 = vld [vmem:[%s19416_s25 + $0xb0] sm:$0xff]  ;;  %v805_v55 = vld [vmem:[%s19416_s25 + $0xb8] sm:$0xff]  ;;  %v18507_v56 = vld [vmem:[%s23861_s19 + $0x20] sm:$0xff]   ;;  %p18989_p8 = scmp.lt.s32.totalorder %s23489_s22, %s18987_s14 }
  0xb8   : > { %1015 = vmatprep.subr.bf16.mxu0 %v18491_v9  ;;  %23863 = vst [vmem:[#allocation25_spill] sm:$0xff] %v19480_v48  ;;  %16227 = vmatpush3.bf16.msra.mxu1 %v18505_v51  ;;  %v19501_v57 = vpack.c.bf16 %v805_v55, %v804_v54  ;;  %v18508_v58 = vld [vmem:[%s23861_s19 + $0x28] sm:$0xff]   ;;  %v806_v62 = vld [vmem:[%s19416_s25 + $0xc0] sm:$0xff]  ;;  %v18509_v4 = vld [vmem:[%s23861_s19 + $0x30] sm:$0xff]  }
  0xb9   : > { %23864 = vst [vmem:[#allocation26_spill] sm:$0xff] %v19489_v52  ;;  %16228 = vmatprep.subr.bf16.mxu1 %v18506_v53  ;;  %v807_v63 = vld [vmem:[%s19416_s25 + $0xc8] sm:$0xff]  ;;  %v18510_v6 = vld [vmem:[%s23861_s19 + $0x38] sm:$0xff]   ;;  %v808_v9 = vld [vmem:[%s19416_s25 + $0xd0] sm:$0xff] }
  0xba   : > { %23865 = vst [vmem:[#allocation27_spill] sm:$0xff] %v19501_v57  ;;  %v19526_v5 = vpack.c.bf16 %v807_v63, %v806_v62  ;;  %v737_v7 = vld [vmem:[#allocation2 + $0x28] sm:$0x1]  ;;  %v810_v15 = vld [vmem:[%s19416_s25 + $0xe0] sm:$0xff]  ;;  %v690_v17 = vld [vmem:[#allocation2 + $0x30] sm:$0x1]  ;;  %s23487_s21 = scalar_lea.hbm %s24342_s3, %s15277_s27 }
  0xbb   : > { %1016 = vmatpush1.bf16.msra.mxu0 %v18493_v10  ;;  %v738_v8 = vsel %vm19507_vm3, 0, %v737_v7  ;;  %v687_v10 = vld [vmem:[#allocation2 + $0x20] sm:$0x1]  ;;  %v691_v19 = vsel %vm19513_vm4, 0, %v690_v17  ;;  %v743_v22 = vld [vmem:[#allocation2 + $0x48] sm:$0x1] }
  0xbc   : > { %1017 = vmatprep.subr.bf16.mxu0 %v18494_v11  ;;  %16229 = vmatpush3.bf16.msra.mxu1 %v18506_v53  ;;  %23871 = vst [vmem:[#allocation29_spill] sm:$0xff] %v19526_v5  ;;  %739 = vst [vmem:[#allocation2 + $0x28] sm:$0x1] %v738_v8  ;;  %v809_v11 = vld [vmem:[%s19416_s25 + $0xd8] sm:$0xff]  ;;  %v744_v23 = vsel %vm19507_vm3, 0, %v743_v22  ;;  %v18831_v28 = vld [vmem:[#allocation2] sm:$0xff] }
  0xbd   : > { %16230 = vmatprep.subr.bf16.mxu1 %v18507_v56  ;;  %692 = vst [vmem:[#allocation2 + $0x30] sm:$0x1] %v691_v19  ;;  %v693_v25 = vld [vmem:[#allocation2 + $0x40] sm:$0x1]  ;;  %745 = vst [vmem:[#allocation2 + $0x48] sm:$0x1] %v744_v23  ;;  %v864_v23 = vlaneseq }
  0xbe   : > { %v694_v26 = vsel %vm19513_vm4, 0, %v693_v25  ;;  %v696_v31 = vld [vmem:[#allocation2 + $0x50] sm:$0x1]  ;;  %v749_v34 = vld [vmem:[#allocation2 + $0x68] sm:$0x1]  ;;  %v813_v63 = vld [vmem:[%s19416_s25 + $0xf8] sm:$0xff] }
  0xbf   : > { %1018 = vmatpush1.bf16.msra.mxu0 %v18496_v12  ;;  %v688_v12 = vsel %vm19513_vm4, 0, %v687_v10  ;;  %695 = vst [vmem:[#allocation2 + $0x40] sm:$0x1] %v694_v26  ;;  %v697_v32 = vsel %vm19513_vm4, 0, %v696_v31  ;;  %v750_v35 = vsel %vm19507_vm3, 0, %v749_v34  ;;  %v812_v62 = vld [vmem:[%s19416_s25 + $0xf0] sm:$0xff] }
  0xc0   : > { %1019 = vmatprep.subr.bf16.mxu0 %v18497_v13  ;;  %16231 = vmatpush3.bf16.msra.mxu1 %v18507_v56  ;;  %689 = vst [vmem:[#allocation2 + $0x20] sm:$0x1] %v688_v12  ;;  %v19539_v13 = vpack.c.bf16 %v809_v11, %v808_v9  ;;  %698 = vst [vmem:[#allocation2 + $0x50] sm:$0x1] %v697_v32  ;;  %v699_v37 = vld [vmem:[#allocation2 + $0x60] sm:$0x1]  ;;  %v19582_v2 = vpack.c.bf16 %v813_v63, %v812_v62 }
  0xc1   : > { %16232 = vmatprep.subr.bf16.mxu1 %v18508_v58  ;;  %751 = vst [vmem:[#allocation2 + $0x68] sm:$0x1] %v750_v35  ;;  %v700_v38 = vsel %vm19513_vm4, 0, %v699_v37  ;;  %v752_v40 = vld [vmem:[#allocation2 + $0x78] sm:$0x1]  ;;  %v19593_v8 = vld [vmem:[%s23861_s19 + $0x40] sm:$0xff]  }
  0xc2   : > { %23872 = vst [vmem:[#allocation30_spill] sm:$0xff] %v19539_v13  ;;  %701 = vst [vmem:[#allocation2 + $0x60] sm:$0x1] %v700_v38  ;;  %v753_v41 = vsel %vm19507_vm3, 0, %v752_v40  ;;  %v702_v43 = vld [vmem:[#allocation2 + $0x70] sm:$0x1] }
  0xc3   : > { %1020 = vmatpush1.bf16.msra.mxu0 %v18499_v14  ;;  %v740_v14 = vld [vmem:[#allocation2 + $0x38] sm:$0x1]  ;;  %754 = vst [vmem:[#allocation2 + $0x78] sm:$0x1] %v753_v41  ;;  %v703_v44 = vsel %vm19513_vm4, 0, %v702_v43  ;;  %23874 = vst [vmem:[#allocation32_spill] sm:$0xff] %v19582_v2 }
  0xc4   : > { %1021 = vmatprep.subr.bf16.mxu0 %v18500_v16  ;;  %16233 = vmatpush3.bf16.msra.mxu1 %v18508_v58  ;;  %v741_v16 = vsel %vm19507_vm3, 0, %v740_v14  ;;  %704 = vst [vmem:[#allocation2 + $0x70] sm:$0x1] %v703_v44  ;;  %v755_v46 = vld [vmem:[#allocation2 + $0x88] sm:$0x1]  ;;  %v23882_v62 = vmov 0 }
  0xc5   : > { %16234 = vmatprep.subr.bf16.mxu1 %v18509_v4  ;;  %742 = vst [vmem:[#allocation2 + $0x38] sm:$0x1] %v741_v16  ;;  %v756_v47 = vsel %vm19507_vm3, 0, %v755_v46  ;;  %v705_v49 = vld [vmem:[#allocation2 + $0x80] sm:$0x1]  ;;  %v23883_v62 = vsel %vm19636_vm6, 4294967295, %v23882_v62 }
  0xc6   : > { %757 = vst [vmem:[#allocation2 + $0x88] sm:$0x1] %v756_v47  ;;  %v706_v50 = vsel %vm19513_vm4, 0, %v705_v49  ;;  %v758_v51 = vld [vmem:[#allocation2 + $0x98] sm:$0x1]  ;;  %23884 = vst [vmem:[#allocation39_spill] sm:$0xff] %v23883_v62 }
  0xc7   : > { %1022 = vmatpush1.bf16.msra.mxu0 %v18502_v18  ;;  %v811_v18 = vld [vmem:[%s19416_s25 + $0xe8] sm:$0xff]  ;;  %707 = vst [vmem:[#allocation2 + $0x80] sm:$0x1] %v706_v50  ;;  %v759_v53 = vsel %vm19507_vm3, 0, %v758_v51  ;;  %v708_v54 = vld [vmem:[#allocation2 + $0x90] sm:$0x1] }
  0xc8   : > { %16235 = vmatpush3.bf16.msra.mxu1 %v18509_v4  ;;  %v19549_v20 = vpack.c.bf16 %v811_v18, %v810_v15  ;;  %760 = vst [vmem:[#allocation2 + $0x98] sm:$0x1] %v759_v53  ;;  %v709_v55 = vsel %vm19513_vm4, 0, %v708_v54  ;;  %v761_v56 = vld [vmem:[#allocation2 + $0xa8] sm:$0x1]  ;;  %v1555_v63 = vld [vmem:[#allocation2 + $0x10] sm:$0xff] }
  0xc9   : > { %16236 = vmatprep.subr.bf16.mxu1 %v18510_v6  ;;  %710 = vst [vmem:[#allocation2 + $0x90] sm:$0x1] %v709_v55  ;;  %v762_v58 = vsel %vm19507_vm3, 0, %v761_v56  ;;  %v711_v59 = vld [vmem:[#allocation2 + $0xa0] sm:$0x1]  ;;  %s24214_s25 = sld [smem:[#allocation92_spill]] }
  0xca   : > { %1040 = vmatmul.mubr.bf16.vlgmr.msra.gmra.mrb[0].mxu0 %v19426_v21  ;;  %23873 = vst [vmem:[#allocation31_spill] sm:$0xff] %v19549_v20  ;;  %763 = vst [vmem:[#allocation2 + $0xa8] sm:$0x1] %v762_v58  ;;  %v712_v61 = vsel %vm19513_vm4, 0, %v711_v59  ;;  %v764_v3 = vld [vmem:[#allocation2 + $0xb8] sm:$0x1] }
  0xcb   : > { %1049 = vmatprep.mubr.bf16.mxu0 %v19067_v0  ;;  %713 = vst [vmem:[#allocation2 + $0xa0] sm:$0x1] %v712_v61  ;;  %v765_v4 = vsel %vm19507_vm3, 0, %v764_v3  ;;  %v767_v9 = vld [vmem:[#allocation2 + $0xc8] sm:$0x1]  ;;  %p24343_p3 = scmp.ne.s32.totalorder %s24337_s2, 0 }
  0xcc   : > { %16237 = vmatpush3.bf16.msra.mxu1 %v18510_v6  ;;  %v714_v6 = vld [vmem:[#allocation2 + $0xb0] sm:$0x1]  ;;  %766 = vst [vmem:[#allocation2 + $0xb8] sm:$0x1] %v765_v4  ;;  %v768_v10 = vsel %vm19507_vm3, 0, %v767_v9  ;;  %v18512_v9 = vld [vmem:[%s23861_s19 + $0x48] sm:$0xff]  }
  0xcd   : > { %v715_v7 = vsel %vm19513_vm4, 0, %v714_v6  ;;  %16270 = vmatprep.subr.bf16.mxu1 %v19593_v8  ;;  %v717_v11 = vld [vmem:[#allocation2 + $0xc0] sm:$0x1]  ;;  %769 = vst [vmem:[#allocation2 + $0xc8] sm:$0x1] %v768_v10 }
  0xce   : > { %716 = vst [vmem:[#allocation2 + $0xb0] sm:$0x1] %v715_v7  ;;  %v770_v12 = vld [vmem:[#allocation2 + $0xd8] sm:$0x1]  ;;  %v720_v15 = vld [vmem:[#allocation2 + $0xd0] sm:$0x1] }
  0xcf   : > { %v771_v14 = vsel %vm19507_vm3, 0, %v770_v12  ;;  %v721_v16 = vsel %vm19513_vm4, 0, %v720_v15  ;;  %v773_v17 = vld [vmem:[#allocation2 + $0xe8] sm:$0x1]  ;;  %v723_v19 = vld [vmem:[#allocation2 + $0xe0] sm:$0x1] }
  0xd0   : > { %772 = vst [vmem:[#allocation2 + $0xd8] sm:$0x1] %v771_v14  ;;  %722 = vst [vmem:[#allocation2 + $0xd0] sm:$0x1] %v721_v16  ;;  %v774_v18 = vsel %vm19507_vm3, 0, %v773_v17  ;;  %v724_v22 = vsel %vm19513_vm4, 0, %v723_v19 }
  0xd1   : > { %775 = vst [vmem:[#allocation2 + $0xe8] sm:$0x1] %v774_v18  ;;  %725 = vst [vmem:[#allocation2 + $0xe0] sm:$0x1] %v724_v22  ;;  %v776_v25 = vld [vmem:[#allocation2 + $0xf8] sm:$0x1] }
  0xd2   : > { %1050 = vmatmul.mubr.bf16.gmra.mrb[4].mxu0 %v19432_v24  ;;  %v777_v26 = vsel %vm19507_vm3, 0, %v776_v25  ;;  %v862_v32 = vld [vmem:[%s23877_s23] sm:$0x7]  ;;  %v1558_v54 = vld [vmem:[#allocation2 + $0x18] sm:$0x1]  ;;  %v18513_v18 = vld [vmem:[%s23861_s19 + $0x50] sm:$0xff]  }
  0xd3   : > { %1059 = vmatprep.mubr.bf16.mxu0 %v19067_v0  ;;  %778 = vst [vmem:[#allocation2 + $0xf8] sm:$0x1] %v777_v26  ;;  %v1564_v16 = vld [vmem:[#allocation2 + $0x28] sm:$0x1]  ;;  %v1561_v26 = vld [vmem:[#allocation2 + $0x20] sm:$0xff] }
  0xda   : > { %1060 = vmatmul.mubr.bf16.gmra.mrb[8].mxu0 %v19438_v27 }
  0xdb   : > { %1069 = vmatprep.mubr.bf16.mxu0 %v19067_v0 }
  0xe2   : > { %1070 = vmatmul.mubr.bf16.gmra.mrb[12].mxu0 %v19444_v30 }
  0xe3   : > { %1079 = vmatprep.mubr.bf16.mxu0 %v19067_v0 }
  0xea   : > { %1080 = vmatmul.mubr.bf16.gmra.mrb[16].mxu0 %v19450_v33 }
  0xeb   : > { %1089 = vmatprep.mubr.bf16.mxu0 %v19067_v0 }
  0xf2   : > { %1090 = vmatmul.mubr.bf16.gmra.mrb[20].mxu0 %v19456_v36 }
  0xf3   : > { %1099 = vmatprep.mubr.bf16.mxu0 %v19067_v0 }
  0xfa   : > { %1100 = vmatmul.mubr.bf16.gmra.mrb[24].mxu0 %v19462_v39 }
  0xfb   : > { %1109 = vmatprep.mubr.bf16.mxu0 %v19067_v0 }
 0x102   : > { %1110 = vmatmul.mubr.bf16.gmra.mrb[28].mxu0 %v19468_v42 }
 0x103   : > { %1119 = vmatprep.mubr.bf16.mxu0 %v19067_v0 }
 0x10a   : > { %1120 = vmatmul.mubr.bf16.gmra.mrb[32].mxu0 %v19474_v45 }
 0x10b   : > { %1129 = vmatprep.mubr.bf16.mxu0 %v19067_v0 }
 0x112   : > { %1130 = vmatmul.mubr.bf16.gmra.mrb[36].mxu0 %v19480_v48 }
 0x113   : > { %1139 = vmatprep.mubr.bf16.mxu0 %v19067_v0 }
 0x11a   : > { %1140 = vmatmul.mubr.bf16.gmra.mrb[40].mxu0 %v19489_v52 }
 0x11b   : > { %1149 = vmatprep.mubr.bf16.mxu0 %v19067_v0 }
 0x122   : > { %1150 = vmatmul.mubr.bf16.gmra.mrb[44].mxu0 %v19501_v57 }
 0x123   : > { %1159 = vmatprep.mubr.bf16.mxu0 %v19067_v0 }
 0x12a   : > { %1160 = vmatmul.mubr.bf16.gmra.mrb[48].mxu0 %v19526_v5 }
 0x12b   : > { %1169 = vmatprep.mubr.bf16.mxu0 %v19067_v0 }
 0x132   : > { %1170 = vmatmul.mubr.bf16.gmra.mrb[52].mxu0 %v19539_v13 }
 0x133   : > { %1179 = vmatprep.mubr.bf16.mxu0 %v19067_v0  ;;  %v746_v0 = vld [vmem:[#allocation2 + $0x58] sm:$0x1] }
 0x134   : > { %v747_v29 = vsel %vm19507_vm3, 0, %v746_v0  ;;  %v726_v0 = vld [vmem:[#allocation2 + $0xf0] sm:$0x1] }
 0x135   : > { %748 = vst [vmem:[#allocation2 + $0x58] sm:$0x1] %v747_v29  ;;  %v727_v29 = vsel %vm19513_vm4, 0, %v726_v0 }
 0x136   : > { %728 = vst [vmem:[#allocation2 + $0xf0] sm:$0x1] %v727_v29 }
 0x13a   : > { %1180 = vmatmul.mubr.bf16.gmra.mrb[56].mxu0 %v19549_v20 }
 0x13b   : > { %1189 = vmatprep.mubr.bf16.mxu0 %v18831_v28  ;;  %v19610_v28 = vshrl.u32 %v864_v23, 7 }
 0x13d   : > { %23875 = vst [vmem:[#allocation33_spill] sm:$0xff] %v19610_v28  ;;  %v19615_v31 = vsub.s32 0, %v19610_v28 }
 0x13f   : > { %23876 = vst [vmem:[#allocation34_spill] sm:$0xff] %v19615_v31  ;;  %v19621_v34 = vrot.slane %v862_v32, %v19615_v31 }
 0x142   : > { %1190 = vmatmul.mubr.bf16.gmra.mrb[60].mxu0 %v19582_v2 }
 0x143   : > { %16190 = vmatprep.mubr.bf16.mxu0 %v19426_v21  ;;  %v718_v21 = vsel %vm19513_vm4, 0, %v717_v11 }
 0x144   : > { %719 = vst [vmem:[#allocation2 + $0xc0] sm:$0x1] %v718_v21 }
 0x19d   : > { %v1041_v35 = vpop.f32.mrb[0].mxu0 }
 0x19e   : > { %v1042_v37 = vadd.f32 %v1041_v35, %v19621_v34  ;;  %v19624_v38 = vpop.f32.mrb[1].mxu0  ;;  %v18514_v35 = vld [vmem:[%s23861_s19 + $0x58] sm:$0xff]  }
 0x19f   : > { %23878 = vst [vmem:[#allocation35_spill] sm:$0xff] %v19624_v38  ;;  %v1045_v40 = vpop.f32.mrb[2].mxu0 }
 0x1a0   : > { %v1046_v41 = vadd.f32 %v1045_v40, %v19621_v34  ;;  %v19627_v43 = vpop.f32.mrb[3].mxu0  ;;  %v1361_v44 = vmax.f32 %v1042_v37, 0.0 }
 0x1a1   : > { %23879 = vst [vmem:[#allocation36_spill] sm:$0xff] %v19627_v43 }
 0x1a2   : > { %v1362_v46 = vmax.f32 %v1046_v41, 0.0 }
 0x1a4   : > { %v1393_v47 = vpack.c.bf16 %v1362_v46, %v1361_v44 }
 0x1a5   : > { %v1051_v49 = vpop.f32.mrb[4].mxu0 }
 0x1a6   : > { %v1410_v50 = vshrl.u32 %v1393_v47, 16  ;;  %v1052_v51 = vadd.f32 %v1051_v49, %v19621_v34  ;;  %v19630_v53 = vpop.f32.mrb[5].mxu0  ;;  %v1413_v58 = vshll.u32 %v1393_v47, 16  ;;  %v1570_v49 = vld [vmem:[#allocation2 + $0x38] sm:$0x1] }
 0x1a7   : > { %23880 = vst [vmem:[#allocation37_spill] sm:$0xff] %v19630_v53  ;;  %v1055_v55 = vpop.f32.mrb[6].mxu0 }
 0x1a8   : > { %v1412_v56 = vrot.slane %v1410_v50, 7  ;;  %v1056_v59 = vadd.f32 %v1055_v55, %v19621_v34  ;;  %v19633_v61 = vpop.f32.mrb[7].mxu0  ;;  %v1363_v6 = vmax.f32 %v1052_v51, 0.0  ;;  %v18515_v51 = vld [vmem:[%s23861_s19 + $0x60] sm:$0xff]  }
 0x1a9   : > { %23881 = vst [vmem:[#allocation38_spill] sm:$0xff] %v19633_v61 }
 0x1aa   : > { %v1415_v3 = vor.u32 %v1413_v58, %v1412_v56  ;;  %v1559_v4 = vsel %vm19513_vm4, %v1412_v56, %v1558_v54  ;;  %v1364_v7 = vmax.f32 %v1056_v59, 0.0  ;;  %v1567_v59 = vld [vmem:[#allocation2 + $0x30] sm:$0xff] }
 0x1ab   : > { %1560 = vst [vmem:[#allocation2 + $0x18] sm:$0x1] %v1559_v4 }
 0x1ac   : > { %v19647_v10 = vsel %vm19636_vm6, %v1415_v3, %v1555_v63  ;;  %v1394_v11 = vpack.c.bf16 %v1364_v7, %v1363_v6  ;;  %v18516_v7 = vld [vmem:[%s23861_s19 + $0x68] sm:$0xff]  }
 0x1ad   : > { %1557 = vst [vmem:[#allocation2 + $0x10] sm:$0xff] %v19647_v10  ;;  %v1061_v21 = vpop.f32.mrb[8].mxu0  ;;  %16239 = vmatmul.mubr.bf16.vlgmr.msra.gmra.mrb[0].mxu1 %v19647_v10 }
 0x1ae   : > { %v1417_v12 = vshrl.u32 %v1394_v11, 16  ;;  %v1062_v14 = vadd.f32 %v1061_v21, %v19621_v34  ;;  %v19652_v15 = vpop.f32.mrb[9].mxu0  ;;  %16271 = vmatpush3.bf16.msra.mxu1 %v19593_v8  ;;  %v1420_v22 = vshll.u32 %v1394_v11, 16 }
 0x1af   : > { %23885 = vst [vmem:[#allocation40_spill] sm:$0xff] %v19652_v15  ;;  %v1065_v17 = vpop.f32.mrb[10].mxu0  ;;  %16272 = vmatprep.subr.bf16.mxu1 %v18512_v9 }
 0x1b0   : > { %v1419_v19 = vrot.slane %v1417_v12, 7  ;;  %v1066_v23 = vadd.f32 %v1065_v17, %v19621_v34  ;;  %v19659_v25 = vpop.f32.mrb[11].mxu0  ;;  %v1365_v32 = vmax.f32 %v1062_v14, 0.0  ;;  %v1576_v17 = vld [vmem:[#allocation2 + $0x48] sm:$0x1] }
 0x1b1   : > { %23886 = vst [vmem:[#allocation41_spill] sm:$0xff] %v19659_v25 }
 0x1b2   : > { %v1422_v0 = vor.u32 %v1420_v22, %v1419_v19  ;;  %v1565_v29 = vsel %vm19513_vm4, %v1419_v19, %v1564_v16  ;;  %v1366_v8 = vmax.f32 %v1066_v23, 0.0  ;;  %16273 = vmatpush3.bf16.msra.mxu1 %v18512_v9  ;;  %v18517_v19 = vld [vmem:[%s23861_s19 + $0x70] sm:$0xff]  }
 0x1b3   : > { %1566 = vst [vmem:[#allocation2 + $0x28] sm:$0x1] %v1565_v29  ;;  %16274 = vmatprep.subr.bf16.mxu1 %v18513_v18  ;;  %v1573_v29 = vld [vmem:[#allocation2 + $0x40] sm:$0xff] }
 0x1b4   : > { %v19668_v37 = vsel %vm19636_vm6, %v1422_v0, %v1561_v26  ;;  %v1395_v40 = vpack.c.bf16 %v1366_v8, %v1365_v32 }
 0x1b5   : > { %1563 = vst [vmem:[#allocation2 + $0x20] sm:$0xff] %v19668_v37  ;;  %v1071_v41 = vpop.f32.mrb[12].mxu0  ;;  %16242 = vmatprep.mubr.bf16.mxu1 %v19668_v37 }
 0x1b6   : > { %v1424_v44 = vshrl.u32 %v1395_v40, 16  ;;  %v1072_v46 = vadd.f32 %v1071_v41, %v19621_v34  ;;  %v19673_v47 = vpop.f32.mrb[13].mxu0  ;;  %16275 = vmatpush3.bf16.msra.mxu1 %v18513_v18  ;;  %v1427_v55 = vshll.u32 %v1395_v40, 16  ;;  %v18518_v41 = vld [vmem:[%s23861_s19 + $0x78] sm:$0xff]  }
 0x1b7   : > { %23887 = vst [vmem:[#allocation42_spill] sm:$0xff] %v19673_v47  ;;  %v1075_v50 = vpop.f32.mrb[14].mxu0  ;;  %16276 = vmatprep.subr.bf16.mxu1 %v18514_v35 }
 0x1b8   : > { %v1426_v54 = vrot.slane %v1424_v44, 7  ;;  %v1076_v56 = vadd.f32 %v1075_v50, %v19621_v34  ;;  %v19679_v58 = vpop.f32.mrb[15].mxu0  ;;  %v1367_v4 = vmax.f32 %v1072_v46, 0.0 }
 0x1b9   : > { %23888 = vst [vmem:[#allocation43_spill] sm:$0xff] %v19679_v58 }
 0x1ba   : > { %v1429_v63 = vor.u32 %v1427_v55, %v1426_v54  ;;  %v1571_v3 = vsel %vm19513_vm4, %v1426_v54, %v1570_v49  ;;  %v1368_v6 = vmax.f32 %v1076_v56, 0.0  ;;  %16277 = vmatpush3.bf16.msra.mxu1 %v18514_v35  ;;  %v1582_v55 = vld [vmem:[#allocation2 + $0x58] sm:$0x1] }
 0x1bb   : > { %1572 = vst [vmem:[#allocation2 + $0x38] sm:$0x1] %v1571_v3  ;;  %16278 = vmatprep.subr.bf16.mxu1 %v18515_v51 }
 0x1bc   : > { %v19688_v9 = vsel %vm19636_vm6, %v1429_v63, %v1567_v59  ;;  %v1396_v11 = vpack.c.bf16 %v1368_v6, %v1367_v4  ;;  %v19718_v59 = vld [vmem:[%s23861_s19 + $0x80] sm:$0xff]  }
 0x1bd   : > { %1569 = vst [vmem:[#allocation2 + $0x30] sm:$0xff] %v19688_v9  ;;  %v1081_v21 = vpop.f32.mrb[16].mxu0  ;;  %16243 = vmatmul.mubr.bf16.gmra.mrb[4].mxu1 %v19688_v9  ;;  %v3574_v57 = vld [vmem:[#allocation2 + $0x20] sm:$0xfe] }
 0x1be   : > { %v1431_v12 = vshrl.u32 %v1396_v11, 16  ;;  %v1082_v14 = vadd.f32 %v1081_v21, %v19621_v34  ;;  %v19693_v16 = vpop.f32.mrb[17].mxu0  ;;  %16279 = vmatpush3.bf16.msra.mxu1 %v18515_v51  ;;  %v1434_v23 = vshll.u32 %v1396_v11, 16  ;;  %v3624_v52 = vrot.slane %v3574_v57, 1  ;;  %v18553_v57 = vld [vmem:[%s23861_s19 + $0x190] sm:$0xff]  }
 0x1bf   : > { %23889 = vst [vmem:[#allocation44_spill] sm:$0xff] %v19693_v16  ;;  %v1085_v18 = vpop.f32.mrb[18].mxu0  ;;  %16280 = vmatprep.subr.bf16.mxu1 %v18516_v7 }
 0x1c0   : > { %v1433_v22 = vrot.slane %v1431_v12, 7  ;;  %v1086_v26 = vadd.f32 %v1085_v18, %v19621_v34  ;;  %v19699_v0 = vpop.f32.mrb[19].mxu0  ;;  %v1369_v35 = vmax.f32 %v1082_v14, 0.0 }
 0x1c1   : > { %23890 = vst [vmem:[#allocation45_spill] sm:$0xff] %v19699_v0 }
 0x1c2   : > { %v1436_v32 = vor.u32 %v1434_v23, %v1433_v22  ;;  %v1577_v8 = vsel %vm19513_vm4, %v1433_v22, %v1576_v17  ;;  %v1370_v40 = vmax.f32 %v1086_v26, 0.0  ;;  %16281 = vmatpush3.bf16.msra.mxu1 %v18516_v7  ;;  %v1579_v7 = vld [vmem:[#allocation2 + $0x50] sm:$0xff] }
 0x1c3   : > { %1578 = vst [vmem:[#allocation2 + $0x48] sm:$0x1] %v1577_v8  ;;  %16282 = vmatprep.subr.bf16.mxu1 %v18517_v19 }
 0x1c4   : > { %v19708_v44 = vsel %vm19636_vm6, %v1436_v32, %v1573_v29  ;;  %v1397_v46 = vpack.c.bf16 %v1370_v40, %v1369_v35  ;;  %v1588_v29 = vld [vmem:[#allocation2 + $0x68] sm:$0x1] }
 0x1c5   : > { %1575 = vst [vmem:[#allocation2 + $0x40] sm:$0xff] %v19708_v44  ;;  %v1091_v49 = vpop.f32.mrb[20].mxu0  ;;  %16246 = vmatprep.mubr.bf16.mxu1 %v19708_v44 }
 0x1c6   : > { %v1438_v50 = vshrl.u32 %v1397_v46, 16  ;;  %v1092_v51 = vadd.f32 %v1091_v49, %v19621_v34  ;;  %v19713_v54 = vpop.f32.mrb[21].mxu0  ;;  %16283 = vmatpush3.bf16.msra.mxu1 %v18517_v19  ;;  %v1441_v3 = vshll.u32 %v1397_v46, 16  ;;  %v1585_v46 = vld [vmem:[#allocation2 + $0x60] sm:$0xff] }
 0x1c7   : > { %23891 = vst [vmem:[#allocation46_spill] sm:$0xff] %v19713_v54  ;;  %v1095_v56 = vpop.f32.mrb[22].mxu0  ;;  %16284 = vmatprep.subr.bf16.mxu1 %v18518_v41 }
 0x1c8   : > { %v1440_v63 = vrot.slane %v1438_v50, 7  ;;  %v1096_v4 = vadd.f32 %v1095_v56, %v19621_v34  ;;  %v19721_v6 = vpop.f32.mrb[23].mxu0  ;;  %v1371_v12 = vmax.f32 %v1092_v51, 0.0 }
 0x1c9   : > { %23892 = vst [vmem:[#allocation47_spill] sm:$0xff] %v19721_v6 }
 0x1ca   : > { %v1443_v11 = vor.u32 %v1441_v3, %v1440_v63  ;;  %v1583_v21 = vsel %vm19513_vm4, %v1440_v63, %v1582_v55  ;;  %v1372_v14 = vmax.f32 %v1096_v4, 0.0  ;;  %16285 = vmatpush3.bf16.msra.mxu1 %v18518_v41 }
 0x1cb   : > { %1584 = vst [vmem:[#allocation2 + $0x58] sm:$0x1] %v1583_v21  ;;  %16318 = vmatprep.subr.bf16.mxu1 %v19718_v59  ;;  %v1594_v21 = vld [vmem:[#allocation2 + $0x78] sm:$0x1] }
 0x1cc   : > { %v19728_v17 = vsel %vm19636_vm6, %v1443_v11, %v1579_v7  ;;  %v1398_v18 = vpack.c.bf16 %v1372_v14, %v1371_v12 }
 0x1cd   : > { %1581 = vst [vmem:[#allocation2 + $0x50] sm:$0xff] %v19728_v17  ;;  %v1101_v19 = vpop.f32.mrb[24].mxu0  ;;  %16247 = vmatmul.mubr.bf16.gmra.mrb[8].mxu1 %v19728_v17 }
 0x1ce   : > { %v1445_v22 = vshrl.u32 %v1398_v18, 16  ;;  %v1102_v23 = vadd.f32 %v1101_v19, %v19621_v34  ;;  %v19733_v26 = vpop.f32.mrb[25].mxu0  ;;  %v1448_v35 = vshll.u32 %v1398_v18, 16 }
 0x1cf   : > { %23893 = vst [vmem:[#allocation48_spill] sm:$0xff] %v19733_v26  ;;  %v1105_v32 = vpop.f32.mrb[26].mxu0 }
 0x1d0   : > { %v1447_v8 = vrot.slane %v1445_v22, 7  ;;  %v1106_v40 = vadd.f32 %v1105_v32, %v19621_v34  ;;  %v19736_v41 = vpop.f32.mrb[27].mxu0  ;;  %v1373_v51 = vmax.f32 %v1102_v23, 0.0  ;;  %v1591_v23 = vld [vmem:[#allocation2 + $0x70] sm:$0xff] }
 0x1d1   : > { %23894 = vst [vmem:[#allocation49_spill] sm:$0xff] %v19736_v41 }
 0x1d2   : > { %v1450_v49 = vor.u32 %v1448_v35, %v1447_v8  ;;  %v1589_v50 = vsel %vm19513_vm4, %v1447_v8, %v1588_v29  ;;  %v1374_v55 = vmax.f32 %v1106_v40, 0.0 }
 0x1d3   : > { %1590 = vst [vmem:[#allocation2 + $0x68] sm:$0x1] %v1589_v50 }
 0x1d4   : > { %v19742_v56 = vsel %vm19636_vm6, %v1450_v49, %v1585_v46  ;;  %v1399_v63 = vpack.c.bf16 %v1374_v55, %v1373_v51 }
 0x1d5   : > { %1587 = vst [vmem:[#allocation2 + $0x60] sm:$0xff] %v19742_v56  ;;  %v1111_v3 = vpop.f32.mrb[28].mxu0  ;;  %16250 = vmatprep.mubr.bf16.mxu1 %v19742_v56 }
 0x1d6   : > { %v1452_v4 = vshrl.u32 %v1399_v63, 16  ;;  %v1112_v7 = vadd.f32 %v1111_v3, %v19621_v34  ;;  %v19747_v11 = vpop.f32.mrb[29].mxu0  ;;  %v1455_v18 = vshll.u32 %v1399_v63, 16  ;;  %v1600_v63 = vld [vmem:[#allocation2 + $0x88] sm:$0x1] }
 0x1d7   : > { %23895 = vst [vmem:[#allocation50_spill] sm:$0xff] %v19747_v11  ;;  %v1115_v12 = vpop.f32.mrb[30].mxu0 }
 0x1d8   : > { %v1454_v14 = vrot.slane %v1452_v4, 7  ;;  %v1116_v19 = vadd.f32 %v1115_v12, %v19621_v34  ;;  %v19750_v22 = vpop.f32.mrb[31].mxu0  ;;  %v1375_v8 = vmax.f32 %v1112_v7, 0.0 }
 0x1d9   : > { %23896 = vst [vmem:[#allocation51_spill] sm:$0xff] %v19750_v22 }
 0x1da   : > { %v1457_v29 = vor.u32 %v1455_v18, %v1454_v14  ;;  %v1595_v32 = vsel %vm19513_vm4, %v1454_v14, %v1594_v21  ;;  %v1376_v35 = vmax.f32 %v1116_v19, 0.0  ;;  %v1597_v14 = vld [vmem:[#allocation2 + $0x80] sm:$0xff] }
 0x1db   : > { %1596 = vst [vmem:[#allocation2 + $0x78] sm:$0x1] %v1595_v32 }
 0x1dc   : > { %v19756_v40 = vsel %vm19636_vm6, %v1457_v29, %v1591_v23  ;;  %v1400_v46 = vpack.c.bf16 %v1376_v35, %v1375_v8 }
 0x1dd   : > { %1593 = vst [vmem:[#allocation2 + $0x70] sm:$0xff] %v19756_v40  ;;  %v1121_v49 = vpop.f32.mrb[32].mxu0  ;;  %16251 = vmatmul.mubr.bf16.gmra.mrb[12].mxu1 %v19756_v40 }
 0x1de   : > { %v1459_v50 = vshrl.u32 %v1400_v46, 16  ;;  %v1122_v51 = vadd.f32 %v1121_v49, %v19621_v34  ;;  %v19761_v55 = vpop.f32.mrb[33].mxu0  ;;  %v1462_v7 = vshll.u32 %v1400_v46, 16 }
 0x1df   : > { %23897 = vst [vmem:[#allocation52_spill] sm:$0xff] %v19761_v55  ;;  %v1125_v3 = vpop.f32.mrb[34].mxu0 }
 0x1e0   : > { %v1461_v4 = vrot.slane %v1459_v50, 7  ;;  %v1126_v21 = vadd.f32 %v1125_v3, %v19621_v34  ;;  %v19764_v12 = vpop.f32.mrb[35].mxu0  ;;  %v1377_v23 = vmax.f32 %v1122_v51, 0.0  ;;  %v1606_v3 = vld [vmem:[#allocation2 + $0x98] sm:$0x1] }
 0x1e1   : > { %23898 = vst [vmem:[#allocation53_spill] sm:$0xff] %v19764_v12 }
 0x1e2   : > { %v1464_v18 = vor.u32 %v1462_v7, %v1461_v4  ;;  %v1601_v19 = vsel %vm19513_vm4, %v1461_v4, %v1600_v63  ;;  %v1378_v29 = vmax.f32 %v1126_v21, 0.0 }
 0x1e3   : > { %1602 = vst [vmem:[#allocation2 + $0x88] sm:$0x1] %v1601_v19 }
 0x1e4   : > { %v19770_v32 = vsel %vm19636_vm6, %v1464_v18, %v1597_v14  ;;  %v1401_v8 = vpack.c.bf16 %v1378_v29, %v1377_v23  ;;  %v1603_v14 = vld [vmem:[#allocation2 + $0x90] sm:$0xff] }
 0x1e5   : > { %1599 = vst [vmem:[#allocation2 + $0x80] sm:$0xff] %v19770_v32  ;;  %v1131_v35 = vpop.f32.mrb[36].mxu0  ;;  %16254 = vmatprep.mubr.bf16.mxu1 %v19770_v32 }
 0x1e6   : > { %v1466_v46 = vshrl.u32 %v1401_v8, 16  ;;  %v1132_v49 = vadd.f32 %v1131_v35, %v19621_v34  ;;  %v19775_v50 = vpop.f32.mrb[37].mxu0  ;;  %v1469_v4 = vshll.u32 %v1401_v8, 16 }
 0x1e7   : > { %23899 = vst [vmem:[#allocation54_spill] sm:$0xff] %v19775_v50  ;;  %v1135_v63 = vpop.f32.mrb[38].mxu0 }
 0x1e8   : > { %v1468_v51 = vrot.slane %v1466_v46, 7  ;;  %v1136_v7 = vadd.f32 %v1135_v63, %v19621_v34  ;;  %v19778_v21 = vpop.f32.mrb[39].mxu0  ;;  %v1379_v23 = vmax.f32 %v1132_v49, 0.0 }
 0x1e9   : > { %23900 = vst [vmem:[#allocation55_spill] sm:$0xff] %v19778_v21  ;;  %v1612_v21 = vld [vmem:[#allocation2 + $0xa8] sm:$0x1] }
 0x1ea   : > { %v1471_v18 = vor.u32 %v1469_v4, %v1468_v51  ;;  %v1607_v19 = vsel %vm19513_vm4, %v1468_v51, %v1606_v3  ;;  %v1380_v29 = vmax.f32 %v1136_v7, 0.0 }
 0x1eb   : > { %1608 = vst [vmem:[#allocation2 + $0x98] sm:$0x1] %v1607_v19 }
 0x1ec   : > { %v19784_v35 = vsel %vm19636_vm6, %v1471_v18, %v1603_v14  ;;  %v1402_v50 = vpack.c.bf16 %v1380_v29, %v1379_v23  ;;  %v1609_v14 = vld [vmem:[#allocation2 + $0xa0] sm:$0xff] }
 0x1ed   : > { %1605 = vst [vmem:[#allocation2 + $0x90] sm:$0xff] %v19784_v35  ;;  %v1141_v8 = vpop.f32.mrb[40].mxu0  ;;  %16255 = vmatmul.mubr.bf16.gmra.mrb[16].mxu1 %v19784_v35 }
 0x1ee   : > { %v1473_v46 = vshrl.u32 %v1402_v50, 16  ;;  %v1142_v63 = vadd.f32 %v1141_v8, %v19621_v34  ;;  %v19789_v4 = vpop.f32.mrb[41].mxu0  ;;  %v1476_v51 = vshll.u32 %v1402_v50, 16 }
 0x1ef   : > { %23901 = vst [vmem:[#allocation56_spill] sm:$0xff] %v19789_v4  ;;  %v1145_v3 = vpop.f32.mrb[42].mxu0 }
 0x1f0   : > { %v1475_v49 = vrot.slane %v1473_v46, 7  ;;  %v1146_v7 = vadd.f32 %v1145_v3, %v19621_v34  ;;  %v19792_v19 = vpop.f32.mrb[43].mxu0  ;;  %v1381_v29 = vmax.f32 %v1142_v63, 0.0 }
 0x1f1   : > { %23902 = vst [vmem:[#allocation57_spill] sm:$0xff] %v19792_v19  ;;  %v1618_v19 = vld [vmem:[#allocation2 + $0xb8] sm:$0x1] }
 0x1f2   : > { %v1478_v18 = vor.u32 %v1476_v51, %v1475_v49  ;;  %v1613_v23 = vsel %vm19513_vm4, %v1475_v49, %v1612_v21  ;;  %v1382_v12 = vmax.f32 %v1146_v7, 0.0  ;;  %v20193_v1 = vld [vmem:[#allocation2 + $0x98] sm:$0x1] }
 0x1f3   : > { %1614 = vst [vmem:[#allocation2 + $0xa8] sm:$0x1] %v1613_v23 }
 0x1f4   : > { %v19798_v8 = vsel %vm19636_vm6, %v1478_v18, %v1609_v14  ;;  %v1403_v4 = vpack.c.bf16 %v1382_v12, %v1381_v29  ;;  %v1615_v14 = vld [vmem:[#allocation2 + $0xb0] sm:$0xff] }
 0x1f5   : > { %1611 = vst [vmem:[#allocation2 + $0xa0] sm:$0xff] %v19798_v8  ;;  %v1151_v50 = vpop.f32.mrb[44].mxu0  ;;  %16258 = vmatprep.mubr.bf16.mxu1 %v19798_v8 }
 0x1f6   : > { %v1480_v46 = vshrl.u32 %v1403_v4, 16  ;;  %v1152_v3 = vadd.f32 %v1151_v50, %v19621_v34  ;;  %v19803_v51 = vpop.f32.mrb[45].mxu0  ;;  %v1483_v49 = vshll.u32 %v1403_v4, 16 }
 0x1f7   : > { %23903 = vst [vmem:[#allocation58_spill] sm:$0xff] %v19803_v51  ;;  %v1155_v21 = vpop.f32.mrb[46].mxu0 }
 0x1f8   : > { %v1482_v63 = vrot.slane %v1480_v46, 7  ;;  %v1156_v7 = vadd.f32 %v1155_v21, %v19621_v34  ;;  %v19806_v23 = vpop.f32.mrb[47].mxu0  ;;  %v1383_v29 = vmax.f32 %v1152_v3, 0.0 }
 0x1f9   : > { %23904 = vst [vmem:[#allocation59_spill] sm:$0xff] %v19806_v23  ;;  %v1624_v23 = vld [vmem:[#allocation2 + $0xc8] sm:$0x1] }
 0x1fa   : > { %v1485_v12 = vor.u32 %v1483_v49, %v1482_v63  ;;  %v1619_v18 = vsel %vm19513_vm4, %v1482_v63, %v1618_v19  ;;  %v1384_v55 = vmax.f32 %v1156_v7, 0.0 }
 0x1fb   : > { %1620 = vst [vmem:[#allocation2 + $0xb8] sm:$0x1] %v1619_v18 }
 0x1fc   : > { %v19812_v50 = vsel %vm19636_vm6, %v1485_v12, %v1615_v14  ;;  %v1404_v51 = vpack.c.bf16 %v1384_v55, %v1383_v29  ;;  %v1621_v14 = vld [vmem:[#allocation2 + $0xc0] sm:$0xff] }
 0x1fd   : > { %1617 = vst [vmem:[#allocation2 + $0xb0] sm:$0xff] %v19812_v50  ;;  %v1161_v4 = vpop.f32.mrb[48].mxu0  ;;  %16259 = vmatmul.mubr.bf16.gmra.mrb[20].mxu1 %v19812_v50 }
 0x1fe   : > { %v1487_v46 = vshrl.u32 %v1404_v51, 16  ;;  %v1162_v21 = vadd.f32 %v1161_v4, %v19621_v34  ;;  %v19817_v49 = vpop.f32.mrb[49].mxu0  ;;  %v1490_v63 = vshll.u32 %v1404_v51, 16 }
 0x1ff   : > { %23905 = vst [vmem:[#allocation60_spill] sm:$0xff] %v19817_v49  ;;  %v1165_v19 = vpop.f32.mrb[50].mxu0 }
 0x200   : > { %v1489_v3 = vrot.slane %v1487_v46, 7  ;;  %v1166_v7 = vadd.f32 %v1165_v19, %v19621_v34  ;;  %v19820_v18 = vpop.f32.mrb[51].mxu0  ;;  %v1385_v29 = vmax.f32 %v1162_v21, 0.0 }
 0x201   : > { %23906 = vst [vmem:[#allocation61_spill] sm:$0xff] %v19820_v18  ;;  %v1630_v18 = vld [vmem:[#allocation2 + $0xd8] sm:$0x1] }
 0x202   : > { %v1492_v55 = vor.u32 %v1490_v63, %v1489_v3  ;;  %v1625_v12 = vsel %vm19513_vm4, %v1489_v3, %v1624_v23  ;;  %v1386_v22 = vmax.f32 %v1166_v7, 0.0  ;;  %v20211_v61 = vld [vmem:[#allocation2 + $0xb8] sm:$0x1] }
 0x203   : > { %1626 = vst [vmem:[#allocation2 + $0xc8] sm:$0x1] %v1625_v12 }
 0x204   : > { %v19826_v4 = vsel %vm19636_vm6, %v1492_v55, %v1621_v14  ;;  %v1405_v49 = vpack.c.bf16 %v1386_v22, %v1385_v29  ;;  %v1627_v14 = vld [vmem:[#allocation2 + $0xd0] sm:$0xff] }
 0x205   : > { %1623 = vst [vmem:[#allocation2 + $0xc0] sm:$0xff] %v19826_v4  ;;  %v1171_v51 = vpop.f32.mrb[52].mxu0  ;;  %16262 = vmatprep.mubr.bf16.mxu1 %v19826_v4  ;;  %v2111_v60 = vshll.u32 %v19826_v4, 16 }
 0x206   : > { %v1494_v46 = vshrl.u32 %v1405_v49, 16  ;;  %v1172_v19 = vadd.f32 %v1171_v51, %v19621_v34  ;;  %v19831_v63 = vpop.f32.mrb[53].mxu0  ;;  %v1497_v3 = vshll.u32 %v1405_v49, 16 }
 0x207   : > { %23907 = vst [vmem:[#allocation62_spill] sm:$0xff] %v19831_v63  ;;  %v1175_v23 = vpop.f32.mrb[54].mxu0 }
 0x208   : > { %v1496_v21 = vrot.slane %v1494_v46, 7  ;;  %v1176_v7 = vadd.f32 %v1175_v23, %v19621_v34  ;;  %v19834_v12 = vpop.f32.mrb[55].mxu0  ;;  %v1387_v29 = vmax.f32 %v1172_v19, 0.0  ;;  %v18832_v19 = vld [vmem:[#allocation2] sm:$0xff] }
 0x209   : > { %23908 = vst [vmem:[#allocation63_spill] sm:$0xff] %v19834_v12  ;;  %v1636_v12 = vld [vmem:[#allocation2 + $0xe8] sm:$0x1] }
 0x20a   : > { %v1499_v22 = vor.u32 %v1497_v3, %v1496_v21  ;;  %v1631_v55 = vsel %vm19513_vm4, %v1496_v21, %v1630_v18  ;;  %v1388_v11 = vmax.f32 %v1176_v7, 0.0  ;;  %v1967_v21 = vshll.u32 %v18832_v19, 16  ;;  %v19962_v58 = vld [vmem:[#allocation2 + $0xc8] sm:$0x1] }
 0x20b   : > { %1632 = vst [vmem:[#allocation2 + $0xd8] sm:$0x1] %v1631_v55 }
 0x20c   : > { %v19840_v51 = vsel %vm19636_vm6, %v1499_v22, %v1627_v14  ;;  %v1406_v63 = vpack.c.bf16 %v1388_v11, %v1387_v29  ;;  %v19850_v11 = vld [vmem:[#allocation2 + $0x8] sm:$0x1]  ;;  %v1633_v29 = vld [vmem:[#allocation2 + $0xe0] sm:$0xff]  ;;  %v1969_v54 = vrot.slane %v1967_v21, 1 }
 0x20d   : > { %1629 = vst [vmem:[#allocation2 + $0xd0] sm:$0xff] %v19840_v51  ;;  %v1181_v49 = vpop.f32.mrb[56].mxu0  ;;  %16263 = vmatmul.mubr.bf16.gmra.mrb[24].mxu1 %v19840_v51  ;;  %v1972_v0 = vshll.u32 %v19850_v11, 16 }
 0x20e   : > { %v1501_v46 = vshrl.u32 %v1406_v63, 16  ;;  %v1182_v23 = vadd.f32 %v1181_v49, %v19621_v34  ;;  %v19845_v3 = vpop.f32.mrb[57].mxu0  ;;  %v1504_v55 = vshll.u32 %v1406_v63, 16 }
 0x20f   : > { %23909 = vst [vmem:[#allocation64_spill] sm:$0xff] %v19845_v3  ;;  %v1185_v18 = vpop.f32.mrb[58].mxu0  ;;  %v1965_v3 = vshrl.u32 %v18832_v19, 16  ;;  %v19861_v19 = vld [vmem:[#allocation2 + $0x18] sm:$0x1] }
 0x210   : > { %v1503_v7 = vrot.slane %v1501_v46, 7  ;;  %v1186_v14 = vadd.f32 %v1185_v18, %v19621_v34  ;;  %v19848_v22 = vpop.f32.mrb[59].mxu0  ;;  %v1389_v49 = vmax.f32 %v1182_v23, 0.0 }
 0x211   : > { %23910 = vst [vmem:[#allocation65_spill] sm:$0xff] %v19848_v22  ;;  %v1970_v22 = vor.u32 %v1969_v54, %v1965_v3  ;;  %v1991_v54 = vshll.u32 %v19668_v37, 16  ;;  %v1984_v3 = vshll.u32 %v19861_v19, 16 }
 0x212   : > { %v1506_v41 = vor.u32 %v1504_v55, %v1503_v7  ;;  %v1637_v26 = vsel %vm19513_vm4, %v1503_v7, %v1636_v12  ;;  %v1390_v6 = vmax.f32 %v1186_v14, 0.0  ;;  %v1642_v55 = vld [vmem:[#allocation2 + $0xf8] sm:$0x1]  ;;  %v1974_v12 = vrot.slane %v1972_v0, 1 }
 0x213   : > { %1638 = vst [vmem:[#allocation2 + $0xe8] sm:$0x1] %v1637_v26  ;;  %v1639_v26 = vld [vmem:[#allocation2 + $0xf0] sm:$0xff]  ;;  %v19978_v25 = vld [vmem:[#allocation2 + $0xd8] sm:$0x1] }
 0x214   : > { %v19857_v63 = vsel %vm19636_vm6, %v1506_v41, %v1633_v29  ;;  %v1407_v46 = vpack.c.bf16 %v1390_v6, %v1389_v49  ;;  %v1979_v6 = vshll.u32 %v19647_v10, 16  ;;  %v19866_v41 = vld [vmem:[#allocation2 + $0x28] sm:$0x1]  ;;  %v1975_v29 = vsel %vm1963_vm7, %v1970_v22, %v1974_v12  ;;  %v20231_v43 = vld [vmem:[#allocation2 + $0xd8] sm:$0x1] }
 0x215   : > { %1635 = vst [vmem:[#allocation2 + $0xe0] sm:$0xff] %v19857_v63  ;;  %16266 = vmatprep.mubr.bf16.mxu1 %v19857_v63  ;;  %v1996_v49 = vshll.u32 %v19866_v41, 16  ;;  %v1986_v22 = vrot.slane %v1984_v3, 1  ;;  %v1989_v12 = vshrl.u32 %v19668_v37, 16 }
 0x216   : > { %v1508_v18 = vshrl.u32 %v1407_v46, 16  ;;  %v1511_v7 = vshll.u32 %v1407_v46, 16  ;;  %v1981_v46 = vrot.slane %v1979_v6, 1  ;;  %v2015_v6 = vshll.u32 %v19708_v44, 16 }
 0x218   : > { %v1510_v23 = vrot.slane %v1508_v18, 7  ;;  %v1993_v18 = vrot.slane %v1991_v54, 1 }
 0x21a   : > { %v1513_v21 = vor.u32 %v1511_v7, %v1510_v23  ;;  %v1643_v14 = vsel %vm19513_vm4, %v1510_v23, %v1642_v55  ;;  %v1977_v55 = vshrl.u32 %v19647_v10, 16  ;;  %v1998_v23 = vrot.slane %v1996_v49, 1  ;;  %v19880_v7 = vld [vmem:[#allocation2 + $0x38] sm:$0x1] }
 0x21b   : > { %1644 = vst [vmem:[#allocation2 + $0xf8] sm:$0x1] %v1643_v14  ;;  %v19883_v14 = vld [vmem:[#allocation2 + $0x48] sm:$0x1]  ;;  %v1994_v16 = vor.u32 %v1993_v18, %v1989_v12  ;;  %v2008_v54 = vshll.u32 %v19880_v7, 16  ;;  %v18521_v18 = vld [vmem:[%s23861_s19 + $0x90] sm:$0xff]  }
 0x21c   : > { %v19872_v0 = vsel %vm19636_vm6, %v1513_v21, %v1639_v26  ;;  %v1982_v26 = vor.u32 %v1981_v46, %v1977_v55  ;;  %v2003_v21 = vshll.u32 %v19688_v9, 16  ;;  %v2020_v3 = vshll.u32 %v19883_v14, 16  ;;  %v20234_v38 = vld [vmem:[#allocation2 + $0xe0] sm:$0xff] }
 0x21d   : > { %1641 = vst [vmem:[#allocation2 + $0xf0] sm:$0xff] %v19872_v0  ;;  %16267 = vmatmul.mubr.bf16.gmra.mrb[28].mxu1 %v19872_v0  ;;  %v1999_v37 = vsel %vm1963_vm7, %v1994_v16, %v1998_v23  ;;  %v2017_v46 = vrot.slane %v2015_v6, 1  ;;  %v2001_v55 = vshrl.u32 %v19688_v9, 16  ;;  %v2013_v12 = vshrl.u32 %v19708_v44, 16  ;;  %v19902_v23 = vld [vmem:[#allocation2 + $0x68] sm:$0x1] }
 0x21e   : > { %16286 = vmatprep.mubr.bf16.mxu1 %v1975_v29  ;;  %v18520_v29 = vld [vmem:[%s23861_s19 + $0x88] sm:$0xff]   ;;  %v1987_v10 = vsel %vm1963_vm7, %v1982_v26, %v1986_v22  ;;  %v2005_v49 = vrot.slane %v2003_v21, 1  ;;  %v2010_v22 = vrot.slane %v2008_v54, 1  ;;  %v2022_v26 = vrot.slane %v2020_v3, 1  ;;  %v18522_v9 = vld [vmem:[%s23861_s19 + $0x98] sm:$0xff]  }
 0x21f   : > { %v2018_v21 = vor.u32 %v2017_v46, %v2013_v12  ;;  %v2039_v6 = vshll.u32 %v19742_v56, 16  ;;  %v18523_v46 = vld [vmem:[%s23861_s19 + $0xa0] sm:$0xff]  }
 0x220   : > { %v2006_v16 = vor.u32 %v2005_v49, %v2001_v55  ;;  %v2025_v55 = vshrl.u32 %v19728_v17, 16 }
 0x221   : > { %v2041_v49 = vrot.slane %v2039_v6, 1  ;;  %v2063_v6 = vshll.u32 %v19770_v32, 16 }
 0x222   : > { %v2011_v54 = vsel %vm1963_vm7, %v2006_v16, %v2010_v22  ;;  %v2037_v22 = vshrl.u32 %v19742_v56, 16  ;;  %v20249_v28 = vld [vmem:[#allocation2 + $0xf8] sm:$0x1] }
 0x225   : > { %16287 = vmatmul.mubr.bf16.vlgmr.msra.gmra.mrb[0].mxu1 %v1987_v10  ;;  %v19899_v10 = vld [vmem:[#allocation2 + $0x58] sm:$0x1] }
 0x226   : > { %16319 = vmatpush3.bf16.msra.mxu1 %v19718_v59  ;;  %16290 = vmatprep.mubr.bf16.mxu1 %v1999_v37  ;;  %v2027_v59 = vshll.u32 %v19728_v17, 16  ;;  %v2032_v44 = vshll.u32 %v19899_v10, 16  ;;  %v2023_v37 = vsel %vm1963_vm7, %v2018_v21, %v2022_v26  ;;  %v2051_v21 = vshll.u32 %v19756_v40, 16  ;;  %v18524_v17 = vld [vmem:[%s23861_s19 + $0xa8] sm:$0xff]  }
 0x227   : > { %16320 = vmatprep.subr.bf16.mxu1 %v18520_v29 }
 0x228   : > { %v2029_v3 = vrot.slane %v2027_v59, 1  ;;  %v2034_v12 = vrot.slane %v2032_v44, 1  ;;  %v19920_v59 = vld [vmem:[#allocation2 + $0x88] sm:$0x1] }
 0x22a   : > { %16321 = vmatpush3.bf16.msra.mxu1 %v18520_v29  ;;  %v2044_v29 = vshll.u32 %v19902_v23, 16  ;;  %v2030_v26 = vor.u32 %v2029_v3, %v2025_v55  ;;  %v2065_v3 = vrot.slane %v2063_v6, 1  ;;  %v2049_v55 = vshrl.u32 %v19756_v40, 16  ;;  %v18526_v40 = vld [vmem:[%s23861_s19 + $0xb8] sm:$0xff]  }
 0x22b   : > { %16322 = vmatprep.subr.bf16.mxu1 %v18521_v18 }
 0x22c   : > { %v2046_v16 = vrot.slane %v2044_v29, 1  ;;  %v2035_v44 = vsel %vm1963_vm7, %v2030_v26, %v2034_v12  ;;  %v2068_v29 = vshll.u32 %v19920_v59, 16  ;;  %v2061_v12 = vshrl.u32 %v19770_v32, 16 }
 0x22d   : > { %16291 = vmatmul.mubr.bf16.gmra.mrb[4].mxu1 %v2011_v54  ;;  %v19917_v54 = vld [vmem:[#allocation2 + $0x78] sm:$0x1] }
 0x22e   : > { %16294 = vmatprep.mubr.bf16.mxu1 %v2023_v37  ;;  %16323 = vmatpush3.bf16.msra.mxu1 %v18521_v18  ;;  %v2042_v18 = vor.u32 %v2041_v49, %v2037_v22  ;;  %v2056_v56 = vshll.u32 %v19917_v54, 16  ;;  %v18525_v49 = vld [vmem:[%s23861_s19 + $0xb0] sm:$0xff]   ;;  %v2070_v26 = vrot.slane %v2068_v29, 1 }
 0x22f   : > { %16324 = vmatprep.subr.bf16.mxu1 %v18522_v9 }
 0x230   : > { %v2047_v37 = vsel %vm1963_vm7, %v2042_v18, %v2046_v16  ;;  %v2058_v22 = vrot.slane %v2056_v56, 1  ;;  %v2075_v18 = vshll.u32 %v19784_v35, 16 }
 0x232   : > { %16325 = vmatpush3.bf16.msra.mxu1 %v18522_v9  ;;  %v2053_v9 = vrot.slane %v2051_v21, 1  ;;  %v2087_v21 = vshll.u32 %v19798_v8, 16 }
 0x233   : > { %16326 = vmatprep.subr.bf16.mxu1 %v18523_v46 }
 0x234   : > { %v2054_v16 = vor.u32 %v2053_v9, %v2049_v55  ;;  %v2077_v9 = vrot.slane %v2075_v18, 1  ;;  %v2089_v55 = vrot.slane %v2087_v21, 1  ;;  %v19959_v21 = vld [vmem:[#allocation2 + $0xb8] sm:$0x1] }
 0x235   : > { %16295 = vmatmul.mubr.bf16.gmra.mrb[8].mxu1 %v2035_v44  ;;  %v19935_v44 = vld [vmem:[#allocation2 + $0x98] sm:$0x1] }
 0x236   : > { %16298 = vmatprep.mubr.bf16.mxu1 %v2047_v37  ;;  %16327 = vmatpush3.bf16.msra.mxu1 %v18523_v46  ;;  %v19938_v37 = vld [vmem:[#allocation2 + $0xa8] sm:$0x1]  ;;  %v2066_v46 = vor.u32 %v2065_v3, %v2061_v12  ;;  %v2059_v6 = vsel %vm1963_vm7, %v2054_v16, %v2058_v22  ;;  %v2080_v32 = vshll.u32 %v19935_v44, 16  ;;  %v19951_v12 = vld [vmem:[%s23861_s19 + $0xc0] sm:$0xff]   ;;  %v2073_v16 = vshrl.u32 %v19784_v35, 16  ;;  %v1191_v35 = vpop.f32.mrb[60].mxu0 }
 0x237   : > { %16328 = vmatprep.subr.bf16.mxu1 %v18524_v17  ;;  %v2092_v29 = vshll.u32 %v19938_v37, 16  ;;  %v779_v3 = vld [vmem:[#allocation2 + $0x108] sm:$0x1] }
 0x238   : > { %v2071_v56 = vsel %vm1963_vm7, %v2066_v46, %v2070_v26  ;;  %v780_v26 = vsel %vm19507_vm3, 0, %v779_v3  ;;  %v2082_v46 = vrot.slane %v2080_v32, 1  ;;  %v2104_v3 = vshll.u32 %v19959_v21, 16 }
 0x239   : > { %781 = vst [vmem:[#allocation2 + $0x108] sm:$0x1] %v780_v26  ;;  %v2094_v18 = vrot.slane %v2092_v29, 1  ;;  %v19969_v29 = vpop.f32.mrb[61].mxu0 }
 0x23a   : > { %16329 = vmatpush3.bf16.msra.mxu1 %v18524_v17  ;;  %v729_v17 = vld [vmem:[#allocation2 + $0x100] sm:$0x1]  ;;  %23911 = vst [vmem:[#allocation66_spill] sm:$0xff] %v19969_v29  ;;  %v2106_v47 = vrot.slane %v2104_v3, 1  ;;  %v2109_v29 = vshrl.u32 %v19826_v4, 16 }
 0x23b   : > { %16330 = vmatprep.subr.bf16.mxu1 %v18525_v49  ;;  %v730_v22 = vsel %vm19513_vm4, 0, %v729_v17 }
 0x23c   : > { %731 = vst [vmem:[#allocation2 + $0x100] sm:$0x1] %v730_v22  ;;  %v2116_v22 = vshll.u32 %v19962_v58, 16 }
 0x23d   : > { %16299 = vmatmul.mubr.bf16.gmra.mrb[12].mxu1 %v2059_v6  ;;  %v2078_v6 = vor.u32 %v2077_v9, %v2073_v16 }
 0x23e   : > { %16302 = vmatprep.mubr.bf16.mxu1 %v2071_v56  ;;  %16331 = vmatpush3.bf16.msra.mxu1 %v18525_v49  ;;  %v2085_v49 = vshrl.u32 %v19798_v8, 16  ;;  %v2099_v56 = vshll.u32 %v19812_v50, 16  ;;  %v1192_v8 = vadd.f32 %v1191_v35, %v19621_v34 }
 0x23f   : > { %16332 = vmatprep.subr.bf16.mxu1 %v18526_v40  ;;  %v2083_v32 = vsel %vm1963_vm7, %v2078_v6, %v2082_v46  ;;  %v2113_v46 = vrot.slane %v2111_v60, 1  ;;  %v2097_v6 = vshrl.u32 %v19812_v50, 16  ;;  %v2128_v50 = vshll.u32 %v19978_v25, 16 }
 0x240   : > { %v2090_v17 = vor.u32 %v2089_v55, %v2085_v49  ;;  %v2101_v55 = vrot.slane %v2099_v56, 1  ;;  %v1391_v26 = vmax.f32 %v1192_v8, 0.0 }
 0x241   : > { %v2114_v8 = vor.u32 %v2113_v46, %v2109_v29  ;;  %v2121_v29 = vshrl.u32 %v19840_v51, 16  ;;  %v2130_v46 = vrot.slane %v2128_v50, 1 }
 0x242   : > { %16333 = vmatpush3.bf16.msra.mxu1 %v18526_v40  ;;  %v2095_v9 = vsel %vm1963_vm7, %v2090_v17, %v2094_v18  ;;  %v1195_v40 = vpop.f32.mrb[62].mxu0  ;;  %v2102_v18 = vor.u32 %v2101_v55, %v2097_v6  ;;  %v2123_v17 = vshll.u32 %v19840_v51, 16  ;;  %v1648_v55 = vld [vmem:[#allocation2 + $0x108] sm:$0x1] }
 0x243   : > { %16366 = vmatprep.subr.bf16.mxu1 %v19951_v12  ;;  %v1196_v16 = vadd.f32 %v1195_v40, %v19621_v34  ;;  %v19974_v49 = vpop.f32.mrb[63].mxu0  ;;  %v2135_v34 = vshll.u32 %v19857_v63, 16 }
 0x244   : > { %23912 = vst [vmem:[#allocation67_spill] sm:$0xff] %v19974_v49  ;;  %v2107_v60 = vsel %vm1963_vm7, %v2102_v18, %v2106_v47  ;;  %v2133_v18 = vshrl.u32 %v19857_v63, 16 }
 0x245   : > { %16303 = vmatmul.mubr.bf16.gmra.mrb[16].mxu1 %v2083_v32  ;;  %v1392_v35 = vmax.f32 %v1196_v16, 0.0  ;;  %v2118_v32 = vrot.slane %v2116_v22, 1  ;;  %v2125_v16 = vrot.slane %v2123_v17, 1  ;;  %v2137_v49 = vrot.slane %v2135_v34, 1 }
 0x246   : > { %16306 = vmatprep.mubr.bf16.mxu1 %v2095_v9  ;;  %v19981_v9 = vld [vmem:[#allocation2 + $0xe8] sm:$0x1] }
 0x247   : > { %v1408_v56 = vpack.c.bf16 %v1392_v35, %v1391_v26  ;;  %v2119_v4 = vsel %vm1963_vm7, %v2114_v8, %v2118_v32  ;;  %v2140_v22 = vshll.u32 %v19981_v9, 16  ;;  %v1645_v26 = vld [vmem:[#allocation2 + $0x100] sm:$0xff]  ;;  %v2126_v32 = vor.u32 %v2125_v16, %v2121_v29 }
 0x248   : > { %v2147_v8 = vshll.u32 %v19872_v0, 16  ;;  %v2138_v34 = vor.u32 %v2137_v49, %v2133_v18  ;;  %v2480_v16 = vrot.slane %v19850_v11, 1  ;;  %v18528_v11 = vld [vmem:[%s23861_s19 + $0xc8] sm:$0xff]  }
 0x249   : > { %v1515_v3 = vshrl.u32 %v1408_v56, 16  ;;  %v1518_v40 = vshll.u32 %v1408_v56, 16  ;;  %v2142_v56 = vrot.slane %v2140_v22, 1  ;;  %v2131_v50 = vsel %vm1963_vm7, %v2126_v32, %v2130_v46 }
 0x24a   : > { %v2149_v22 = vrot.slane %v2147_v8, 1  ;;  %v2483_v32 = vrot.slane %v19861_v19, 1  ;;  %v2486_v8 = vrot.slane %v19866_v41, 1  ;;  %v18529_v19 = vld [vmem:[%s23861_s19 + $0xd0] sm:$0xff]  }
 0x24b   : > { %v1517_v6 = vrot.slane %v1515_v3, 7 }
 0x24d   : > { %16307 = vmatmul.mubr.bf16.gmra.mrb[20].mxu1 %v2107_v60  ;;  %v1520_v35 = vor.u32 %v1518_v40, %v1517_v6  ;;  %v1649_v47 = vsel %vm19513_vm4, %v1517_v6, %v1648_v55  ;;  %v19992_v60 = vld [vmem:[#allocation2 + $0xf8] sm:$0x1]  ;;  %v2430_v40 = vld [vmem:[#allocation2] sm:$0xfe]  ;;  %v2145_v6 = vshrl.u32 %v19872_v0, 16 }
 0x24e   : > { %16310 = vmatprep.mubr.bf16.mxu1 %v2119_v4  ;;  %1650 = vst [vmem:[#allocation2 + $0x108] sm:$0x1] %v1649_v47  ;;  %v2152_v3 = vshll.u32 %v19992_v60, 16  ;;  %v2143_v4 = vsel %vm1963_vm7, %v2138_v34, %v2142_v56  ;;  %v2479_v55 = vrot.slane %v2430_v40, 1  ;;  %v2432_v47 = vld [vmem:[#allocation2 + $0x20] sm:$0xfe] }
 0x24f   : > { %v19997_v17 = vsel %vm19636_vm6, %v1520_v35, %v1645_v26  ;;  %v2150_v29 = vor.u32 %v2149_v22, %v2145_v6  ;;  %v2431_v35 = vld [vmem:[#allocation2 + $0x10] sm:$0xfe]  ;;  %v2485_v56 = vrot.slane %v2432_v47, 1  ;;  %v2434_v40 = vld [vmem:[#allocation2 + $0x40] sm:$0xfe]  ;;  %v2489_v22 = vrot.slane %v19880_v7, 1 }
 0x250   : > { %1647 = vst [vmem:[#allocation2 + $0x100] sm:$0xff] %v19997_v17  ;;  %v2154_v26 = vrot.slane %v2152_v3, 1  ;;  %v2481_v49 = vsel %vm2478_vm8, %v2479_v55, %v2480_v16  ;;  %v2482_v18 = vrot.slane %v2431_v35, 1  ;;  %v2433_v3 = vld [vmem:[#allocation2 + $0x30] sm:$0xfe]  ;;  %v2492_v55 = vrot.slane %v19883_v14, 1 }
 0x251   : > { %v2488_v41 = vrot.slane %v2433_v3, 1  ;;  %v18530_v16 = vld [vmem:[%s23861_s19 + $0xd8] sm:$0xff]   ;;  %v18531_v7 = vld [vmem:[%s23861_s19 + $0xe0] sm:$0xff]   ;;  %v2498_v35 = vrot.slane %v19902_v23, 1  ;;  %v18532_v47 = vld [vmem:[%s23861_s19 + $0xe8] sm:$0xff]  }
 0x252   : > { %v2155_v46 = vsel %vm1963_vm7, %v2150_v29, %v2154_v26  ;;  %v2484_v34 = vsel %vm2478_vm8, %v2482_v18, %v2483_v32  ;;  %v2435_v26 = vld [vmem:[#allocation2 + $0x50] sm:$0xfe]  ;;  %v2436_v29 = vld [vmem:[#allocation2 + $0x60] sm:$0xfe]  ;;  %v18534_v3 = vld [vmem:[%s23861_s19 + $0xf8] sm:$0xff]  }
 0x253   : > { %v2494_v14 = vrot.slane %v2435_v26, 1  ;;  %v2437_v32 = vld [vmem:[#allocation2 + $0x70] sm:$0xfe] }
 0x254   : > { %v2500_v23 = vrot.slane %v2437_v32, 1  ;;  %v2441_v26 = vld [vmem:[#allocation2 + $0xb0] sm:$0xfe]  ;;  %v2519_v32 = vrot.slane %v19978_v25, 1  ;;  %v18536_v25 = vld [vmem:[%s23861_s19 + $0x108] sm:$0xff]  }
 0x255   : > { %16311 = vmatmul.mubr.bf16.gmra.mrb[24].mxu1 %v2131_v50  ;;  %v2487_v50 = vsel %vm2478_vm8, %v2485_v56, %v2486_v8  ;;  %v2438_v8 = vld [vmem:[#allocation2 + $0x80] sm:$0xfe] }
 0x256   : > { %16314 = vmatprep.mubr.bf16.mxu1 %v2143_v4  ;;  %v2491_v4 = vrot.slane %v2434_v40, 1 }
 0x258   : > { %v2493_v6 = vsel %vm2478_vm8, %v2491_v4, %v2492_v55  ;;  %v2440_v4 = vld [vmem:[#allocation2 + $0xa0] sm:$0xfe]  ;;  %v2507_v55 = vrot.slane %v19935_v44, 1 }
 0x25d   : > { %16315 = vmatmul.mubr.bf16.gmra.mrb[28].mxu1 %v2155_v46  ;;  %v2495_v46 = vrot.slane %v19899_v10, 1  ;;  %v18533_v10 = vld [vmem:[%s23861_s19 + $0xf0] sm:$0xff]  }
 0x25e   : > { %16334 = vmatprep.mubr.bf16.mxu1 %v2481_v49  ;;  %v2497_v49 = vrot.slane %v2436_v29, 1  ;;  %v2442_v29 = vld [vmem:[#allocation2 + $0xc0] sm:$0xfe] }
 0x25f   : > { %v2496_v18 = vsel %vm2478_vm8, %v2494_v14, %v2495_v46  ;;  %v2515_v14 = vrot.slane %v2442_v29, 1  ;;  %v2516_v46 = vrot.slane %v19962_v58, 1  ;;  %v2445_v58 = vld [vmem:[#allocation2 + $0xf0] sm:$0xfe]  ;;  %v20110_v29 = vld [vmem:[#allocation2 + $0xa0] sm:$0xff] }
 0x260   : > { %v2499_v56 = vsel %vm2478_vm8, %v2497_v49, %v2498_v35  ;;  %v2513_v49 = vrot.slane %v19959_v21, 1  ;;  %v2443_v35 = vld [vmem:[#allocation2 + $0xd0] sm:$0xfe] }
 0x265   : > { %16335 = vmatmul.mubr.bf16.vlgmr.msra.gmra.mrb[0].mxu1 %v2484_v34  ;;  %v2501_v34 = vrot.slane %v19917_v54, 1  ;;  %v18535_v54 = vld [vmem:[%s23861_s19 + $0x100] sm:$0xff]  }
 0x266   : > { %16367 = vmatpush3.bf16.msra.mxu1 %v19951_v12  ;;  %16338 = vmatprep.mubr.bf16.mxu1 %v2487_v50  ;;  %v2490_v12 = vsel %vm2478_vm8, %v2488_v41, %v2489_v22  ;;  %v2504_v50 = vrot.slane %v19920_v59, 1  ;;  %v2439_v41 = vld [vmem:[#allocation2 + $0x90] sm:$0xfe]  ;;  %v2509_v22 = vrot.slane %v2440_v4, 1  ;;  %v18539_v4 = vld [vmem:[%s23861_s19 + $0x120] sm:$0xff]  }
 0x267   : > { %16368 = vmatprep.subr.bf16.mxu1 %v18528_v11  ;;  %v2502_v40 = vsel %vm2478_vm8, %v2500_v23, %v2501_v34  ;;  %v2506_v59 = vrot.slane %v2439_v41, 1  ;;  %v2524_v23 = vrot.slane %v2445_v58, 1  ;;  %v20080_v41 = vld [vmem:[#allocation2 + $0x50] sm:$0xff] }
 0x26a   : > { %16369 = vmatpush3.bf16.msra.mxu1 %v18528_v11  ;;  %v2503_v11 = vrot.slane %v2438_v8, 1  ;;  %v2522_v8 = vrot.slane %v19981_v9, 1  ;;  %v20065_v9 = vld [vmem:[#allocation2 + $0x20] sm:$0xff] }
 0x26b   : > { %16370 = vmatprep.subr.bf16.mxu1 %v18529_v19 }
 0x26d   : > { %16339 = vmatmul.mubr.bf16.gmra.mrb[4].mxu1 %v2490_v12  ;;  %v2508_v12 = vsel %vm2478_vm8, %v2506_v59, %v2507_v55  ;;  %v20089_v59 = vld [vmem:[#allocation2 + $0x60] sm:$0xff]  ;;  %v18541_v55 = vld [vmem:[%s23861_s19 + $0x130] sm:$0xff]  }
 0x26e   : > { %16342 = vmatprep.mubr.bf16.mxu1 %v2493_v6  ;;  %16371 = vmatpush3.bf16.msra.mxu1 %v18529_v19  ;;  %v2505_v19 = vsel %vm2478_vm8, %v2503_v11, %v2504_v50  ;;  %v2525_v11 = vrot.slane %v19992_v60, 1  ;;  %v2801_v50 = vld [vmem:[#allocation2 + $0x10] sm:$0xff] }
 0x26f   : > { %16372 = vmatprep.subr.bf16.mxu1 %v18530_v16  ;;  %v18537_v60 = vld [vmem:[%s23861_s19 + $0x110] sm:$0xff]  }
 0x270   : > { %v2526_v34 = vsel %vm2478_vm8, %v2524_v23, %v2525_v11 }
 0x272   : > { %16373 = vmatpush3.bf16.msra.mxu1 %v18530_v16  ;;  %v2510_v16 = vrot.slane %v19938_v37, 1  ;;  %v2517_v37 = vsel %vm2478_vm8, %v2515_v14, %v2516_v46  ;;  %v20116_v14 = vld [vmem:[#allocation2 + $0xc0] sm:$0xff]  ;;  %v20120_v46 = vld [vmem:[#allocation2 + $0x18] sm:$0x1] }
 0x273   : > { %16374 = vmatprep.subr.bf16.mxu1 %v18531_v7 }
 0x274   : > { %v2511_v6 = vsel %vm2478_vm8, %v2509_v22, %v2510_v16  ;;  %v20092_v22 = vld [vmem:[#allocation2 + $0x70] sm:$0xff]  ;;  %v18542_v16 = vld [vmem:[%s23861_s19 + $0x138] sm:$0xff]  }
 0x275   : > { %16343 = vmatmul.mubr.bf16.gmra.mrb[8].mxu1 %v2496_v18  ;;  %v2518_v18 = vrot.slane %v2443_v35, 1  ;;  %v3115_v35 = vshll.u32 %v20120_v46, 16 }
 0x276   : > { %16346 = vmatprep.mubr.bf16.mxu1 %v2499_v56  ;;  %16375 = vmatpush3.bf16.msra.mxu1 %v18531_v7  ;;  %v2512_v7 = vrot.slane %v2441_v26, 1  ;;  %v18543_v26 = vld [vmem:[%s23861_s19 + $0x140] sm:$0xff]  }
 0x277   : > { %16376 = vmatprep.subr.bf16.mxu1 %v18532_v47 }
 0x278   : > { %v2514_v44 = vsel %vm2478_vm8, %v2512_v7, %v2513_v49  ;;  %v20113_v7 = vld [vmem:[#allocation2 + $0xb0] sm:$0xff]  ;;  %v3110_v49 = vshll.u32 %v2801_v50, 16 }
 0x27a   : > { %16377 = vmatpush3.bf16.msra.mxu1 %v18532_v47  ;;  %v2444_v47 = vld [vmem:[#allocation2 + $0xe0] sm:$0xfe] }
 0x27b   : > { %16378 = vmatprep.subr.bf16.mxu1 %v18533_v10  ;;  %v2521_v56 = vrot.slane %v2444_v47, 1  ;;  %v3122_v47 = vshll.u32 %v20065_v9, 16 }
 0x27d   : > { %16347 = vmatmul.mubr.bf16.gmra.mrb[12].mxu1 %v2502_v40  ;;  %v2523_v21 = vsel %vm2478_vm8, %v2521_v56, %v2522_v8  ;;  %v18538_v40 = vld [vmem:[%s23861_s19 + $0x118] sm:$0xff]   ;;  %v20127_v8 = vld [vmem:[#allocation2 + $0x28] sm:$0x1] }
 0x27e   : > { %16350 = vmatprep.mubr.bf16.mxu1 %v2505_v19  ;;  %16379 = vmatpush3.bf16.msra.mxu1 %v18533_v10  ;;  %v2520_v10 = vsel %vm2478_vm8, %v2518_v18, %v2519_v32  ;;  %v20077_v19 = vld [vmem:[#allocation2 + $0x40] sm:$0xff]  ;;  %v3117_v32 = vrot.slane %v3115_v35, 1  ;;  %v3127_v58 = vshll.u32 %v20127_v8, 16  ;;  %v3625_v48 = vrot.slane %v20127_v8, 1 }
 0x27f   : > { %16380 = vmatprep.subr.bf16.mxu1 %v18534_v3 }
 0x282   : > { %16381 = vmatpush3.bf16.msra.mxu1 %v18534_v3  ;;  %v20068_v3 = vld [vmem:[#allocation2 + $0x30] sm:$0xff] }
 0x283   : > { %16414 = vmatprep.subr.bf16.mxu1 %v18535_v54  ;;  %v3134_v56 = vshll.u32 %v20068_v3, 16  ;;  %v3132_v23 = vshrl.u32 %v20068_v3, 16 }
 0x285   : > { %16351 = vmatmul.mubr.bf16.gmra.mrb[16].mxu1 %v2508_v12  ;;  %v20101_v12 = vld [vmem:[#allocation2 + $0x80] sm:$0xff] }
 0x286   : > { %16354 = vmatprep.mubr.bf16.mxu1 %v2511_v6  ;;  %v20104_v6 = vld [vmem:[#allocation2 + $0x90] sm:$0xff] }
 0x28d   : > { %16355 = vmatmul.mubr.bf16.gmra.mrb[20].mxu1 %v2514_v44  ;;  %v3112_v44 = vrot.slane %v3110_v49, 1 }
 0x28e   : > { %16358 = vmatprep.mubr.bf16.mxu1 %v2517_v37  ;;  %v3108_v37 = vshrl.u32 %v2801_v50, 16 }
 0x290   : > { %v3113_v18 = vor.u32 %v3112_v44, %v3108_v37  ;;  %v20150_v44 = vld [vmem:[#allocation2 + $0x58] sm:$0x1] }
 0x295   : > { %16359 = vmatmul.mubr.bf16.gmra.mrb[24].mxu1 %v2520_v10  ;;  %v20129_v10 = vld [vmem:[#allocation2 + $0x38] sm:$0x1] }
 0x296   : > { %16362 = vmatprep.mubr.bf16.mxu1 %v2523_v21  ;;  %v3136_v21 = vrot.slane %v3134_v56, 1  ;;  %v3139_v11 = vshll.u32 %v20129_v10, 16  ;;  %v3156_v56 = vshrl.u32 %v20080_v41, 16 }
 0x29d   : > { %16363 = vmatmul.mubr.bf16.gmra.mrb[28].mxu1 %v2526_v34 }
 0x29e   : > { %16382 = vmatprep.mubr.bf16.mxu1 %v2801_v50  ;;  %v3146_v50 = vshll.u32 %v20077_v19, 16 }
 0x2a0   : > { %v3148_v49 = vrot.slane %v3146_v50, 1  ;;  %v18546_v50 = vld [vmem:[%s23861_s19 + $0x158] sm:$0xff]  }
 0x2a5   : > { %16383 = vmatmul.mubr.bf16.vlgmr.msra.gmra.mrb[0].mxu1 %v20065_v9 }
 0x2a6   : > { %16415 = vmatpush3.bf16.msra.mxu1 %v18535_v54  ;;  %16386 = vmatprep.mubr.bf16.mxu1 %v20068_v3  ;;  %v18540_v54 = vld [vmem:[%s23861_s19 + $0x128] sm:$0xff]  }
 0x2a7   : > { %16416 = vmatprep.subr.bf16.mxu1 %v18536_v25 }
 0x2aa   : > { %16417 = vmatpush3.bf16.msra.mxu1 %v18536_v25  ;;  %v20140_v25 = vor.u32 %v3136_v21, %v3132_v23  ;;  %v3170_v21 = vshll.u32 %v20089_v59, 16 }
 0x2ab   : > { %16418 = vmatprep.subr.bf16.mxu1 %v18537_v60 }
 0x2ad   : > { %16387 = vmatmul.mubr.bf16.gmra.mrb[4].mxu1 %v20077_v19 }
 0x2ae   : > { %16390 = vmatprep.mubr.bf16.mxu1 %v20080_v41  ;;  %16419 = vmatpush3.bf16.msra.mxu1 %v18537_v60  ;;  %v3158_v60 = vshll.u32 %v20080_v41, 16 }
 0x2af   : > { %16420 = vmatprep.subr.bf16.mxu1 %v18538_v40 }
 0x2b0   : > { %v3160_v35 = vrot.slane %v3158_v60, 1 }
 0x2b2   : > { %16421 = vmatpush3.bf16.msra.mxu1 %v18538_v40  ;;  %v3129_v40 = vrot.slane %v3127_v58, 1 }
 0x2b3   : > { %16422 = vmatprep.subr.bf16.mxu1 %v18539_v4 }
 0x2b5   : > { %16391 = vmatmul.mubr.bf16.gmra.mrb[8].mxu1 %v20089_v59 }
 0x2b6   : > { %16394 = vmatprep.mubr.bf16.mxu1 %v20092_v22  ;;  %16423 = vmatpush3.bf16.msra.mxu1 %v18539_v4  ;;  %v3141_v4 = vrot.slane %v3139_v11, 1  ;;  %v20167_v11 = vld [vmem:[#allocation2 + $0x68] sm:$0x1] }
 0x2b7   : > { %16424 = vmatprep.subr.bf16.mxu1 %v18540_v54 }
 0x2b8   : > { %v3142_v37 = vsel %vm1963_vm7, %v20140_v25, %v3141_v4  ;;  %v20174_v4 = vld [vmem:[#allocation2 + $0x78] sm:$0x1] }
 0x2ba   : > { %16425 = vmatpush3.bf16.msra.mxu1 %v18540_v54  ;;  %v18544_v54 = vld [vmem:[%s23861_s19 + $0x148] sm:$0xff]  }
 0x2bb   : > { %16426 = vmatprep.subr.bf16.mxu1 %v18541_v55 }
 0x2bd   : > { %16395 = vmatmul.mubr.bf16.gmra.mrb[12].mxu1 %v20101_v12 }
 0x2be   : > { %16398 = vmatprep.mubr.bf16.mxu1 %v20104_v6  ;;  %16427 = vmatpush3.bf16.msra.mxu1 %v18541_v55  ;;  %v20146_v55 = vld [vmem:[#allocation2 + $0x48] sm:$0x1] }
 0x2bf   : > { %16428 = vmatprep.subr.bf16.mxu1 %v18542_v16 }
 0x2c2   : > { %16429 = vmatpush3.bf16.msra.mxu1 %v18542_v16 }
 0x2c3   : > { %16462 = vmatprep.subr.bf16.mxu1 %v18543_v26 }
 0x2c5   : > { %16399 = vmatmul.mubr.bf16.gmra.mrb[16].mxu1 %v20110_v29 }
 0x2c6   : > { %16402 = vmatprep.mubr.bf16.mxu1 %v20113_v7 }
 0x2cd   : > { %16403 = vmatmul.mubr.bf16.gmra.mrb[20].mxu1 %v20116_v14 }
 0x2ce   : > { %16406 = vmatprep.mubr.bf16.mxu1 %v19840_v51  ;;  %v3124_v51 = vrot.slane %v3122_v47, 1  ;;  %v3144_v47 = vshrl.u32 %v20077_v19, 16 }
 0x2d5   : > { %16407 = vmatmul.mubr.bf16.gmra.mrb[24].mxu1 %v19857_v63  ;;  %v3118_v63 = vsel %vm1963_vm7, %v3113_v18, %v3117_v32  ;;  %v3151_v18 = vshll.u32 %v20146_v55, 16  ;;  %v3163_v32 = vshll.u32 %v20150_v44, 16 }
 0x2d6   : > { %16410 = vmatprep.mubr.bf16.mxu1 %v19872_v0  ;;  %v3120_v0 = vshrl.u32 %v20065_v9, 16 }
 0x2d7   : > { %v3153_v58 = vrot.slane %v3151_v18, 1  ;;  %v3165_v23 = vrot.slane %v3163_v32, 1  ;;  %v18547_v18 = vld [vmem:[%s23861_s19 + $0x160] sm:$0xff]   ;;  %v3194_v32 = vshll.u32 %v20101_v12, 16 }
 0x2d8   : > { %v20137_v34 = vor.u32 %v3124_v51, %v3120_v0  ;;  %v18545_v51 = vld [vmem:[%s23861_s19 + $0x150] sm:$0xff]   ;;  %v20164_v0 = vor.u32 %v3160_v35, %v3156_v56  ;;  %v3180_v35 = vshrl.u32 %v20092_v22, 16 }
 0x2d9   : > { %v3196_v62 = vrot.slane %v3194_v32, 1  ;;  %v3218_v32 = vshll.u32 %v20110_v29, 16 }
 0x2da   : > { %v3130_v16 = vsel %vm1963_vm7, %v20137_v34, %v3129_v40  ;;  %v3172_v40 = vrot.slane %v3170_v21, 1 }
 0x2db   : > { %v3220_v15 = vrot.slane %v3218_v32, 1 }
 0x2dd   : > { %16411 = vmatmul.mubr.bf16.gmra.mrb[28].mxu1 %v19997_v17 }
 0x2de   : > { %16430 = vmatprep.mubr.bf16.mxu1 %v3118_v63  ;;  %v20161_v63 = vor.u32 %v3148_v49, %v3144_v47  ;;  %v3187_v47 = vshll.u32 %v20174_v4, 16 }
 0x2e0   : > { %v3154_v60 = vsel %vm1963_vm7, %v20161_v63, %v3153_v58 }
 0x2e5   : > { %16431 = vmatmul.mubr.bf16.vlgmr.msra.gmra.mrb[0].mxu1 %v3130_v16  ;;  %v3166_v16 = vsel %vm1963_vm7, %v20164_v0, %v3165_v23  ;;  %v3189_v23 = vrot.slane %v3187_v47, 1  ;;  %v18549_v47 = vld [vmem:[%s23861_s19 + $0x170] sm:$0xff]  }
 0x2e6   : > { %16463 = vmatpush3.bf16.msra.mxu1 %v18543_v26  ;;  %16434 = vmatprep.mubr.bf16.mxu1 %v3142_v37  ;;  %v3182_v26 = vshll.u32 %v20092_v22, 16  ;;  %v3175_v37 = vshll.u32 %v20167_v11, 16 }
 0x2e7   : > { %16464 = vmatprep.subr.bf16.mxu1 %v18544_v54 }
 0x2e8   : > { %v3184_v49 = vrot.slane %v3182_v26, 1  ;;  %v3206_v26 = vshll.u32 %v20104_v6, 16  ;;  %v3177_v58 = vrot.slane %v3175_v37, 1  ;;  %v3204_v37 = vshrl.u32 %v20104_v6, 16 }
 0x2ea   : > { %16465 = vmatpush3.bf16.msra.mxu1 %v18544_v54  ;;  %v3168_v54 = vshrl.u32 %v20089_v59, 16  ;;  %v3185_v21 = vor.u32 %v3184_v49, %v3180_v35  ;;  %v3208_v49 = vrot.slane %v3206_v26, 1  ;;  %v3211_v35 = vshll.u32 %v20193_v1, 16 }
 0x2eb   : > { %16466 = vmatprep.subr.bf16.mxu1 %v18545_v51  ;;  %v3230_v26 = vshll.u32 %v20113_v7, 16 }
 0x2ec   : > { %v3173_v56 = vor.u32 %v3172_v40, %v3168_v54  ;;  %v3190_v40 = vsel %vm1963_vm7, %v3185_v21, %v3189_v23  ;;  %v3209_v21 = vor.u32 %v3208_v49, %v3204_v37  ;;  %v3213_v23 = vrot.slane %v3211_v35, 1 }
 0x2ed   : > { %16435 = vmatmul.mubr.bf16.gmra.mrb[4].mxu1 %v3154_v60  ;;  %v20187_v60 = vld [vmem:[#allocation2 + $0x88] sm:$0x1]  ;;  %v3232_v49 = vrot.slane %v3230_v26, 1  ;;  %v3228_v37 = vshrl.u32 %v20113_v7, 16  ;;  %v3235_v35 = vshll.u32 %v20211_v61, 16 }
 0x2ee   : > { %16438 = vmatprep.mubr.bf16.mxu1 %v3166_v16  ;;  %16467 = vmatpush3.bf16.msra.mxu1 %v18545_v51  ;;  %v18548_v51 = vld [vmem:[%s23861_s19 + $0x168] sm:$0xff]   ;;  %v3178_v16 = vsel %vm1963_vm7, %v3173_v56, %v3177_v58  ;;  %v3199_v54 = vshll.u32 %v20187_v60, 16 }
 0x2ef   : > { %16468 = vmatprep.subr.bf16.mxu1 %v18546_v50  ;;  %v3233_v26 = vor.u32 %v3232_v49, %v3228_v37  ;;  %v3240_v49 = vshrl.u32 %v20116_v14, 16 }
 0x2f0   : > { %v3201_v58 = vrot.slane %v3199_v54, 1  ;;  %v20216_v54 = vld [vmem:[#allocation2 + $0xd0] sm:$0xff] }
 0x2f1   : > { %v3252_v37 = vshrl.u32 %v20216_v54, 16 }
 0x2f2   : > { %16469 = vmatpush3.bf16.msra.mxu1 %v18546_v50  ;;  %v3192_v50 = vshrl.u32 %v20101_v12, 16 }
 0x2f3   : > { %16470 = vmatprep.subr.bf16.mxu1 %v18547_v18 }
 0x2f4   : > { %v3197_v56 = vor.u32 %v3196_v62, %v3192_v50  ;;  %v3214_v62 = vsel %vm1963_vm7, %v3209_v21, %v3213_v23  ;;  %v3242_v21 = vshll.u32 %v20116_v14, 16 }
 0x2f5   : > { %16439 = vmatmul.mubr.bf16.gmra.mrb[8].mxu1 %v3178_v16  ;;  %v20205_v16 = vld [vmem:[#allocation2 + $0xa8] sm:$0x1] }
 0x2f6   : > { %16442 = vmatprep.mubr.bf16.mxu1 %v3190_v40  ;;  %16471 = vmatpush3.bf16.msra.mxu1 %v18547_v18  ;;  %v18550_v18 = vld [vmem:[%s23861_s19 + $0x178] sm:$0xff]   ;;  %v3202_v40 = vsel %vm1963_vm7, %v3197_v56, %v3201_v58  ;;  %v3223_v50 = vshll.u32 %v20205_v16, 16  ;;  %v20223_v56 = vld [vmem:[%s23861_s19 + $0x180] sm:$0xff]   ;;  %v3254_v58 = vshll.u32 %v20216_v54, 16  ;;  %v3244_v53 = vrot.slane %v3242_v21, 1 }
 0x2f7   : > { %16472 = vmatprep.subr.bf16.mxu1 %v18548_v51  ;;  %v3266_v21 = vshll.u32 %v20234_v38, 16 }
 0x2f8   : > { %v3225_v23 = vrot.slane %v3223_v50, 1  ;;  %v20238_v50 = vld [vmem:[#allocation2 + $0xf0] sm:$0xff] }
 0x2f9   : > { %v3268_v31 = vrot.slane %v3266_v21, 1 }
 0x2fa   : > { %16473 = vmatpush3.bf16.msra.mxu1 %v18548_v51  ;;  %v3216_v51 = vshrl.u32 %v20110_v29, 16 }
 0x2fb   : > { %16474 = vmatprep.subr.bf16.mxu1 %v18549_v47 }
 0x2fc   : > { %v3221_v32 = vor.u32 %v3220_v15, %v3216_v51  ;;  %v3256_v51 = vrot.slane %v3254_v58, 1 }
 0x2fd   : > { %16443 = vmatmul.mubr.bf16.gmra.mrb[12].mxu1 %v3202_v40  ;;  %v3237_v40 = vrot.slane %v3235_v35, 1  ;;  %v3259_v35 = vshll.u32 %v20231_v43, 16 }
 0x2fe   : > { %16446 = vmatprep.mubr.bf16.mxu1 %v3214_v62  ;;  %16475 = vmatpush3.bf16.msra.mxu1 %v18549_v47  ;;  %v20227_v47 = vld [vmem:[#allocation2 + $0xc8] sm:$0x1]  ;;  %v3226_v62 = vsel %vm1963_vm7, %v3221_v32, %v3225_v23  ;;  %v3245_v32 = vor.u32 %v3244_v53, %v3240_v49  ;;  %v20243_v23 = vor.u32 %v3256_v51, %v3252_v37  ;;  %v3264_v51 = vshrl.u32 %v20234_v38, 16 }
 0x2ff   : > { %16476 = vmatprep.subr.bf16.mxu1 %v18550_v18  ;;  %v3238_v15 = vsel %vm1963_vm7, %v3233_v26, %v3237_v40  ;;  %v3278_v26 = vshll.u32 %v20238_v50, 16  ;;  %v3261_v40 = vrot.slane %v3259_v35, 1  ;;  %v3283_v37 = vshll.u32 %v20249_v28, 16 }
 0x300   : > { %v20257_v35 = vor.u32 %v3268_v31, %v3264_v51  ;;  %v3573_v51 = vld [vmem:[#allocation2 + $0x10] sm:$0xfe] }
 0x301   : > { %v3262_v2 = vsel %vm1963_vm7, %v20243_v23, %v3261_v40  ;;  %v3280_v53 = vrot.slane %v3278_v26, 1  ;;  %v3285_v40 = vrot.slane %v3283_v37, 1  ;;  %v3288_v26 = vshrl.u32 %v19997_v17, 16 }
 0x302   : > { %16477 = vmatpush3.bf16.msra.mxu1 %v18550_v18  ;;  %v3247_v18 = vshll.u32 %v20227_v47, 16  ;;  %v3621_v5 = vrot.slane %v3573_v51, 1 }
 0x303   : > { %16510 = vmatprep.subr.bf16.mxu1 %v20223_v56 }
 0x304   : > { %v3249_v58 = vrot.slane %v3247_v18, 1  ;;  %v3276_v18 = vshrl.u32 %v20238_v50, 16 }
 0x305   : > { %16447 = vmatmul.mubr.bf16.gmra.mrb[16].mxu1 %v3226_v62  ;;  %v20246_v62 = vld [vmem:[#allocation2 + $0xe8] sm:$0x1] }
 0x306   : > { %16450 = vmatprep.mubr.bf16.mxu1 %v3238_v15  ;;  %v3250_v15 = vsel %vm1963_vm7, %v3245_v32, %v3249_v58  ;;  %v3271_v49 = vshll.u32 %v20246_v62, 16  ;;  %v3290_v32 = vshll.u32 %v19997_v17, 16  ;;  %v20260_v21 = vor.u32 %v3280_v53, %v3276_v18  ;;  %v20262_v58 = vld [vmem:[#allocation2 + $0x108] sm:$0x1] }
 0x307   : > { %v3295_v13 = vshll.u32 %v20262_v58, 16 }
 0x308   : > { %v3292_v20 = vrot.slane %v3290_v32, 1  ;;  %v3286_v31 = vsel %vm1963_vm7, %v20260_v21, %v3285_v40  ;;  %v3575_v32 = vld [vmem:[#allocation2 + $0x30] sm:$0xfe]  ;;  %v3628_v40 = vrot.slane %v20129_v10, 1 }
 0x309   : > { %v3297_v18 = vrot.slane %v3295_v13, 1  ;;  %v18552_v13 = vld [vmem:[%s23861_s19 + $0x188] sm:$0xff]  }
 0x30a   : > { %v3293_v53 = vor.u32 %v3292_v20, %v3288_v26  ;;  %v3626_v20 = vsel %vm2478_vm8, %v3624_v52, %v3625_v48  ;;  %v3576_v26 = vld [vmem:[#allocation2 + $0x40] sm:$0xfe]  ;;  %v3634_v48 = vrot.slane %v20150_v44, 1  ;;  %v18554_v52 = vld [vmem:[%s23861_s19 + $0x198] sm:$0xff]  }
 0x30b   : > { %v3630_v8 = vrot.slane %v3576_v26, 1  ;;  %v3643_v26 = vrot.slane %v20187_v60, 1  ;;  %v18559_v60 = vld [vmem:[%s23861_s19 + $0x1c0] sm:$0xff]  }
 0x30c   : > { %v3298_v37 = vsel %vm1963_vm7, %v3293_v53, %v3297_v18  ;;  %v3578_v53 = vld [vmem:[#allocation2 + $0x60] sm:$0xfe]  ;;  %v3579_v18 = vld [vmem:[#allocation2 + $0x70] sm:$0xfe] }
 0x30d   : > { %16451 = vmatmul.mubr.bf16.gmra.mrb[20].mxu1 %v3250_v15  ;;  %v3273_v15 = vrot.slane %v3271_v49, 1  ;;  %v3622_v49 = vrot.slane %v20120_v46, 1  ;;  %v3636_v44 = vrot.slane %v3578_v53, 1 }
 0x30e   : > { %16454 = vmatprep.mubr.bf16.mxu1 %v3262_v2 }
 0x30f   : > { %v3274_v2 = vsel %vm1963_vm7, %v20257_v35, %v3273_v15  ;;  %v3623_v15 = vsel %vm2478_vm8, %v3621_v5, %v3622_v49  ;;  %v3577_v5 = vld [vmem:[#allocation2 + $0x50] sm:$0xfe]  ;;  %v3639_v49 = vrot.slane %v3579_v18, 1 }
 0x310   : > { %v3633_v10 = vrot.slane %v3577_v5, 1  ;;  %v3646_v5 = vrot.slane %v20193_v1, 1 }
 0x312   : > { %v3635_v51 = vsel %vm2478_vm8, %v3633_v10, %v3634_v48  ;;  %v3583_v48 = vld [vmem:[#allocation2 + $0xb0] sm:$0xfe] }
 0x315   : > { %16455 = vmatmul.mubr.bf16.gmra.mrb[24].mxu1 %v3274_v2  ;;  %v3627_v2 = vrot.slane %v3575_v32, 1  ;;  %v18556_v32 = vld [vmem:[%s23861_s19 + $0x1a8] sm:$0xff]  }
 0x316   : > { %16458 = vmatprep.mubr.bf16.mxu1 %v3286_v31  ;;  %v3631_v31 = vrot.slane %v20146_v55, 1  ;;  %v18555_v55 = vld [vmem:[%s23861_s19 + $0x1a0] sm:$0xff]  }
 0x317   : > { %v3629_v46 = vsel %vm2478_vm8, %v3627_v2, %v3628_v40 }
 0x31d   : > { %16459 = vmatmul.mubr.bf16.gmra.mrb[28].mxu1 %v3298_v37  ;;  %v3637_v37 = vrot.slane %v20167_v11, 1  ;;  %v18557_v11 = vld [vmem:[%s23861_s19 + $0x1b0] sm:$0xff]  }
 0x31e   : > { %16478 = vmatprep.mubr.bf16.mxu1 %v3623_v15  ;;  %v3640_v15 = vrot.slane %v20174_v4, 1 }
 0x31f   : > { %v3638_v2 = vsel %vm2478_vm8, %v3636_v44, %v3637_v37  ;;  %v3585_v44 = vld [vmem:[#allocation2 + $0xd0] sm:$0xfe] }
 0x320   : > { %v3641_v40 = vsel %vm2478_vm8, %v3639_v49, %v3640_v15  ;;  %v3657_v37 = vrot.slane %v3585_v44, 1  ;;  %v3655_v15 = vrot.slane %v20227_v47, 1 }
 0x325   : > { %16479 = vmatmul.mubr.bf16.vlgmr.msra.gmra.mrb[0].mxu1 %v3626_v20  ;;  %v3581_v20 = vld [vmem:[#allocation2 + $0x90] sm:$0xfe] }
 0x326   : > { %16511 = vmatpush3.bf16.msra.mxu1 %v20223_v56  ;;  %16482 = vmatprep.mubr.bf16.mxu1 %v3629_v46  ;;  %v3632_v56 = vsel %vm2478_vm8, %v3630_v8, %v3631_v31  ;;  %v3645_v46 = vrot.slane %v3581_v20, 1  ;;  %v3582_v31 = vld [vmem:[#allocation2 + $0xa0] sm:$0xfe] }
 0x327   : > { %16512 = vmatprep.subr.bf16.mxu1 %v18552_v13  ;;  %v3648_v1 = vrot.slane %v3582_v31, 1  ;;  %v4226_v31 = vld [vmem:[#allocation2 + $0x60] sm:$0xff] }
 0x328   : > { %v3647_v10 = vsel %vm2478_vm8, %v3645_v46, %v3646_v5  ;;  %v3667_v5 = vrot.slane %v20262_v58, 1 }
 0x32a   : > { %16513 = vmatpush3.bf16.msra.mxu1 %v18552_v13  ;;  %v3580_v13 = vld [vmem:[#allocation2 + $0x80] sm:$0xfe] }
 0x32b   : > { %16514 = vmatprep.subr.bf16.mxu1 %v18553_v57  ;;  %v3642_v4 = vrot.slane %v3580_v13, 1 }
 0x32d   : > { %16483 = vmatmul.mubr.bf16.gmra.mrb[4].mxu1 %v3632_v56  ;;  %v3644_v8 = vsel %vm2478_vm8, %v3642_v4, %v3643_v26  ;;  %v3649_v56 = vrot.slane %v20205_v16, 1  ;;  %v3664_v4 = vrot.slane %v20249_v28, 1  ;;  %v18561_v28 = vld [vmem:[%s23861_s19 + $0x1d0] sm:$0xff]  }
 0x32e   : > { %16486 = vmatprep.mubr.bf16.mxu1 %v3635_v51  ;;  %16515 = vmatpush3.bf16.msra.mxu1 %v18553_v57  ;;  %v18558_v57 = vld [vmem:[%s23861_s19 + $0x1b8] sm:$0xff]   ;;  %v3652_v51 = vrot.slane %v20211_v61, 1 }
 0x32f   : > { %16516 = vmatprep.subr.bf16.mxu1 %v18554_v52  ;;  %v3650_v53 = vsel %vm2478_vm8, %v3648_v1, %v3649_v56  ;;  %v18568_v56 = vld [vmem:[%s23861_s19 + $0x208] sm:$0xff]  }
 0x332   : > { %16517 = vmatpush3.bf16.msra.mxu1 %v18554_v52  ;;  %v3651_v52 = vrot.slane %v3583_v48, 1 }
 0x333   : > { %16518 = vmatprep.subr.bf16.mxu1 %v18555_v55 }
 0x334   : > { %v3653_v18 = vsel %vm2478_vm8, %v3651_v52, %v3652_v51  ;;  %v20399_v51 = vld [vmem:[#allocation2 + $0x58] sm:$0x1] }
 0x335   : > { %16487 = vmatmul.mubr.bf16.gmra.mrb[8].mxu1 %v3638_v2  ;;  %v3586_v2 = vld [vmem:[#allocation2 + $0xe0] sm:$0xfe] }
 0x336   : > { %16490 = vmatprep.mubr.bf16.mxu1 %v3641_v40  ;;  %16519 = vmatpush3.bf16.msra.mxu1 %v18555_v55  ;;  %v3584_v55 = vld [vmem:[#allocation2 + $0xc0] sm:$0xfe]  ;;  %v3587_v40 = vld [vmem:[#allocation2 + $0xf0] sm:$0xfe]  ;;  %v3660_v13 = vrot.slane %v3586_v2, 1 }
 0x337   : > { %16520 = vmatprep.subr.bf16.mxu1 %v18556_v32  ;;  %v3654_v49 = vrot.slane %v3584_v55, 1  ;;  %v3663_v20 = vrot.slane %v3587_v40, 1 }
 0x339   : > { %v3656_v16 = vsel %vm2478_vm8, %v3654_v49, %v3655_v15  ;;  %v3665_v47 = vsel %vm2478_vm8, %v3663_v20, %v3664_v4  ;;  %v4228_v49 = vld [vmem:[#allocation2 + $0x70] sm:$0xff]  ;;  %v4294_v15 = vshll.u32 %v20399_v51, 16  ;;  %v20418_v4 = vld [vmem:[#allocation2 + $0x78] sm:$0x1] }
 0x33a   : > { %16521 = vmatpush3.bf16.msra.mxu1 %v18556_v32  ;;  %v3658_v32 = vrot.slane %v20231_v43, 1  ;;  %v3588_v43 = vld [vmem:[#allocation2 + $0x100] sm:$0xfe] }
 0x33b   : > { %16522 = vmatprep.subr.bf16.mxu1 %v18557_v11  ;;  %v3666_v26 = vrot.slane %v3588_v43, 1  ;;  %v4296_v20 = vrot.slane %v4294_v15, 1 }
 0x33c   : > { %v3659_v61 = vsel %vm2478_vm8, %v3657_v37, %v3658_v32  ;;  %v18580_v37 = vld [vmem:[%s23860_s28 + $0x80] ss:$12 sps:$4 sm:$0xff]  }
 0x33d   : > { %16491 = vmatmul.mubr.bf16.gmra.mrb[12].mxu1 %v3644_v8  ;;  %v4230_v32 = vld [vmem:[#allocation2 + $0x80] sm:$0xff] }
 0x33e   : > { %16494 = vmatprep.mubr.bf16.mxu1 %v3647_v10  ;;  %16523 = vmatpush3.bf16.msra.mxu1 %v18557_v11  ;;  %v3661_v11 = vrot.slane %v20246_v62, 1  ;;  %v18560_v62 = vld [vmem:[%s23861_s19 + $0x1c8] sm:$0xff]   ;;  %v4325_v40 = vshll.u32 %v4230_v32, 16 }
 0x33f   : > { %16524 = vmatprep.subr.bf16.mxu1 %v18558_v57 }
 0x340   : > { %v3662_v46 = vsel %vm2478_vm8, %v3660_v13, %v3661_v11  ;;  %v18581_v13 = vld [vmem:[%s23860_s28 + $0x98] ss:$12 sps:$4 sm:$0xff]  }
 0x342   : > { %16525 = vmatpush3.bf16.msra.mxu1 %v18558_v57  ;;  %v3668_v57 = vsel %vm2478_vm8, %v3666_v26, %v3667_v5  ;;  %v20425_v26 = vld [vmem:[#allocation2 + $0x88] sm:$0x1] }
 0x343   : > { %16558 = vmatprep.subr.bf16.mxu1 %v18559_v60 }
 0x345   : > { %16495 = vmatmul.mubr.bf16.gmra.mrb[16].mxu1 %v3650_v53 }
 0x346   : > { %16498 = vmatprep.mubr.bf16.mxu1 %v3653_v18  ;;  %v20403_v18 = vld [vmem:[#allocation2 + $0x68] sm:$0x1] }
 0x34d   : > { %16499 = vmatmul.mubr.bf16.gmra.mrb[20].mxu1 %v3656_v16  ;;  %v4306_v16 = vshll.u32 %v20403_v18, 16 }
 0x34e   : > { %16502 = vmatprep.mubr.bf16.mxu1 %v3659_v61  ;;  %v4313_v61 = vshll.u32 %v4228_v49, 16 }
 0x34f   : > { %v4308_v11 = vrot.slane %v4306_v16, 1 }
 0x350   : > { %v4315_v43 = vrot.slane %v4313_v61, 1 }
 0x355   : > { %16503 = vmatmul.mubr.bf16.gmra.mrb[24].mxu1 %v3662_v46  ;;  %v18570_v46 = vld [vmem:[%s23861_s19 + $0x218] sm:$0xff]  }
 0x356   : > { %16506 = vmatprep.mubr.bf16.mxu1 %v3665_v47  ;;  %v4297_v47 = vsel %vm1963_vm7, %v20164_v0, %v4296_v20  ;;  %v4234_v0 = vld [vmem:[#allocation2 + $0xa0] sm:$0xff] }
 0x35d   : > { %16507 = vmatmul.mubr.bf16.gmra.mrb[28].mxu1 %v3668_v57  ;;  %v4327_v57 = vrot.slane %v4325_v40, 1  ;;  %v18591_v40 = vld [vmem:[%s23542_s5 + $0x24] ss:$8 sps:$4 sm:$0xff]  }
 0x35e   : > { %16526 = vmatprep.mubr.bf16.mxu1 %v20065_v9  ;;  %v18562_v9 = vld [vmem:[%s23861_s19 + $0x1d8] sm:$0xff]  }
 0x365   : > { %16527 = vmatmul.mubr.bf16.vlgmr.msra.gmra.mrb[0].mxu1 %v20068_v3  ;;  %v18563_v3 = vld [vmem:[%s23861_s19 + $0x1e0] sm:$0xff]  }
 0x366   : > { %16559 = vmatpush3.bf16.msra.mxu1 %v18559_v60  ;;  %16530 = vmatprep.mubr.bf16.mxu1 %v20077_v19  ;;  %v18564_v19 = vld [vmem:[%s23861_s19 + $0x1e8] sm:$0xff]   ;;  %v4301_v60 = vshll.u32 %v4226_v31, 16 }
 0x367   : > { %16560 = vmatprep.subr.bf16.mxu1 %v18560_v62 }
 0x368   : > { %v4303_v44 = vrot.slane %v4301_v60, 1  ;;  %v20445_v60 = vld [vmem:[#allocation2 + $0xa8] sm:$0x1] }
 0x369   : > { %v4354_v15 = vshll.u32 %v20445_v60, 16 }
 0x36a   : > { %16561 = vmatpush3.bf16.msra.mxu1 %v18560_v62  ;;  %v4232_v62 = vld [vmem:[#allocation2 + $0x90] sm:$0xff] }
 0x36b   : > { %16562 = vmatprep.subr.bf16.mxu1 %v18561_v28  ;;  %v4356_v20 = vrot.slane %v4354_v15, 1 }
 0x36d   : > { %16531 = vmatmul.mubr.bf16.gmra.mrb[4].mxu1 %v20080_v41  ;;  %v18565_v41 = vld [vmem:[%s23861_s19 + $0x1f0] sm:$0xff]  }
 0x36e   : > { %16534 = vmatprep.mubr.bf16.mxu1 %v20089_v59  ;;  %16563 = vmatpush3.bf16.msra.mxu1 %v18561_v28  ;;  %v18566_v59 = vld [vmem:[%s23861_s19 + $0x1f8] sm:$0xff]  }
 0x36f   : > { %16564 = vmatprep.subr.bf16.mxu1 %v18562_v9  ;;  %v18582_v28 = vld [vmem:[%s23860_s28 + $0xb0] ss:$12 sps:$4 sm:$0xff]  }
 0x372   : > { %16565 = vmatpush3.bf16.msra.mxu1 %v18562_v9  ;;  %v4311_v9 = vshrl.u32 %v4228_v49, 16  ;;  %v4238_v49 = vld [vmem:[#allocation2 + $0xc0] sm:$0xff] }
 0x373   : > { %16566 = vmatprep.subr.bf16.mxu1 %v18563_v3 }
 0x375   : > { %16535 = vmatmul.mubr.bf16.gmra.mrb[8].mxu1 %v20092_v22  ;;  %v18575_v22 = vld [vmem:[%s23860_s28 + $0x8] ss:$12 sps:$4 sm:$0xff]  }
 0x376   : > { %16538 = vmatprep.mubr.bf16.mxu1 %v20101_v12  ;;  %16567 = vmatpush3.bf16.msra.mxu1 %v18563_v3  ;;  %v18567_v12 = vld [vmem:[%s23861_s19 + $0x200] sm:$0xff]   ;;  %v4318_v3 = vshll.u32 %v20418_v4, 16 }
 0x377   : > { %16568 = vmatprep.subr.bf16.mxu1 %v18564_v19  ;;  %16174 = vmatprep.subr.bf16.mxu0 %v18575_v22 }
 0x378   : > { %16175 = vmatpush3.bf16.msra.mxu0 %v18575_v22  ;;  %v4316_v22 = vor.u32 %v4315_v43, %v4311_v9  ;;  %v18589_v43 = vld [vmem:[%s23542_s5 + $0x20] ss:$8 sps:$4 sm:$0xff]  }
 0x37a   : > { %16569 = vmatpush3.bf16.msra.mxu1 %v18564_v19  ;;  %v4323_v19 = vshrl.u32 %v4230_v32, 16  ;;  %v18573_v32 = vld [vmem:[%s23861_s19 + $0x230] sm:$0xff]  }
 0x37b   : > { %16570 = vmatprep.subr.bf16.mxu1 %v18565_v41 }
 0x37d   : > { %16539 = vmatmul.mubr.bf16.gmra.mrb[12].mxu1 %v20104_v6  ;;  %v18576_v6 = vld [vmem:[%s23860_s28 + $0x20] ss:$12 sps:$4 sm:$0xff]  }
 0x37e   : > { %16542 = vmatprep.mubr.bf16.mxu1 %v20110_v29  ;;  %16571 = vmatpush3.bf16.msra.mxu1 %v18565_v41  ;;  %v20371_v29 = vld [vmem:[#allocation2 + $0x28] sm:$0x1]  ;;  %v4330_v41 = vshll.u32 %v20425_v26, 16 }
 0x37f   : > { %16572 = vmatprep.subr.bf16.mxu1 %v18566_v59  ;;  %16176 = vmatprep.subr.bf16.mxu0 %v18576_v6 }
 0x380   : > { %16177 = vmatpush3.bf16.msra.mxu0 %v18576_v6  ;;  %v4328_v6 = vor.u32 %v4327_v57, %v4323_v19 }
 0x382   : > { %16573 = vmatpush3.bf16.msra.mxu1 %v18566_v59  ;;  %v18571_v59 = vld [vmem:[%s23861_s19 + $0x220] sm:$0xff]  }
 0x383   : > { %16606 = vmatprep.subr.bf16.mxu1 %v18567_v12 }
 0x385   : > { %16543 = vmatmul.mubr.bf16.gmra.mrb[16].mxu1 %v20113_v7  ;;  %v4258_v7 = vshll.u32 %v20371_v29, 16 }
 0x386   : > { %16546 = vmatprep.mubr.bf16.mxu1 %v20116_v14  ;;  %v20376_v14 = vld [vmem:[#allocation2 + $0x38] sm:$0x1] }
 0x387   : > { %v4260_v58 = vrot.slane %v4258_v7, 1  ;;  %v4270_v10 = vshll.u32 %v20376_v14, 16  ;;  %v4349_v7 = vshll.u32 %v4234_v0, 16 }
 0x389   : > { %v4261_v8 = vsel %vm1963_vm7, %v20137_v34, %v4260_v58  ;;  %v18579_v34 = vld [vmem:[%s23860_s28 + $0x68] ss:$12 sps:$4 sm:$0xff]   ;;  %v4272_v1 = vrot.slane %v4270_v10, 1  ;;  %v18585_v58 = vld [vmem:[%s23542_s5 + $0x4] ss:$8 sps:$4 sm:$0xff]  }
 0x38a   : > { %v18572_v10 = vld [vmem:[%s23861_s19 + $0x228] sm:$0xff]  }
 0x38b   : > { %v4273_v53 = vsel %vm1963_vm7, %v20140_v25, %v4272_v1  ;;  %v4299_v25 = vshrl.u32 %v4226_v31, 16 }
 0x38d   : > { %16547 = vmatmul.mubr.bf16.gmra.mrb[20].mxu1 %v20216_v54  ;;  %v20378_v54 = vld [vmem:[#allocation2 + $0x48] sm:$0x1]  ;;  %v4304_v2 = vor.u32 %v4303_v44, %v4299_v25 }
 0x38e   : > { %16550 = vmatprep.mubr.bf16.mxu1 %v20234_v38  ;;  %v20380_v38 = vld [vmem:[#allocation2] sm:$0xff]  ;;  %v4282_v48 = vshll.u32 %v20378_v54, 16 }
 0x38f   : > { %v4309_v5 = vsel %vm1963_vm7, %v4304_v2, %v4308_v11  ;;  %v4373_v2 = vshll.u32 %v4238_v49, 16 }
 0x390   : > { %v4284_v52 = vrot.slane %v4282_v48, 1 }
 0x391   : > { %v4375_v57 = vrot.slane %v4373_v2, 1  ;;  %v4431_v2 = vshrl.u32 %v20380_v38, 16 }
 0x392   : > { %v4285_v55 = vsel %vm1963_vm7, %v20161_v63, %v4284_v52  ;;  %v18569_v63 = vld [vmem:[%s23861_s19 + $0x210] sm:$0xff]   ;;  %v4351_v52 = vrot.slane %v4349_v7, 1  ;;  %v20492_v7 = vld [vmem:[#allocation2 + $0xd8] sm:$0x1] }
 0x395   : > { %16551 = vmatmul.mubr.bf16.gmra.mrb[24].mxu1 %v20238_v50  ;;  %v18577_v50 = vld [vmem:[%s23860_s28 + $0x38] ss:$12 sps:$4 sm:$0xff]  }
 0x396   : > { %16554 = vmatprep.mubr.bf16.mxu1 %v19997_v17  ;;  %v18578_v17 = vld [vmem:[%s23860_s28 + $0x50] ss:$12 sps:$4 sm:$0xff]   ;;  %16178 = vmatprep.subr.bf16.mxu0 %v18577_v50 }
 0x397   : > { %16179 = vmatpush3.bf16.msra.mxu0 %v18577_v50  ;;  %v4332_v50 = vrot.slane %v4330_v41, 1  ;;  %v18592_v41 = vld [vmem:[%s23542_s5 + $0x30] ss:$8 sps:$4 sm:$0xff]  }
 0x398   : > { %16180 = vmatprep.subr.bf16.mxu0 %v18578_v17 }
 0x399   : > { %v4333_v1 = vsel %vm1963_vm7, %v4328_v6, %v4332_v50  ;;  %v18600_v50 = vld [vmem:[%s23542_s5 + $0x54] ss:$8 sps:$4 sm:$0xff]  }
 0x39b   : > { %16181 = vmatpush3.bf16.msra.mxu0 %v18578_v17  ;;  %v20439_v17 = vld [vmem:[#allocation2 + $0x98] sm:$0x1] }
 0x39c   : > { %16182 = vmatprep.subr.bf16.mxu0 %v18579_v34  ;;  %v4342_v44 = vshll.u32 %v20439_v17, 16 }
 0x39d   : > { %16555 = vmatmul.mubr.bf16.gmra.mrb[28].mxu1 %v20380_v38 }
 0x39e   : > { %16574 = vmatprep.mubr.bf16.mxu1 %v4261_v8  ;;  %v4320_v8 = vrot.slane %v4318_v3, 1  ;;  %v4371_v3 = vshrl.u32 %v4238_v49, 16 }
 0x39f   : > { %16183 = vmatpush3.bf16.msra.mxu0 %v18579_v34  ;;  %v18583_v34 = vld [vmem:[%s23542_s5] ss:$8 sps:$4 sm:$0xff]  }
 0x3a0   : > { %16184 = vmatprep.subr.bf16.mxu0 %v18580_v37  ;;  %v4321_v31 = vsel %vm1963_vm7, %v4316_v22, %v4320_v8  ;;  %v18597_v22 = vld [vmem:[%s23542_s5 + $0x44] ss:$8 sps:$4 sm:$0xff]  }
 0x3a3   : > { %16185 = vmatpush3.bf16.msra.mxu0 %v18580_v37  ;;  %v4347_v37 = vshrl.u32 %v4234_v0, 16 }
 0x3a4   : > { %16186 = vmatprep.subr.bf16.mxu0 %v18581_v13 }
 0x3a5   : > { %16575 = vmatmul.mubr.bf16.vlgmr.msra.gmra.mrb[0].mxu1 %v4273_v53  ;;  %v18588_v53 = vld [vmem:[%s23542_s5 + $0x14] ss:$8 sps:$4 sm:$0xff]   ;;  %v4352_v61 = vor.u32 %v4351_v52, %v4347_v37  ;;  %v18603_v52 = vld [vmem:[%s23542_s5 + $0x64] ss:$8 sps:$4 sm:$0xff]  }
 0x3a6   : > { %16607 = vmatpush3.bf16.msra.mxu1 %v18567_v12  ;;  %16578 = vmatprep.mubr.bf16.mxu1 %v4285_v55  ;;  %v4337_v12 = vshll.u32 %v4232_v62, 16  ;;  %v4335_v55 = vshrl.u32 %v4232_v62, 16  ;;  %v18594_v62 = vld [vmem:[%s23542_s5 + $0x34] ss:$8 sps:$4 sm:$0xff]  }
 0x3a7   : > { %16608 = vmatprep.subr.bf16.mxu1 %v18568_v56  ;;  %16187 = vmatpush3.bf16.msra.mxu0 %v18581_v13  ;;  %v4344_v13 = vrot.slane %v4342_v44, 1  ;;  %v20516_v44 = vld [vmem:[#allocation2 + $0xf8] sm:$0x1] }
 0x3a8   : > { %16188 = vmatprep.subr.bf16.mxu0 %v18582_v28  ;;  %v4339_v48 = vrot.slane %v4337_v12, 1 }
 0x3aa   : > { %16609 = vmatpush3.bf16.msra.mxu1 %v18568_v56  ;;  %v4236_v56 = vld [vmem:[#allocation2 + $0xb0] sm:$0xff]  ;;  %v4340_v25 = vor.u32 %v4339_v48, %v4335_v55 }
 0x3ab   : > { %16610 = vmatprep.subr.bf16.mxu1 %v18569_v63  ;;  %16189 = vmatpush3.bf16.msra.mxu0 %v18582_v28  ;;  %v4361_v16 = vshll.u32 %v4236_v56, 16  ;;  %v4359_v28 = vshrl.u32 %v4236_v56, 16 }
 0x3ac   : > { %5242 = vmatprep.subr.bf16.mxu0 %v18585_v58  ;;  %v4345_v11 = vsel %vm1963_vm7, %v4340_v25, %v4344_v13  ;;  %v20495_v58 = vld [vmem:[#allocation2 + $0xe8] sm:$0x1]  ;;  %v4414_v25 = vshll.u32 %v20516_v44, 16 }
 0x3ad   : > { %16579 = vmatmul.mubr.bf16.gmra.mrb[4].mxu1 %v4297_v47  ;;  %v20473_v47 = vld [vmem:[#allocation2 + $0xc8] sm:$0x1]  ;;  %v4402_v48 = vshll.u32 %v20495_v58, 16 }
 0x3ae   : > { %16582 = vmatprep.mubr.bf16.mxu1 %v4309_v5  ;;  %16611 = vmatpush3.bf16.msra.mxu1 %v18569_v63  ;;  %v18586_v63 = vld [vmem:[%s23542_s5 + $0x10] ss:$8 sps:$4 sm:$0xff]   ;;  %v4357_v5 = vsel %vm1963_vm7, %v4352_v61, %v4356_v20  ;;  %v4378_v0 = vshll.u32 %v20473_v47, 16 }
 0x3af   : > { %16612 = vmatprep.subr.bf16.mxu1 %v18570_v46  ;;  %16191 = vmatmul.mubr.bf16.vlgmr.msra.gmra.mrb[64].mxu0 %v19432_v24  ;;  %v20467_v24 = vld [vmem:[#allocation2 + $0xb8] sm:$0x1]  ;;  %v4404_v55 = vrot.slane %v4402_v48, 1 }
 0x3b0   : > { %5243 = vmatpush1.bf16.msra.mxu0 %v18583_v34  ;;  %16194 = vmatprep.mubr.bf16.mxu0 %v19438_v27  ;;  %v18574_v27 = vld [vmem:[%s23861_s19 + $0x238] sm:$0xff]   ;;  %v4366_v9 = vshll.u32 %v20467_v24, 16  ;;  %v4380_v6 = vrot.slane %v4378_v0, 1 }
 0x3b1   : > { %5244 = vmatprep.subr.bf16.mxu0 %v18588_v53  ;;  %v18598_v34 = vld [vmem:[%s23542_s5 + $0x50] ss:$8 sps:$4 sm:$0xff]   ;;  %v20514_v53 = vld [vmem:[#allocation2 + $0x108] sm:$0x1]  ;;  %v4405_v49 = vsel %vm1963_vm7, %v20257_v35, %v4404_v55  ;;  %v4416_v35 = vrot.slane %v4414_v25, 1  ;;  %v4786_v25 = vrot.slane %v20439_v17, 1 }
 0x3b2   : > { %16613 = vmatpush3.bf16.msra.mxu1 %v18570_v46  ;;  %v4363_v46 = vrot.slane %v4361_v16, 1  ;;  %v4368_v12 = vrot.slane %v4366_v9, 1  ;;  %v4433_v16 = vshll.u32 %v20380_v38, 16  ;;  %v4718_v9 = vld [vmem:[#allocation2 + $0x40] sm:$0xfe] }
 0x3b3   : > { %16614 = vmatprep.subr.bf16.mxu1 %v18571_v59  ;;  %v4417_v20 = vsel %vm1963_vm7, %v20260_v21, %v4416_v35  ;;  %v4717_v21 = vld [vmem:[#allocation2 + $0x30] sm:$0xfe] }
 0x3b4   : > { %5245 = vmatpush1.bf16.msra.mxu0 %v18586_v63  ;;  %v4364_v19 = vor.u32 %v4363_v46, %v4359_v28  ;;  %v4716_v46 = vld [vmem:[#allocation2 + $0x20] sm:$0xfe]  ;;  %v4767_v0 = vrot.slane %v4717_v21, 1  ;;  %v4804_v21 = vrot.slane %v20516_v44, 1 }
 0x3b5   : > { %16583 = vmatmul.mubr.bf16.gmra.mrb[8].mxu1 %v4321_v31  ;;  %5246 = vmatprep.subr.bf16.mxu0 %v18591_v40  ;;  %v4246_v31 = vld [vmem:[#allocation2 + $0x100] sm:$0xff]  ;;  %v4435_v40 = vrot.slane %v4433_v16, 1  ;;  %v4789_v16 = vrot.slane %v20445_v60, 1  ;;  %v4727_v60 = vld [vmem:[#allocation2 + $0xd0] sm:$0xfe] }
 0x3b6   : > { %16586 = vmatprep.mubr.bf16.mxu1 %v4333_v1  ;;  %16615 = vmatpush3.bf16.msra.mxu1 %v18571_v59  ;;  %v4376_v59 = vor.u32 %v4375_v57, %v4371_v3  ;;  %v4421_v1 = vshll.u32 %v4246_v31, 16  ;;  %v4419_v37 = vshrl.u32 %v4246_v31, 16  ;;  %v23915_v3 = vld [vmem:[#allocation27_spill] sm:$0xff]  ;;  %v4774_v31 = vrot.slane %v20399_v51, 1  ;;  %v18607_v44 = vld [vmem:[%s23544_s7 + $0x40] sm:$0xff]  }
 0x3b7   : > { %16616 = vmatprep.subr.bf16.mxu1 %v18572_v10  ;;  %16195 = vmatmul.mubr.bf16.gmra.mrb[68].mxu0 %v19444_v30  ;;  %v4369_v30 = vsel %vm1963_vm7, %v4364_v19, %v4368_v12  ;;  %v23916_v19 = vld [vmem:[#allocation29_spill] sm:$0xff]  ;;  %v4783_v51 = vrot.slane %v20425_v26, 1  ;;  %v4725_v26 = vld [vmem:[#allocation2 + $0xb0] sm:$0xfe] }
 0x3b8   : > { %16198 = vmatprep.mubr.bf16.mxu0 %v19450_v33  ;;  %5247 = vmatpush1.bf16.msra.mxu0 %v18589_v43  ;;  %v18595_v33 = vld [vmem:[%s23542_s5 + $0x40] ss:$8 sps:$4 sm:$0xff]   ;;  %v4381_v8 = vsel %vm1963_vm7, %v4376_v59, %v4380_v6  ;;  %v4423_v15 = vrot.slane %v4421_v1, 1  ;;  %v4768_v59 = vrot.slane %v20376_v14, 1  ;;  %v4719_v6 = vld [vmem:[#allocation2 + $0x50] sm:$0xfe] }
 0x3b9   : > { %5248 = vmatprep.subr.bf16.mxu0 %v18594_v62  ;;  %v23914_v43 = vld [vmem:[#allocation26_spill] sm:$0xff]  ;;  %v4765_v62 = vrot.slane %v20371_v29, 1  ;;  %v4777_v14 = vrot.slane %v20403_v18, 1  ;;  %v4722_v1 = vld [vmem:[#allocation2 + $0x80] sm:$0xfe]  ;;  %v4791_v35 = vrot.slane %v4725_v26, 1 }
 0x3ba   : > { %16617 = vmatpush3.bf16.msra.mxu1 %v18572_v10  ;;  %v4390_v10 = vshll.u32 %v20492_v7, 16  ;;  %v4424_v63 = vor.u32 %v4423_v15, %v4419_v37  ;;  %v4769_v12 = vsel %vm2478_vm8, %v4767_v0, %v4768_v59  ;;  %v4782_v55 = vrot.slane %v4722_v1, 1  ;;  %v4724_v37 = vld [vmem:[#allocation2 + $0xa0] sm:$0xfe] }
 0x3bb   : > { %16618 = vmatprep.subr.bf16.mxu1 %v18573_v32 }
 0x3bc   : > { %5249 = vmatpush1.bf16.msra.mxu0 %v18592_v41  ;;  %v4392_v56 = vrot.slane %v4390_v10, 1  ;;  %v4770_v41 = vrot.slane %v4718_v9, 1  ;;  %v4731_v9 = vld [vmem:[#allocation2 + $0x110] sm:$0xfe] }
 0x3bd   : > { %16587 = vmatmul.mubr.bf16.gmra.mrb[12].mxu1 %v4345_v11  ;;  %5250 = vmatprep.subr.bf16.mxu0 %v18597_v22  ;;  %v4436_v11 = vor.u32 %v4435_v40, %v4431_v2  ;;  %v4771_v22 = vrot.slane %v20378_v54, 1  ;;  %v4792_v40 = vrot.slane %v20467_v24, 1 }
 0x3be   : > { %16590 = vmatprep.mubr.bf16.mxu1 %v4357_v5  ;;  %16619 = vmatpush3.bf16.msra.mxu1 %v18573_v32  ;;  %v4426_v32 = vshll.u32 %v20514_v53, 16  ;;  %v4764_v5 = vrot.slane %v4716_v46, 1  ;;  %v4798_v46 = vrot.slane %v20492_v7, 1 }
 0x3bf   : > { %16620 = vmatprep.subr.bf16.mxu1 %v18574_v27  ;;  %16199 = vmatmul.mubr.bf16.gmra.mrb[72].mxu0 %v19456_v36  ;;  %v4393_v36 = vsel %vm1963_vm7, %v20243_v23, %v4392_v56  ;;  %v20528_v23 = vld [vmem:[#allocation2 + $0x118] sm:$0x1]  ;;  %v4772_v29 = vsel %vm2478_vm8, %v4770_v41, %v4771_v22 }
 0x3c0   : > { %16202 = vmatprep.mubr.bf16.mxu0 %v19462_v39  ;;  %5251 = vmatpush1.bf16.msra.mxu0 %v18595_v33  ;;  %v18601_v39 = vld [vmem:[%s23542_s5 + $0x60] ss:$8 sps:$4 sm:$0xff]   ;;  %v4428_v61 = vrot.slane %v4426_v32, 1  ;;  %v4438_v13 = vshll.u32 %v20528_v23, 16  ;;  %v4766_v28 = vsel %vm2478_vm8, %v4764_v5, %v4765_v62  ;;  %v4788_v32 = vrot.slane %v4724_v37, 1 }
 0x3c1   : > { %5252 = vmatprep.subr.bf16.mxu0 %v18600_v50  ;;  %v23917_v33 = vld [vmem:[#allocation30_spill] sm:$0xff]  ;;  %v23918_v50 = vld [vmem:[#allocation31_spill] sm:$0xff]  ;;  %v4730_v5 = vld [vmem:[#allocation2 + $0x100] sm:$0xfe]  ;;  %v4810_v0 = vrot.slane %v20528_v23, 1 }
 0x3c2   : > { %16621 = vmatpush3.bf16.msra.mxu1 %v18574_v27  ;;  %v4429_v27 = vsel %vm1963_vm7, %v4424_v63, %v4428_v61  ;;  %v4726_v61 = vld [vmem:[#allocation2 + $0xc0] sm:$0xfe]  ;;  %v4806_v62 = vrot.slane %v4730_v5, 1  ;;  %v18604_v41 = vld [vmem:[%s23542_s5 + $0x70] ss:$8 sps:$4 sm:$0xff]  }
 0x3c3   : > { %v4794_v2 = vrot.slane %v4726_v61, 1  ;;  %v20590_v23 = vld [vmem:[%s23541_s4] ss:$0 sm:$0xff]  ;;  %v18610_v61 = vld [vmem:[%s23544_s7 + $0x8] sm:$0xff]  }
 0x3c4   : > { %5253 = vmatpush1.bf16.msra.mxu0 %v18598_v34  ;;  %v4721_v34 = vld [vmem:[#allocation2 + $0x70] sm:$0xfe] }
 0x3c5   : > { %16591 = vmatmul.mubr.bf16.gmra.mrb[16].mxu1 %v4369_v30  ;;  %5254 = vmatprep.subr.bf16.mxu0 %v18603_v52  ;;  %v4720_v30 = vld [vmem:[#allocation2 + $0x60] sm:$0xfe]  ;;  %v23919_v52 = vld [vmem:[#allocation32_spill] sm:$0xff]  ;;  %v4779_v56 = vrot.slane %v4721_v34, 1 }
 0x3c6   : > { %16594 = vmatprep.mubr.bf16.mxu1 %v4381_v8  ;;  %v4773_v8 = vrot.slane %v4719_v6, 1  ;;  %v4776_v10 = vrot.slane %v4720_v30, 1 }
 0x3c7   : > { %16203 = vmatmul.mubr.bf16.gmra.mrb[76].mxu0 %v19468_v42  ;;  %v4440_v42 = vrot.slane %v4438_v13, 1  ;;  %v4795_v13 = vrot.slane %v20473_v47, 1  ;;  %v4729_v47 = vld [vmem:[#allocation2 + $0xf0] sm:$0xfe] }
 0x3c8   : > { %16206 = vmatprep.mubr.bf16.mxu0 %v19474_v45  ;;  %5255 = vmatpush1.bf16.msra.mxu0 %v18601_v39  ;;  %v23913_v45 = vld [vmem:[#allocation25_spill] sm:$0xff]  ;;  %v4775_v54 = vsel %vm2478_vm8, %v4773_v8, %v4774_v31  ;;  %v4778_v48 = vsel %vm2478_vm8, %v4776_v10, %v4777_v14  ;;  %v4784_v39 = vsel %vm2478_vm8, %v4782_v55, %v4783_v51 }
 0x3c9   : > { %v4441_v57 = vsel %vm1963_vm7, %v4436_v11, %v4440_v42  ;;  %v4796_v17 = vsel %vm2478_vm8, %v4794_v2, %v4795_v13  ;;  %v4797_v11 = vrot.slane %v4727_v60, 1  ;;  %v18608_v55 = vld [vmem:[%s23544_s7] sm:$0xff]  }
 0x3ca   : > { %v23920_v60 = vld [vmem:[#allocation33_spill] sm:$0xff] }
 0x3cd   : > { %16595 = vmatmul.mubr.bf16.gmra.mrb[20].mxu1 %v4393_v36  ;;  %v4780_v36 = vrot.slane %v20418_v4, 1  ;;  %v4790_v4 = vsel %vm2478_vm8, %v4788_v32, %v4789_v16 }
 0x3ce   : > { %16598 = vmatprep.mubr.bf16.mxu1 %v4405_v49  ;;  %v4723_v49 = vld [vmem:[#allocation2 + $0x90] sm:$0xfe] }
 0x3cf   : > { %16207 = vmatmul.mubr.bf16.gmra.mrb[80].mxu0 %v23913_v45  ;;  %v4781_v18 = vsel %vm2478_vm8, %v4779_v56, %v4780_v36  ;;  %v4785_v15 = vrot.slane %v4723_v49, 1  ;;  %v4801_v45 = vrot.slane %v20495_v58, 1  ;;  %v4809_v58 = vrot.slane %v4731_v9, 1 }
 0x3d0   : > { %16210 = vmatprep.mubr.bf16.mxu0 %v23914_v43  ;;  %v4799_v43 = vsel %vm2478_vm8, %v4797_v11, %v4798_v46 }
 0x3d1   : > { %v4787_v63 = vsel %vm2478_vm8, %v4785_v15, %v4786_v25 }
 0x3d5   : > { %16599 = vmatmul.mubr.bf16.gmra.mrb[24].mxu1 %v4417_v20  ;;  %v4793_v20 = vsel %vm2478_vm8, %v4791_v35, %v4792_v40  ;;  %v18611_v40 = vld [vmem:[%s23544_s7 + $0x50] sm:$0xff]  }
 0x3d6   : > { %16602 = vmatprep.mubr.bf16.mxu1 %v4429_v27  ;;  %v4728_v27 = vld [vmem:[#allocation2 + $0xe0] sm:$0xfe] }
 0x3d7   : > { %16211 = vmatmul.mubr.bf16.gmra.mrb[84].mxu0 %v23915_v3  ;;  %v4800_v42 = vrot.slane %v4728_v27, 1  ;;  %v874_v27 = vsub.s32 2, %v23920_v60 }
 0x3d8   : > { %16214 = vmatprep.mubr.bf16.mxu0 %v23916_v19  ;;  %v4811_v19 = vsel %vm2478_vm8, %v4809_v58, %v4810_v0 }
 0x3d9   : > { %v4802_v24 = vsel %vm2478_vm8, %v4800_v42, %v4801_v45 }
 0x3dd   : > { %16603 = vmatmul.mubr.bf16.gmra.mrb[28].mxu1 %v4441_v57  ;;  %v4803_v57 = vrot.slane %v4729_v47, 1 }
 0x3de   : > { %16622 = vmatprep.mubr.bf16.mxu1 %v4766_v28  ;;  %v4807_v28 = vrot.slane %v20514_v53, 1  ;;  %v18606_v53 = vld [vmem:[%s23542_s5 + $0x74] ss:$8 sps:$4 sm:$0xff]  }
 0x3df   : > { %16215 = vmatmul.mubr.bf16.gmra.mrb[88].mxu0 %v23917_v33  ;;  %v4805_v3 = vsel %vm2478_vm8, %v4803_v57, %v4804_v21  ;;  %5256 = vmatprep.subr.bf16.mxu0 %v18606_v53 }
 0x3e0   : > { %16218 = vmatprep.mubr.bf16.mxu0 %v23918_v50  ;;  %v4808_v7 = vsel %vm2478_vm8, %v4806_v62, %v4807_v28  ;;  %5257 = vmatpush1.bf16.msra.mxu0 %v18604_v41  ;;  %v18613_v62 = vld [vmem:[%s23544_s7 + $0x58] sm:$0xff]  }
 0x3e1   : > { %15518 = vmatprep.subr.bf16.mxu0 %v18607_v44 }
 0x3e5   : > { %16623 = vmatmul.mubr.bf16.vlgmr.msra.gmra.mrb[0].mxu1 %v4769_v12 }
 0x3e6   : > { %16626 = vmatprep.mubr.bf16.mxu1 %v4772_v29 }
 0x3e7   : > { %16219 = vmatmul.mubr.bf16.gmra.mrb[92].mxu0 %v23919_v52 }
 0x3e8   : > { %5274 = vmatprep.mubr.bf16.mxu0 %v20380_v38 }
 0x3ed   : > { %16627 = vmatmul.mubr.bf16.gmra.mrb[4].mxu1 %v4775_v54 }
 0x3ee   : > { %16630 = vmatprep.mubr.bf16.mxu1 %v4778_v48 }
 0x3f5   : > { %16631 = vmatmul.mubr.bf16.gmra.mrb[8].mxu1 %v4781_v18 }
 0x3f6   : > { %16634 = vmatprep.mubr.bf16.mxu1 %v4784_v39  ;;  %v18609_v39 = vld [vmem:[%s23544_s7 + $0x48] sm:$0xff]  }
 0x3fd   : > { %16635 = vmatmul.mubr.bf16.gmra.mrb[12].mxu1 %v4787_v63 }
 0x3fe   : > { %16638 = vmatprep.mubr.bf16.mxu1 %v4790_v4 }
 0x405   : > { %16639 = vmatmul.mubr.bf16.gmra.mrb[16].mxu1 %v4793_v20 }
 0x406   : > { %16642 = vmatprep.mubr.bf16.mxu1 %v4796_v17 }
 0x40d   : > { %16643 = vmatmul.mubr.bf16.gmra.mrb[20].mxu1 %v4799_v43 }
 0x40e   : > { %16646 = vmatprep.mubr.bf16.mxu1 %v4802_v24  ;;  %v18612_v24 = vld [vmem:[%s23544_s7 + $0x10] sm:$0xff]  }
 0x415   : > { %16647 = vmatmul.mubr.bf16.gmra.mrb[24].mxu1 %v4805_v3  ;;  %v20656_v3 = vld [vmem:[%s23877_s23] sm:$0x7] }
 0x416   : > { %16650 = vmatprep.mubr.bf16.mxu1 %v4808_v7  ;;  %v20659_v7 = vrot.slane %v20656_v3, %v874_v27 }
 0x41d   : > { %16651 = vmatmul.mubr.bf16.gmra.mrb[28].mxu1 %v4811_v19 }
 0x482   : > { %v20594_v30 = vpop.f32.mrb[64].mxu0 }
 0x483   : > { %v20597_v50 = vpop.f32.mrb[65].mxu0 }
 0x484   : > { %v20600_v31 = vpop.f32.mrb[66].mxu0 }
 0x485   : > { %v20602_v48 = vpop.f32.mrb[67].mxu0 }
 0x48a   : > { %v20604_v52 = vpop.f32.mrb[68].mxu0 }
 0x48b   : > { %v20609_v36 = vpop.f32.mrb[69].mxu0 }
 0x48c   : > { %v20614_v49 = vpop.f32.mrb[70].mxu0 }
 0x48d   : > { %v20617_v32 = vpop.f32.mrb[71].mxu0 }
 0x492   : > { %v20620_v63 = vpop.f32.mrb[72].mxu0 }
 0x493   : > { %v20627_v35 = vpop.f32.mrb[73].mxu0 }
 0x494   : > { %v20633_v13 = vpop.f32.mrb[74].mxu0 }
 0x495   : > { %v20636_v11 = vpop.f32.mrb[75].mxu0 }
 0x49a   : > { %v20638_v45 = vpop.f32.mrb[76].mxu0 }
 0x49b   : > { %v20645_v47 = vpop.f32.mrb[77].mxu0 }
 0x49c   : > { %v20650_v28 = vpop.f32.mrb[78].mxu0 }
 0x49d   : > { %v20661_v58 = vpop.f32.mrb[79].mxu0 }
 0x4a2   : > { %v16208_v41 = vpop.f32.mrb[80].mxu0 }
 0x4b8   : > { %v16624_v59 = vpop.f32.mrb[0].mxu1 }
 0x4b9   : > { %v17518_v22 = vadd.f32 %v16624_v59, %v20590_v23  ;;  %v4927_v12 = vpop.f32.mrb[1].mxu1  ;;  %v18614_v59 = vld [vmem:[%s23544_s7 + $0x18] sm:$0xff]  }
 0x4ba   : > { %v17519_v29 = vadd.f32 %v20590_v23, %v4927_v12  ;;  %v16625_v6 = vpop.f32.mrb[2].mxu1  ;;  %v1298_v12 = vpop.f32.mrb[81].mxu0 }
 0x4bb   : > { %v17520_v33 = vadd.f32 %v16625_v6, %v20590_v23  ;;  %v4930_v8 = vpop.f32.mrb[3].mxu1  ;;  %v5088_v14 = vmax.f32 %v17518_v22, 0.0  ;;  %v20670_v22 = vadd.f32 %v16208_v41, %v20659_v7  ;;  %v18615_v6 = vld [vmem:[%s23544_s7 + $0x60] sm:$0xff]  }
 0x4bc   : > { %v17521_v10 = vadd.f32 %v20590_v23, %v4930_v8  ;;  %v5086_v34 = vmax.f32 %v17519_v29, 0.0  ;;  %v16209_v8 = vpop.f32.mrb[82].mxu0 }
 0x4bd   : > { %v5089_v54 = vmax.f32 %v17520_v33, 0.0  ;;  %v20677_v33 = vadd.f32 %v1298_v12, %v20659_v7 }
 0x4be   : > { %v5087_v1 = vmax.f32 %v17521_v10, 0.0 }
 0x4bf   : > { %v5119_v56 = vpack.c.bf16 %v5089_v54, %v5088_v14  ;;  %v20680_v54 = vadd.f32 %v16209_v8, %v20659_v7 }
 0x4c0   : > { %v5118_v51 = vpack.c.bf16 %v5087_v1, %v5086_v34  ;;  %v16628_v18 = vpop.f32.mrb[4].mxu1  ;;  %v1301_v34 = vpop.f32.mrb[83].mxu0 }
 0x4c1   : > { %v17522_v37 = vadd.f32 %v16628_v18, %v20590_v23  ;;  %v4943_v15 = vpop.f32.mrb[5].mxu1 }
 0x4c2   : > { %v17523_v25 = vadd.f32 %v20590_v23, %v4943_v15  ;;  %v16629_v16 = vpop.f32.mrb[6].mxu1  ;;  %5275 = vmatmul.mubr.bf16.vlgmr.msra.gmra.mrb[96].mxu0 %v5118_v51  ;;  %v16212_v51 = vpop.f32.mrb[84].mxu0 }
 0x4c3   : > { %v17524_v4 = vadd.f32 %v16629_v16, %v20590_v23  ;;  %v4946_v26 = vpop.f32.mrb[7].mxu1  ;;  %5284 = vmatprep.mubr.bf16.mxu0 %v20380_v38  ;;  %15519 = vmatpush3.bf16.msra.mxu0 %v18608_v55  ;;  %v5092_v20 = vmax.f32 %v17522_v37, 0.0  ;;  %v20683_v55 = vadd.f32 %v1301_v34, %v20659_v7  ;;  %v20691_v37 = vadd.f32 %v16212_v51, %v20659_v7  ;;  %v1314_v15 = vpop.f32.mrb[85].mxu0 }
 0x4c4   : > { %v17525_v2 = vadd.f32 %v20590_v23, %v4946_v26  ;;  %15520 = vmatprep.subr.bf16.mxu0 %v18609_v39  ;;  %v5090_v42 = vmax.f32 %v17523_v25, 0.0  ;;  %v18616_v39 = vld [vmem:[%s23544_s7 + $0x20] sm:$0xff]   ;;  %v20699_v26 = vadd.f32 %v1314_v15, %v20659_v7 }
 0x4c5   : > { %v5093_v17 = vmax.f32 %v17524_v4, 0.0  ;;  %v18617_v4 = vld [vmem:[%s23544_s7 + $0x68] sm:$0xff]  }
 0x4c6   : > { %v5091_v46 = vmax.f32 %v17525_v2, 0.0 }
 0x4c7   : > { %v20640_v43 = vpack.c.bf16 %v5093_v17, %v5092_v20  ;;  %15521 = vmatpush3.bf16.msra.mxu0 %v18610_v61  ;;  %v16213_v61 = vpop.f32.mrb[86].mxu0 }
 0x4c8   : > { %v5120_v5 = vpack.c.bf16 %v5091_v46, %v5090_v42  ;;  %v16632_v57 = vpop.f32.mrb[8].mxu1  ;;  %15522 = vmatprep.subr.bf16.mxu0 %v18611_v40  ;;  %v20703_v20 = vadd.f32 %v16213_v61, %v20659_v7  ;;  %v1317_v17 = vpop.f32.mrb[87].mxu0  ;;  %v18621_v61 = vld [vmem:[%s23544_s7 + $0x78] sm:$0xff]  }
 0x4c9   : > { %v17526_v21 = vadd.f32 %v16632_v57, %v20590_v23  ;;  %v4959_v9 = vpop.f32.mrb[9].mxu1  ;;  %v20707_v46 = vadd.f32 %v1317_v17, %v20659_v7 }
 0x4ca   : > { %v17527_v0 = vadd.f32 %v20590_v23, %v4959_v9  ;;  %v16633_v19 = vpop.f32.mrb[10].mxu1  ;;  %5285 = vmatmul.mubr.bf16.gmra.mrb[100].mxu0 %v5119_v56 }
 0x4cb   : > { %v17528_v53 = vadd.f32 %v16633_v19, %v20590_v23  ;;  %v4962_v44 = vpop.f32.mrb[11].mxu1  ;;  %5294 = vmatprep.mubr.bf16.mxu0 %v20380_v38  ;;  %15523 = vmatpush3.bf16.msra.mxu0 %v18612_v24  ;;  %v5096_v10 = vmax.f32 %v17526_v21, 0.0  ;;  %v16216_v24 = vpop.f32.mrb[88].mxu0  ;;  %v18618_v21 = vld [vmem:[%s23544_s7 + $0x28] sm:$0xff]   ;;  %v18619_v19 = vld [vmem:[%s23544_s7 + $0x70] sm:$0xff]  }
 0x4cc   : > { %v17529_v29 = vadd.f32 %v20590_v23, %v4962_v44  ;;  %15524 = vmatprep.subr.bf16.mxu0 %v18613_v62  ;;  %v5094_v1 = vmax.f32 %v17527_v0, 0.0  ;;  %v20715_v9 = vadd.f32 %v16216_v24, %v20659_v7  ;;  %v1330_v0 = vpop.f32.mrb[89].mxu0 }
 0x4cd   : > { %v5097_v14 = vmax.f32 %v17528_v53, 0.0  ;;  %v20722_v41 = vadd.f32 %v1330_v0, %v20659_v7  ;;  %v16217_v53 = vpop.f32.mrb[90].mxu0  ;;  %v18622_v0 = vld [vmem:[%s23544_s7 + $0x38] sm:$0xff]  }
 0x4ce   : > { %v5095_v56 = vmax.f32 %v17529_v29, 0.0  ;;  %v20725_v12 = vadd.f32 %v16217_v53, %v20659_v7  ;;  %v1333_v29 = vpop.f32.mrb[91].mxu0 }
 0x4cf   : > { %v20685_v18 = vpack.c.bf16 %v5097_v14, %v5096_v10  ;;  %15525 = vmatpush3.bf16.msra.mxu0 %v18614_v59  ;;  %v20728_v10 = vadd.f32 %v1333_v29, %v20659_v7  ;;  %v16220_v14 = vpop.f32.mrb[92].mxu0 }
 0x4d0   : > { %v20693_v25 = vpack.c.bf16 %v5095_v56, %v5094_v1  ;;  %v16636_v16 = vpop.f32.mrb[12].mxu1  ;;  %15526 = vmatprep.subr.bf16.mxu0 %v18615_v6  ;;  %v18620_v1 = vld [vmem:[%s23544_s7 + $0x30] sm:$0xff]   ;;  %v20736_v56 = vadd.f32 %v16220_v14, %v20659_v7  ;;  %v1346_v51 = vpop.f32.mrb[93].mxu0 }
 0x4d1   : > { %v17530_v2 = vadd.f32 %v16636_v16, %v20590_v23  ;;  %v4975_v40 = vpop.f32.mrb[13].mxu1  ;;  %v20741_v16 = vadd.f32 %v1346_v51, %v20659_v7 }
 0x4d2   : > { %v17531_v27 = vadd.f32 %v20590_v23, %v4975_v40  ;;  %v16637_v42 = vpop.f32.mrb[14].mxu1  ;;  %5295 = vmatmul.mubr.bf16.gmra.mrb[104].mxu0 %v5120_v5 }
 0x4d3   : > { %v17532_v57 = vadd.f32 %v16637_v42, %v20590_v23  ;;  %v4978_v62 = vpop.f32.mrb[15].mxu1  ;;  %5304 = vmatprep.mubr.bf16.mxu0 %v20380_v38  ;;  %15527 = vmatpush3.bf16.msra.mxu0 %v18616_v39  ;;  %v5100_v44 = vmax.f32 %v17530_v2, 0.0 }
 0x4d4   : > { %v17533_v5 = vadd.f32 %v20590_v23, %v4978_v62  ;;  %15528 = vmatprep.subr.bf16.mxu0 %v18617_v4  ;;  %v5098_v6 = vmax.f32 %v17531_v27, 0.0  ;;  %v16221_v4 = vpop.f32.mrb[94].mxu0 }
 0x4d5   : > { %v5101_v59 = vmax.f32 %v17532_v57, 0.0  ;;  %v20748_v17 = vadd.f32 %v16221_v4, %v20659_v7  ;;  %v1349_v27 = vpop.f32.mrb[95].mxu0 }
 0x4d6   : > { %v5099_v8 = vmax.f32 %v17533_v5, 0.0  ;;  %v20753_v57 = vadd.f32 %v1349_v27, %v20659_v7 }
 0x4d7   : > { %v20730_v34 = vpack.c.bf16 %v5101_v59, %v5100_v44  ;;  %15529 = vmatpush3.bf16.msra.mxu0 %v18618_v21 }
 0x4d8   : > { %v20738_v39 = vpack.c.bf16 %v5099_v8, %v5098_v6  ;;  %v16640_v15 = vpop.f32.mrb[16].mxu1  ;;  %15530 = vmatprep.subr.bf16.mxu0 %v18619_v19 }
 0x4d9   : > { %v17534_v2 = vadd.f32 %v16640_v15, %v20590_v23  ;;  %v4991_v40 = vpop.f32.mrb[17].mxu1 }
 0x4da   : > { %v17535_v42 = vadd.f32 %v20590_v23, %v4991_v40  ;;  %v16641_v24 = vpop.f32.mrb[18].mxu1  ;;  %5305 = vmatmul.mubr.bf16.gmra.mrb[108].mxu0 %v20640_v43 }
 0x4db   : > { %v17536_v62 = vadd.f32 %v16641_v24, %v20590_v23  ;;  %v4994_v21 = vpop.f32.mrb[19].mxu1  ;;  %5314 = vmatprep.mubr.bf16.mxu0 %v20380_v38  ;;  %15531 = vmatpush3.bf16.msra.mxu0 %v18620_v1  ;;  %v5104_v19 = vmax.f32 %v17534_v2, 0.0 }
 0x4dc   : > { %v17537_v5 = vadd.f32 %v20590_v23, %v4994_v21  ;;  %15532 = vmatprep.subr.bf16.mxu0 %v18621_v61  ;;  %v5102_v44 = vmax.f32 %v17535_v42, 0.0 }
 0x4dd   : > { %v5105_v53 = vmax.f32 %v17536_v62, 0.0 }
 0x4de   : > { %v5103_v43 = vmax.f32 %v17537_v5, 0.0 }
 0x4df   : > { %v5127_v59 = vpack.c.bf16 %v5105_v53, %v5104_v19  ;;  %15533 = vmatpush3.bf16.msra.mxu0 %v18622_v0 }
 0x4e0   : > { %v5126_v29 = vpack.c.bf16 %v5103_v43, %v5102_v44  ;;  %v16644_v6 = vpop.f32.mrb[20].mxu1 }
 0x4e1   : > { %v17538_v8 = vadd.f32 %v16644_v6, %v20590_v23  ;;  %v5007_v14 = vpop.f32.mrb[21].mxu1 }
 0x4e2   : > { %v17539_v1 = vadd.f32 %v20590_v23, %v5007_v14  ;;  %v16645_v51 = vpop.f32.mrb[22].mxu1  ;;  %5315 = vmatmul.mubr.bf16.gmra.mrb[112].mxu0 %v20693_v25 }
 0x4e3   : > { %v17540_v15 = vadd.f32 %v16645_v51, %v20590_v23  ;;  %v5010_v4 = vpop.f32.mrb[23].mxu1  ;;  %5324 = vmatprep.mubr.bf16.mxu0 %v20380_v38  ;;  %v5108_v2 = vmax.f32 %v17538_v8, 0.0 }
 0x4e4   : > { %v17541_v61 = vadd.f32 %v20590_v23, %v5010_v4  ;;  %v5106_v27 = vmax.f32 %v17539_v1, 0.0 }
 0x4e5   : > { %v5109_v40 = vmax.f32 %v17540_v15, 0.0 }
 0x4e6   : > { %v5107_v42 = vmax.f32 %v17541_v61, 0.0 }
 0x4e7   : > { %v5129_v24 = vpack.c.bf16 %v5109_v40, %v5108_v2 }
 0x4e8   : > { %v5128_v62 = vpack.c.bf16 %v5107_v42, %v5106_v27  ;;  %v16648_v21 = vpop.f32.mrb[24].mxu1 }
 0x4e9   : > { %v17542_v0 = vadd.f32 %v16648_v21, %v20590_v23  ;;  %v5023_v5 = vpop.f32.mrb[25].mxu1 }
 0x4ea   : > { %v17543_v19 = vadd.f32 %v20590_v23, %v5023_v5  ;;  %v16649_v25 = vpop.f32.mrb[26].mxu1  ;;  %5325 = vmatmul.mubr.bf16.gmra.mrb[116].mxu0 %v20685_v18 }
 0x4eb   : > { %v17544_v53 = vadd.f32 %v16649_v25, %v20590_v23  ;;  %v5026_v44 = vpop.f32.mrb[27].mxu1  ;;  %5334 = vmatprep.mubr.bf16.mxu0 %v20380_v38  ;;  %v5112_v6 = vmax.f32 %v17542_v0, 0.0 }
 0x4ec   : > { %v17545_v43 = vadd.f32 %v20590_v23, %v5026_v44  ;;  %v5110_v14 = vmax.f32 %v17543_v19, 0.0 }
 0x4ed   : > { %v5113_v8 = vmax.f32 %v17544_v53, 0.0 }
 0x4ee   : > { %v5111_v1 = vmax.f32 %v17545_v43, 0.0  ;;  %v23922_v43 = vld [vmem:[#allocation35_spill] sm:$0xff] }
 0x4ef   : > { %v5131_v51 = vpack.c.bf16 %v5113_v8, %v5112_v6 }
 0x4f0   : > { %v5130_v15 = vpack.c.bf16 %v5111_v1, %v5110_v14  ;;  %v16652_v4 = vpop.f32.mrb[28].mxu1  ;;  %v1235_v14 = vadd.f32 %v20597_v50, %v20659_v7  ;;  %v18623_v50 = vld [vmem:[#allocation3] sm:$0xff]  }
 0x4f1   : > { %v17546_v61 = vadd.f32 %v16652_v4, %v20590_v23  ;;  %v5039_v2 = vpop.f32.mrb[29].mxu1  ;;  %16654 = vmatprep.subr.bf16.mxu0 %v18623_v50 }
 0x4f2   : > { %v17547_v40 = vadd.f32 %v20590_v23, %v5039_v2  ;;  %v16653_v18 = vpop.f32.mrb[30].mxu1  ;;  %5335 = vmatmul.mubr.bf16.gmra.mrb[120].mxu0 %v20738_v39  ;;  %v5150_v39 = vld [vmem:[%s23543_s6] sm:$0x3] }
 0x4f3   : > { %v17548_v27 = vadd.f32 %v16653_v18, %v20590_v23  ;;  %v5042_v42 = vpop.f32.mrb[31].mxu1  ;;  %5344 = vmatprep.mubr.bf16.mxu0 %v20380_v38  ;;  %v5116_v0 = vmax.f32 %v17546_v61, 0.0 }
 0x4f4   : > { %v17549_v21 = vadd.f32 %v20590_v23, %v5042_v42  ;;  %v5114_v19 = vmax.f32 %v17547_v40, 0.0  ;;  %v20787_v23 = vld [vmem:[#allocation2] sm:$0xff]  ;;  %v1238_v40 = vadd.f32 %v20602_v48, %v20659_v7 }
 0x4f5   : > { %v5117_v5 = vmax.f32 %v17548_v27, 0.0 }
 0x4f6   : > { %v5115_v25 = vmax.f32 %v17549_v21, 0.0 }
 0x4f7   : > { %v5133_v53 = vpack.c.bf16 %v5117_v5, %v5116_v0 }
 0x4f8   : > { %v5132_v44 = vpack.c.bf16 %v5115_v25, %v5114_v19 }
 0x4fa   : > { %5345 = vmatmul.mubr.bf16.gmra.mrb[124].mxu0 %v20730_v34  ;;  %v20791_v34 = vsub.s32 1, %v23920_v60 }
 0x4fb   : > { %5354 = vmatprep.mubr.bf16.mxu0 %v20380_v38 }
 0x502   : > { %5355 = vmatmul.mubr.bf16.gmra.mrb[128].mxu0 %v5126_v29  ;;  %v23921_v29 = vld [vmem:[#allocation34_spill] sm:$0xff] }
 0x503   : > { %5364 = vmatprep.mubr.bf16.mxu0 %v20380_v38 }
 0x50a   : > { %5365 = vmatmul.mubr.bf16.gmra.mrb[132].mxu0 %v5127_v59  ;;  %v20798_v59 = vrot.slane %v20656_v3, %v20791_v34 }
 0x50b   : > { %5374 = vmatprep.mubr.bf16.mxu0 %v20380_v38 }
 0x50c   : > { %v1044_v6 = vadd.f32 %v23922_v43, %v20798_v59  ;;  %v1243_v43 = vadd.f32 %v20594_v30, %v20659_v7 }
 0x512   : > { %5375 = vmatmul.mubr.bf16.gmra.mrb[136].mxu0 %v5128_v62 }
 0x513   : > { %5384 = vmatprep.mubr.bf16.mxu0 %v20380_v38 }
 0x51a   : > { %5385 = vmatmul.mubr.bf16.gmra.mrb[140].mxu0 %v5129_v24  ;;  %v20801_v24 = vrot.slane %v5150_v39, %v23921_v29 }
 0x51b   : > { %5394 = vmatprep.mubr.bf16.mxu0 %v20380_v38 }
 0x522   : > { %5395 = vmatmul.mubr.bf16.gmra.mrb[144].mxu0 %v5130_v15 }
 0x523   : > { %5404 = vmatprep.mubr.bf16.mxu0 %v20380_v38 }
 0x52a   : > { %5405 = vmatmul.mubr.bf16.gmra.mrb[148].mxu0 %v5131_v51  ;;  %v23923_v51 = vld [vmem:[#allocation36_spill] sm:$0xff] }
 0x52b   : > { %5414 = vmatprep.mubr.bf16.mxu0 %v20380_v38  ;;  %v20804_v38 = vrot.slane %v5150_v39, %v20791_v34  ;;  %v1048_v15 = vadd.f32 %v23923_v51, %v20798_v59 }
 0x532   : > { %5415 = vmatmul.mubr.bf16.gmra.mrb[152].mxu0 %v5132_v44 }
 0x533   : > { %5424 = vmatprep.mubr.bf16.mxu0 %v20787_v23 }
 0x53a   : > { %5425 = vmatmul.mubr.bf16.gmra.mrb[156].mxu0 %v5133_v53  ;;  %v23924_v53 = vld [vmem:[#allocation37_spill] sm:$0xff] }
 0x53b   : > { %v1054_v48 = vadd.f32 %v23924_v53, %v20798_v59 }
 0x595   : > { %v5276_v62 = vpop.f32.mrb[96].mxu0 }
 0x596   : > { %v5277_v60 = vadd.f32 %v5276_v62, %v20801_v24  ;;  %v5278_v8 = vpop.f32.mrb[97].mxu0 }
 0x597   : > { %v5279_v1 = vadd.f32 %v5278_v8, %v20804_v38  ;;  %v5280_v3 = vpop.f32.mrb[98].mxu0 }
 0x598   : > { %v20814_v4 = vadd.f32 %v5277_v60, %v1044_v6  ;;  %v5281_v61 = vadd.f32 %v5280_v3, %v20801_v24  ;;  %v5282_v2 = vpop.f32.mrb[99].mxu0 }
 0x599   : > { %v20819_v18 = vadd.f32 %v5279_v1, %v1235_v14  ;;  %v5283_v27 = vadd.f32 %v5282_v2, %v20804_v38  ;;  %v23925_v14 = vld [vmem:[#allocation38_spill] sm:$0xff]  ;;  %v1246_v2 = vadd.f32 %v20600_v31, %v20659_v7 }
 0x59a   : > { %v20822_v42 = vadd.f32 %v5281_v61, %v1048_v15  ;;  %v23601_v44 = vmax.f32 %v20814_v4, 0.0  ;;  %v1058_v1 = vadd.f32 %v23925_v14, %v20798_v59  ;;  %v18624_v61 = vld [vmem:[#allocation3 + $0x8] sm:$0xff]  }
 0x59b   : > { %v20824_v21 = vadd.f32 %v5283_v27, %v1238_v40  ;;  %v23602_v19 = vmax.f32 %v20819_v18, 0.0 }
 0x59c   : > { %v23592_v0 = vmax.f32 %v20822_v42, 0.0 }
 0x59d   : > { %v5286_v5 = vpop.f32.mrb[100].mxu0  ;;  %v23591_v25 = vmax.f32 %v20824_v21, 0.0 }
 0x59e   : > { %v5287_v39 = vadd.f32 %v5286_v5, %v20801_v24  ;;  %v5288_v62 = vpop.f32.mrb[101].mxu0  ;;  %v5563_v3 = vpack.c.bf16 %v23592_v0, %v23601_v44 }
 0x59f   : > { %v5289_v6 = vadd.f32 %v5288_v62, %v20804_v38  ;;  %v5290_v60 = vpop.f32.mrb[102].mxu0  ;;  %v5564_v8 = vpack.c.bf16 %v23591_v25, %v23602_v19 }
 0x5a0   : > { %v20846_v51 = vadd.f32 %v5287_v39, %v1054_v48  ;;  %v5291_v30 = vadd.f32 %v5290_v60, %v20801_v24  ;;  %v5292_v15 = vpop.f32.mrb[103].mxu0  ;;  %v18625_v39 = vld [vmem:[#allocation3 + $0x10] sm:$0xff]  }
 0x5a1   : > { %v20851_v40 = vadd.f32 %v5289_v6, %v1243_v43  ;;  %v5293_v27 = vadd.f32 %v5292_v15, %v20804_v38  ;;  %5762 = vmatprep.mubr.bf16.mxu0 %v5564_v8  ;;  %v23930_v43 = vld [vmem:[#allocation40_spill] sm:$0xff] }
 0x5a2   : > { %23926 = vst [vmem:[#allocation25_spill] sm:$0xff] %v20846_v51  ;;  %v20854_v5 = vadd.f32 %v5291_v30, %v1058_v1  ;;  %5763 = vmatmul.mubr.bf16.vlgmr.msra.gmra.mrb[160].mxu0 %v5563_v3  ;;  %v1064_v6 = vadd.f32 %v23930_v43, %v20798_v59  ;;  %v23595_v1 = vmax.f32 %v20846_v51, 0.0 }
 0x5a3   : > { %23927 = vst [vmem:[#allocation26_spill] sm:$0xff] %v20851_v40  ;;  %v20856_v53 = vadd.f32 %v5293_v27, %v1246_v2  ;;  %16655 = vmatpush3.bf16.msra.mxu0 %v18623_v50  ;;  %v23596_v60 = vmax.f32 %v20851_v40, 0.0  ;;  %v1251_v50 = vadd.f32 %v20609_v36, %v20659_v7  ;;  %v23931_v2 = vld [vmem:[#allocation41_spill] sm:$0xff] }
 0x5a4   : > { %23928 = vst [vmem:[#allocation27_spill] sm:$0xff] %v20854_v5  ;;  %v23594_v48 = vmax.f32 %v20854_v5, 0.0  ;;  %16656 = vmatprep.subr.bf16.mxu0 %v18624_v61  ;;  %v1068_v27 = vadd.f32 %v23931_v2, %v20798_v59 }
 0x5a5   : > { %23929 = vst [vmem:[#allocation29_spill] sm:$0xff] %v20856_v53  ;;  %v5296_v62 = vpop.f32.mrb[104].mxu0  ;;  %v23593_v31 = vmax.f32 %v20856_v53, 0.0 }
 0x5a6   : > { %v5297_v8 = vadd.f32 %v5296_v62, %v20801_v24  ;;  %v5298_v14 = vpop.f32.mrb[105].mxu0  ;;  %v5565_v36 = vpack.c.bf16 %v23594_v48, %v23595_v1 }
 0x5a7   : > { %v5299_v3 = vadd.f32 %v5298_v14, %v20804_v38  ;;  %v5300_v30 = vpop.f32.mrb[106].mxu0  ;;  %v5566_v15 = vpack.c.bf16 %v23593_v31, %v23596_v60  ;;  %16657 = vmatpush3.bf16.msra.mxu0 %v18624_v61  ;;  %v1254_v14 = vadd.f32 %v20617_v32, %v20659_v7  ;;  %v23936_v32 = vld [vmem:[#allocation42_spill] sm:$0xff] }
 0x5a8   : > { %v20874_v43 = vadd.f32 %v5297_v8, %v1064_v6  ;;  %v5301_v62 = vadd.f32 %v5300_v30, %v20801_v24  ;;  %v5302_v25 = vpop.f32.mrb[107].mxu0  ;;  %16658 = vmatprep.subr.bf16.mxu0 %v18625_v39 }
 0x5a9   : > { %v20883_v0 = vadd.f32 %v5299_v3, %v1251_v50  ;;  %v5303_v61 = vadd.f32 %v5302_v25, %v20804_v38  ;;  %5770 = vmatprep.mubr.bf16.mxu0 %v5566_v15  ;;  %v1074_v50 = vadd.f32 %v23936_v32, %v20798_v59 }
 0x5aa   : > { %23932 = vst [vmem:[#allocation30_spill] sm:$0xff] %v20874_v43  ;;  %v20886_v2 = vadd.f32 %v5301_v62, %v1068_v27  ;;  %5771 = vmatmul.mubr.bf16.gmra.mrb[164].mxu0 %v5565_v36  ;;  %v23600_v15 = vmax.f32 %v20874_v43, 0.0  ;;  %v1259_v27 = vadd.f32 %v20604_v52, %v20659_v7 }
 0x5ab   : > { %23933 = vst [vmem:[#allocation31_spill] sm:$0xff] %v20883_v0  ;;  %v20888_v6 = vadd.f32 %v5303_v61, %v1254_v14  ;;  %16659 = vmatpush3.bf16.msra.mxu0 %v18625_v39  ;;  %v23598_v31 = vmax.f32 %v20883_v0, 0.0  ;;  %v23937_v14 = vld [vmem:[#allocation43_spill] sm:$0xff] }
 0x5ac   : > { %23934 = vst [vmem:[#allocation32_spill] sm:$0xff] %v20886_v2  ;;  %v23599_v8 = vmax.f32 %v20886_v2, 0.0  ;;  %v1078_v61 = vadd.f32 %v23937_v14, %v20798_v59 }
 0x5ad   : > { %23935 = vst [vmem:[#allocation33_spill] sm:$0xff] %v20888_v6  ;;  %v5306_v30 = vpop.f32.mrb[108].mxu0  ;;  %v23597_v48 = vmax.f32 %v20888_v6, 0.0 }
 0x5ae   : > { %v5307_v3 = vadd.f32 %v5306_v30, %v20801_v24  ;;  %v5308_v25 = vpop.f32.mrb[109].mxu0  ;;  %v5567_v52 = vpack.c.bf16 %v23599_v8, %v23600_v15  ;;  %v23942_v15 = vld [vmem:[#allocation44_spill] sm:$0xff] }
 0x5af   : > { %v5309_v39 = vadd.f32 %v5308_v25, %v20804_v38  ;;  %v5310_v62 = vpop.f32.mrb[110].mxu0  ;;  %v5568_v36 = vpack.c.bf16 %v23597_v48, %v23598_v31  ;;  %v1262_v25 = vadd.f32 %v20614_v49, %v20659_v7  ;;  %v1084_v49 = vadd.f32 %v23942_v15, %v20798_v59 }
 0x5b0   : > { %v20906_v32 = vadd.f32 %v5307_v3, %v1074_v50  ;;  %v5311_v30 = vadd.f32 %v5310_v62, %v20801_v24  ;;  %v5312_v1 = vpop.f32.mrb[111].mxu0 }
 0x5b1   : > { %v20915_v60 = vadd.f32 %v5309_v39, %v1259_v27  ;;  %v5313_v48 = vadd.f32 %v5312_v1, %v20804_v38  ;;  %5778 = vmatprep.mubr.bf16.mxu0 %v5568_v36  ;;  %v1267_v36 = vadd.f32 %v20627_v35, %v20659_v7 }
 0x5b2   : > { %23938 = vst [vmem:[#allocation34_spill] sm:$0xff] %v20906_v32  ;;  %v20918_v31 = vadd.f32 %v5311_v30, %v1078_v61  ;;  %5779 = vmatmul.mubr.bf16.gmra.mrb[168].mxu0 %v5567_v52  ;;  %v23606_v1 = vmax.f32 %v20906_v32, 0.0  ;;  %v23943_v52 = vld [vmem:[#allocation45_spill] sm:$0xff] }
 0x5b3   : > { %23939 = vst [vmem:[#allocation35_spill] sm:$0xff] %v20915_v60  ;;  %v20920_v50 = vadd.f32 %v5313_v48, %v1262_v25  ;;  %v23604_v14 = vmax.f32 %v20915_v60, 0.0  ;;  %v1088_v25 = vadd.f32 %v23943_v52, %v20798_v59 }
 0x5b4   : > { %23940 = vst [vmem:[#allocation36_spill] sm:$0xff] %v20918_v31  ;;  %v23605_v3 = vmax.f32 %v20918_v31, 0.0 }
 0x5b5   : > { %23941 = vst [vmem:[#allocation37_spill] sm:$0xff] %v20920_v50  ;;  %v5316_v62 = vpop.f32.mrb[112].mxu0  ;;  %v23603_v8 = vmax.f32 %v20920_v50, 0.0 }
 0x5b6   : > { %v5317_v27 = vadd.f32 %v5316_v62, %v20801_v24  ;;  %v5318_v39 = vpop.f32.mrb[113].mxu0  ;;  %v5569_v35 = vpack.c.bf16 %v23605_v3, %v23606_v1  ;;  %v23948_v1 = vld [vmem:[#allocation46_spill] sm:$0xff] }
 0x5b7   : > { %v5319_v48 = vadd.f32 %v5318_v39, %v20804_v38  ;;  %v5320_v61 = vpop.f32.mrb[114].mxu0  ;;  %v5570_v30 = vpack.c.bf16 %v23603_v8, %v23604_v14  ;;  %v1270_v39 = vadd.f32 %v20636_v11, %v20659_v7  ;;  %v1094_v11 = vadd.f32 %v23948_v1, %v20798_v59 }
 0x5b8   : > { %v20938_v15 = vadd.f32 %v5317_v27, %v1084_v49  ;;  %v5321_v62 = vadd.f32 %v5320_v61, %v20801_v24  ;;  %v5322_v44 = vpop.f32.mrb[115].mxu0 }
 0x5b9   : > { %v20947_v19 = vadd.f32 %v5319_v48, %v1267_v36  ;;  %v5323_v8 = vadd.f32 %v5322_v44, %v20804_v38  ;;  %5786 = vmatprep.mubr.bf16.mxu0 %v5570_v30  ;;  %v1275_v30 = vadd.f32 %v20620_v63, %v20659_v7 }
 0x5ba   : > { %23944 = vst [vmem:[#allocation38_spill] sm:$0xff] %v20938_v15  ;;  %v20950_v14 = vadd.f32 %v5321_v62, %v1088_v25  ;;  %5787 = vmatmul.mubr.bf16.gmra.mrb[172].mxu0 %v5569_v35  ;;  %v23611_v44 = vmax.f32 %v20938_v15, 0.0  ;;  %v23949_v35 = vld [vmem:[#allocation47_spill] sm:$0xff] }
 0x5bb   : > { %23945 = vst [vmem:[#allocation40_spill] sm:$0xff] %v20947_v19  ;;  %v20952_v49 = vadd.f32 %v5323_v8, %v1270_v39  ;;  %v23610_v52 = vmax.f32 %v20947_v19, 0.0  ;;  %v1098_v39 = vadd.f32 %v23949_v35, %v20798_v59 }
 0x5bc   : > { %23946 = vst [vmem:[#allocation41_spill] sm:$0xff] %v20950_v14  ;;  %v23951_v63 = vmax.f32 %v20950_v14, 0.0 }
 0x5bd   : > { %23947 = vst [vmem:[#allocation42_spill] sm:$0xff] %v20952_v49  ;;  %v5326_v61 = vpop.f32.mrb[116].mxu0  ;;  %v23609_v3 = vmax.f32 %v20952_v49, 0.0 }
 0x5be   : > { %v5327_v36 = vadd.f32 %v5326_v61, %v20801_v24  ;;  %v5328_v48 = vpop.f32.mrb[117].mxu0  ;;  %v5571_v50 = vpack.c.bf16 %v23951_v63, %v23611_v44  ;;  %v23955_v44 = vld [vmem:[#allocation48_spill] sm:$0xff] }
 0x5bf   : > { %v5329_v8 = vadd.f32 %v5328_v48, %v20804_v38  ;;  %v5330_v25 = vpop.f32.mrb[118].mxu0  ;;  %v5572_v62 = vpack.c.bf16 %v23609_v3, %v23610_v52  ;;  %v1278_v48 = vadd.f32 %v20633_v13, %v20659_v7  ;;  %v1104_v13 = vadd.f32 %v23955_v44, %v20798_v59 }
 0x5c0   : > { %v20970_v1 = vadd.f32 %v5327_v36, %v1094_v11  ;;  %v5331_v61 = vadd.f32 %v5330_v25, %v20801_v24  ;;  %v5332_v27 = vpop.f32.mrb[119].mxu0 }
 0x5c1   : > { %v20979_v19 = vadd.f32 %v5329_v8, %v1275_v30  ;;  %v5333_v3 = vadd.f32 %v5332_v27, %v20804_v38  ;;  %5794 = vmatprep.mubr.bf16.mxu0 %v5572_v62 }
 0x5c2   : > { %23950 = vst [vmem:[#allocation43_spill] sm:$0xff] %v20970_v1  ;;  %v20982_v52 = vadd.f32 %v5331_v61, %v1098_v39  ;;  %5795 = vmatmul.mubr.bf16.gmra.mrb[176].mxu0 %v5571_v50  ;;  %v23616_v27 = vmax.f32 %v20970_v1, 0.0  ;;  %v1283_v50 = vadd.f32 %v20645_v47, %v20659_v7  ;;  %v23956_v61 = vld [vmem:[#allocation49_spill] sm:$0xff] }
 0x5c3   : > { %23952 = vst [vmem:[#allocation44_spill] sm:$0xff] %v20979_v19  ;;  %v20984_v11 = vadd.f32 %v5333_v3, %v1278_v48  ;;  %v23615_v35 = vmax.f32 %v20979_v19, 0.0  ;;  %v1108_v48 = vadd.f32 %v23956_v61, %v20798_v59 }
 0x5c4   : > { %23953 = vst [vmem:[#allocation45_spill] sm:$0xff] %v20982_v52  ;;  %v23958_v47 = vmax.f32 %v20982_v52, 0.0 }
 0x5c5   : > { %23954 = vst [vmem:[#allocation46_spill] sm:$0xff] %v20984_v11  ;;  %v5336_v25 = vpop.f32.mrb[120].mxu0  ;;  %v23614_v63 = vmax.f32 %v20984_v11, 0.0 }
 0x5c6   : > { %v5337_v30 = vadd.f32 %v5336_v25, %v20801_v24  ;;  %v5338_v8 = vpop.f32.mrb[121].mxu0  ;;  %v5573_v49 = vpack.c.bf16 %v23958_v47, %v23616_v27  ;;  %v23962_v27 = vld [vmem:[#allocation50_spill] sm:$0xff] }
 0x5c7   : > { %v5339_v3 = vadd.f32 %v5338_v8, %v20804_v38  ;;  %v5340_v62 = vpop.f32.mrb[122].mxu0  ;;  %v5574_v39 = vpack.c.bf16 %v23614_v63, %v23615_v35  ;;  %v1286_v8 = vadd.f32 %v20661_v58, %v20659_v7  ;;  %v1114_v58 = vadd.f32 %v23962_v27, %v20798_v59 }
 0x5c8   : > { %v21002_v44 = vadd.f32 %v5337_v30, %v1104_v13  ;;  %v5341_v25 = vadd.f32 %v5340_v62, %v20801_v24  ;;  %v5342_v36 = vpop.f32.mrb[123].mxu0 }
 0x5c9   : > { %v21011_v19 = vadd.f32 %v5339_v3, %v1283_v50  ;;  %v5343_v63 = vadd.f32 %v5342_v36, %v20804_v38  ;;  %5802 = vmatprep.mubr.bf16.mxu0 %v5574_v39 }
 0x5ca   : > { %23957 = vst [vmem:[#allocation47_spill] sm:$0xff] %v21002_v44  ;;  %v21014_v35 = vadd.f32 %v5341_v25, %v1108_v48  ;;  %5803 = vmatmul.mubr.bf16.gmra.mrb[180].mxu0 %v5573_v49  ;;  %v23621_v36 = vmax.f32 %v21002_v44, 0.0  ;;  %v1291_v49 = vadd.f32 %v20638_v45, %v20659_v7  ;;  %v23963_v25 = vld [vmem:[#allocation51_spill] sm:$0xff] }
 0x5cb   : > { %23959 = vst [vmem:[#allocation48_spill] sm:$0xff] %v21011_v19  ;;  %v21016_v13 = vadd.f32 %v5343_v63, %v1286_v8  ;;  %v23620_v61 = vmax.f32 %v21011_v19, 0.0  ;;  %v1118_v8 = vadd.f32 %v23963_v25, %v20798_v59 }
 0x5cc   : > { %23960 = vst [vmem:[#allocation49_spill] sm:$0xff] %v21014_v35  ;;  %v23965_v45 = vmax.f32 %v21014_v35, 0.0 }
 0x5cd   : > { %23961 = vst [vmem:[#allocation68_spill] sm:$0xff] %v21016_v13  ;;  %v5346_v62 = vpop.f32.mrb[124].mxu0  ;;  %v23619_v47 = vmax.f32 %v21016_v13, 0.0 }
 0x5ce   : > { %v5347_v50 = vadd.f32 %v5346_v62, %v20801_v24  ;;  %v5348_v3 = vpop.f32.mrb[125].mxu0  ;;  %v5575_v11 = vpack.c.bf16 %v23965_v45, %v23621_v36  ;;  %v23969_v36 = vld [vmem:[#allocation52_spill] sm:$0xff] }
 0x5cf   : > { %v5349_v63 = vadd.f32 %v5348_v3, %v20804_v38  ;;  %v5350_v39 = vpop.f32.mrb[126].mxu0  ;;  %v5576_v48 = vpack.c.bf16 %v23619_v47, %v23620_v61  ;;  %v1294_v3 = vadd.f32 %v20650_v28, %v20659_v7  ;;  %v1124_v28 = vadd.f32 %v23969_v36, %v20798_v59 }
 0x5d0   : > { %v21034_v27 = vadd.f32 %v5347_v50, %v1114_v58  ;;  %v5351_v62 = vadd.f32 %v5350_v39, %v20801_v24  ;;  %v5352_v30 = vpop.f32.mrb[127].mxu0 }
 0x5d1   : > { %v21043_v19 = vadd.f32 %v5349_v63, %v1291_v49  ;;  %v5353_v47 = vadd.f32 %v5352_v30, %v20804_v38  ;;  %5810 = vmatprep.mubr.bf16.mxu0 %v5576_v48  ;;  %v23970_v48 = vld [vmem:[#allocation53_spill] sm:$0xff] }
 0x5d2   : > { %23964 = vst [vmem:[#allocation50_spill] sm:$0xff] %v21034_v27  ;;  %v21046_v61 = vadd.f32 %v5351_v62, %v1118_v8  ;;  %5811 = vmatmul.mubr.bf16.gmra.mrb[184].mxu0 %v5575_v11  ;;  %v23626_v30 = vmax.f32 %v21034_v27, 0.0  ;;  %v1128_v8 = vadd.f32 %v23970_v48, %v20798_v59 }
 0x5d3   : > { %23966 = vst [vmem:[#allocation51_spill] sm:$0xff] %v21043_v19  ;;  %v21048_v58 = vadd.f32 %v5353_v47, %v1294_v3  ;;  %v23624_v25 = vmax.f32 %v21043_v19, 0.0 }
 0x5d4   : > { %23967 = vst [vmem:[#allocation69_spill] sm:$0xff] %v21046_v61  ;;  %v23625_v50 = vmax.f32 %v21046_v61, 0.0 }
 0x5d5   : > { %23968 = vst [vmem:[#allocation70_spill] sm:$0xff] %v21048_v58  ;;  %v5356_v39 = vpop.f32.mrb[128].mxu0  ;;  %v23623_v45 = vmax.f32 %v21048_v58, 0.0 }
 0x5d6   : > { %v5357_v7 = vadd.f32 %v5356_v39, %v20801_v24  ;;  %v5358_v49 = vpop.f32.mrb[129].mxu0  ;;  %v5577_v39 = vpack.c.bf16 %v23625_v50, %v23626_v30  ;;  %v23975_v50 = vld [vmem:[#allocation54_spill] sm:$0xff] }
 0x5d7   : > { %v5359_v63 = vadd.f32 %v5358_v49, %v20804_v38  ;;  %v5360_v11 = vpop.f32.mrb[130].mxu0  ;;  %v5578_v47 = vpack.c.bf16 %v23623_v45, %v23624_v25 }
 0x5d8   : > { %v21064_v62 = vadd.f32 %v5357_v7, %v1124_v28  ;;  %v5361_v36 = vadd.f32 %v5360_v11, %v20801_v24  ;;  %v5362_v3 = vpop.f32.mrb[131].mxu0 }
 0x5d9   : > { %v21072_v49 = vadd.f32 %v5359_v63, %v20677_v33  ;;  %v5363_v19 = vadd.f32 %v5362_v3, %v20804_v38  ;;  %5818 = vmatprep.mubr.bf16.mxu0 %v5578_v47  ;;  %v1134_v33 = vadd.f32 %v23975_v50, %v20798_v59 }
 0x5da   : > { %23971 = vst [vmem:[#allocation52_spill] sm:$0xff] %v21064_v62  ;;  %v21075_v45 = vadd.f32 %v5361_v36, %v1128_v8  ;;  %5819 = vmatmul.mubr.bf16.gmra.mrb[188].mxu0 %v5577_v39  ;;  %v23631_v63 = vmax.f32 %v21064_v62, 0.0 }
 0x5db   : > { %23972 = vst [vmem:[#allocation53_spill] sm:$0xff] %v21072_v49  ;;  %v21078_v28 = vadd.f32 %v5363_v19, %v20683_v55  ;;  %v23630_v11 = vmax.f32 %v21072_v49, 0.0  ;;  %v23976_v19 = vld [vmem:[#allocation55_spill] sm:$0xff] }
 0x5dc   : > { %23973 = vst [vmem:[#allocation71_spill] sm:$0xff] %v21075_v45  ;;  %v1138_v39 = vadd.f32 %v23976_v19, %v20798_v59 }
 0x5dd   : > { %23974 = vst [vmem:[#allocation72_spill] sm:$0xff] %v21078_v28  ;;  %v23629_v48 = vmax.f32 %v21078_v28, 0.0  ;;  %v5366_v25 = vpop.f32.mrb[132].mxu0 }
 0x5de   : > { %v5367_v47 = vadd.f32 %v5366_v25, %v20801_v24  ;;  %v5368_v8 = vpop.f32.mrb[133].mxu0  ;;  %v23978_v25 = vmax.f32 %v21075_v45, 0.0  ;;  %v6160_v45 = vld [vmem:[#allocation2 + $0xe0] sm:$0xff] }
 0x5df   : > { %v5369_v36 = vadd.f32 %v5368_v8, %v20804_v38  ;;  %v5370_v3 = vpop.f32.mrb[134].mxu0  ;;  %v5580_v55 = vpack.c.bf16 %v23629_v48, %v23630_v11 }
 0x5e0   : > { %v21094_v30 = vadd.f32 %v5367_v47, %v1134_v33  ;;  %v5371_v50 = vadd.f32 %v5370_v3, %v20801_v24  ;;  %v5372_v7 = vpop.f32.mrb[135].mxu0  ;;  %v5579_v58 = vpack.c.bf16 %v23978_v25, %v23631_v63  ;;  %v23982_v25 = vld [vmem:[#allocation56_spill] sm:$0xff] }
 0x5e1   : > { %v21102_v8 = vadd.f32 %v5369_v36, %v20670_v22  ;;  %v5373_v49 = vadd.f32 %v5372_v7, %v20804_v38  ;;  %5826 = vmatprep.mubr.bf16.mxu0 %v5580_v55  ;;  %v1144_v22 = vadd.f32 %v23982_v25, %v20798_v59 }
 0x5e2   : > { %23977 = vst [vmem:[#allocation54_spill] sm:$0xff] %v21094_v30  ;;  %v21105_v48 = vadd.f32 %v5371_v50, %v1138_v39  ;;  %5827 = vmatmul.mubr.bf16.gmra.mrb[192].mxu0 %v5579_v58  ;;  %v23636_v36 = vmax.f32 %v21094_v30, 0.0 }
 0x5e3   : > { %23979 = vst [vmem:[#allocation55_spill] sm:$0xff] %v21102_v8  ;;  %v21108_v33 = vadd.f32 %v5373_v49, %v20680_v54  ;;  %v23635_v3 = vmax.f32 %v21102_v8, 0.0  ;;  %v23983_v49 = vld [vmem:[#allocation57_spill] sm:$0xff] }
 0x5e4   : > { %23980 = vst [vmem:[#allocation73_spill] sm:$0xff] %v21105_v48  ;;  %v1148_v50 = vadd.f32 %v23983_v49, %v20798_v59 }
 0x5e5   : > { %23981 = vst [vmem:[#allocation74_spill] sm:$0xff] %v21108_v33  ;;  %v23634_v19 = vmax.f32 %v21108_v33, 0.0  ;;  %v5376_v11 = vpop.f32.mrb[136].mxu0 }
 0x5e6   : > { %v5377_v7 = vadd.f32 %v5376_v11, %v20801_v24  ;;  %v5378_v55 = vpop.f32.mrb[137].mxu0  ;;  %v23985_v11 = vmax.f32 %v21105_v48, 0.0 }
 0x5e7   : > { %v5379_v58 = vadd.f32 %v5378_v55, %v20804_v38  ;;  %v5380_v39 = vpop.f32.mrb[138].mxu0  ;;  %v5582_v54 = vpack.c.bf16 %v23634_v19, %v23635_v3 }
 0x5e8   : > { %v21124_v63 = vadd.f32 %v5377_v7, %v1144_v22  ;;  %v5381_v25 = vadd.f32 %v5380_v39, %v20801_v24  ;;  %v5382_v47 = vpop.f32.mrb[139].mxu0  ;;  %v5581_v28 = vpack.c.bf16 %v23985_v11, %v23636_v36  ;;  %v23989_v11 = vld [vmem:[#allocation58_spill] sm:$0xff] }
 0x5e9   : > { %v21132_v55 = vadd.f32 %v5379_v58, %v20699_v26  ;;  %v5383_v8 = vadd.f32 %v5382_v47, %v20804_v38  ;;  %5834 = vmatprep.mubr.bf16.mxu0 %v5582_v54  ;;  %v1154_v26 = vadd.f32 %v23989_v11, %v20798_v59 }
 0x5ea   : > { %23984 = vst [vmem:[#allocation56_spill] sm:$0xff] %v21124_v63  ;;  %v21135_v19 = vadd.f32 %v5381_v25, %v1148_v50  ;;  %5835 = vmatmul.mubr.bf16.gmra.mrb[196].mxu0 %v5581_v28  ;;  %v23641_v58 = vmax.f32 %v21124_v63, 0.0 }
 0x5eb   : > { %23986 = vst [vmem:[#allocation57_spill] sm:$0xff] %v21132_v55  ;;  %v21138_v22 = vadd.f32 %v5383_v8, %v20707_v46  ;;  %v23640_v39 = vmax.f32 %v21132_v55, 0.0  ;;  %v23990_v8 = vld [vmem:[#allocation59_spill] sm:$0xff] }
 0x5ec   : > { %23987 = vst [vmem:[#allocation75_spill] sm:$0xff] %v21135_v19  ;;  %v1158_v25 = vadd.f32 %v23990_v8, %v20798_v59 }
 0x5ed   : > { %23988 = vst [vmem:[#allocation76_spill] sm:$0xff] %v21138_v22  ;;  %v23639_v49 = vmax.f32 %v21138_v22, 0.0  ;;  %v5386_v3 = vpop.f32.mrb[140].mxu0 }
 0x5ee   : > { %v5387_v47 = vadd.f32 %v5386_v3, %v20801_v24  ;;  %v5388_v54 = vpop.f32.mrb[141].mxu0  ;;  %v23992_v3 = vmax.f32 %v21135_v19, 0.0 }
 0x5ef   : > { %v5389_v28 = vadd.f32 %v5388_v54, %v20804_v38  ;;  %v5390_v50 = vpop.f32.mrb[142].mxu0  ;;  %v5584_v46 = vpack.c.bf16 %v23639_v49, %v23640_v39 }
 0x5f0   : > { %v21154_v36 = vadd.f32 %v5387_v47, %v1154_v26  ;;  %v5391_v11 = vadd.f32 %v5390_v50, %v20801_v24  ;;  %v5392_v7 = vpop.f32.mrb[143].mxu0  ;;  %v5583_v33 = vpack.c.bf16 %v23992_v3, %v23641_v58  ;;  %v23996_v3 = vld [vmem:[#allocation60_spill] sm:$0xff] }
 0x5f1   : > { %v21162_v54 = vadd.f32 %v5389_v28, %v20691_v37  ;;  %v5393_v55 = vadd.f32 %v5392_v7, %v20804_v38  ;;  %5842 = vmatprep.mubr.bf16.mxu0 %v5584_v46  ;;  %v1164_v37 = vadd.f32 %v23996_v3, %v20798_v59 }
 0x5f2   : > { %23991 = vst [vmem:[#allocation58_spill] sm:$0xff] %v21154_v36  ;;  %v21165_v49 = vadd.f32 %v5391_v11, %v1158_v25  ;;  %5843 = vmatmul.mubr.bf16.gmra.mrb[200].mxu0 %v5583_v33  ;;  %v23646_v28 = vmax.f32 %v21154_v36, 0.0 }
 0x5f3   : > { %23993 = vst [vmem:[#allocation59_spill] sm:$0xff] %v21162_v54  ;;  %v21168_v26 = vadd.f32 %v5393_v55, %v20703_v20  ;;  %v23645_v50 = vmax.f32 %v21162_v54, 0.0  ;;  %v23997_v55 = vld [vmem:[#allocation61_spill] sm:$0xff] }
 0x5f4   : > { %23994 = vst [vmem:[#allocation77_spill] sm:$0xff] %v21165_v49  ;;  %v1168_v11 = vadd.f32 %v23997_v55, %v20798_v59 }
 0x5f5   : > { %23995 = vst [vmem:[#allocation78_spill] sm:$0xff] %v21168_v26  ;;  %v23644_v8 = vmax.f32 %v21168_v26, 0.0  ;;  %v5396_v39 = vpop.f32.mrb[144].mxu0 }
 0x5f6   : > { %v5397_v7 = vadd.f32 %v5396_v39, %v20801_v24  ;;  %v5398_v46 = vpop.f32.mrb[145].mxu0  ;;  %v23999_v39 = vmax.f32 %v21165_v49, 0.0 }
 0x5f7   : > { %v5399_v33 = vadd.f32 %v5398_v46, %v20804_v38  ;;  %v5400_v25 = vpop.f32.mrb[146].mxu0  ;;  %v5586_v20 = vpack.c.bf16 %v23644_v8, %v23645_v50 }
 0x5f8   : > { %v21184_v58 = vadd.f32 %v5397_v7, %v1164_v37  ;;  %v5401_v3 = vadd.f32 %v5400_v25, %v20801_v24  ;;  %v5402_v47 = vpop.f32.mrb[147].mxu0  ;;  %v5585_v22 = vpack.c.bf16 %v23999_v39, %v23646_v28  ;;  %v18626_v7 = vld [vmem:[#allocation3 + $0x18] sm:$0xff]  }
 0x5f9   : > { %v21192_v46 = vadd.f32 %v5399_v33, %v20722_v41  ;;  %v5403_v54 = vadd.f32 %v5402_v47, %v20804_v38  ;;  %5850 = vmatprep.mubr.bf16.mxu0 %v5586_v20  ;;  %16660 = vmatprep.subr.bf16.mxu0 %v18626_v7  ;;  %v24003_v41 = vld [vmem:[#allocation62_spill] sm:$0xff] }
 0x5fa   : > { %23998 = vst [vmem:[#allocation60_spill] sm:$0xff] %v21184_v58  ;;  %v21195_v8 = vadd.f32 %v5401_v3, %v1168_v11  ;;  %5851 = vmatmul.mubr.bf16.gmra.mrb[204].mxu0 %v5585_v22  ;;  %v1174_v33 = vadd.f32 %v24003_v41, %v20798_v59  ;;  %v24004_v3 = vld [vmem:[#allocation63_spill] sm:$0xff] }
 0x5fb   : > { %24000 = vst [vmem:[#allocation61_spill] sm:$0xff] %v21192_v46  ;;  %v21198_v37 = vadd.f32 %v5403_v54, %v20728_v10  ;;  %v23650_v55 = vmax.f32 %v21192_v46, 0.0  ;;  %16661 = vmatpush3.bf16.msra.mxu0 %v18626_v7  ;;  %v1178_v28 = vadd.f32 %v24004_v3, %v20798_v59 }
 0x5fc   : > { %24001 = vst [vmem:[#allocation79_spill] sm:$0xff] %v21195_v8  ;;  %v24007_v7 = vmax.f32 %v21195_v8, 0.0 }
 0x5fd   : > { %24002 = vst [vmem:[#allocation80_spill] sm:$0xff] %v21198_v37  ;;  %v23649_v50 = vmax.f32 %v21198_v37, 0.0  ;;  %v5406_v39 = vpop.f32.mrb[148].mxu0 }
 0x5fe   : > { %v5407_v20 = vadd.f32 %v5406_v39, %v20801_v24  ;;  %v5408_v22 = vpop.f32.mrb[149].mxu0  ;;  %v24006_v39 = vmax.f32 %v21184_v58, 0.0 }
 0x5ff   : > { %v5409_v10 = vadd.f32 %v5408_v22, %v20804_v38  ;;  %v5410_v54 = vpop.f32.mrb[150].mxu0  ;;  %v5588_v11 = vpack.c.bf16 %v23649_v50, %v23650_v55 }
 0x600   : > { %v21214_v25 = vadd.f32 %v5407_v20, %v1174_v33  ;;  %v5411_v41 = vadd.f32 %v5410_v54, %v20801_v24  ;;  %v5412_v47 = vpop.f32.mrb[151].mxu0  ;;  %v5587_v26 = vpack.c.bf16 %v24007_v7, %v24006_v39  ;;  %v24011_v39 = vld [vmem:[#allocation64_spill] sm:$0xff] }
 0x601   : > { %v21222_v22 = vadd.f32 %v5409_v10, %v20715_v9  ;;  %v5413_v46 = vadd.f32 %v5412_v47, %v20804_v38  ;;  %5858 = vmatprep.mubr.bf16.mxu0 %v5588_v11  ;;  %v1184_v9 = vadd.f32 %v24011_v39, %v20798_v59 }
 0x602   : > { %24005 = vst [vmem:[#allocation62_spill] sm:$0xff] %v21214_v25  ;;  %v21225_v50 = vadd.f32 %v5411_v41, %v1178_v28  ;;  %5859 = vmatmul.mubr.bf16.gmra.mrb[208].mxu0 %v5587_v26  ;;  %v23655_v10 = vmax.f32 %v21214_v25, 0.0 }
 0x603   : > { %24008 = vst [vmem:[#allocation63_spill] sm:$0xff] %v21222_v22  ;;  %v21228_v33 = vadd.f32 %v5413_v46, %v20725_v12  ;;  %v23654_v54 = vmax.f32 %v21222_v22, 0.0  ;;  %v24012_v46 = vld [vmem:[#allocation65_spill] sm:$0xff] }
 0x604   : > { %24009 = vst [vmem:[#allocation81_spill] sm:$0xff] %v21225_v50  ;;  %v1188_v41 = vadd.f32 %v24012_v46, %v20798_v59 }
 0x605   : > { %24010 = vst [vmem:[#allocation82_spill] sm:$0xff] %v21228_v33  ;;  %v23653_v3 = vmax.f32 %v21228_v33, 0.0  ;;  %v5416_v55 = vpop.f32.mrb[152].mxu0 }
 0x606   : > { %v5417_v47 = vadd.f32 %v5416_v55, %v20801_v24  ;;  %v5418_v28 = vpop.f32.mrb[153].mxu0  ;;  %v24014_v55 = vmax.f32 %v21225_v50, 0.0  ;;  %v18628_v50 = vld [vmem:[#allocation3 + $0x28] sm:$0xff]  }
 0x607   : > { %v5419_v26 = vadd.f32 %v5418_v28, %v20804_v38  ;;  %v5420_v11 = vpop.f32.mrb[154].mxu0  ;;  %v5590_v12 = vpack.c.bf16 %v23653_v3, %v23654_v54 }
 0x608   : > { %v21244_v7 = vadd.f32 %v5417_v47, %v1184_v9  ;;  %v5421_v39 = vadd.f32 %v5420_v11, %v20801_v24  ;;  %v5422_v20 = vpop.f32.mrb[155].mxu0  ;;  %v5589_v37 = vpack.c.bf16 %v24014_v55, %v23655_v10  ;;  %v24018_v55 = vld [vmem:[#allocation66_spill] sm:$0xff] }
 0x609   : > { %v21252_v28 = vadd.f32 %v5419_v26, %v20741_v16  ;;  %v5423_v22 = vadd.f32 %v5422_v20, %v20804_v38  ;;  %5866 = vmatprep.mubr.bf16.mxu0 %v5590_v12  ;;  %v1194_v16 = vadd.f32 %v24018_v55, %v20798_v59 }
 0x60a   : > { %24013 = vst [vmem:[#allocation64_spill] sm:$0xff] %v21244_v7  ;;  %v21255_v3 = vadd.f32 %v5421_v39, %v1188_v41  ;;  %5867 = vmatmul.mubr.bf16.gmra.mrb[212].mxu0 %v5589_v37  ;;  %v23665_v26 = vmax.f32 %v21244_v7, 0.0  ;;  %v6106_v7 = vld [vmem:[#allocation2 + $0x50] sm:$0xff] }
 0x60b   : > { %24015 = vst [vmem:[#allocation65_spill] sm:$0xff] %v21252_v28  ;;  %v21258_v9 = vadd.f32 %v5423_v22, %v20753_v57  ;;  %v23660_v11 = vmax.f32 %v21252_v28, 0.0  ;;  %v24019_v22 = vld [vmem:[#allocation67_spill] sm:$0xff] }
 0x60c   : > { %24016 = vst [vmem:[#allocation83_spill] sm:$0xff] %v21255_v3  ;;  %v1198_v39 = vadd.f32 %v24019_v22, %v20798_v59 }
 0x60d   : > { %24017 = vst [vmem:[#allocation84_spill] sm:$0xff] %v21258_v9  ;;  %v23659_v46 = vmax.f32 %v21258_v9, 0.0  ;;  %v5426_v54 = vpop.f32.mrb[156].mxu0  ;;  %v6094_v9 = vld [vmem:[#allocation2 + $0x30] sm:$0xff] }
 0x60e   : > { %v5427_v20 = vadd.f32 %v5426_v54, %v20801_v24  ;;  %v5428_v12 = vpop.f32.mrb[157].mxu0  ;;  %v24021_v54 = vmax.f32 %v21255_v3, 0.0  ;;  %v6100_v3 = vld [vmem:[#allocation2 + $0x40] sm:$0xff] }
 0x60f   : > { %v5429_v37 = vadd.f32 %v5428_v12, %v20804_v38  ;;  %v5430_v41 = vpop.f32.mrb[158].mxu0  ;;  %v5592_v57 = vpack.c.bf16 %v23659_v46, %v23660_v11  ;;  %v18627_v12 = vld [vmem:[#allocation3 + $0x20] sm:$0xff]  }
 0x610   : > { %v21274_v10 = vadd.f32 %v5427_v20, %v1194_v16  ;;  %v5431_v55 = vadd.f32 %v5430_v41, %v20801_v24  ;;  %v5432_v47 = vpop.f32.mrb[159].mxu0  ;;  %v5591_v33 = vpack.c.bf16 %v24021_v54, %v23665_v26  ;;  %16662 = vmatprep.subr.bf16.mxu0 %v18627_v12 }
 0x611   : > { %v21282_v28 = vadd.f32 %v5429_v37, %v20736_v56  ;;  %v5433_v46 = vadd.f32 %v5432_v47, %v20804_v38  ;;  %5874 = vmatprep.mubr.bf16.mxu0 %v5592_v57  ;;  %16663 = vmatpush3.bf16.msra.mxu0 %v18627_v12  ;;  %v18630_v47 = vld [vmem:[#allocation3 + $0x38] sm:$0xff]  }
 0x612   : > { %24020 = vst [vmem:[#allocation66_spill] sm:$0xff] %v21274_v10  ;;  %v21285_v11 = vadd.f32 %v5431_v55, %v1198_v39  ;;  %5875 = vmatmul.mubr.bf16.gmra.mrb[216].mxu0 %v5591_v33  ;;  %16664 = vmatprep.subr.bf16.mxu0 %v18628_v50  ;;  %v23663_v56 = vmax.f32 %v21274_v10, 0.0  ;;  %v18629_v33 = vld [vmem:[#allocation3 + $0x30] sm:$0xff]  }
 0x613   : > { %24022 = vst [vmem:[#allocation67_spill] sm:$0xff] %v21282_v28  ;;  %v21288_v59 = vadd.f32 %v5433_v46, %v20748_v17  ;;  %v23664_v16 = vmax.f32 %v21282_v28, 0.0  ;;  %v18631_v46 = vld [vmem:[#allocation3 + $0x40] sm:$0xff]  }
 0x614   : > { %24023 = vst [vmem:[#allocation85_spill] sm:$0xff] %v21285_v11  ;;  %v23662_v24 = vmax.f32 %v21285_v11, 0.0  ;;  %v6088_v28 = vld [vmem:[#allocation2 + $0x20] sm:$0xff] }
 0x615   : > { %24024 = vst [vmem:[#allocation86_spill] sm:$0xff] %v21288_v59  ;;  %v23661_v20 = vmax.f32 %v21288_v59, 0.0  ;;  %16665 = vmatpush3.bf16.msra.mxu0 %v18628_v50  ;;  %v21306_v50 = vld [vmem:[%s23545_s8] ss:$0 sm:$0xff] }
 0x616   : > { %v5593_v17 = vpack.c.bf16 %v23662_v24, %v23663_v56  ;;  %16666 = vmatprep.subr.bf16.mxu0 %v18629_v33 }
 0x617   : > { %v5594_v38 = vpack.c.bf16 %v23661_v20, %v23664_v16 }
 0x619   : > { %5882 = vmatprep.mubr.bf16.mxu0 %v5594_v38  ;;  %16667 = vmatpush3.bf16.msra.mxu0 %v18629_v33 }
 0x61a   : > { %5883 = vmatmul.mubr.bf16.gmra.mrb[220].mxu0 %v5593_v17  ;;  %16668 = vmatprep.subr.bf16.mxu0 %v18630_v47 }
 0x61b   : > { %16670 = vmatprep.mubr.bf16.mxu0 %v20787_v23 }
 0x61d   : > { %16669 = vmatpush3.bf16.msra.mxu0 %v18630_v47 }
 0x61e   : > { %16702 = vmatprep.subr.bf16.mxu0 %v18631_v46 }
 0x675   : > { %v15534_v37 = vpop.f32.mrb[160].mxu0 }
 0x676   : > { %v15535_v41 = vpop.f32.mrb[161].mxu0 }
 0x677   : > { %v15536_v57 = vadd.f32 %v15535_v41, %v15534_v37  ;;  %v15537_v22 = vpop.f32.mrb[162].mxu0 }
 0x678   : > { %v15538_v39 = vpop.f32.mrb[163].mxu0 }
 0x679   : > { %v5765_v55 = vadd.f32 %v15536_v57, %v21306_v50  ;;  %v15539_v54 = vadd.f32 %v15538_v39, %v15537_v22  ;;  %v6085_v57 = vld [vmem:[#allocation2 + $0x18] sm:$0x1] }
 0x67b   : > { %v5768_v12 = vadd.f32 %v15539_v54, %v21306_v50  ;;  %v5891_v23 = vmax.f32 %v5765_v55, 0.0 }
 0x67d   : > { %v5892_v38 = vmax.f32 %v5768_v12, 0.0  ;;  %v15540_v17 = vpop.f32.mrb[164].mxu0 }
 0x67e   : > { %v15541_v33 = vpop.f32.mrb[165].mxu0 }
 0x67f   : > { %v5923_v47 = vpack.c.bf16 %v5892_v38, %v5891_v23  ;;  %v15542_v20 = vadd.f32 %v15541_v33, %v15540_v17  ;;  %v15543_v24 = vpop.f32.mrb[166].mxu0  ;;  %v18632_v38 = vld [vmem:[#allocation3 + $0x48] sm:$0xff]   ;;  %v18836_v17 = vld [vmem:[#allocation2 + $0x10] sm:$0xff] }
 0x680   : > { %v15544_v56 = vpop.f32.mrb[167].mxu0 }
 0x681   : > { %v5940_v16 = vshrl.u32 %v5923_v47, 16  ;;  %v5773_v26 = vadd.f32 %v15542_v20, %v21306_v50  ;;  %v15545_v59 = vadd.f32 %v15544_v56, %v15543_v24  ;;  %v5943_v41 = vshll.u32 %v5923_v47, 16 }
 0x683   : > { %v5942_v37 = vrot.slane %v5940_v16, 7  ;;  %v5776_v11 = vadd.f32 %v15545_v59, %v21306_v50  ;;  %v5893_v54 = vmax.f32 %v5773_v26, 0.0 }
 0x685   : > { %v5945_v22 = vor.u32 %v5943_v41, %v5942_v37  ;;  %v6086_v55 = vsel %vm19513_vm4, %v5942_v37, %v6085_v57  ;;  %v5894_v12 = vmax.f32 %v5776_v11, 0.0  ;;  %v15546_v10 = vpop.f32.mrb[168].mxu0  ;;  %v18633_v37 = vld [vmem:[#allocation3 + $0x50] sm:$0xff]  }
 0x686   : > { %6087 = vst [vmem:[#allocation2 + $0x18] sm:$0x1] %v6086_v55  ;;  %v15547_v23 = vpop.f32.mrb[169].mxu0  ;;  %v6091_v55 = vld [vmem:[#allocation2 + $0x28] sm:$0x1] }
 0x687   : > { %v21316_v20 = vsel %vm19636_vm6, %v5945_v22, %v18836_v17  ;;  %v5924_v24 = vpack.c.bf16 %v5894_v12, %v5893_v54  ;;  %v15548_v16 = vadd.f32 %v15547_v23, %v15546_v10  ;;  %v15549_v56 = vpop.f32.mrb[170].mxu0 }
 0x688   : > { %6084 = vst [vmem:[#allocation2 + $0x10] sm:$0xff] %v21316_v20  ;;  %v15550_v59 = vpop.f32.mrb[171].mxu0  ;;  %16671 = vmatmul.mubr.bf16.vlgmr.msra.gmra.mrb[224].mxu0 %v21316_v20 }
 0x689   : > { %v5947_v47 = vshrl.u32 %v5924_v24, 16  ;;  %v5781_v11 = vadd.f32 %v15548_v16, %v21306_v50  ;;  %v15551_v26 = vadd.f32 %v15550_v59, %v15549_v56  ;;  %16703 = vmatpush3.bf16.msra.mxu0 %v18631_v46  ;;  %v5950_v57 = vshll.u32 %v5924_v24, 16  ;;  %v18634_v46 = vld [vmem:[#allocation3 + $0x58] sm:$0xff]  }
 0x68a   : > { %16704 = vmatprep.subr.bf16.mxu0 %v18632_v38 }
 0x68b   : > { %v5949_v41 = vrot.slane %v5947_v47, 7  ;;  %v5784_v22 = vadd.f32 %v15551_v26, %v21306_v50  ;;  %v5895_v12 = vmax.f32 %v5781_v11, 0.0 }
 0x68d   : > { %v5952_v54 = vor.u32 %v5950_v57, %v5949_v41  ;;  %v6092_v10 = vsel %vm19513_vm4, %v5949_v41, %v6091_v55  ;;  %v5896_v23 = vmax.f32 %v5784_v22, 0.0  ;;  %v15552_v17 = vpop.f32.mrb[172].mxu0  ;;  %16705 = vmatpush3.bf16.msra.mxu0 %v18632_v38  ;;  %v18635_v57 = vld [vmem:[#allocation3 + $0x60] sm:$0xff]  }
 0x68e   : > { %6093 = vst [vmem:[#allocation2 + $0x28] sm:$0x1] %v6092_v10  ;;  %v15553_v16 = vpop.f32.mrb[173].mxu0  ;;  %16706 = vmatprep.subr.bf16.mxu0 %v18633_v37 }
 0x68f   : > { %v21326_v56 = vsel %vm19636_vm6, %v5952_v54, %v6088_v28  ;;  %v5925_v24 = vpack.c.bf16 %v5896_v23, %v5895_v12  ;;  %v15554_v59 = vadd.f32 %v15553_v16, %v15552_v17  ;;  %v15555_v47 = vpop.f32.mrb[174].mxu0  ;;  %v6097_v54 = vld [vmem:[#allocation2 + $0x38] sm:$0x1]  ;;  %v8098_v5 = vld [vmem:[#allocation2 + $0x10] sm:$0xfe] }
 0x690   : > { %6090 = vst [vmem:[#allocation2 + $0x20] sm:$0xff] %v21326_v56  ;;  %v15556_v26 = vpop.f32.mrb[175].mxu0  ;;  %16674 = vmatprep.mubr.bf16.mxu0 %v21326_v56 }
 0x691   : > { %v5954_v11 = vshrl.u32 %v5925_v24, 16  ;;  %v5789_v38 = vadd.f32 %v15554_v59, %v21306_v50  ;;  %v15557_v41 = vadd.f32 %v15556_v26, %v15555_v47  ;;  %16707 = vmatpush3.bf16.msra.mxu0 %v18633_v37  ;;  %v5957_v55 = vshll.u32 %v5925_v24, 16  ;;  %v18636_v37 = vld [vmem:[#allocation3 + $0x68] sm:$0xff]  }
 0x692   : > { %16708 = vmatprep.subr.bf16.mxu0 %v18634_v46 }
 0x693   : > { %v5956_v22 = vrot.slane %v5954_v11, 7  ;;  %v5792_v28 = vadd.f32 %v15557_v41, %v21306_v50  ;;  %v5897_v23 = vmax.f32 %v5789_v38, 0.0 }
 0x695   : > { %v5959_v10 = vor.u32 %v5957_v55, %v5956_v22  ;;  %v6098_v12 = vsel %vm19513_vm4, %v5956_v22, %v6097_v54  ;;  %v5898_v17 = vmax.f32 %v5792_v28, 0.0  ;;  %v15558_v16 = vpop.f32.mrb[176].mxu0  ;;  %16709 = vmatpush3.bf16.msra.mxu0 %v18634_v46  ;;  %v18637_v55 = vld [vmem:[#allocation3 + $0x70] sm:$0xff]   ;;  %v21463_v35 = vld [vmem:[#allocation2 + $0x28] sm:$0x1] }
 0x696   : > { %6099 = vst [vmem:[#allocation2 + $0x38] sm:$0x1] %v6098_v12  ;;  %v15559_v59 = vpop.f32.mrb[177].mxu0  ;;  %16710 = vmatprep.subr.bf16.mxu0 %v18635_v57 }
 0x697   : > { %v21336_v47 = vsel %vm19636_vm6, %v5959_v10, %v6094_v9  ;;  %v5926_v24 = vpack.c.bf16 %v5898_v17, %v5897_v23  ;;  %v15560_v26 = vadd.f32 %v15559_v59, %v15558_v16  ;;  %v15561_v11 = vpop.f32.mrb[178].mxu0  ;;  %v6103_v10 = vld [vmem:[#allocation2 + $0x48] sm:$0x1] }
 0x698   : > { %6096 = vst [vmem:[#allocation2 + $0x30] sm:$0xff] %v21336_v47  ;;  %v15562_v41 = vpop.f32.mrb[179].mxu0  ;;  %16675 = vmatmul.mubr.bf16.gmra.mrb[228].mxu0 %v21336_v47 }
 0x699   : > { %v5961_v38 = vshrl.u32 %v5926_v24, 16  ;;  %v5797_v46 = vadd.f32 %v15560_v26, %v21306_v50  ;;  %v15563_v22 = vadd.f32 %v15562_v41, %v15561_v11  ;;  %16711 = vmatpush3.bf16.msra.mxu0 %v18635_v57  ;;  %v5964_v54 = vshll.u32 %v5926_v24, 16  ;;  %v18638_v57 = vld [vmem:[#allocation3 + $0x78] sm:$0xff]  }
 0x69a   : > { %16712 = vmatprep.subr.bf16.mxu0 %v18636_v37 }
 0x69b   : > { %v5963_v28 = vrot.slane %v5961_v38, 7  ;;  %v5800_v9 = vadd.f32 %v15563_v22, %v21306_v50  ;;  %v5899_v17 = vmax.f32 %v5797_v46, 0.0 }
 0x69d   : > { %v5966_v12 = vor.u32 %v5964_v54, %v5963_v28  ;;  %v6104_v23 = vsel %vm19513_vm4, %v5963_v28, %v6103_v10  ;;  %v5900_v16 = vmax.f32 %v5800_v9, 0.0  ;;  %v15564_v59 = vpop.f32.mrb[180].mxu0  ;;  %16713 = vmatpush3.bf16.msra.mxu0 %v18636_v37  ;;  %v21351_v54 = vld [vmem:[#allocation3 + $0x80] sm:$0xff]  }
 0x69e   : > { %6105 = vst [vmem:[#allocation2 + $0x48] sm:$0x1] %v6104_v23  ;;  %v15565_v26 = vpop.f32.mrb[181].mxu0  ;;  %16714 = vmatprep.subr.bf16.mxu0 %v18637_v55 }
 0x69f   : > { %v21346_v11 = vsel %vm19636_vm6, %v5966_v12, %v6100_v3  ;;  %v5927_v24 = vpack.c.bf16 %v5900_v16, %v5899_v17  ;;  %v15566_v41 = vadd.f32 %v15565_v26, %v15564_v59  ;;  %v15567_v38 = vpop.f32.mrb[182].mxu0  ;;  %v6109_v12 = vld [vmem:[#allocation2 + $0x58] sm:$0x1] }
 0x6a0   : > { %6102 = vst [vmem:[#allocation2 + $0x40] sm:$0xff] %v21346_v11  ;;  %v15568_v22 = vpop.f32.mrb[183].mxu0  ;;  %16678 = vmatprep.mubr.bf16.mxu0 %v21346_v11 }
 0x6a1   : > { %v5968_v46 = vshrl.u32 %v5927_v24, 16  ;;  %v5805_v37 = vadd.f32 %v15566_v41, %v21306_v50  ;;  %v15569_v28 = vadd.f32 %v15568_v22, %v15567_v38  ;;  %16715 = vmatpush3.bf16.msra.mxu0 %v18637_v55  ;;  %v5971_v10 = vshll.u32 %v5927_v24, 16 }
 0x6a2   : > { %16716 = vmatprep.subr.bf16.mxu0 %v18638_v57 }
 0x6a3   : > { %v5970_v9 = vrot.slane %v5968_v46, 7  ;;  %v5808_v3 = vadd.f32 %v15569_v28, %v21306_v50  ;;  %v5901_v16 = vmax.f32 %v5805_v37, 0.0 }
 0x6a5   : > { %v5973_v23 = vor.u32 %v5971_v10, %v5970_v9  ;;  %v6110_v17 = vsel %vm19513_vm4, %v5970_v9, %v6109_v12  ;;  %v5902_v59 = vmax.f32 %v5808_v3, 0.0  ;;  %v15570_v26 = vpop.f32.mrb[184].mxu0  ;;  %16717 = vmatpush3.bf16.msra.mxu0 %v18638_v57  ;;  %v6115_v12 = vld [vmem:[#allocation2 + $0x68] sm:$0x1] }
 0x6a6   : > { %6111 = vst [vmem:[#allocation2 + $0x58] sm:$0x1] %v6110_v17  ;;  %v15571_v41 = vpop.f32.mrb[185].mxu0  ;;  %16750 = vmatprep.subr.bf16.mxu0 %v21351_v54 }
 0x6a7   : > { %v21359_v55 = vsel %vm19636_vm6, %v5973_v23, %v6106_v7  ;;  %v5928_v24 = vpack.c.bf16 %v5902_v59, %v5901_v16  ;;  %v15572_v38 = vadd.f32 %v15571_v41, %v15570_v26  ;;  %v15573_v22 = vpop.f32.mrb[186].mxu0  ;;  %v6112_v26 = vld [vmem:[#allocation2 + $0x60] sm:$0xff] }
 0x6a8   : > { %6108 = vst [vmem:[#allocation2 + $0x50] sm:$0xff] %v21359_v55  ;;  %v15574_v46 = vpop.f32.mrb[187].mxu0  ;;  %16679 = vmatmul.mubr.bf16.gmra.mrb[232].mxu0 %v21359_v55 }
 0x6a9   : > { %v5975_v37 = vshrl.u32 %v5928_v24, 16  ;;  %v5813_v57 = vadd.f32 %v15572_v38, %v21306_v50  ;;  %v15575_v28 = vadd.f32 %v15574_v46, %v15573_v22  ;;  %v5978_v10 = vshll.u32 %v5928_v24, 16 }
 0x6ab   : > { %v5977_v9 = vrot.slane %v5975_v37, 7  ;;  %v5816_v3 = vadd.f32 %v15575_v28, %v21306_v50  ;;  %v5903_v23 = vmax.f32 %v5813_v57, 0.0 }
 0x6ad   : > { %v5980_v17 = vor.u32 %v5978_v10, %v5977_v9  ;;  %v6116_v7 = vsel %vm19513_vm4, %v5977_v9, %v6115_v12  ;;  %v5904_v16 = vmax.f32 %v5816_v3, 0.0  ;;  %v15576_v59 = vpop.f32.mrb[188].mxu0  ;;  %v6121_v12 = vld [vmem:[#allocation2 + $0x78] sm:$0x1] }
 0x6ae   : > { %6117 = vst [vmem:[#allocation2 + $0x68] sm:$0x1] %v6116_v7  ;;  %v15577_v41 = vpop.f32.mrb[189].mxu0 }
 0x6af   : > { %v21369_v25 = vsel %vm19636_vm6, %v5980_v17, %v6112_v26  ;;  %v5929_v38 = vpack.c.bf16 %v5904_v16, %v5903_v23  ;;  %v15578_v22 = vadd.f32 %v15577_v41, %v15576_v59  ;;  %v15579_v24 = vpop.f32.mrb[190].mxu0  ;;  %v6118_v26 = vld [vmem:[#allocation2 + $0x70] sm:$0xff] }
 0x6b0   : > { %6114 = vst [vmem:[#allocation2 + $0x60] sm:$0xff] %v21369_v25  ;;  %v15580_v46 = vpop.f32.mrb[191].mxu0  ;;  %16682 = vmatprep.mubr.bf16.mxu0 %v21369_v25 }
 0x6b1   : > { %v5982_v37 = vshrl.u32 %v5929_v38, 16  ;;  %v5821_v57 = vadd.f32 %v15578_v22, %v21306_v50  ;;  %v15581_v28 = vadd.f32 %v15580_v46, %v15579_v24  ;;  %v5985_v10 = vshll.u32 %v5929_v38, 16 }
 0x6b3   : > { %v5984_v9 = vrot.slane %v5982_v37, 7  ;;  %v5824_v3 = vadd.f32 %v15581_v28, %v21306_v50  ;;  %v5905_v23 = vmax.f32 %v5821_v57, 0.0 }
 0x6b5   : > { %v5987_v7 = vor.u32 %v5985_v10, %v5984_v9  ;;  %v6122_v17 = vsel %vm19513_vm4, %v5984_v9, %v6121_v12  ;;  %v5906_v16 = vmax.f32 %v5824_v3, 0.0  ;;  %v15582_v59 = vpop.f32.mrb[192].mxu0  ;;  %v6127_v12 = vld [vmem:[#allocation2 + $0x88] sm:$0x1] }
 0x6b6   : > { %6123 = vst [vmem:[#allocation2 + $0x78] sm:$0x1] %v6122_v17  ;;  %v15583_v41 = vpop.f32.mrb[193].mxu0 }
 0x6b7   : > { %v21379_v8 = vsel %vm19636_vm6, %v5987_v7, %v6118_v26  ;;  %v5930_v22 = vpack.c.bf16 %v5906_v16, %v5905_v23  ;;  %v15584_v24 = vadd.f32 %v15583_v41, %v15582_v59  ;;  %v15585_v38 = vpop.f32.mrb[194].mxu0  ;;  %v6124_v26 = vld [vmem:[#allocation2 + $0x80] sm:$0xff] }
 0x6b8   : > { %6120 = vst [vmem:[#allocation2 + $0x70] sm:$0xff] %v21379_v8  ;;  %v15586_v46 = vpop.f32.mrb[195].mxu0  ;;  %16683 = vmatmul.mubr.bf16.gmra.mrb[236].mxu0 %v21379_v8 }
 0x6b9   : > { %v5989_v37 = vshrl.u32 %v5930_v22, 16  ;;  %v5829_v57 = vadd.f32 %v15584_v24, %v21306_v50  ;;  %v15587_v28 = vadd.f32 %v15586_v46, %v15585_v38  ;;  %v5992_v10 = vshll.u32 %v5930_v22, 16 }
 0x6bb   : > { %v5991_v9 = vrot.slane %v5989_v37, 7  ;;  %v5832_v3 = vadd.f32 %v15587_v28, %v21306_v50  ;;  %v5907_v23 = vmax.f32 %v5829_v57, 0.0 }
 0x6bd   : > { %v5994_v17 = vor.u32 %v5992_v10, %v5991_v9  ;;  %v6128_v7 = vsel %vm19513_vm4, %v5991_v9, %v6127_v12  ;;  %v5908_v16 = vmax.f32 %v5832_v3, 0.0  ;;  %v15588_v59 = vpop.f32.mrb[196].mxu0  ;;  %v6133_v12 = vld [vmem:[#allocation2 + $0x98] sm:$0x1] }
 0x6be   : > { %6129 = vst [vmem:[#allocation2 + $0x88] sm:$0x1] %v6128_v7  ;;  %v15589_v41 = vpop.f32.mrb[197].mxu0 }
 0x6bf   : > { %v21389_v58 = vsel %vm19636_vm6, %v5994_v17, %v6124_v26  ;;  %v5931_v24 = vpack.c.bf16 %v5908_v16, %v5907_v23  ;;  %v15590_v38 = vadd.f32 %v15589_v41, %v15588_v59  ;;  %v15591_v22 = vpop.f32.mrb[198].mxu0  ;;  %v6130_v26 = vld [vmem:[#allocation2 + $0x90] sm:$0xff] }
 0x6c0   : > { %6126 = vst [vmem:[#allocation2 + $0x80] sm:$0xff] %v21389_v58  ;;  %v15592_v46 = vpop.f32.mrb[199].mxu0  ;;  %16686 = vmatprep.mubr.bf16.mxu0 %v21389_v58 }
 0x6c1   : > { %v5996_v37 = vshrl.u32 %v5931_v24, 16  ;;  %v5837_v57 = vadd.f32 %v15590_v38, %v21306_v50  ;;  %v15593_v28 = vadd.f32 %v15592_v46, %v15591_v22  ;;  %v5999_v10 = vshll.u32 %v5931_v24, 16 }
 0x6c3   : > { %v5998_v9 = vrot.slane %v5996_v37, 7  ;;  %v5840_v3 = vadd.f32 %v15593_v28, %v21306_v50  ;;  %v5909_v23 = vmax.f32 %v5837_v57, 0.0 }
 0x6c5   : > { %v6001_v7 = vor.u32 %v5999_v10, %v5998_v9  ;;  %v6134_v17 = vsel %vm19513_vm4, %v5998_v9, %v6133_v12  ;;  %v5910_v16 = vmax.f32 %v5840_v3, 0.0  ;;  %v15594_v59 = vpop.f32.mrb[200].mxu0  ;;  %v6139_v12 = vld [vmem:[#allocation2 + $0xa8] sm:$0x1] }
 0x6c6   : > { %6135 = vst [vmem:[#allocation2 + $0x98] sm:$0x1] %v6134_v17  ;;  %v15595_v41 = vpop.f32.mrb[201].mxu0 }
 0x6c7   : > { %v21399_v49 = vsel %vm19636_vm6, %v6001_v7, %v6130_v26  ;;  %v5932_v38 = vpack.c.bf16 %v5910_v16, %v5909_v23  ;;  %v15596_v22 = vadd.f32 %v15595_v41, %v15594_v59  ;;  %v15597_v24 = vpop.f32.mrb[202].mxu0  ;;  %v6136_v26 = vld [vmem:[#allocation2 + $0xa0] sm:$0xff] }
 0x6c8   : > { %6132 = vst [vmem:[#allocation2 + $0x90] sm:$0xff] %v21399_v49  ;;  %v15598_v46 = vpop.f32.mrb[203].mxu0  ;;  %16687 = vmatmul.mubr.bf16.gmra.mrb[240].mxu0 %v21399_v49 }
 0x6c9   : > { %v6003_v37 = vshrl.u32 %v5932_v38, 16  ;;  %v5845_v57 = vadd.f32 %v15596_v22, %v21306_v50  ;;  %v15599_v28 = vadd.f32 %v15598_v46, %v15597_v24  ;;  %v6006_v10 = vshll.u32 %v5932_v38, 16 }
 0x6cb   : > { %v6005_v9 = vrot.slane %v6003_v37, 7  ;;  %v5848_v3 = vadd.f32 %v15599_v28, %v21306_v50  ;;  %v5911_v23 = vmax.f32 %v5845_v57, 0.0 }
 0x6cd   : > { %v6008_v17 = vor.u32 %v6006_v10, %v6005_v9  ;;  %v6140_v7 = vsel %vm19513_vm4, %v6005_v9, %v6139_v12  ;;  %v5912_v16 = vmax.f32 %v5848_v3, 0.0  ;;  %v15600_v59 = vpop.f32.mrb[204].mxu0  ;;  %v6145_v12 = vld [vmem:[#allocation2 + $0xb8] sm:$0x1] }
 0x6ce   : > { %6141 = vst [vmem:[#allocation2 + $0xa8] sm:$0x1] %v6140_v7  ;;  %v15601_v41 = vpop.f32.mrb[205].mxu0 }
 0x6cf   : > { %v21409_v36 = vsel %vm19636_vm6, %v6008_v17, %v6136_v26  ;;  %v5933_v22 = vpack.c.bf16 %v5912_v16, %v5911_v23  ;;  %v15602_v24 = vadd.f32 %v15601_v41, %v15600_v59  ;;  %v15603_v38 = vpop.f32.mrb[206].mxu0  ;;  %v6142_v26 = vld [vmem:[#allocation2 + $0xb0] sm:$0xff] }
 0x6d0   : > { %6138 = vst [vmem:[#allocation2 + $0xa0] sm:$0xff] %v21409_v36  ;;  %v15604_v46 = vpop.f32.mrb[207].mxu0  ;;  %16690 = vmatprep.mubr.bf16.mxu0 %v21409_v36 }
 0x6d1   : > { %v6010_v37 = vshrl.u32 %v5933_v22, 16  ;;  %v5853_v57 = vadd.f32 %v15602_v24, %v21306_v50  ;;  %v15605_v28 = vadd.f32 %v15604_v46, %v15603_v38  ;;  %v6013_v10 = vshll.u32 %v5933_v22, 16 }
 0x6d3   : > { %v6012_v9 = vrot.slane %v6010_v37, 7  ;;  %v5856_v3 = vadd.f32 %v15605_v28, %v21306_v50  ;;  %v5913_v23 = vmax.f32 %v5853_v57, 0.0 }
 0x6d5   : > { %v6015_v7 = vor.u32 %v6013_v10, %v6012_v9  ;;  %v6146_v17 = vsel %vm19513_vm4, %v6012_v9, %v6145_v12  ;;  %v5914_v16 = vmax.f32 %v5856_v3, 0.0  ;;  %v15606_v59 = vpop.f32.mrb[208].mxu0  ;;  %v6151_v12 = vld [vmem:[#allocation2 + $0xc8] sm:$0x1] }
 0x6d6   : > { %6147 = vst [vmem:[#allocation2 + $0xb8] sm:$0x1] %v6146_v17  ;;  %v15607_v41 = vpop.f32.mrb[209].mxu0  ;;  %v21708_v33 = vld [vmem:[#allocation2 + $0xa8] sm:$0x1] }
 0x6d7   : > { %v21419_v19 = vsel %vm19636_vm6, %v6015_v7, %v6142_v26  ;;  %v5934_v24 = vpack.c.bf16 %v5914_v16, %v5913_v23  ;;  %v15608_v38 = vadd.f32 %v15607_v41, %v15606_v59  ;;  %v15609_v22 = vpop.f32.mrb[210].mxu0  ;;  %v6148_v26 = vld [vmem:[#allocation2 + $0xc0] sm:$0xff] }
 0x6d8   : > { %6144 = vst [vmem:[#allocation2 + $0xb0] sm:$0xff] %v21419_v19  ;;  %v15610_v46 = vpop.f32.mrb[211].mxu0  ;;  %16691 = vmatmul.mubr.bf16.gmra.mrb[244].mxu0 %v21419_v19 }
 0x6d9   : > { %v6017_v37 = vshrl.u32 %v5934_v24, 16  ;;  %v5861_v57 = vadd.f32 %v15608_v38, %v21306_v50  ;;  %v15611_v28 = vadd.f32 %v15610_v46, %v15609_v22  ;;  %v6020_v10 = vshll.u32 %v5934_v24, 16 }
 0x6db   : > { %v6019_v9 = vrot.slane %v6017_v37, 7  ;;  %v5864_v3 = vadd.f32 %v15611_v28, %v21306_v50  ;;  %v5915_v23 = vmax.f32 %v5861_v57, 0.0 }
 0x6dd   : > { %v6022_v17 = vor.u32 %v6020_v10, %v6019_v9  ;;  %v6152_v7 = vsel %vm19513_vm4, %v6019_v9, %v6151_v12  ;;  %v5916_v16 = vmax.f32 %v5864_v3, 0.0  ;;  %v15612_v59 = vpop.f32.mrb[212].mxu0  ;;  %v6157_v12 = vld [vmem:[#allocation2 + $0xd8] sm:$0x1] }
 0x6de   : > { %6153 = vst [vmem:[#allocation2 + $0xc8] sm:$0x1] %v6152_v7  ;;  %v15613_v41 = vpop.f32.mrb[213].mxu0  ;;  %v21712_v52 = vld [vmem:[#allocation2 + $0xb8] sm:$0x1] }
 0x6df   : > { %v21429_v63 = vsel %vm19636_vm6, %v6022_v17, %v6148_v26  ;;  %v5935_v38 = vpack.c.bf16 %v5916_v16, %v5915_v23  ;;  %v15614_v22 = vadd.f32 %v15613_v41, %v15612_v59  ;;  %v15615_v24 = vpop.f32.mrb[214].mxu0  ;;  %v6154_v26 = vld [vmem:[#allocation2 + $0xd0] sm:$0xff] }
 0x6e0   : > { %6150 = vst [vmem:[#allocation2 + $0xc0] sm:$0xff] %v21429_v63  ;;  %v15616_v46 = vpop.f32.mrb[215].mxu0  ;;  %16694 = vmatprep.mubr.bf16.mxu0 %v21429_v63 }
 0x6e1   : > { %v6024_v37 = vshrl.u32 %v5935_v38, 16  ;;  %v5869_v57 = vadd.f32 %v15614_v22, %v21306_v50  ;;  %v15617_v28 = vadd.f32 %v15616_v46, %v15615_v24  ;;  %v6027_v10 = vshll.u32 %v5935_v38, 16 }
 0x6e3   : > { %v6026_v9 = vrot.slane %v6024_v37, 7  ;;  %v5872_v3 = vadd.f32 %v15617_v28, %v21306_v50  ;;  %v5917_v23 = vmax.f32 %v5869_v57, 0.0 }
 0x6e5   : > { %v6029_v7 = vor.u32 %v6027_v10, %v6026_v9  ;;  %v6158_v17 = vsel %vm19513_vm4, %v6026_v9, %v6157_v12  ;;  %v5918_v16 = vmax.f32 %v5872_v3, 0.0  ;;  %v15618_v59 = vpop.f32.mrb[216].mxu0  ;;  %v18837_v9 = vld [vmem:[#allocation2] sm:$0xff]  ;;  %v21727_v14 = vld [vmem:[#allocation2 + $0xc8] sm:$0x1] }
 0x6e6   : > { %6159 = vst [vmem:[#allocation2 + $0xd8] sm:$0x1] %v6158_v17  ;;  %v15619_v41 = vpop.f32.mrb[217].mxu0  ;;  %v6493_v10 = vshll.u32 %v18837_v9, 16 }
 0x6e7   : > { %v21439_v48 = vsel %vm19636_vm6, %v6029_v7, %v6154_v26  ;;  %v5936_v22 = vpack.c.bf16 %v5918_v16, %v5917_v23  ;;  %v15620_v24 = vadd.f32 %v15619_v41, %v15618_v59  ;;  %v15621_v38 = vpop.f32.mrb[218].mxu0  ;;  %v21445_v7 = vld [vmem:[#allocation2 + $0x8] sm:$0x1] }
 0x6e8   : > { %6156 = vst [vmem:[#allocation2 + $0xd0] sm:$0xff] %v21439_v48  ;;  %v15622_v46 = vpop.f32.mrb[219].mxu0  ;;  %16695 = vmatmul.mubr.bf16.gmra.mrb[248].mxu0 %v21439_v48  ;;  %v6163_v23 = vld [vmem:[#allocation2 + $0xe8] sm:$0x1] }
 0x6e9   : > { %v6031_v37 = vshrl.u32 %v5936_v22, 16  ;;  %v5877_v57 = vadd.f32 %v15620_v24, %v21306_v50  ;;  %v15623_v28 = vadd.f32 %v15622_v46, %v15621_v38  ;;  %v6034_v12 = vshll.u32 %v5936_v22, 16 }
 0x6ea   : > { %v6491_v38 = vshrl.u32 %v18837_v9, 16  ;;  %v6495_v46 = vrot.slane %v6493_v10, 1 }
 0x6eb   : > { %v6033_v3 = vrot.slane %v6031_v37, 7  ;;  %v5880_v17 = vadd.f32 %v15623_v28, %v21306_v50  ;;  %v5919_v26 = vmax.f32 %v5877_v57, 0.0  ;;  %v6498_v37 = vshll.u32 %v21445_v7, 16 }
 0x6ec   : > { %v6496_v9 = vor.u32 %v6495_v46, %v6491_v38  ;;  %v6517_v46 = vshll.u32 %v21326_v56, 16 }
 0x6ed   : > { %v6036_v16 = vor.u32 %v6034_v12, %v6033_v3  ;;  %v6164_v59 = vsel %vm19513_vm4, %v6033_v3, %v6163_v23  ;;  %v5920_v41 = vmax.f32 %v5880_v17, 0.0  ;;  %v15624_v30 = vpop.f32.mrb[220].mxu0  ;;  %v6500_v10 = vrot.slane %v6498_v37, 1  ;;  %v21731_v31 = vld [vmem:[#allocation2 + $0xd8] sm:$0x1] }
 0x6ee   : > { %6165 = vst [vmem:[#allocation2 + $0xe8] sm:$0x1] %v6164_v59  ;;  %v15625_v24 = vpop.f32.mrb[221].mxu0 }
 0x6ef   : > { %v21452_v22 = vsel %vm19636_vm6, %v6036_v16, %v6160_v45  ;;  %v5937_v28 = vpack.c.bf16 %v5920_v41, %v5919_v26  ;;  %v15626_v62 = vadd.f32 %v15625_v24, %v15624_v30  ;;  %v15627_v12 = vpop.f32.mrb[222].mxu0  ;;  %v6169_v45 = vld [vmem:[#allocation2 + $0xf8] sm:$0x1]  ;;  %v6505_v30 = vshll.u32 %v21316_v20, 16 }
 0x6f0   : > { %6162 = vst [vmem:[#allocation2 + $0xe0] sm:$0xff] %v21452_v22  ;;  %v15628_v3 = vpop.f32.mrb[223].mxu0  ;;  %16698 = vmatprep.mubr.bf16.mxu0 %v21452_v22  ;;  %v21458_v16 = vld [vmem:[#allocation2 + $0x18] sm:$0x1]  ;;  %v6501_v38 = vsel %vm1963_vm7, %v6496_v9, %v6500_v10  ;;  %v6175_v10 = vld [vmem:[#allocation2 + $0x108] sm:$0x1] }
 0x6f1   : > { %v6038_v57 = vshrl.u32 %v5937_v28, 16  ;;  %v5885_v17 = vadd.f32 %v15626_v62, %v21306_v50  ;;  %v15629_v23 = vadd.f32 %v15628_v3, %v15627_v12  ;;  %v6041_v61 = vshll.u32 %v5937_v28, 16  ;;  %v6166_v62 = vld [vmem:[#allocation2 + $0xf0] sm:$0xff] }
 0x6f2   : > { %v6507_v12 = vrot.slane %v6505_v30, 1  ;;  %v6519_v3 = vrot.slane %v6517_v46, 1  ;;  %v21482_v30 = vld [vmem:[#allocation2 + $0x48] sm:$0x1] }
 0x6f3   : > { %v6040_v59 = vrot.slane %v6038_v57, 7  ;;  %v5888_v27 = vadd.f32 %v15629_v23, %v21306_v50  ;;  %v5921_v24 = vmax.f32 %v5885_v17, 0.0  ;;  %v6503_v23 = vshrl.u32 %v21316_v20, 16  ;;  %v18640_v20 = vld [vmem:[#allocation3 + $0x88] sm:$0xff]  }
 0x6f5   : > { %v6043_v26 = vor.u32 %v6041_v61, %v6040_v59  ;;  %v6170_v41 = vsel %vm19513_vm4, %v6040_v59, %v6169_v45  ;;  %v5922_v13 = vmax.f32 %v5888_v27, 0.0  ;;  %v6510_v61 = vshll.u32 %v21458_v16, 16  ;;  %v21477_v45 = vld [vmem:[#allocation2 + $0x38] sm:$0x1] }
 0x6f6   : > { %6171 = vst [vmem:[#allocation2 + $0xf8] sm:$0x1] %v6170_v41  ;;  %v6522_v27 = vshll.u32 %v21463_v35, 16 }
 0x6f7   : > { %v21469_v50 = vsel %vm19636_vm6, %v6043_v26, %v6166_v62  ;;  %v5938_v37 = vpack.c.bf16 %v5922_v13, %v5921_v24  ;;  %v6512_v9 = vrot.slane %v6510_v61, 1  ;;  %v6515_v13 = vshrl.u32 %v21326_v56, 16  ;;  %v21734_v32 = vld [vmem:[#allocation2 + $0xe0] sm:$0xff] }
 0x6f8   : > { %6168 = vst [vmem:[#allocation2 + $0xf0] sm:$0xff] %v21469_v50  ;;  %16699 = vmatmul.mubr.bf16.gmra.mrb[252].mxu0 %v21469_v50  ;;  %v6524_v59 = vrot.slane %v6522_v27, 1  ;;  %v6508_v24 = vor.u32 %v6507_v12, %v6503_v23  ;;  %v6529_v62 = vshll.u32 %v21336_v47, 16  ;;  %v6534_v27 = vshll.u32 %v21477_v45, 16 }
 0x6f9   : > { %v6045_v28 = vshrl.u32 %v5938_v37, 16  ;;  %16718 = vmatprep.mubr.bf16.mxu0 %v6501_v38  ;;  %v6048_v17 = vshll.u32 %v5938_v37, 16  ;;  %v6172_v38 = vld [vmem:[#allocation2 + $0x100] sm:$0xff]  ;;  %v6520_v46 = vor.u32 %v6519_v3, %v6515_v13  ;;  %v6541_v37 = vshll.u32 %v21346_v11, 16 }
 0x6fa   : > { %v6513_v61 = vsel %vm1963_vm7, %v6508_v24, %v6512_v9  ;;  %v6546_v12 = vshll.u32 %v21482_v30, 16  ;;  %v6531_v3 = vrot.slane %v6529_v62, 1  ;;  %v6527_v23 = vshrl.u32 %v21336_v47, 16  ;;  %v21500_v24 = vld [vmem:[#allocation2 + $0x68] sm:$0x1] }
 0x6fb   : > { %v6047_v57 = vrot.slane %v6045_v28, 7  ;;  %v6525_v28 = vsel %vm1963_vm7, %v6520_v46, %v6524_v59  ;;  %v6539_v9 = vshrl.u32 %v21346_v11, 16  ;;  %v6553_v59 = vshll.u32 %v21359_v55, 16 }
 0x6fc   : > { %v6548_v13 = vrot.slane %v6546_v12, 1  ;;  %v6565_v62 = vshll.u32 %v21369_v25, 16 }
 0x6fd   : > { %v6050_v26 = vor.u32 %v6048_v17, %v6047_v57  ;;  %v6176_v41 = vsel %vm19513_vm4, %v6047_v57, %v6175_v10  ;;  %v6543_v57 = vrot.slane %v6541_v37, 1  ;;  %v18641_v17 = vld [vmem:[#allocation3 + $0x90] sm:$0xff]   ;;  %v6536_v10 = vrot.slane %v6534_v27, 1  ;;  %v18643_v27 = vld [vmem:[#allocation3 + $0xa0] sm:$0xff]   ;;  %v21752_v6 = vld [vmem:[#allocation2 + $0xf8] sm:$0x1] }
 0x6fe   : > { %6177 = vst [vmem:[#allocation2 + $0x108] sm:$0x1] %v6176_v41  ;;  %v6532_v41 = vor.u32 %v6531_v3, %v6527_v23  ;;  %v6570_v37 = vshll.u32 %v21500_v24, 16  ;;  %v6563_v3 = vshrl.u32 %v21369_v25, 16  ;;  %v21509_v23 = vld [vmem:[#allocation2 + $0x78] sm:$0x1] }
 0x6ff   : > { %v21487_v56 = vsel %vm19636_vm6, %v6050_v26, %v6172_v38  ;;  %v21497_v26 = vld [vmem:[#allocation2 + $0x58] sm:$0x1] }
 0x700   : > { %6174 = vst [vmem:[#allocation2 + $0x100] sm:$0xff] %v21487_v56  ;;  %16719 = vmatmul.mubr.bf16.vlgmr.msra.gmra.mrb[224].mxu0 %v6513_v61  ;;  %v18642_v38 = vld [vmem:[#allocation3 + $0x98] sm:$0xff]   ;;  %v6537_v46 = vsel %vm1963_vm7, %v6532_v41, %v6536_v10  ;;  %v6558_v47 = vshll.u32 %v21497_v26, 16  ;;  %v6567_v61 = vrot.slane %v6565_v62, 1 }
 0x701   : > { %16751 = vmatpush3.bf16.msra.mxu0 %v21351_v54  ;;  %16722 = vmatprep.mubr.bf16.mxu0 %v6525_v28  ;;  %v6544_v54 = vor.u32 %v6543_v57, %v6539_v9  ;;  %v6551_v28 = vshrl.u32 %v21359_v55, 16  ;;  %v6572_v57 = vrot.slane %v6570_v37, 1  ;;  %v6577_v9 = vshll.u32 %v21379_v8, 16 }
 0x702   : > { %16752 = vmatprep.subr.bf16.mxu0 %v18640_v20  ;;  %v6560_v12 = vrot.slane %v6558_v47, 1  ;;  %v6568_v41 = vor.u32 %v6567_v61, %v6563_v3  ;;  %v6582_v55 = vshll.u32 %v21509_v23, 16  ;;  %v18645_v47 = vld [vmem:[#allocation3 + $0xb0] sm:$0xff]   ;;  %v6601_v3 = vshll.u32 %v21399_v49, 16 }
 0x703   : > { %v6549_v11 = vsel %vm1963_vm7, %v6544_v54, %v6548_v13  ;;  %v21512_v13 = vld [vmem:[#allocation2 + $0x88] sm:$0x1] }
 0x704   : > { %v6573_v25 = vsel %vm1963_vm7, %v6568_v41, %v6572_v57  ;;  %v6594_v62 = vshll.u32 %v21512_v13, 16  ;;  %v6584_v37 = vrot.slane %v6582_v55, 1  ;;  %v21524_v57 = vld [vmem:[#allocation2 + $0xa8] sm:$0x1] }
 0x705   : > { %16753 = vmatpush3.bf16.msra.mxu0 %v18640_v20  ;;  %v6555_v20 = vrot.slane %v6553_v59, 1  ;;  %v18644_v59 = vld [vmem:[#allocation3 + $0xa8] sm:$0xff]  }
 0x706   : > { %16754 = vmatprep.subr.bf16.mxu0 %v18641_v17  ;;  %v6596_v61 = vrot.slane %v6594_v62, 1 }
 0x707   : > { %v6556_v10 = vor.u32 %v6555_v20, %v6551_v28  ;;  %v6587_v20 = vshrl.u32 %v21389_v58, 16  ;;  %v21521_v28 = vld [vmem:[#allocation2 + $0x98] sm:$0x1]  ;;  %v21756_v2 = vld [vmem:[#allocation2 + $0x100] sm:$0xff] }
 0x708   : > { %16723 = vmatmul.mubr.bf16.gmra.mrb[228].mxu0 %v6537_v46  ;;  %v6579_v46 = vrot.slane %v6577_v9, 1  ;;  %v18646_v9 = vld [vmem:[#allocation3 + $0xb8] sm:$0xff]  }
 0x709   : > { %16726 = vmatprep.mubr.bf16.mxu0 %v6549_v11  ;;  %16755 = vmatpush3.bf16.msra.mxu0 %v18641_v17  ;;  %v6589_v17 = vshll.u32 %v21389_v58, 16  ;;  %v6561_v54 = vsel %vm1963_vm7, %v6556_v10, %v6560_v12  ;;  %v6575_v11 = vshrl.u32 %v21379_v8, 16  ;;  %v6606_v8 = vshll.u32 %v21521_v28, 16 }
 0x70a   : > { %16756 = vmatprep.subr.bf16.mxu0 %v18642_v38 }
 0x70b   : > { %v6580_v12 = vor.u32 %v6579_v46, %v6575_v11  ;;  %v6608_v62 = vrot.slane %v6606_v8, 1  ;;  %v6611_v46 = vshrl.u32 %v21409_v36, 16  ;;  %v21535_v11 = vld [vmem:[#allocation2 + $0xb8] sm:$0x1]  ;;  %v6623_v8 = vshrl.u32 %v21419_v19, 16 }
 0x70d   : > { %16757 = vmatpush3.bf16.msra.mxu0 %v18642_v38  ;;  %v6591_v38 = vrot.slane %v6589_v17, 1  ;;  %v6585_v41 = vsel %vm1963_vm7, %v6580_v12, %v6584_v37  ;;  %v6618_v17 = vshll.u32 %v21524_v57, 16 }
 0x70e   : > { %16758 = vmatprep.subr.bf16.mxu0 %v18643_v27 }
 0x70f   : > { %v6592_v10 = vor.u32 %v6591_v38, %v6587_v20  ;;  %v6620_v38 = vrot.slane %v6618_v17, 1  ;;  %v6625_v20 = vshll.u32 %v21419_v19, 16 }
 0x710   : > { %16727 = vmatmul.mubr.bf16.gmra.mrb[232].mxu0 %v6561_v54  ;;  %v6603_v54 = vrot.slane %v6601_v3, 1 }
 0x711   : > { %16730 = vmatprep.mubr.bf16.mxu0 %v6573_v25  ;;  %16759 = vmatpush3.bf16.msra.mxu0 %v18643_v27  ;;  %v6613_v27 = vshll.u32 %v21409_v36, 16  ;;  %v6597_v58 = vsel %vm1963_vm7, %v6592_v10, %v6596_v61  ;;  %v6599_v25 = vshrl.u32 %v21399_v49, 16  ;;  %v21538_v61 = vld [vmem:[#allocation2 + $0xc8] sm:$0x1]  ;;  %v6630_v49 = vshll.u32 %v21535_v11, 16 }
 0x712   : > { %16760 = vmatprep.subr.bf16.mxu0 %v18644_v59  ;;  %v6642_v10 = vshll.u32 %v21538_v61, 16 }
 0x713   : > { %v6615_v55 = vrot.slane %v6613_v27, 1  ;;  %v6604_v37 = vor.u32 %v6603_v54, %v6599_v25  ;;  %v6627_v27 = vrot.slane %v6625_v20, 1  ;;  %v21548_v54 = vld [vmem:[#allocation2 + $0xd8] sm:$0x1]  ;;  %v6649_v25 = vshll.u32 %v21439_v48, 16 }
 0x714   : > { %v6644_v17 = vrot.slane %v6642_v10, 1  ;;  %v6654_v20 = vshll.u32 %v21548_v54, 16  ;;  %v6659_v10 = vshrl.u32 %v21452_v22, 16 }
 0x715   : > { %16761 = vmatpush3.bf16.msra.mxu0 %v18644_v59  ;;  %v21531_v59 = vld [vmem:[#allocation3 + $0xc0] sm:$0xff]   ;;  %v6616_v12 = vor.u32 %v6615_v55, %v6611_v46  ;;  %v6609_v3 = vsel %vm1963_vm7, %v6604_v37, %v6608_v62  ;;  %v6628_v55 = vor.u32 %v6627_v27, %v6623_v8  ;;  %v21551_v62 = vld [vmem:[#allocation2 + $0xe8] sm:$0x1] }
 0x716   : > { %16762 = vmatprep.subr.bf16.mxu0 %v18645_v47 }
 0x717   : > { %v6621_v36 = vsel %vm1963_vm7, %v6616_v12, %v6620_v38  ;;  %v6661_v38 = vshll.u32 %v21452_v22, 16  ;;  %v6666_v12 = vshll.u32 %v21551_v62, 16 }
 0x718   : > { %16731 = vmatmul.mubr.bf16.gmra.mrb[236].mxu0 %v6585_v41 }
 0x719   : > { %16734 = vmatprep.mubr.bf16.mxu0 %v6597_v58  ;;  %16763 = vmatpush3.bf16.msra.mxu0 %v18645_v47  ;;  %v6637_v47 = vshll.u32 %v21429_v63, 16  ;;  %v6635_v58 = vshrl.u32 %v21429_v63, 16  ;;  %v6668_v27 = vrot.slane %v6666_v12, 1 }
 0x71a   : > { %16764 = vmatprep.subr.bf16.mxu0 %v18646_v9 }
 0x71b   : > { %v6639_v41 = vrot.slane %v6637_v47, 1  ;;  %v6651_v47 = vrot.slane %v6649_v25, 1 }
 0x71d   : > { %16765 = vmatpush3.bf16.msra.mxu0 %v18646_v9  ;;  %v6632_v9 = vrot.slane %v6630_v49, 1  ;;  %v6640_v46 = vor.u32 %v6639_v41, %v6635_v58  ;;  %v6647_v49 = vshrl.u32 %v21439_v48, 16  ;;  %v21560_v41 = vld [vmem:[#allocation2 + $0xf8] sm:$0x1] }
 0x71e   : > { %16798 = vmatprep.subr.bf16.mxu0 %v21531_v59 }
 0x71f   : > { %v6633_v37 = vsel %vm1963_vm7, %v6628_v55, %v6632_v9  ;;  %v6645_v19 = vsel %vm1963_vm7, %v6640_v46, %v6644_v17  ;;  %v6652_v8 = vor.u32 %v6651_v47, %v6647_v49  ;;  %v6673_v9 = vshll.u32 %v21469_v50, 16  ;;  %v6956_v46 = vld [vmem:[#allocation2] sm:$0xfe] }
 0x720   : > { %16735 = vmatmul.mubr.bf16.gmra.mrb[240].mxu0 %v6609_v3  ;;  %v6663_v3 = vrot.slane %v6661_v38, 1  ;;  %v6678_v17 = vshll.u32 %v21560_v41, 16 }
 0x721   : > { %16738 = vmatprep.mubr.bf16.mxu0 %v6621_v36  ;;  %v6656_v36 = vrot.slane %v6654_v20, 1  ;;  %v6675_v38 = vrot.slane %v6673_v9, 1  ;;  %v7005_v20 = vrot.slane %v21445_v7, 1  ;;  %v7011_v9 = vrot.slane %v21463_v35, 1 }
 0x722   : > { %v6664_v58 = vor.u32 %v6663_v3, %v6659_v10  ;;  %v6680_v12 = vrot.slane %v6678_v17, 1  ;;  %v6958_v10 = vld [vmem:[#allocation2 + $0x20] sm:$0xfe]  ;;  %v7017_v35 = vrot.slane %v21482_v30, 1  ;;  %v7023_v30 = vrot.slane %v21500_v24, 1 }
 0x723   : > { %v6657_v55 = vsel %vm1963_vm7, %v6652_v8, %v6656_v36  ;;  %v6957_v36 = vld [vmem:[#allocation2 + $0x10] sm:$0xfe]  ;;  %v7029_v24 = vrot.slane %v21512_v13, 1  ;;  %v7035_v13 = vrot.slane %v21524_v57, 1 }
 0x724   : > { %v6669_v25 = vsel %vm1963_vm7, %v6664_v58, %v6668_v27  ;;  %v7007_v8 = vrot.slane %v6957_v36, 1  ;;  %v7008_v27 = vrot.slane %v21458_v16, 1  ;;  %v18648_v58 = vld [vmem:[#allocation3 + $0xc8] sm:$0xff]   ;;  %v18650_v16 = vld [vmem:[#allocation3 + $0xd8] sm:$0xff]  }
 0x726   : > { %v7009_v7 = vsel %vm2478_vm8, %v7007_v8, %v7008_v27  ;;  %v18652_v8 = vld [vmem:[#allocation3 + $0xe8] sm:$0xff]  }
 0x728   : > { %16739 = vmatmul.mubr.bf16.gmra.mrb[244].mxu0 %v6633_v37  ;;  %v7004_v37 = vrot.slane %v6956_v46, 1  ;;  %v6959_v46 = vld [vmem:[#allocation2 + $0x30] sm:$0xfe] }
 0x729   : > { %16742 = vmatprep.mubr.bf16.mxu0 %v6645_v19  ;;  %v6671_v19 = vshrl.u32 %v21469_v50, 16 }
 0x72a   : > { %v7006_v49 = vsel %vm2478_vm8, %v7004_v37, %v7005_v20  ;;  %v7013_v37 = vrot.slane %v6959_v46, 1 }
 0x72b   : > { %v6676_v47 = vor.u32 %v6675_v38, %v6671_v19  ;;  %v18649_v38 = vld [vmem:[#allocation3 + $0xd0] sm:$0xff]   ;;  %v7014_v19 = vrot.slane %v21477_v45, 1  ;;  %v7020_v45 = vrot.slane %v21497_v26, 1  ;;  %v7026_v26 = vrot.slane %v21509_v23, 1 }
 0x72c   : > { %v7032_v23 = vrot.slane %v21521_v28, 1 }
 0x72d   : > { %v6681_v3 = vsel %vm1963_vm7, %v6676_v47, %v6680_v12  ;;  %v7015_v12 = vsel %vm2478_vm8, %v7013_v37, %v7014_v19  ;;  %v6966_v19 = vld [vmem:[#allocation2 + $0xa0] sm:$0xfe] }
 0x730   : > { %16743 = vmatmul.mubr.bf16.gmra.mrb[248].mxu0 %v6657_v55  ;;  %v7010_v55 = vrot.slane %v6958_v10, 1 }
 0x731   : > { %16746 = vmatprep.mubr.bf16.mxu0 %v6669_v25  ;;  %v6960_v25 = vld [vmem:[#allocation2 + $0x40] sm:$0xfe] }
 0x732   : > { %v7012_v17 = vsel %vm2478_vm8, %v7010_v55, %v7011_v9  ;;  %v7016_v20 = vrot.slane %v6960_v25, 1  ;;  %v6963_v9 = vld [vmem:[#allocation2 + $0x70] sm:$0xfe]  ;;  %v18654_v25 = vld [vmem:[#allocation3 + $0xf8] sm:$0xff]  }
 0x734   : > { %v7018_v47 = vsel %vm2478_vm8, %v7016_v20, %v7017_v35  ;;  %v6965_v20 = vld [vmem:[#allocation2 + $0x90] sm:$0xfe]  ;;  %v18655_v35 = vld [vmem:[#allocation3 + $0x100] sm:$0xff]  }
 0x738   : > { %16747 = vmatmul.mubr.bf16.gmra.mrb[252].mxu0 %v6681_v3  ;;  %v18651_v3 = vld [vmem:[#allocation3 + $0xe0] sm:$0xff]  }
 0x739   : > { %16766 = vmatprep.mubr.bf16.mxu0 %v7006_v49  ;;  %v6961_v49 = vld [vmem:[#allocation2 + $0x50] sm:$0xfe] }
 0x73a   : > { %v7019_v36 = vrot.slane %v6961_v49, 1 }
 0x73c   : > { %v7021_v55 = vsel %vm2478_vm8, %v7019_v36, %v7020_v45  ;;  %v7038_v45 = vrot.slane %v21535_v11, 1 }
 0x740   : > { %16767 = vmatmul.mubr.bf16.vlgmr.msra.gmra.mrb[224].mxu0 %v7009_v7  ;;  %v18653_v7 = vld [vmem:[#allocation3 + $0xf0] sm:$0xff]  }
 0x741   : > { %16799 = vmatpush3.bf16.msra.mxu0 %v21531_v59  ;;  %16770 = vmatprep.mubr.bf16.mxu0 %v7012_v17  ;;  %v6962_v59 = vld [vmem:[#allocation2 + $0x60] sm:$0xfe]  ;;  %v7025_v17 = vrot.slane %v6963_v9, 1 }
 0x742   : > { %16800 = vmatprep.subr.bf16.mxu0 %v18648_v58  ;;  %v7022_v10 = vrot.slane %v6962_v59, 1  ;;  %v6967_v59 = vld [vmem:[#allocation2 + $0xb0] sm:$0xfe] }
 0x743   : > { %v7037_v36 = vrot.slane %v6967_v59, 1  ;;  %v21622_v59 = vld [vmem:[#allocation2 + $0x90] sm:$0xff] }
 0x744   : > { %v7024_v27 = vsel %vm2478_vm8, %v7022_v10, %v7023_v30  ;;  %v7041_v30 = vrot.slane %v21538_v61, 1  ;;  %v6971_v61 = vld [vmem:[#allocation2 + $0xf0] sm:$0xfe] }
 0x745   : > { %16801 = vmatpush3.bf16.msra.mxu0 %v18648_v58  ;;  %v6964_v58 = vld [vmem:[#allocation2 + $0x80] sm:$0xfe]  ;;  %v7039_v28 = vsel %vm2478_vm8, %v7037_v36, %v7038_v45 }
 0x746   : > { %16802 = vmatprep.subr.bf16.mxu0 %v18649_v38  ;;  %v7028_v46 = vrot.slane %v6964_v58, 1  ;;  %v7044_v58 = vrot.slane %v21548_v54, 1  ;;  %v21604_v54 = vld [vmem:[#allocation2 + $0x30] sm:$0xff]  ;;  %v21625_v36 = vld [vmem:[#allocation2 + $0xa0] sm:$0xff] }
 0x748   : > { %16771 = vmatmul.mubr.bf16.gmra.mrb[228].mxu0 %v7015_v12  ;;  %v7030_v37 = vsel %vm2478_vm8, %v7028_v46, %v7029_v24  ;;  %v7034_v12 = vrot.slane %v6966_v19, 1  ;;  %v7049_v46 = vrot.slane %v6971_v61, 1  ;;  %v21610_v19 = vld [vmem:[#allocation2 + $0x50] sm:$0xff]  ;;  %v7657_v61 = vshrl.u32 %v21604_v54, 16 }
 0x749   : > { %16774 = vmatprep.mubr.bf16.mxu0 %v7018_v47  ;;  %16803 = vmatpush3.bf16.msra.mxu0 %v18649_v38  ;;  %v7027_v38 = vsel %vm2478_vm8, %v7025_v17, %v7026_v26  ;;  %v7050_v26 = vrot.slane %v21560_v41, 1  ;;  %v18658_v41 = vld [vmem:[#allocation3 + $0x118] sm:$0xff]  }
 0x74a   : > { %16804 = vmatprep.subr.bf16.mxu0 %v18650_v16  ;;  %v7036_v49 = vsel %vm2478_vm8, %v7034_v12, %v7035_v13  ;;  %v21613_v12 = vld [vmem:[#allocation2 + $0x60] sm:$0xff]  ;;  %v18661_v13 = vld [vmem:[#allocation3 + $0x130] sm:$0xff]  }
 0x74b   : > { %v7051_v24 = vsel %vm2478_vm8, %v7049_v46, %v7050_v26 }
 0x74d   : > { %16805 = vmatpush3.bf16.msra.mxu0 %v18650_v16  ;;  %v7031_v16 = vrot.slane %v6965_v20, 1  ;;  %v21607_v20 = vld [vmem:[#allocation2 + $0x40] sm:$0xff] }
 0x74e   : > { %16806 = vmatprep.subr.bf16.mxu0 %v18651_v3 }
 0x74f   : > { %v7033_v47 = vsel %vm2478_vm8, %v7031_v16, %v7032_v23  ;;  %v18659_v16 = vld [vmem:[#allocation3 + $0x120] sm:$0xff]   ;;  %v21616_v23 = vld [vmem:[#allocation2 + $0x70] sm:$0xff] }
 0x750   : > { %16775 = vmatmul.mubr.bf16.gmra.mrb[232].mxu0 %v7021_v55  ;;  %v6970_v55 = vld [vmem:[#allocation2 + $0xe0] sm:$0xfe] }
 0x751   : > { %16778 = vmatprep.mubr.bf16.mxu0 %v7024_v27  ;;  %16807 = vmatpush3.bf16.msra.mxu0 %v18651_v3  ;;  %v6968_v3 = vld [vmem:[#allocation2 + $0xc0] sm:$0xfe]  ;;  %v7046_v9 = vrot.slane %v6970_v55, 1 }
 0x752   : > { %16808 = vmatprep.subr.bf16.mxu0 %v18652_v8  ;;  %v7040_v10 = vrot.slane %v6968_v3, 1  ;;  %v18663_v3 = vld [vmem:[#allocation3 + $0x140] sm:$0xff]  }
 0x754   : > { %v7042_v57 = vsel %vm2478_vm8, %v7040_v10, %v7041_v30  ;;  %v21628_v10 = vld [vmem:[#allocation2 + $0xb0] sm:$0xff]  ;;  %v21633_v30 = vld [vmem:[#allocation2 + $0x18] sm:$0x1] }
 0x755   : > { %16809 = vmatpush3.bf16.msra.mxu0 %v18652_v8  ;;  %v6969_v8 = vld [vmem:[#allocation2 + $0xd0] sm:$0xfe] }
 0x756   : > { %16810 = vmatprep.subr.bf16.mxu0 %v18653_v7  ;;  %v7043_v27 = vrot.slane %v6969_v8, 1  ;;  %v7640_v8 = vshll.u32 %v21633_v30, 16 }
 0x758   : > { %16779 = vmatmul.mubr.bf16.gmra.mrb[236].mxu0 %v7027_v38  ;;  %v7045_v17 = vsel %vm2478_vm8, %v7043_v27, %v7044_v58  ;;  %v18656_v38 = vld [vmem:[#allocation3 + $0x108] sm:$0xff]   ;;  %v7642_v58 = vrot.slane %v7640_v8, 1 }
 0x759   : > { %16782 = vmatprep.mubr.bf16.mxu0 %v7030_v37  ;;  %16811 = vmatpush3.bf16.msra.mxu0 %v18653_v7  ;;  %v7047_v7 = vrot.slane %v21551_v62, 1  ;;  %v21601_v37 = vld [vmem:[#allocation2 + $0x20] sm:$0xff]  ;;  %v18657_v62 = vld [vmem:[#allocation3 + $0x110] sm:$0xff]  }
 0x75a   : > { %16812 = vmatprep.subr.bf16.mxu0 %v18654_v25  ;;  %v7647_v55 = vshll.u32 %v21601_v37, 16 }
 0x75b   : > { %v7048_v11 = vsel %vm2478_vm8, %v7046_v9, %v7047_v7  ;;  %v7659_v9 = vshll.u32 %v21604_v54, 16  ;;  %v21642_v7 = vld [vmem:[#allocation2 + $0x38] sm:$0x1] }
 0x75c   : > { %v7664_v46 = vshll.u32 %v21642_v7, 16 }
 0x75d   : > { %16813 = vmatpush3.bf16.msra.mxu0 %v18654_v25  ;;  %v7326_v25 = vld [vmem:[#allocation2 + $0x10] sm:$0xff] }
 0x75e   : > { %16846 = vmatprep.subr.bf16.mxu0 %v18655_v35  ;;  %v7635_v45 = vshll.u32 %v7326_v25, 16 }
 0x760   : > { %16783 = vmatmul.mubr.bf16.gmra.mrb[240].mxu0 %v7033_v47  ;;  %v18662_v47 = vld [vmem:[#allocation3 + $0x138] sm:$0xff]  }
 0x761   : > { %16786 = vmatprep.mubr.bf16.mxu0 %v7036_v49  ;;  %v21619_v49 = vld [vmem:[#allocation2 + $0x80] sm:$0xff] }
 0x768   : > { %16787 = vmatmul.mubr.bf16.gmra.mrb[244].mxu0 %v7039_v28  ;;  %v7637_v28 = vrot.slane %v7635_v45, 1 }
 0x769   : > { %16790 = vmatprep.mubr.bf16.mxu0 %v7042_v57  ;;  %v7633_v57 = vshrl.u32 %v7326_v25, 16 }
 0x76b   : > { %v7638_v27 = vor.u32 %v7637_v28, %v7633_v57  ;;  %v7669_v57 = vshrl.u32 %v21607_v20, 16 }
 0x770   : > { %16791 = vmatmul.mubr.bf16.gmra.mrb[248].mxu0 %v7045_v17  ;;  %v7661_v17 = vrot.slane %v7659_v9, 1  ;;  %v18665_v9 = vld [vmem:[#allocation3 + $0x150] sm:$0xff]  }
 0x771   : > { %16794 = vmatprep.mubr.bf16.mxu0 %v7048_v11 }
 0x778   : > { %16795 = vmatmul.mubr.bf16.gmra.mrb[252].mxu0 %v7051_v24  ;;  %v7671_v24 = vshll.u32 %v21607_v20, 16 }
 0x779   : > { %16814 = vmatprep.mubr.bf16.mxu0 %v7326_v25  ;;  %v21653_v25 = vor.u32 %v7661_v17, %v7657_v61  ;;  %v7707_v17 = vshll.u32 %v21616_v23, 16  ;;  %v18666_v61 = vld [vmem:[#allocation3 + $0x158] sm:$0xff]  }
 0x780   : > { %16815 = vmatmul.mubr.bf16.vlgmr.msra.gmra.mrb[224].mxu0 %v21601_v37 }
 0x781   : > { %16847 = vmatpush3.bf16.msra.mxu0 %v18655_v35  ;;  %16818 = vmatprep.mubr.bf16.mxu0 %v21604_v54  ;;  %v18660_v35 = vld [vmem:[#allocation3 + $0x128] sm:$0xff]  }
 0x782   : > { %16848 = vmatprep.subr.bf16.mxu0 %v18656_v38 }
 0x785   : > { %16849 = vmatpush3.bf16.msra.mxu0 %v18656_v38 }
 0x786   : > { %16850 = vmatprep.subr.bf16.mxu0 %v18657_v62 }
 0x788   : > { %16819 = vmatmul.mubr.bf16.gmra.mrb[228].mxu0 %v21607_v20 }
 0x789   : > { %16822 = vmatprep.mubr.bf16.mxu0 %v21610_v19  ;;  %16851 = vmatpush3.bf16.msra.mxu0 %v18657_v62  ;;  %v7666_v62 = vrot.slane %v7664_v46, 1 }
 0x78a   : > { %16852 = vmatprep.subr.bf16.mxu0 %v18658_v41 }
 0x78b   : > { %v7667_v45 = vsel %vm1963_vm7, %v21653_v25, %v7666_v62  ;;  %v7709_v62 = vrot.slane %v7707_v17, 1 }
 0x78d   : > { %16853 = vmatpush3.bf16.msra.mxu0 %v18658_v41  ;;  %v18664_v41 = vld [vmem:[#allocation3 + $0x148] sm:$0xff]  }
 0x78e   : > { %16854 = vmatprep.subr.bf16.mxu0 %v18659_v16 }
 0x790   : > { %16823 = vmatmul.mubr.bf16.gmra.mrb[232].mxu0 %v21613_v12 }
 0x791   : > { %16826 = vmatprep.mubr.bf16.mxu0 %v21616_v23  ;;  %16855 = vmatpush3.bf16.msra.mxu0 %v18659_v16  ;;  %v21656_v16 = vld [vmem:[#allocation2 + $0x48] sm:$0x1] }
 0x792   : > { %16856 = vmatprep.subr.bf16.mxu0 %v18660_v35  ;;  %v7676_v8 = vshll.u32 %v21656_v16, 16 }
 0x795   : > { %16857 = vmatpush3.bf16.msra.mxu0 %v18660_v35 }
 0x796   : > { %16858 = vmatprep.subr.bf16.mxu0 %v18661_v13 }
 0x798   : > { %16827 = vmatmul.mubr.bf16.gmra.mrb[236].mxu0 %v21619_v49 }
 0x799   : > { %16830 = vmatprep.mubr.bf16.mxu0 %v21622_v59  ;;  %16859 = vmatpush3.bf16.msra.mxu0 %v18661_v13  ;;  %v7673_v13 = vrot.slane %v7671_v24, 1 }
 0x79a   : > { %16860 = vmatprep.subr.bf16.mxu0 %v18662_v47 }
 0x79d   : > { %16861 = vmatpush3.bf16.msra.mxu0 %v18662_v47  ;;  %v21660_v47 = vld [vmem:[#allocation2 + $0x58] sm:$0x1] }
 0x79e   : > { %16894 = vmatprep.subr.bf16.mxu0 %v18663_v3 }
 0x7a0   : > { %16831 = vmatmul.mubr.bf16.gmra.mrb[240].mxu0 %v21625_v36 }
 0x7a1   : > { %16834 = vmatprep.mubr.bf16.mxu0 %v21628_v10 }
 0x7a8   : > { %16835 = vmatmul.mubr.bf16.gmra.mrb[244].mxu0 %v21429_v63  ;;  %v21640_v63 = vld [vmem:[#allocation2 + $0x28] sm:$0x1] }
 0x7a9   : > { %16838 = vmatprep.mubr.bf16.mxu0 %v21439_v48  ;;  %v7649_v48 = vrot.slane %v7647_v55, 1  ;;  %v7652_v11 = vshll.u32 %v21640_v63, 16  ;;  %v7681_v55 = vshrl.u32 %v21610_v19, 16  ;;  %v8150_v40 = vrot.slane %v21640_v63, 1 }
 0x7aa   : > { %v8159_v63 = vrot.slane %v21660_v47, 1 }
 0x7ab   : > { %v7654_v38 = vrot.slane %v7652_v11, 1  ;;  %v21674_v11 = vld [vmem:[#allocation2 + $0x68] sm:$0x1] }
 0x7b0   : > { %16839 = vmatmul.mubr.bf16.gmra.mrb[248].mxu0 %v21452_v22  ;;  %v7643_v22 = vsel %vm1963_vm7, %v7638_v27, %v7642_v58  ;;  %v7688_v27 = vshll.u32 %v21660_v47, 16  ;;  %v21668_v58 = vor.u32 %v7673_v13, %v7669_v57  ;;  %v7705_v13 = vshrl.u32 %v21616_v23, 16 }
 0x7b1   : > { %16842 = vmatprep.mubr.bf16.mxu0 %v21469_v50  ;;  %v7645_v50 = vshrl.u32 %v21601_v37, 16 }
 0x7b3   : > { %v21650_v26 = vor.u32 %v7649_v48, %v7645_v50  ;;  %v7695_v48 = vshll.u32 %v21613_v12, 16  ;;  %v7690_v50 = vrot.slane %v7688_v27, 1  ;;  %v7731_v27 = vshll.u32 %v21622_v59, 16 }
 0x7b5   : > { %v7655_v35 = vsel %vm1963_vm7, %v21650_v26, %v7654_v38  ;;  %v7697_v24 = vrot.slane %v7695_v48, 1 }
 0x7b8   : > { %16843 = vmatmul.mubr.bf16.gmra.mrb[252].mxu0 %v21487_v56  ;;  %v7683_v56 = vshll.u32 %v21610_v19, 16 }
 0x7b9   : > { %16862 = vmatprep.mubr.bf16.mxu0 %v7643_v22 }
 0x7ba   : > { %v7685_v28 = vrot.slane %v7683_v56, 1  ;;  %v21678_v56 = vld [vmem:[#allocation2 + $0x78] sm:$0x1] }
 0x7bb   : > { %v8165_v47 = vrot.slane %v21678_v56, 1 }
 0x7bc   : > { %v21671_v22 = vor.u32 %v7685_v28, %v7681_v55  ;;  %v18667_v28 = vld [vmem:[#allocation3 + $0x160] sm:$0xff]   ;;  %v21689_v55 = vor.u32 %v7709_v62, %v7705_v13  ;;  %v7733_v62 = vrot.slane %v7731_v27, 1 }
 0x7be   : > { %v7691_v38 = vsel %vm1963_vm7, %v21671_v22, %v7690_v50 }
 0x7c0   : > { %16863 = vmatmul.mubr.bf16.vlgmr.msra.gmra.mrb[224].mxu0 %v7655_v35  ;;  %v7693_v35 = vshrl.u32 %v21613_v12, 16 }
 0x7c1   : > { %16895 = vmatpush3.bf16.msra.mxu0 %v18663_v3  ;;  %16866 = vmatprep.mubr.bf16.mxu0 %v7667_v45  ;;  %v7678_v3 = vrot.slane %v7676_v8, 1  ;;  %v7712_v45 = vshll.u32 %v21678_v56, 16  ;;  %v7719_v8 = vshll.u32 %v21619_v49, 16 }
 0x7c2   : > { %16896 = vmatprep.subr.bf16.mxu0 %v18664_v41  ;;  %v21686_v57 = vor.u32 %v7697_v24, %v7693_v35  ;;  %v7717_v35 = vshrl.u32 %v21619_v49, 16 }
 0x7c3   : > { %v7679_v46 = vsel %vm1963_vm7, %v21668_v58, %v7678_v3  ;;  %v7714_v17 = vrot.slane %v7712_v45, 1  ;;  %v21692_v3 = vld [vmem:[#allocation2 + $0x88] sm:$0x1]  ;;  %v18669_v45 = vld [vmem:[#allocation3 + $0x170] sm:$0xff]  }
 0x7c5   : > { %16897 = vmatpush3.bf16.msra.mxu0 %v18664_v41  ;;  %v7700_v41 = vshll.u32 %v21674_v11, 16  ;;  %v7715_v24 = vsel %vm1963_vm7, %v21689_v55, %v7714_v17  ;;  %v7755_v17 = vshll.u32 %v21628_v10, 16 }
 0x7c6   : > { %16898 = vmatprep.subr.bf16.mxu0 %v18665_v9 }
 0x7c7   : > { %v7702_v48 = vrot.slane %v7700_v41, 1  ;;  %v7729_v41 = vshrl.u32 %v21622_v59, 16 }
 0x7c8   : > { %16867 = vmatmul.mubr.bf16.gmra.mrb[228].mxu0 %v7679_v46  ;;  %v7721_v46 = vrot.slane %v7719_v8, 1 }
 0x7c9   : > { %16870 = vmatprep.mubr.bf16.mxu0 %v7691_v38  ;;  %16899 = vmatpush3.bf16.msra.mxu0 %v18665_v9  ;;  %v18668_v9 = vld [vmem:[#allocation3 + $0x168] sm:$0xff]   ;;  %v7703_v50 = vsel %vm1963_vm7, %v21686_v57, %v7702_v48  ;;  %v21696_v38 = vld [vmem:[#allocation2 + $0x98] sm:$0x1]  ;;  %v7743_v48 = vshll.u32 %v21625_v36, 16 }
 0x7ca   : > { %16900 = vmatprep.subr.bf16.mxu0 %v18666_v61  ;;  %v7736_v13 = vshll.u32 %v21696_v38, 16  ;;  %v21704_v8 = vor.u32 %v7721_v46, %v7717_v35  ;;  %v7757_v35 = vrot.slane %v7755_v17, 1  ;;  %v8171_v56 = vrot.slane %v21696_v38, 1 }
 0x7cb   : > { %v7745_v44 = vrot.slane %v7743_v48, 1  ;;  %v7760_v48 = vshll.u32 %v21712_v52, 16  ;;  %v8177_v38 = vrot.slane %v21712_v52, 1 }
 0x7cd   : > { %16901 = vmatpush3.bf16.msra.mxu0 %v18666_v61  ;;  %v7724_v61 = vshll.u32 %v21692_v3, 16  ;;  %v7762_v1 = vrot.slane %v7760_v48, 1  ;;  %v7784_v48 = vshll.u32 %v21731_v31, 16 }
 0x7ce   : > { %16902 = vmatprep.subr.bf16.mxu0 %v18667_v28 }
 0x7cf   : > { %v7726_v27 = vrot.slane %v7724_v61, 1  ;;  %v7748_v61 = vshll.u32 %v21708_v33, 16 }
 0x7d0   : > { %16871 = vmatmul.mubr.bf16.gmra.mrb[232].mxu0 %v7703_v50  ;;  %v7734_v50 = vor.u32 %v7733_v62, %v7729_v41  ;;  %v21715_v62 = vld [vmem:[#allocation2 + $0xc0] sm:$0xff]  ;;  %v21719_v41 = vld [vmem:[#allocation2 + $0xd0] sm:$0xff] }
 0x7d1   : > { %16874 = vmatprep.mubr.bf16.mxu0 %v7715_v24  ;;  %16903 = vmatpush3.bf16.msra.mxu0 %v18667_v28  ;;  %v7738_v24 = vrot.slane %v7736_v13, 1  ;;  %v18670_v28 = vld [vmem:[#allocation3 + $0x178] sm:$0xff]   ;;  %v7727_v39 = vsel %vm1963_vm7, %v21704_v8, %v7726_v27  ;;  %v7753_v13 = vshrl.u32 %v21628_v10, 16  ;;  %v21723_v27 = vld [vmem:[#allocation3 + $0x180] sm:$0xff]  }
 0x7d2   : > { %16904 = vmatprep.subr.bf16.mxu0 %v18668_v9 }
 0x7d3   : > { %v7739_v46 = vsel %vm1963_vm7, %v7734_v50, %v7738_v24  ;;  %v7767_v50 = vshll.u32 %v21715_v62, 16  ;;  %v7758_v17 = vor.u32 %v7757_v35, %v7753_v13  ;;  %v7779_v24 = vshll.u32 %v21719_v41, 16 }
 0x7d4   : > { %v7765_v35 = vshrl.u32 %v21715_v62, 16  ;;  %v7777_v13 = vshrl.u32 %v21719_v41, 16 }
 0x7d5   : > { %16905 = vmatpush3.bf16.msra.mxu0 %v18668_v9  ;;  %v7741_v9 = vshrl.u32 %v21625_v36, 16  ;;  %v7769_v15 = vrot.slane %v7767_v50, 1  ;;  %v7791_v50 = vshll.u32 %v21734_v32, 16 }
 0x7d6   : > { %16906 = vmatprep.subr.bf16.mxu0 %v18669_v45 }
 0x7d7   : > { %v7793_v60 = vrot.slane %v7791_v50, 1  ;;  %v7815_v50 = vshll.u32 %v21756_v2, 16 }
 0x7d8   : > { %16875 = vmatmul.mubr.bf16.gmra.mrb[236].mxu0 %v7727_v39  ;;  %v7746_v39 = vor.u32 %v7745_v44, %v7741_v9  ;;  %v7763_v44 = vsel %vm1963_vm7, %v7758_v17, %v7762_v1  ;;  %v7781_v9 = vrot.slane %v7779_v24, 1  ;;  %v7786_v24 = vrot.slane %v7784_v48, 1 }
 0x7d9   : > { %16878 = vmatprep.mubr.bf16.mxu0 %v7739_v46  ;;  %16907 = vmatpush3.bf16.msra.mxu0 %v18669_v45  ;;  %v7750_v46 = vrot.slane %v7748_v61, 1  ;;  %v21738_v61 = vld [vmem:[#allocation2 + $0xf0] sm:$0xff]  ;;  %v7808_v48 = vshll.u32 %v21752_v6, 16  ;;  %v7817_v0 = vrot.slane %v7815_v50, 1 }
 0x7da   : > { %16908 = vmatprep.subr.bf16.mxu0 %v18670_v28  ;;  %v7803_v1 = vshll.u32 %v21738_v61, 16 }
 0x7db   : > { %v7751_v45 = vsel %vm1963_vm7, %v7746_v39, %v7750_v46  ;;  %v21742_v39 = vor.u32 %v7769_v15, %v7765_v35  ;;  %v21745_v46 = vor.u32 %v7781_v9, %v7777_v13  ;;  %v7789_v9 = vshrl.u32 %v21734_v32, 16 }
 0x7dc   : > { %v7805_v35 = vrot.slane %v7803_v1, 1  ;;  %v7801_v13 = vshrl.u32 %v21738_v61, 16  ;;  %v21767_v1 = vld [vmem:[#allocation2 + $0x108] sm:$0x1] }
 0x7dd   : > { %16909 = vmatpush3.bf16.msra.mxu0 %v18670_v28  ;;  %v7772_v28 = vshll.u32 %v21727_v14, 16  ;;  %v7787_v15 = vsel %vm1963_vm7, %v21745_v46, %v7786_v24  ;;  %v7810_v24 = vrot.slane %v7808_v48, 1  ;;  %v8147_v48 = vrot.slane %v21633_v30, 1 }
 0x7de   : > { %16942 = vmatprep.subr.bf16.mxu0 %v21723_v27 }
 0x7df   : > { %v7774_v17 = vrot.slane %v7772_v28, 1 }
 0x7e0   : > { %16879 = vmatmul.mubr.bf16.gmra.mrb[240].mxu0 %v7751_v45  ;;  %v21748_v45 = vld [vmem:[#allocation2 + $0xe8] sm:$0x1] }
 0x7e1   : > { %16882 = vmatprep.mubr.bf16.mxu0 %v7763_v44  ;;  %v7775_v44 = vsel %vm1963_vm7, %v21742_v39, %v7774_v17  ;;  %v7796_v28 = vshll.u32 %v21748_v45, 16  ;;  %v21762_v17 = vor.u32 %v7793_v60, %v7789_v9  ;;  %v7813_v60 = vshrl.u32 %v21756_v2, 16 }
 0x7e2   : > { %v7820_v9 = vshll.u32 %v21767_v1, 16 }
 0x7e3   : > { %v7798_v43 = vrot.slane %v7796_v28, 1  ;;  %v8146_v28 = vrot.slane %v8098_v5, 1 }
 0x7e5   : > { %v8148_v50 = vsel %vm2478_vm8, %v8146_v28, %v8147_v48  ;;  %v8102_v28 = vld [vmem:[#allocation2 + $0x50] sm:$0xfe] }
 0x7e8   : > { %16883 = vmatmul.mubr.bf16.gmra.mrb[244].mxu0 %v7775_v44  ;;  %v21765_v44 = vor.u32 %v7805_v35, %v7801_v13  ;;  %v21775_v35 = vor.u32 %v7817_v0, %v7813_v60  ;;  %v7822_v13 = vrot.slane %v7820_v9, 1  ;;  %v8153_v0 = vrot.slane %v21642_v7, 1  ;;  %v18672_v60 = vld [vmem:[#allocation3 + $0x188] sm:$0xff]   ;;  %v8101_v9 = vld [vmem:[#allocation2 + $0x40] sm:$0xfe]  ;;  %v18674_v7 = vld [vmem:[#allocation3 + $0x198] sm:$0xff]  }
 0x7e9   : > { %16886 = vmatprep.mubr.bf16.mxu0 %v7787_v15  ;;  %v7799_v15 = vsel %vm1963_vm7, %v21762_v17, %v7798_v43  ;;  %v8155_v48 = vrot.slane %v8101_v9, 1  ;;  %v8105_v9 = vld [vmem:[#allocation2 + $0x80] sm:$0xfe] }
 0x7ea   : > { %v7811_v53 = vsel %vm1963_vm7, %v21765_v44, %v7810_v24  ;;  %v7823_v43 = vsel %vm1963_vm7, %v21775_v35, %v7822_v13  ;;  %v18673_v13 = vld [vmem:[#allocation3 + $0x190] sm:$0xff]  }
 0x7f0   : > { %16887 = vmatmul.mubr.bf16.gmra.mrb[248].mxu0 %v7799_v15  ;;  %v8099_v15 = vld [vmem:[#allocation2 + $0x20] sm:$0xfe] }
 0x7f1   : > { %16890 = vmatprep.mubr.bf16.mxu0 %v7811_v53  ;;  %v8100_v53 = vld [vmem:[#allocation2 + $0x30] sm:$0xfe]  ;;  %v8149_v24 = vrot.slane %v8099_v15, 1  ;;  %v8103_v15 = vld [vmem:[#allocation2 + $0x60] sm:$0xfe] }
 0x7f2   : > { %v8152_v51 = vrot.slane %v8100_v53, 1  ;;  %v18675_v53 = vld [vmem:[#allocation3 + $0x1a0] sm:$0xff]  }
 0x7f3   : > { %v8151_v5 = vsel %vm2478_vm8, %v8149_v24, %v8150_v40  ;;  %v8161_v24 = vrot.slane %v8103_v15, 1  ;;  %v18679_v15 = vld [vmem:[#allocation3 + $0x1c0] sm:$0xff]  }
 0x7f4   : > { %v8154_v30 = vsel %vm2478_vm8, %v8152_v51, %v8153_v0 }
 0x7f8   : > { %16891 = vmatmul.mubr.bf16.gmra.mrb[252].mxu0 %v7823_v43  ;;  %v8158_v43 = vrot.slane %v8102_v28, 1  ;;  %v8106_v28 = vld [vmem:[#allocation2 + $0x90] sm:$0xfe] }
 0x7f9   : > { %16910 = vmatprep.mubr.bf16.mxu0 %v8148_v50  ;;  %v8156_v50 = vrot.slane %v21656_v16, 1  ;;  %v8162_v16 = vrot.slane %v21674_v11, 1  ;;  %v8168_v11 = vrot.slane %v21692_v3, 1  ;;  %v8174_v3 = vrot.slane %v21708_v33, 1 }
 0x7fa   : > { %v8160_v51 = vsel %vm2478_vm8, %v8158_v43, %v8159_v63  ;;  %v8170_v43 = vrot.slane %v8106_v28, 1  ;;  %v8111_v28 = vld [vmem:[#allocation2 + $0xe0] sm:$0xfe] }
 0x7fb   : > { %v8157_v40 = vsel %vm2478_vm8, %v8155_v48, %v8156_v50  ;;  %v8167_v48 = vrot.slane %v8105_v9, 1  ;;  %v18678_v50 = vld [vmem:[#allocation3 + $0x1b8] sm:$0xff]   ;;  %v8183_v9 = vrot.slane %v21731_v31, 1  ;;  %v8113_v31 = vld [vmem:[#allocation2 + $0x100] sm:$0xfe] }
 0x7fd   : > { %v8169_v63 = vsel %vm2478_vm8, %v8167_v48, %v8168_v11  ;;  %v8185_v48 = vrot.slane %v8111_v28, 1  ;;  %v8186_v11 = vrot.slane %v21748_v45, 1  ;;  %v18682_v45 = vld [vmem:[#allocation3 + $0x1d8] sm:$0xff]  }
 0x800   : > { %16911 = vmatmul.mubr.bf16.vlgmr.msra.gmra.mrb[224].mxu0 %v8151_v5  ;;  %v8163_v5 = vsel %vm2478_vm8, %v8161_v24, %v8162_v16  ;;  %v8109_v16 = vld [vmem:[#allocation2 + $0xc0] sm:$0xfe] }
 0x801   : > { %16943 = vmatpush3.bf16.msra.mxu0 %v21723_v27  ;;  %16914 = vmatprep.mubr.bf16.mxu0 %v8154_v30  ;;  %v8104_v27 = vld [vmem:[#allocation2 + $0x70] sm:$0xfe] }
 0x802   : > { %16944 = vmatprep.subr.bf16.mxu0 %v18672_v60  ;;  %v8164_v0 = vrot.slane %v8104_v27, 1 }
 0x804   : > { %v8166_v30 = vsel %vm2478_vm8, %v8164_v0, %v8165_v47  ;;  %v8110_v47 = vld [vmem:[#allocation2 + $0xd0] sm:$0xfe] }
 0x805   : > { %16945 = vmatpush3.bf16.msra.mxu0 %v18672_v60  ;;  %v18676_v60 = vld [vmem:[#allocation3 + $0x1a8] sm:$0xff]  }
 0x806   : > { %16946 = vmatprep.subr.bf16.mxu0 %v18673_v13 }
 0x808   : > { %16915 = vmatmul.mubr.bf16.gmra.mrb[228].mxu0 %v8157_v40  ;;  %v8107_v40 = vld [vmem:[#allocation2 + $0xa0] sm:$0xfe] }
 0x809   : > { %16918 = vmatprep.mubr.bf16.mxu0 %v8160_v51  ;;  %16947 = vmatpush3.bf16.msra.mxu0 %v18673_v13  ;;  %v18677_v13 = vld [vmem:[#allocation3 + $0x1b0] sm:$0xff]   ;;  %v8173_v27 = vrot.slane %v8107_v40, 1 }
 0x80a   : > { %16948 = vmatprep.subr.bf16.mxu0 %v18674_v7  ;;  %v8108_v51 = vld [vmem:[#allocation2 + $0xb0] sm:$0xfe] }
 0x80b   : > { %v8175_v24 = vsel %vm2478_vm8, %v8173_v27, %v8174_v3  ;;  %v21841_v27 = vld [vmem:[#allocation2 + $0x58] sm:$0x1]  ;;  %v21845_v3 = vld [vmem:[#allocation2 + $0x68] sm:$0x1] }
 0x80d   : > { %16949 = vmatpush3.bf16.msra.mxu0 %v18674_v7  ;;  %v8172_v7 = vsel %vm2478_vm8, %v8170_v43, %v8171_v56  ;;  %v8189_v56 = vrot.slane %v21752_v6, 1  ;;  %v18681_v6 = vld [vmem:[#allocation3 + $0x1d0] sm:$0xff]  }
 0x80e   : > { %16950 = vmatprep.subr.bf16.mxu0 %v18675_v53 }
 0x810   : > { %16919 = vmatmul.mubr.bf16.gmra.mrb[232].mxu0 %v8163_v5  ;;  %v8182_v5 = vrot.slane %v8110_v47, 1 }
 0x811   : > { %16922 = vmatprep.mubr.bf16.mxu0 %v8166_v30  ;;  %16951 = vmatpush3.bf16.msra.mxu0 %v18675_v53  ;;  %v8176_v53 = vrot.slane %v8108_v51, 1  ;;  %v8180_v30 = vrot.slane %v21727_v14, 1  ;;  %v18680_v51 = vld [vmem:[#allocation3 + $0x1c8] sm:$0xff]  }
 0x812   : > { %16952 = vmatprep.subr.bf16.mxu0 %v18676_v60  ;;  %v8184_v52 = vsel %vm2478_vm8, %v8182_v5, %v8183_v9  ;;  %v8756_v9 = vld [vmem:[#allocation2 + $0x90] sm:$0xff] }
 0x813   : > { %v8178_v0 = vsel %vm2478_vm8, %v8176_v53, %v8177_v38 }
 0x815   : > { %16953 = vmatpush3.bf16.msra.mxu0 %v18676_v60  ;;  %v8179_v60 = vrot.slane %v8109_v16, 1 }
 0x816   : > { %16954 = vmatprep.subr.bf16.mxu0 %v18677_v13 }
 0x817   : > { %v8181_v33 = vsel %vm2478_vm8, %v8179_v60, %v8180_v30  ;;  %v21851_v60 = vld [vmem:[#allocation2 + $0x78] sm:$0x1]  ;;  %v21855_v30 = vld [vmem:[#allocation2 + $0x88] sm:$0x1] }
 0x818   : > { %16923 = vmatmul.mubr.bf16.gmra.mrb[236].mxu0 %v8169_v63  ;;  %v8191_v63 = vrot.slane %v8113_v31, 1  ;;  %v8854_v28 = vshll.u32 %v21855_v30, 16  ;;  %v21865_v31 = vld [vmem:[#allocation2 + $0xa8] sm:$0x1] }
 0x819   : > { %16926 = vmatprep.mubr.bf16.mxu0 %v8172_v7  ;;  %16955 = vmatpush3.bf16.msra.mxu0 %v18677_v13  ;;  %v8112_v13 = vld [vmem:[#allocation2 + $0xf0] sm:$0xfe]  ;;  %v8192_v7 = vrot.slane %v21767_v1, 1  ;;  %v18683_v1 = vld [vmem:[#allocation3 + $0x1e0] sm:$0xff]  }
 0x81a   : > { %16956 = vmatprep.subr.bf16.mxu0 %v18678_v50  ;;  %v8188_v43 = vrot.slane %v8112_v13, 1  ;;  %v18691_v13 = vld [vmem:[#allocation3 + $0x220] sm:$0xff]  }
 0x81b   : > { %v8193_v40 = vsel %vm2478_vm8, %v8191_v63, %v8192_v7 }
 0x81c   : > { %v8190_v14 = vsel %vm2478_vm8, %v8188_v43, %v8189_v56  ;;  %v21861_v56 = vld [vmem:[#allocation2 + $0x98] sm:$0x1] }
 0x81d   : > { %16957 = vmatpush3.bf16.msra.mxu0 %v18678_v50  ;;  %v8187_v50 = vsel %vm2478_vm8, %v8185_v48, %v8186_v11  ;;  %v8861_v48 = vshll.u32 %v8756_v9, 16 }
 0x81e   : > { %16990 = vmatprep.subr.bf16.mxu0 %v18679_v15 }
 0x820   : > { %16927 = vmatmul.mubr.bf16.gmra.mrb[240].mxu0 %v8175_v24  ;;  %v8830_v24 = vshll.u32 %v21845_v3, 16 }
 0x821   : > { %16930 = vmatprep.mubr.bf16.mxu0 %v8178_v0  ;;  %v18689_v0 = vld [vmem:[#allocation3 + $0x210] sm:$0xff]  }
 0x822   : > { %v8832_v47 = vrot.slane %v8830_v24, 1 }
 0x828   : > { %16931 = vmatmul.mubr.bf16.gmra.mrb[244].mxu0 %v8181_v33  ;;  %v8842_v33 = vshll.u32 %v21851_v60, 16 }
 0x829   : > { %16934 = vmatprep.mubr.bf16.mxu0 %v8184_v52  ;;  %v8758_v52 = vld [vmem:[#allocation2 + $0xa0] sm:$0xff] }
 0x82a   : > { %v8873_v43 = vshll.u32 %v8758_v52, 16  ;;  %v8844_v11 = vrot.slane %v8842_v33, 1 }
 0x82c   : > { %v8875_v7 = vrot.slane %v8873_v43, 1 }
 0x830   : > { %16935 = vmatmul.mubr.bf16.gmra.mrb[248].mxu0 %v8187_v50  ;;  %v18692_v50 = vld [vmem:[#allocation3 + $0x228] sm:$0xff]  }
 0x831   : > { %16938 = vmatprep.mubr.bf16.mxu0 %v8190_v14  ;;  %v8863_v14 = vrot.slane %v8861_v48, 1  ;;  %v21892_v48 = vld [vmem:[#allocation2 + $0x108] sm:$0x1] }
 0x838   : > { %16939 = vmatmul.mubr.bf16.gmra.mrb[252].mxu0 %v8193_v40  ;;  %v8760_v40 = vld [vmem:[#allocation2 + $0xb0] sm:$0xff] }
 0x839   : > { %16958 = vmatprep.mubr.bf16.mxu0 %v21601_v37  ;;  %v18684_v37 = vld [vmem:[#allocation3 + $0x1e8] sm:$0xff]  }
 0x840   : > { %16959 = vmatmul.mubr.bf16.vlgmr.msra.gmra.mrb[224].mxu0 %v21604_v54  ;;  %v18685_v54 = vld [vmem:[#allocation3 + $0x1f0] sm:$0xff]  }
 0x841   : > { %16991 = vmatpush3.bf16.msra.mxu0 %v18679_v15  ;;  %16962 = vmatprep.mubr.bf16.mxu0 %v21607_v20  ;;  %v18686_v20 = vld [vmem:[#allocation3 + $0x1f8] sm:$0xff]   ;;  %v18688_v15 = vld [vmem:[#allocation3 + $0x208] sm:$0xff]  }
 0x842   : > { %16992 = vmatprep.subr.bf16.mxu0 %v18680_v51 }
 0x845   : > { %16993 = vmatpush3.bf16.msra.mxu0 %v18680_v51  ;;  %v8859_v51 = vshrl.u32 %v8756_v9, 16 }
 0x846   : > { %16994 = vmatprep.subr.bf16.mxu0 %v18681_v6 }
 0x848   : > { %16963 = vmatmul.mubr.bf16.gmra.mrb[228].mxu0 %v21610_v19  ;;  %v18687_v19 = vld [vmem:[#allocation3 + $0x200] sm:$0xff]  }
 0x849   : > { %16966 = vmatprep.mubr.bf16.mxu0 %v21613_v12  ;;  %16995 = vmatpush3.bf16.msra.mxu0 %v18681_v6  ;;  %v21825_v12 = vld [vmem:[#allocation2 + $0x28] sm:$0x1]  ;;  %v8866_v6 = vshll.u32 %v21861_v56, 16 }
 0x84a   : > { %16996 = vmatprep.subr.bf16.mxu0 %v18682_v45 }
 0x84d   : > { %16997 = vmatpush3.bf16.msra.mxu0 %v18682_v45  ;;  %v8871_v45 = vshrl.u32 %v8758_v52, 16 }
 0x84e   : > { %16998 = vmatprep.subr.bf16.mxu0 %v18683_v1 }
 0x850   : > { %16967 = vmatmul.mubr.bf16.gmra.mrb[232].mxu0 %v21616_v23  ;;  %v8782_v23 = vshll.u32 %v21825_v12, 16 }
 0x851   : > { %16970 = vmatprep.mubr.bf16.mxu0 %v21619_v49  ;;  %16999 = vmatpush3.bf16.msra.mxu0 %v18683_v1  ;;  %v8878_v1 = vshll.u32 %v21865_v31, 16 }
 0x852   : > { %17000 = vmatprep.subr.bf16.mxu0 %v18684_v37  ;;  %v8784_v49 = vrot.slane %v8782_v23, 1 }
 0x853   : > { %v8880_v23 = vrot.slane %v8878_v1, 1 }
 0x855   : > { %17001 = vmatpush3.bf16.msra.mxu0 %v18684_v37  ;;  %v18693_v37 = vld [vmem:[#allocation3 + $0x230] sm:$0xff]  }
 0x856   : > { %17002 = vmatprep.subr.bf16.mxu0 %v18685_v54 }
 0x858   : > { %16971 = vmatmul.mubr.bf16.gmra.mrb[236].mxu0 %v21622_v59  ;;  %v21830_v59 = vld [vmem:[#allocation2 + $0x38] sm:$0x1] }
 0x859   : > { %16974 = vmatprep.mubr.bf16.mxu0 %v21625_v36  ;;  %17003 = vmatpush3.bf16.msra.mxu0 %v18685_v54  ;;  %v21832_v36 = vld [vmem:[#allocation2 + $0x48] sm:$0x1]  ;;  %v8885_v54 = vshll.u32 %v8760_v40, 16 }
 0x85a   : > { %17004 = vmatprep.subr.bf16.mxu0 %v18686_v20 }
 0x85d   : > { %17005 = vmatpush3.bf16.msra.mxu0 %v18686_v20  ;;  %v8876_v20 = vor.u32 %v8875_v7, %v8871_v45  ;;  %v9240_v45 = vld [vmem:[#allocation2 + $0x20] sm:$0xfe] }
 0x85e   : > { %17038 = vmatprep.subr.bf16.mxu0 %v18687_v19  ;;  %v9288_v1 = vrot.slane %v9240_v45, 1 }
 0x860   : > { %16975 = vmatmul.mubr.bf16.gmra.mrb[240].mxu0 %v21628_v10  ;;  %v21834_v10 = vld [vmem:[#allocation2] sm:$0xff] }
 0x861   : > { %16978 = vmatprep.mubr.bf16.mxu0 %v21715_v62  ;;  %v8794_v62 = vshll.u32 %v21830_v59, 16 }
 0x868   : > { %16979 = vmatmul.mubr.bf16.gmra.mrb[244].mxu0 %v21719_v41  ;;  %v8806_v41 = vshll.u32 %v21832_v36, 16 }
 0x869   : > { %16982 = vmatprep.mubr.bf16.mxu0 %v21734_v32  ;;  %v8785_v32 = vsel %vm1963_vm7, %v21650_v26, %v8784_v49  ;;  %v8818_v26 = vshll.u32 %v21841_v27, 16  ;;  %v21871_v49 = vld [vmem:[#allocation2 + $0xb8] sm:$0x1] }
 0x86b   : > { %v8820_v16 = vrot.slane %v8818_v26, 1 }
 0x86d   : > { %v8821_v5 = vsel %vm1963_vm7, %v21671_v22, %v8820_v16  ;;  %v8856_v22 = vrot.slane %v8854_v28, 1  ;;  %v21879_v16 = vld [vmem:[#allocation2 + $0xd8] sm:$0x1] }
 0x86e   : > { %v21888_v28 = vld [vmem:[#allocation2 + $0xf8] sm:$0x1] }
 0x86f   : > { %v8857_v63 = vsel %vm1963_vm7, %v21704_v8, %v8856_v22  ;;  %v18694_v8 = vld [vmem:[#allocation3 + $0x238] sm:$0xff]   ;;  %v8950_v22 = vshll.u32 %v21892_v48, 16 }
 0x870   : > { %16983 = vmatmul.mubr.bf16.gmra.mrb[248].mxu0 %v21738_v61  ;;  %v8808_v61 = vrot.slane %v8806_v41, 1  ;;  %v21874_v41 = vld [vmem:[#allocation2 + $0xc8] sm:$0x1] }
 0x871   : > { %16986 = vmatprep.mubr.bf16.mxu0 %v21756_v2  ;;  %v8796_v2 = vrot.slane %v8794_v62, 1  ;;  %v8887_v62 = vrot.slane %v8885_v54, 1  ;;  %v8952_v7 = vrot.slane %v8950_v22, 1  ;;  %v18712_v22 = vld [vmem:[#allocation6 + $0x54] ss:$8 sps:$4 sm:$0xff]  }
 0x872   : > { %v8809_v38 = vsel %vm1963_vm7, %v21668_v58, %v8808_v61  ;;  %v8833_v58 = vsel %vm1963_vm7, %v21686_v57, %v8832_v47  ;;  %v8845_v57 = vsel %vm1963_vm7, %v21689_v55, %v8844_v11  ;;  %v8864_v55 = vor.u32 %v8863_v14, %v8859_v51 }
 0x873   : > { %v8797_v53 = vsel %vm1963_vm7, %v21653_v25, %v8796_v2  ;;  %v18690_v25 = vld [vmem:[#allocation3 + $0x218] sm:$0xff]   ;;  %v8881_v2 = vsel %vm1963_vm7, %v8876_v20, %v8880_v23  ;;  %v8883_v61 = vshrl.u32 %v8760_v40, 16  ;;  %v8957_v11 = vshll.u32 %v21834_v10, 16  ;;  %v9241_v20 = vld [vmem:[#allocation2 + $0x30] sm:$0xfe] }
 0x874   : > { %v8955_v14 = vshrl.u32 %v21834_v10, 16 }
 0x875   : > { %v8888_v26 = vor.u32 %v8887_v62, %v8883_v61  ;;  %v18700_v62 = vld [vmem:[#allocation6 + $0x14] ss:$8 sps:$4 sm:$0xff]  }
 0x878   : > { %16987 = vmatmul.mubr.bf16.gmra.mrb[252].mxu0 %v21834_v10 }
 0x879   : > { %17006 = vmatprep.mubr.bf16.mxu0 %v8785_v32 }
 0x880   : > { %17007 = vmatmul.mubr.bf16.vlgmr.msra.gmra.mrb[224].mxu0 %v8797_v53  ;;  %v8902_v53 = vshll.u32 %v21874_v41, 16 }
 0x881   : > { %17039 = vmatpush3.bf16.msra.mxu0 %v18687_v19  ;;  %17010 = vmatprep.mubr.bf16.mxu0 %v8809_v38  ;;  %v8868_v19 = vrot.slane %v8866_v6, 1  ;;  %v18697_v38 = vld [vmem:[#allocation6 + $0x4] ss:$8 sps:$4 sm:$0xff]  }
 0x882   : > { %17040 = vmatprep.subr.bf16.mxu0 %v18688_v15 }
 0x883   : > { %v8869_v32 = vsel %vm1963_vm7, %v8864_v55, %v8868_v19  ;;  %v9289_v55 = vrot.slane %v21825_v12, 1  ;;  %v9242_v19 = vld [vmem:[#allocation2 + $0x40] sm:$0xfe]  ;;  %v9243_v12 = vld [vmem:[#allocation2 + $0x50] sm:$0xfe] }
 0x884   : > { %v9294_v23 = vrot.slane %v9242_v19, 1  ;;  %v9316_v19 = vrot.slane %v21871_v49, 1 }
 0x885   : > { %17041 = vmatpush3.bf16.msra.mxu0 %v18688_v15  ;;  %v8890_v15 = vshll.u32 %v21871_v49, 16  ;;  %v9290_v54 = vsel %vm2478_vm8, %v9288_v1, %v9289_v55  ;;  %v9250_v55 = vld [vmem:[#allocation2 + $0xc0] sm:$0xfe] }
 0x886   : > { %17042 = vmatprep.subr.bf16.mxu0 %v18689_v0 }
 0x887   : > { %v8892_v24 = vrot.slane %v8890_v15, 1  ;;  %v9244_v15 = vld [vmem:[#allocation2 + $0x60] sm:$0xfe] }
 0x888   : > { %17011 = vmatmul.mubr.bf16.gmra.mrb[228].mxu0 %v8821_v5 }
 0x889   : > { %17014 = vmatprep.mubr.bf16.mxu0 %v8833_v58  ;;  %17043 = vmatpush3.bf16.msra.mxu0 %v18689_v0  ;;  %v8904_v0 = vrot.slane %v8902_v53, 1  ;;  %v8893_v47 = vsel %vm1963_vm7, %v8888_v26, %v8892_v24  ;;  %v8914_v58 = vshll.u32 %v21879_v16, 16  ;;  %v18698_v53 = vld [vmem:[#allocation6 + $0x10] ss:$8 sps:$4 sm:$0xff]   ;;  %v9297_v26 = vrot.slane %v9243_v12, 1 }
 0x88a   : > { %17044 = vmatprep.subr.bf16.mxu0 %v18690_v25  ;;  %v9300_v24 = vrot.slane %v9244_v15, 1  ;;  %v9254_v12 = vld [vmem:[#allocation2 + $0x100] sm:$0xfe] }
 0x88b   : > { %v8905_v5 = vsel %vm1963_vm7, %v21742_v39, %v8904_v0  ;;  %v8916_v33 = vrot.slane %v8914_v58, 1  ;;  %v8938_v39 = vshll.u32 %v21888_v28, 16  ;;  %v18701_v0 = vld [vmem:[#allocation6 + $0x20] ss:$8 sps:$4 sm:$0xff]  }
 0x88d   : > { %17045 = vmatpush3.bf16.msra.mxu0 %v18690_v25  ;;  %v21882_v25 = vld [vmem:[#allocation2 + $0xe8] sm:$0x1] }
 0x88e   : > { %17046 = vmatprep.subr.bf16.mxu0 %v18691_v13  ;;  %v8926_v9 = vshll.u32 %v21882_v25, 16 }
 0x890   : > { %17015 = vmatmul.mubr.bf16.gmra.mrb[232].mxu0 %v8845_v57  ;;  %v8928_v52 = vrot.slane %v8926_v9, 1  ;;  %v8940_v57 = vrot.slane %v8938_v39, 1  ;;  %v9245_v9 = vld [vmem:[#allocation2 + $0x70] sm:$0xfe]  ;;  %v9304_v39 = vrot.slane %v21851_v60, 1 }
 0x891   : > { %17018 = vmatprep.mubr.bf16.mxu0 %v8857_v63  ;;  %17047 = vmatpush3.bf16.msra.mxu0 %v18691_v13  ;;  %v8917_v13 = vsel %vm1963_vm7, %v21745_v46, %v8916_v33  ;;  %v8959_v63 = vrot.slane %v8957_v11, 1  ;;  %v9246_v33 = vld [vmem:[#allocation2 + $0x80] sm:$0xfe]  ;;  %v9307_v11 = vrot.slane %v21855_v30, 1 }
 0x892   : > { %17048 = vmatprep.subr.bf16.mxu0 %v18692_v50  ;;  %v8929_v43 = vsel %vm1963_vm7, %v21762_v17, %v8928_v52  ;;  %v8941_v40 = vsel %vm1963_vm7, %v21765_v44, %v8940_v57  ;;  %v8953_v17 = vsel %vm1963_vm7, %v21775_v35, %v8952_v7  ;;  %v9291_v44 = vrot.slane %v9241_v20, 1  ;;  %v18695_v35 = vld [vmem:[#allocation6] ss:$8 sps:$4 sm:$0xff]   ;;  %v18704_v52 = vld [vmem:[#allocation6 + $0x30] ss:$8 sps:$4 sm:$0xff]  }
 0x893   : > { %v8960_v51 = vor.u32 %v8959_v63, %v8955_v14  ;;  %v9247_v63 = vld [vmem:[#allocation2 + $0x90] sm:$0xfe]  ;;  %v18713_v30 = vld [vmem:[#allocation6 + $0x60] ss:$8 sps:$4 sm:$0xff]   ;;  %v9318_v20 = vrot.slane %v9250_v55, 1 }
 0x894   : > { %v18710_v7 = vld [vmem:[#allocation6 + $0x50] ss:$8 sps:$4 sm:$0xff]  }
 0x895   : > { %17049 = vmatpush3.bf16.msra.mxu0 %v18692_v50  ;;  %v21899_v50 = vld [vmem:[#allocation2 + $0x118] sm:$0x1] }
 0x896   : > { %17050 = vmatprep.subr.bf16.mxu0 %v18693_v37  ;;  %v8962_v46 = vshll.u32 %v21899_v50, 16 }
 0x898   : > { %17019 = vmatmul.mubr.bf16.gmra.mrb[236].mxu0 %v8869_v32  ;;  %v8964_v6 = vrot.slane %v8962_v46, 1  ;;  %v9295_v32 = vrot.slane %v21832_v36, 1  ;;  %v9301_v36 = vrot.slane %v21845_v3, 1  ;;  %v18707_v3 = vld [vmem:[#allocation6 + $0x40] ss:$8 sps:$4 sm:$0xff]  }
 0x899   : > { %17022 = vmatprep.mubr.bf16.mxu0 %v8881_v2  ;;  %17051 = vmatpush3.bf16.msra.mxu0 %v18693_v37  ;;  %v9248_v46 = vld [vmem:[#allocation2 + $0xa0] sm:$0xfe] }
 0x89a   : > { %17052 = vmatprep.subr.bf16.mxu0 %v18694_v8  ;;  %v8965_v37 = vsel %vm1963_vm7, %v8960_v51, %v8964_v6  ;;  %v9296_v61 = vsel %vm2478_vm8, %v9294_v23, %v9295_v32  ;;  %v9302_v58 = vsel %vm2478_vm8, %v9300_v24, %v9301_v36  ;;  %v9312_v60 = vrot.slane %v9248_v46, 1  ;;  %v9251_v23 = vld [vmem:[#allocation2 + $0xd0] sm:$0xfe] }
 0x89b   : > { %v9310_v51 = vrot.slane %v21861_v56, 1  ;;  %v9313_v6 = vrot.slane %v21865_v31, 1  ;;  %v9319_v56 = vrot.slane %v21874_v41, 1  ;;  %v9253_v41 = vld [vmem:[#allocation2 + $0xf0] sm:$0xfe] }
 0x89c   : > { %v9327_v15 = vrot.slane %v9253_v41, 1  ;;  %v9255_v24 = vld [vmem:[#allocation2 + $0x110] sm:$0xfe] }
 0x89d   : > { %17053 = vmatpush3.bf16.msra.mxu0 %v18694_v8  ;;  %v9292_v8 = vrot.slane %v21830_v59, 1  ;;  %v9298_v59 = vrot.slane %v21841_v27, 1  ;;  %v9306_v27 = vrot.slane %v9246_v33, 1  ;;  %v9314_v1 = vsel %vm2478_vm8, %v9312_v60, %v9313_v6  ;;  %v18723_v46 = vld [vmem:[#allocation8 + $0x50] sm:$0xff]  }
 0x89e   : > { %9766 = vmatprep.subr.bf16.mxu0 %v18697_v38  ;;  %v18703_v38 = vld [vmem:[#allocation6 + $0x24] ss:$8 sps:$4 sm:$0xff]   ;;  %v9320_v31 = vsel %vm2478_vm8, %v9318_v20, %v9319_v56  ;;  %v18726_v56 = vld [vmem:[#allocation8 + $0x18] sm:$0xff]  }
 0x89f   : > { %v9293_v2 = vsel %vm2478_vm8, %v9291_v44, %v9292_v8  ;;  %v9308_v14 = vsel %vm2478_vm8, %v9306_v27, %v9307_v11  ;;  %v9252_v8 = vld [vmem:[#allocation2 + $0xe0] sm:$0xfe] }
 0x8a0   : > { %17023 = vmatmul.mubr.bf16.gmra.mrb[240].mxu0 %v8893_v47  ;;  %v18706_v47 = vld [vmem:[#allocation6 + $0x34] ss:$8 sps:$4 sm:$0xff]   ;;  %v9324_v32 = vrot.slane %v9252_v8, 1 }
 0x8a1   : > { %17026 = vmatprep.mubr.bf16.mxu0 %v8905_v5  ;;  %v9299_v5 = vsel %vm2478_vm8, %v9297_v26, %v9298_v59  ;;  %v9331_v26 = vrot.slane %v21892_v48, 1 }
 0x8a8   : > { %17027 = vmatmul.mubr.bf16.gmra.mrb[244].mxu0 %v8917_v13  ;;  %v18709_v13 = vld [vmem:[#allocation6 + $0x44] ss:$8 sps:$4 sm:$0xff]  }
 0x8a9   : > { %17030 = vmatprep.mubr.bf16.mxu0 %v8929_v43  ;;  %v9303_v43 = vrot.slane %v9245_v9, 1 }
 0x8ab   : > { %v9305_v57 = vsel %vm2478_vm8, %v9303_v43, %v9304_v39  ;;  %v18721_v43 = vld [vmem:[#allocation8 + $0x48] sm:$0xff]  }
 0x8b0   : > { %17031 = vmatmul.mubr.bf16.gmra.mrb[248].mxu0 %v8941_v40  ;;  %v18715_v40 = vld [vmem:[#allocation6 + $0x64] ss:$8 sps:$4 sm:$0xff]  }
 0x8b1   : > { %17034 = vmatprep.mubr.bf16.mxu0 %v8953_v17  ;;  %v9309_v17 = vrot.slane %v9247_v63, 1 }
 0x8b3   : > { %v9311_v45 = vsel %vm2478_vm8, %v9309_v17, %v9310_v51 }
 0x8b8   : > { %17035 = vmatmul.mubr.bf16.gmra.mrb[252].mxu0 %v8965_v37  ;;  %v9249_v37 = vld [vmem:[#allocation2 + $0xb0] sm:$0xfe] }
 0x8b9   : > { %17054 = vmatprep.mubr.bf16.mxu0 %v9290_v54  ;;  %v9315_v54 = vrot.slane %v9249_v37, 1 }
 0x8bb   : > { %v9317_v44 = vsel %vm2478_vm8, %v9315_v54, %v9316_v19 }
 0x8c0   : > { %17055 = vmatmul.mubr.bf16.vlgmr.msra.gmra.mrb[224].mxu0 %v9293_v2  ;;  %v9325_v2 = vrot.slane %v21882_v25, 1  ;;  %v9333_v25 = vrot.slane %v9255_v24, 1 }
 0x8c1   : > { %17058 = vmatprep.mubr.bf16.mxu0 %v9296_v61  ;;  %9767 = vmatpush1.bf16.msra.mxu0 %v18695_v35  ;;  %v9321_v35 = vrot.slane %v9251_v23, 1  ;;  %v18727_v23 = vld [vmem:[#allocation8 + $0x60] sm:$0xff]  }
 0x8c2   : > { %9768 = vmatprep.subr.bf16.mxu0 %v18700_v62  ;;  %v9322_v62 = vrot.slane %v21879_v16, 1  ;;  %v9326_v49 = vsel %vm2478_vm8, %v9324_v32, %v9325_v2 }
 0x8c4   : > { %v9323_v61 = vsel %vm2478_vm8, %v9321_v35, %v9322_v62 }
 0x8c5   : > { %9769 = vmatpush1.bf16.msra.mxu0 %v18698_v53  ;;  %v9330_v53 = vrot.slane %v9254_v12, 1  ;;  %v18729_v12 = vld [vmem:[#allocation8 + $0x68] sm:$0xff]  }
 0x8c6   : > { %9770 = vmatprep.subr.bf16.mxu0 %v18703_v38  ;;  %v9328_v38 = vrot.slane %v21888_v28, 1  ;;  %v21944_v28 = vld [vmem:[%s23547_s10] ss:$0 sm:$0xff] }
 0x8c7   : > { %v9332_v16 = vsel %vm2478_vm8, %v9330_v53, %v9331_v26 }
 0x8c8   : > { %17059 = vmatmul.mubr.bf16.gmra.mrb[228].mxu0 %v9299_v5  ;;  %v9329_v59 = vsel %vm2478_vm8, %v9327_v15, %v9328_v38  ;;  %v18718_v5 = vld [vmem:[#allocation6 + $0x74] ss:$8 sps:$4 sm:$0xff]  }
 0x8c9   : > { %17062 = vmatprep.mubr.bf16.mxu0 %v9302_v58  ;;  %9771 = vmatpush1.bf16.msra.mxu0 %v18701_v0  ;;  %v9334_v0 = vrot.slane %v21899_v50, 1 }
 0x8ca   : > { %9772 = vmatprep.subr.bf16.mxu0 %v18706_v47  ;;  %v18716_v47 = vld [vmem:[#allocation6 + $0x70] ss:$8 sps:$4 sm:$0xff]  }
 0x8cb   : > { %v9335_v36 = vsel %vm2478_vm8, %v9333_v25, %v9334_v0  ;;  %v18731_v0 = vld [vmem:[#allocation8 + $0x70] sm:$0xff]  }
 0x8cd   : > { %9773 = vmatpush1.bf16.msra.mxu0 %v18704_v52  ;;  %v18719_v52 = vld [vmem:[#allocation8 + $0x40] sm:$0xff]  }
 0x8ce   : > { %9774 = vmatprep.subr.bf16.mxu0 %v18709_v13  ;;  %v18720_v13 = vld [vmem:[#allocation8] sm:$0xff]   ;;  %15846 = vmatprep.subr.bf16.mxu1 %v18719_v52 }
 0x8cf   : > { %15847 = vmatpush3.bf16.msra.mxu1 %v18720_v13 }
 0x8d0   : > { %17063 = vmatmul.mubr.bf16.gmra.mrb[232].mxu0 %v9305_v57  ;;  %v18722_v57 = vld [vmem:[#allocation8 + $0x8] sm:$0xff]   ;;  %15848 = vmatprep.subr.bf16.mxu1 %v18721_v43 }
 0x8d1   : > { %17066 = vmatprep.mubr.bf16.mxu0 %v9308_v14  ;;  %9775 = vmatpush1.bf16.msra.mxu0 %v18707_v3 }
 0x8d2   : > { %9776 = vmatprep.subr.bf16.mxu0 %v18712_v22 }
 0x8d3   : > { %15849 = vmatpush3.bf16.msra.mxu1 %v18722_v57 }
 0x8d4   : > { %15850 = vmatprep.subr.bf16.mxu1 %v18723_v46 }
 0x8d5   : > { %9777 = vmatpush1.bf16.msra.mxu0 %v18710_v7 }
 0x8d6   : > { %9778 = vmatprep.subr.bf16.mxu0 %v18715_v40 }
 0x8d8   : > { %17067 = vmatmul.mubr.bf16.gmra.mrb[236].mxu0 %v9311_v45 }
 0x8d9   : > { %17070 = vmatprep.mubr.bf16.mxu0 %v9314_v1  ;;  %9779 = vmatpush1.bf16.msra.mxu0 %v18713_v30  ;;  %v18724_v30 = vld [vmem:[#allocation8 + $0x10] sm:$0xff]   ;;  %v18725_v1 = vld [vmem:[#allocation8 + $0x58] sm:$0xff]  }
 0x8da   : > { %9780 = vmatprep.subr.bf16.mxu0 %v18718_v5  ;;  %15851 = vmatpush3.bf16.msra.mxu1 %v18724_v30 }
 0x8db   : > { %15852 = vmatprep.subr.bf16.mxu1 %v18725_v1 }
 0x8dd   : > { %9781 = vmatpush1.bf16.msra.mxu0 %v18716_v47 }
 0x8de   : > { %15853 = vmatpush3.bf16.msra.mxu1 %v18726_v56 }
 0x8df   : > { %15854 = vmatprep.subr.bf16.mxu1 %v18727_v23 }
 0x8e0   : > { %17071 = vmatmul.mubr.bf16.gmra.mrb[240].mxu0 %v9317_v44 }
 0x8e1   : > { %17074 = vmatprep.mubr.bf16.mxu0 %v9320_v31 }
 0x8e8   : > { %17075 = vmatmul.mubr.bf16.gmra.mrb[244].mxu0 %v9323_v61  ;;  %v18728_v61 = vld [vmem:[#allocation8 + $0x20] sm:$0xff]  }
 0x8e9   : > { %17078 = vmatprep.mubr.bf16.mxu0 %v9326_v49  ;;  %15855 = vmatpush3.bf16.msra.mxu1 %v18728_v61 }
 0x8ea   : > { %15856 = vmatprep.subr.bf16.mxu1 %v18729_v12 }
 0x8f0   : > { %17079 = vmatmul.mubr.bf16.gmra.mrb[248].mxu0 %v9329_v59  ;;  %v18730_v59 = vld [vmem:[#allocation8 + $0x28] sm:$0xff]  }
 0x8f1   : > { %17082 = vmatprep.mubr.bf16.mxu0 %v9332_v16  ;;  %15857 = vmatpush3.bf16.msra.mxu1 %v18730_v59 }
 0x8f2   : > { %15858 = vmatprep.subr.bf16.mxu1 %v18731_v0 }
 0x8f8   : > { %17083 = vmatmul.mubr.bf16.gmra.mrb[252].mxu0 %v9335_v36 }
 0x8f9   : > { %9798 = vmatprep.mubr.bf16.mxu0 %v21834_v10 }
 0x993   : > { %v17056_v48 = vpop.f32.mrb[224].mxu0 }
 0x994   : > { %v17550_v58 = vadd.f32 %v17056_v48, %v21944_v28  ;;  %v9451_v9 = vpop.f32.mrb[225].mxu0 }
 0x995   : > { %v17551_v50 = vadd.f32 %v21944_v28, %v9451_v9  ;;  %v17057_v33 = vpop.f32.mrb[226].mxu0  ;;  %v18732_v9 = vld [vmem:[#allocation8 + $0x30] sm:$0xff]  }
 0x996   : > { %v17552_v27 = vadd.f32 %v17057_v33, %v21944_v28  ;;  %v9454_v39 = vpop.f32.mrb[227].mxu0  ;;  %v9612_v11 = vmax.f32 %v17550_v58, 0.0  ;;  %15859 = vmatpush3.bf16.msra.mxu1 %v18732_v9 }
 0x997   : > { %v17553_v3 = vadd.f32 %v21944_v28, %v9454_v39  ;;  %v9610_v14 = vmax.f32 %v17551_v50, 0.0 }
 0x998   : > { %v9613_v22 = vmax.f32 %v17552_v27, 0.0 }
 0x999   : > { %v9611_v63 = vmax.f32 %v17553_v3, 0.0 }
 0x99a   : > { %v9643_v7 = vpack.c.bf16 %v9613_v22, %v9612_v11 }
 0x99b   : > { %v9642_v40 = vpack.c.bf16 %v9611_v63, %v9610_v14  ;;  %v17060_v17 = vpop.f32.mrb[228].mxu0 }
 0x99c   : > { %v17554_v60 = vadd.f32 %v17060_v17, %v21944_v28  ;;  %v9467_v51 = vpop.f32.mrb[229].mxu0 }
 0x99d   : > { %v17555_v6 = vadd.f32 %v21944_v28, %v9467_v51  ;;  %v17061_v45 = vpop.f32.mrb[230].mxu0  ;;  %9799 = vmatmul.mubr.bf16.vlgmr.msra.gmra.mrb[0].mxu0 %v9642_v40 }
 0x99e   : > { %v17556_v37 = vadd.f32 %v17061_v45, %v21944_v28  ;;  %v9470_v55 = vpop.f32.mrb[231].mxu0  ;;  %9808 = vmatprep.mubr.bf16.mxu0 %v21834_v10  ;;  %v9616_v20 = vmax.f32 %v17554_v60, 0.0 }
 0x99f   : > { %v17557_v54 = vadd.f32 %v21944_v28, %v9470_v55  ;;  %v9614_v44 = vmax.f32 %v17555_v6, 0.0 }
 0x9a0   : > { %v9617_v19 = vmax.f32 %v17556_v37, 0.0 }
 0x9a1   : > { %v9615_v31 = vmax.f32 %v17557_v54, 0.0 }
 0x9a2   : > { %v9645_v8 = vpack.c.bf16 %v9617_v19, %v9616_v20 }
 0x9a3   : > { %v9644_v35 = vpack.c.bf16 %v9615_v31, %v9614_v44  ;;  %v17064_v32 = vpop.f32.mrb[232].mxu0 }
 0x9a4   : > { %v17558_v62 = vadd.f32 %v17064_v32, %v21944_v28  ;;  %v9483_v2 = vpop.f32.mrb[233].mxu0 }
 0x9a5   : > { %v17559_v49 = vadd.f32 %v21944_v28, %v9483_v2  ;;  %v17065_v41 = vpop.f32.mrb[234].mxu0  ;;  %9809 = vmatmul.mubr.bf16.gmra.mrb[4].mxu0 %v9643_v7 }
 0x9a6   : > { %v17560_v15 = vadd.f32 %v17065_v41, %v21944_v28  ;;  %v9486_v53 = vpop.f32.mrb[235].mxu0  ;;  %9818 = vmatprep.mubr.bf16.mxu0 %v21834_v10  ;;  %v9620_v26 = vmax.f32 %v17558_v62, 0.0 }
 0x9a7   : > { %v17561_v38 = vadd.f32 %v21944_v28, %v9486_v53  ;;  %v9618_v16 = vmax.f32 %v17559_v49, 0.0 }
 0x9a8   : > { %v9621_v24 = vmax.f32 %v17560_v15, 0.0 }
 0x9a9   : > { %v9619_v25 = vmax.f32 %v17561_v38, 0.0 }
 0x9aa   : > { %v9647_v36 = vpack.c.bf16 %v9621_v24, %v9620_v26 }
 0x9ab   : > { %v9646_v47 = vpack.c.bf16 %v9619_v25, %v9618_v16  ;;  %v17068_v5 = vpop.f32.mrb[236].mxu0 }
 0x9ac   : > { %v17562_v48 = vadd.f32 %v17068_v5, %v21944_v28  ;;  %v9499_v58 = vpop.f32.mrb[237].mxu0 }
 0x9ad   : > { %v17563_v50 = vadd.f32 %v21944_v28, %v9499_v58  ;;  %v17069_v33 = vpop.f32.mrb[238].mxu0  ;;  %9819 = vmatmul.mubr.bf16.gmra.mrb[8].mxu0 %v9644_v35 }
 0x9ae   : > { %v17564_v52 = vadd.f32 %v17069_v33, %v21944_v28  ;;  %v9502_v13 = vpop.f32.mrb[239].mxu0  ;;  %9828 = vmatprep.mubr.bf16.mxu0 %v21834_v10  ;;  %v9624_v27 = vmax.f32 %v17562_v48, 0.0 }
 0x9af   : > { %v17565_v43 = vadd.f32 %v21944_v28, %v9502_v13  ;;  %v9622_v3 = vmax.f32 %v17563_v50, 0.0 }
 0x9b0   : > { %v9625_v39 = vmax.f32 %v17564_v52, 0.0 }
 0x9b1   : > { %v9623_v11 = vmax.f32 %v17565_v43, 0.0 }
 0x9b2   : > { %v21965_v22 = vpack.c.bf16 %v9625_v39, %v9624_v27 }
 0x9b3   : > { %v9648_v57 = vpack.c.bf16 %v9623_v11, %v9622_v3  ;;  %v17072_v14 = vpop.f32.mrb[240].mxu0 }
 0x9b4   : > { %v17566_v63 = vadd.f32 %v17072_v14, %v21944_v28  ;;  %v9515_v46 = vpop.f32.mrb[241].mxu0 }
 0x9b5   : > { %v17567_v7 = vadd.f32 %v21944_v28, %v9515_v46  ;;  %v17073_v40 = vpop.f32.mrb[242].mxu0  ;;  %9829 = vmatmul.mubr.bf16.gmra.mrb[12].mxu0 %v9645_v8 }
 0x9b6   : > { %v17568_v17 = vadd.f32 %v17073_v40, %v21944_v28  ;;  %v9518_v60 = vpop.f32.mrb[243].mxu0  ;;  %9838 = vmatprep.mubr.bf16.mxu0 %v21834_v10  ;;  %v9628_v30 = vmax.f32 %v17566_v63, 0.0 }
 0x9b7   : > { %v17569_v51 = vadd.f32 %v21944_v28, %v9518_v60  ;;  %v9626_v45 = vmax.f32 %v17567_v7, 0.0 }
 0x9b8   : > { %v9629_v6 = vmax.f32 %v17568_v17, 0.0 }
 0x9b9   : > { %v9627_v1 = vmax.f32 %v17569_v51, 0.0 }
 0x9ba   : > { %v9651_v37 = vpack.c.bf16 %v9629_v6, %v9628_v30 }
 0x9bb   : > { %v9650_v55 = vpack.c.bf16 %v9627_v1, %v9626_v45  ;;  %v17076_v54 = vpop.f32.mrb[244].mxu0  ;;  %v24027_v45 = vmax.f32 %v20819_v18, 0.0 }
 0x9bc   : > { %v17570_v20 = vadd.f32 %v17076_v54, %v21944_v28  ;;  %v9531_v19 = vpop.f32.mrb[245].mxu0 }
 0x9bd   : > { %v17571_v56 = vadd.f32 %v21944_v28, %v9531_v19  ;;  %v17077_v44 = vpop.f32.mrb[246].mxu0  ;;  %9839 = vmatmul.mubr.bf16.gmra.mrb[16].mxu0 %v9646_v47 }
 0x9be   : > { %v17572_v31 = vadd.f32 %v17077_v44, %v21944_v28  ;;  %v9534_v23 = vpop.f32.mrb[247].mxu0  ;;  %9848 = vmatprep.mubr.bf16.mxu0 %v21834_v10  ;;  %v9632_v35 = vmax.f32 %v17570_v20, 0.0  ;;  %v24029_v20 = vmax.f32 %v20822_v42, 0.0  ;;  %v24030_v44 = vmax.f32 %v20824_v21, 0.0 }
 0x9bf   : > { %v17573_v8 = vadd.f32 %v21944_v28, %v9534_v23  ;;  %v9630_v62 = vmax.f32 %v17571_v56, 0.0  ;;  %v18735_v56 = vld [vmem:[#allocation9] sm:$0xff]  }
 0x9c0   : > { %v9633_v32 = vmax.f32 %v17572_v31, 0.0 }
 0x9c1   : > { %v9631_v2 = vmax.f32 %v17573_v8, 0.0 }
 0x9c2   : > { %v9653_v61 = vpack.c.bf16 %v9633_v32, %v9632_v35 }
 0x9c3   : > { %v9652_v49 = vpack.c.bf16 %v9631_v2, %v9630_v62  ;;  %v17080_v41 = vpop.f32.mrb[248].mxu0 }
 0x9c4   : > { %v17574_v12 = vadd.f32 %v17080_v41, %v21944_v28  ;;  %v9547_v15 = vpop.f32.mrb[249].mxu0 }
 0x9c5   : > { %v17575_v53 = vadd.f32 %v21944_v28, %v9547_v15  ;;  %v17081_v38 = vpop.f32.mrb[250].mxu0  ;;  %9849 = vmatmul.mubr.bf16.gmra.mrb[20].mxu0 %v9647_v36  ;;  %v24031_v15 = vld [vmem:[#allocation26_spill] sm:$0xff] }
 0x9c6   : > { %v17576_v26 = vadd.f32 %v17081_v38, %v21944_v28  ;;  %v9550_v24 = vpop.f32.mrb[251].mxu0  ;;  %9858 = vmatprep.mubr.bf16.mxu0 %v21834_v10  ;;  %v9636_v16 = vmax.f32 %v17574_v12, 0.0  ;;  %v18736_v12 = vld [vmem:[#allocation9 + $0x8] sm:$0xff]  }
 0x9c7   : > { %v17577_v59 = vadd.f32 %v21944_v28, %v9550_v24  ;;  %v9634_v0 = vmax.f32 %v17575_v53, 0.0  ;;  %v24032_v53 = vmax.f32 %v24031_v15, 0.0  ;;  %v24034_v24 = vld [vmem:[#allocation25_spill] sm:$0xff] }
 0x9c8   : > { %v9637_v25 = vmax.f32 %v17576_v26, 0.0 }
 0x9c9   : > { %v9635_v47 = vmax.f32 %v17577_v59, 0.0  ;;  %v24035_v59 = vmax.f32 %v24034_v24, 0.0 }
 0x9ca   : > { %v9655_v5 = vpack.c.bf16 %v9637_v25, %v9636_v16  ;;  %v24037_v25 = vld [vmem:[#allocation27_spill] sm:$0xff] }
 0x9cb   : > { %v9654_v48 = vpack.c.bf16 %v9635_v47, %v9634_v0  ;;  %v17084_v58 = vpop.f32.mrb[252].mxu0  ;;  %v24038_v0 = vmax.f32 %v24037_v25, 0.0  ;;  %v24058_v25 = vld [vmem:[#allocation34_spill] sm:$0xff] }
 0x9cc   : > { %v17578_v9 = vadd.f32 %v17084_v58, %v21944_v28  ;;  %v9563_v50 = vpop.f32.mrb[253].mxu0 }
 0x9cd   : > { %v17579_v33 = vadd.f32 %v21944_v28, %v9563_v50  ;;  %v17085_v36 = vpop.f32.mrb[254].mxu0  ;;  %9859 = vmatmul.mubr.bf16.gmra.mrb[24].mxu0 %v9648_v57  ;;  %v18734_v57 = vld [vmem:[#allocation8 + $0x38] sm:$0xff]   ;;  %v18737_v50 = vld [vmem:[#allocation9 + $0x10] sm:$0xff]  }
 0x9ce   : > { %v17580_v52 = vadd.f32 %v17085_v36, %v21944_v28  ;;  %v9566_v13 = vpop.f32.mrb[255].mxu0  ;;  %9868 = vmatprep.mubr.bf16.mxu0 %v21834_v10  ;;  %v9640_v27 = vmax.f32 %v17578_v9, 0.0 }
 0x9cf   : > { %v17581_v43 = vadd.f32 %v21944_v28, %v9566_v13  ;;  %v9638_v3 = vmax.f32 %v17579_v33, 0.0  ;;  %v18733_v28 = vld [vmem:[#allocation8 + $0x78] sm:$0xff]  }
 0x9d0   : > { %v9641_v39 = vmax.f32 %v17580_v52, 0.0  ;;  %15860 = vmatprep.subr.bf16.mxu1 %v18733_v28 }
 0x9d1   : > { %v9639_v11 = vmax.f32 %v17581_v43, 0.0  ;;  %15861 = vmatpush3.bf16.msra.mxu1 %v18734_v57  ;;  %v24043_v57 = vld [vmem:[#allocation31_spill] sm:$0xff] }
 0x9d2   : > { %v9657_v14 = vpack.c.bf16 %v9641_v39, %v9640_v27  ;;  %17086 = vmatprep.subr.bf16.mxu1 %v18735_v56 }
 0x9d3   : > { %v9656_v63 = vpack.c.bf16 %v9639_v11, %v9638_v3 }
 0x9d5   : > { %9869 = vmatmul.mubr.bf16.gmra.mrb[28].mxu0 %v21965_v22  ;;  %v9674_v22 = vld [vmem:[%s23549_s12] sm:$0x3] }
 0x9d6   : > { %9878 = vmatprep.mubr.bf16.mxu0 %v21834_v10  ;;  %v22001_v46 = vrot.slane %v9674_v22, %v23921_v29  ;;  %v22004_v7 = vrot.slane %v9674_v22, %v20791_v34  ;;  %v24044_v22 = vmax.f32 %v24043_v57, 0.0 }
 0x9dd   : > { %9879 = vmatmul.mubr.bf16.gmra.mrb[32].mxu0 %v9650_v55  ;;  %v24028_v55 = vmax.f32 %v20814_v4, 0.0 }
 0x9de   : > { %9888 = vmatprep.mubr.bf16.mxu0 %v21834_v10 }
 0x9e5   : > { %9889 = vmatmul.mubr.bf16.gmra.mrb[36].mxu0 %v9651_v37 }
 0x9e6   : > { %9898 = vmatprep.mubr.bf16.mxu0 %v21834_v10 }
 0x9ed   : > { %9899 = vmatmul.mubr.bf16.gmra.mrb[40].mxu0 %v9652_v49 }
 0x9ee   : > { %9908 = vmatprep.mubr.bf16.mxu0 %v21834_v10 }
 0x9f5   : > { %9909 = vmatmul.mubr.bf16.gmra.mrb[44].mxu0 %v9653_v61 }
 0x9f6   : > { %9918 = vmatprep.mubr.bf16.mxu0 %v21834_v10 }
 0x9fd   : > { %9919 = vmatmul.mubr.bf16.gmra.mrb[48].mxu0 %v9654_v48 }
 0x9fe   : > { %9928 = vmatprep.mubr.bf16.mxu0 %v21834_v10 }
 0xa05   : > { %9929 = vmatmul.mubr.bf16.gmra.mrb[52].mxu0 %v9655_v5  ;;  %v24040_v5 = vld [vmem:[#allocation29_spill] sm:$0xff] }
 0xa06   : > { %9938 = vmatprep.mubr.bf16.mxu0 %v21834_v10  ;;  %v24041_v48 = vmax.f32 %v24040_v5, 0.0 }
 0xa0d   : > { %9939 = vmatmul.mubr.bf16.gmra.mrb[56].mxu0 %v9656_v63 }
 0xa0e   : > { %9948 = vmatprep.mubr.bf16.mxu0 %v21834_v10 }
 0xa15   : > { %9949 = vmatmul.mubr.bf16.gmra.mrb[60].mxu0 %v9657_v14 }
 0xa16   : > { %14322 = vmatprep.mubr.bf16.mxu0 %v21834_v10 }
 0xa70   : > { %v9800_v40 = vpop.f32.mrb[0].mxu0 }
 0xa71   : > { %v9801_v17 = vadd.f32 %v9800_v40, %v22001_v46  ;;  %v9802_v60 = vpop.f32.mrb[1].mxu0 }
 0xa72   : > { %v9803_v51 = vadd.f32 %v9802_v60, %v22004_v7  ;;  %v9804_v30 = vpop.f32.mrb[2].mxu0  ;;  %v24046_v60 = vld [vmem:[#allocation30_spill] sm:$0xff] }
 0xa73   : > { %v9805_v6 = vadd.f32 %v9804_v30, %v22001_v46  ;;  %v9806_v10 = vpop.f32.mrb[3].mxu0  ;;  %v22016_v54 = vadd.f32 %v9801_v17, %v24028_v55 }
 0xa74   : > { %v22011_v1 = vadd.f32 %v9803_v51, %v24027_v45  ;;  %v9807_v37 = vadd.f32 %v9806_v10, %v22004_v7  ;;  %v24047_v51 = vmax.f32 %v24046_v60, 0.0 }
 0xa75   : > { %v22020_v19 = vadd.f32 %v9805_v6, %v24029_v20  ;;  %v23743_v4 = vmax.f32 %v22016_v54, 0.0  ;;  %v24049_v6 = vld [vmem:[#allocation32_spill] sm:$0xff] }
 0xa76   : > { %v22024_v31 = vadd.f32 %v9807_v37, %v24030_v44  ;;  %v23742_v18 = vmax.f32 %v22011_v1, 0.0  ;;  %v24050_v10 = vmax.f32 %v24049_v6, 0.0  ;;  %v24052_v37 = vld [vmem:[#allocation33_spill] sm:$0xff] }
 0xa77   : > { %v23739_v23 = vmax.f32 %v22020_v19, 0.0  ;;  %v24053_v55 = vmax.f32 %v24052_v37, 0.0 }
 0xa78   : > { %v23736_v8 = vmax.f32 %v22024_v31, 0.0  ;;  %v9810_v35 = vpop.f32.mrb[4].mxu0 }
 0xa79   : > { %v9811_v32 = vadd.f32 %v9810_v35, %v22001_v46  ;;  %v9812_v42 = vpop.f32.mrb[5].mxu0  ;;  %v10087_v61 = vpack.c.bf16 %v23739_v23, %v23743_v4 }
 0xa7a   : > { %v9813_v62 = vadd.f32 %v9812_v42, %v22004_v7  ;;  %v9814_v2 = vpop.f32.mrb[6].mxu0  ;;  %v10088_v21 = vpack.c.bf16 %v23736_v8, %v23742_v18  ;;  %v24148_v18 = vld [vmem:[#allocation76_spill] sm:$0xff] }
 0xa7b   : > { %v9815_v49 = vadd.f32 %v9814_v2, %v22001_v46  ;;  %v9816_v41 = vpop.f32.mrb[7].mxu0  ;;  %v22048_v16 = vadd.f32 %v9811_v32, %v24035_v59  ;;  %v24149_v4 = vmax.f32 %v24148_v18, 0.0 }
 0xa7c   : > { %v22043_v38 = vadd.f32 %v9813_v62, %v24032_v53  ;;  %v9817_v26 = vadd.f32 %v9816_v41, %v22004_v7  ;;  %10286 = vmatprep.mubr.bf16.mxu1 %v10088_v21  ;;  %v24055_v53 = vld [vmem:[#allocation35_spill] sm:$0xff] }
 0xa7d   : > { %24036 = vst [vmem:[#allocation25_spill] sm:$0xff] %v22048_v16  ;;  %v22052_v47 = vadd.f32 %v9815_v49, %v24038_v0  ;;  %10287 = vmatmul.mubr.bf16.vlgmr.msra.gmra.mrb[32].mxu1 %v10087_v61  ;;  %v23735_v13 = vmax.f32 %v22048_v16, 0.0  ;;  %v24059_v0 = vmax.f32 %v24058_v25, 0.0 }
 0xa7e   : > { %24033 = vst [vmem:[#allocation26_spill] sm:$0xff] %v22043_v38  ;;  %v22056_v58 = vadd.f32 %v9817_v26, %v24041_v48  ;;  %17087 = vmatpush3.bf16.msra.mxu1 %v18735_v56  ;;  %v23734_v33 = vmax.f32 %v22043_v38, 0.0  ;;  %v24056_v26 = vmax.f32 %v24055_v53, 0.0  ;;  %v24061_v48 = vld [vmem:[#allocation36_spill] sm:$0xff]  ;;  %v24076_v53 = vld [vmem:[#allocation42_spill] sm:$0xff] }
 0xa7f   : > { %24039 = vst [vmem:[#allocation27_spill] sm:$0xff] %v22052_v47  ;;  %v23731_v9 = vmax.f32 %v22052_v47, 0.0  ;;  %17088 = vmatprep.subr.bf16.mxu1 %v18736_v12 }
 0xa80   : > { %24042 = vst [vmem:[#allocation29_spill] sm:$0xff] %v22056_v58  ;;  %v23728_v36 = vmax.f32 %v22056_v58, 0.0  ;;  %v9820_v52 = vpop.f32.mrb[8].mxu0 }
 0xa81   : > { %v9821_v43 = vadd.f32 %v9820_v52, %v22001_v46  ;;  %v9822_v27 = vpop.f32.mrb[9].mxu0  ;;  %v10089_v28 = vpack.c.bf16 %v23731_v9, %v23735_v13 }
 0xa82   : > { %v9823_v39 = vadd.f32 %v9822_v27, %v22004_v7  ;;  %v9824_v3 = vpop.f32.mrb[10].mxu0  ;;  %v10090_v11 = vpack.c.bf16 %v23728_v36, %v23734_v33  ;;  %17089 = vmatpush3.bf16.msra.mxu1 %v18736_v12  ;;  %v24136_v33 = vld [vmem:[#allocation74_spill] sm:$0xff] }
 0xa83   : > { %v9825_v14 = vadd.f32 %v9824_v3, %v22001_v46  ;;  %v9826_v63 = vpop.f32.mrb[11].mxu0  ;;  %17090 = vmatprep.subr.bf16.mxu1 %v18737_v50  ;;  %v22080_v30 = vadd.f32 %v9821_v43, %v24047_v51  ;;  %v24064_v43 = vld [vmem:[#allocation37_spill] sm:$0xff]  ;;  %v24137_v13 = vmax.f32 %v24136_v33, 0.0 }
 0xa84   : > { %v22075_v40 = vadd.f32 %v9823_v39, %v24044_v22  ;;  %v9827_v17 = vadd.f32 %v9826_v63, %v22004_v7  ;;  %10294 = vmatprep.mubr.bf16.mxu1 %v10090_v11  ;;  %v24065_v27 = vmax.f32 %v24064_v43, 0.0 }
 0xa85   : > { %24048 = vst [vmem:[#allocation30_spill] sm:$0xff] %v22080_v30  ;;  %v22084_v45 = vadd.f32 %v9825_v14, %v24050_v10  ;;  %10295 = vmatmul.mubr.bf16.gmra.mrb[36].mxu1 %v10089_v28  ;;  %v23727_v42 = vmax.f32 %v22080_v30, 0.0 }
 0xa86   : > { %24045 = vst [vmem:[#allocation31_spill] sm:$0xff] %v22075_v40  ;;  %v22088_v20 = vadd.f32 %v9827_v17, %v24053_v55  ;;  %17091 = vmatpush3.bf16.msra.mxu1 %v18737_v50  ;;  %v23726_v44 = vmax.f32 %v22075_v40, 0.0  ;;  %v24062_v50 = vmax.f32 %v24061_v48, 0.0  ;;  %v24067_v55 = vld [vmem:[#allocation40_spill] sm:$0xff] }
 0xa87   : > { %24051 = vst [vmem:[#allocation32_spill] sm:$0xff] %v22084_v45  ;;  %v23723_v56 = vmax.f32 %v22084_v45, 0.0 }
 0xa88   : > { %24054 = vst [vmem:[#allocation33_spill] sm:$0xff] %v22088_v20  ;;  %v23720_v35 = vmax.f32 %v22088_v20, 0.0  ;;  %v9830_v32 = vpop.f32.mrb[12].mxu0 }
 0xa89   : > { %v9831_v62 = vadd.f32 %v9830_v32, %v22001_v46  ;;  %v9832_v2 = vpop.f32.mrb[13].mxu0  ;;  %v10091_v15 = vpack.c.bf16 %v23723_v56, %v23727_v42  ;;  %v24068_v32 = vmax.f32 %v24067_v55, 0.0 }
 0xa8a   : > { %v9833_v21 = vadd.f32 %v9832_v2, %v22004_v7  ;;  %v9834_v61 = vpop.f32.mrb[14].mxu0  ;;  %v10092_v49 = vpack.c.bf16 %v23720_v35, %v23726_v44  ;;  %v24124_v44 = vld [vmem:[#allocation72_spill] sm:$0xff] }
 0xa8b   : > { %v9835_v41 = vadd.f32 %v9834_v61, %v22001_v46  ;;  %v9836_v12 = vpop.f32.mrb[15].mxu0  ;;  %v22112_v5 = vadd.f32 %v9831_v62, %v24059_v0  ;;  %v24125_v42 = vmax.f32 %v24124_v44, 0.0 }
 0xa8c   : > { %v22107_v24 = vadd.f32 %v9833_v21, %v24056_v26  ;;  %v9837_v59 = vadd.f32 %v9836_v12, %v22004_v7  ;;  %10302 = vmatprep.mubr.bf16.mxu1 %v10092_v49  ;;  %v24070_v21 = vld [vmem:[#allocation38_spill] sm:$0xff]  ;;  %v24077_v26 = vmax.f32 %v24076_v53, 0.0 }
 0xa8d   : > { %24060 = vst [vmem:[#allocation34_spill] sm:$0xff] %v22112_v5  ;;  %v22116_v52 = vadd.f32 %v9835_v41, %v24062_v50  ;;  %10303 = vmatmul.mubr.bf16.gmra.mrb[40].mxu1 %v10091_v15  ;;  %v23719_v28 = vmax.f32 %v22112_v5, 0.0  ;;  %v24071_v61 = vmax.f32 %v24070_v21, 0.0  ;;  %v24073_v41 = vld [vmem:[#allocation41_spill] sm:$0xff] }
 0xa8e   : > { %24057 = vst [vmem:[#allocation35_spill] sm:$0xff] %v22107_v24  ;;  %v22120_v39 = vadd.f32 %v9837_v59, %v24065_v27  ;;  %v23718_v11 = vmax.f32 %v22107_v24, 0.0  ;;  %v24074_v12 = vmax.f32 %v24073_v41, 0.0  ;;  %v24085_v41 = vld [vmem:[#allocation45_spill] sm:$0xff] }
 0xa8f   : > { %24063 = vst [vmem:[#allocation36_spill] sm:$0xff] %v22116_v52  ;;  %v23715_v3 = vmax.f32 %v22116_v52, 0.0 }
 0xa90   : > { %24066 = vst [vmem:[#allocation37_spill] sm:$0xff] %v22120_v39  ;;  %v23712_v14 = vmax.f32 %v22120_v39, 0.0  ;;  %v9840_v63 = vpop.f32.mrb[16].mxu0 }
 0xa91   : > { %v9841_v57 = vadd.f32 %v9840_v63, %v22001_v46  ;;  %v9842_v22 = vpop.f32.mrb[17].mxu0  ;;  %v10093_v37 = vpack.c.bf16 %v23715_v3, %v23719_v28 }
 0xa92   : > { %v9843_v17 = vadd.f32 %v9842_v22, %v22004_v7  ;;  %v9844_v60 = vpop.f32.mrb[18].mxu0  ;;  %v10094_v51 = vpack.c.bf16 %v23712_v14, %v23718_v11  ;;  %v24112_v11 = vld [vmem:[#allocation70_spill] sm:$0xff] }
 0xa93   : > { %v9845_v6 = vadd.f32 %v9844_v60, %v22001_v46  ;;  %v9846_v10 = vpop.f32.mrb[19].mxu0  ;;  %v22144_v49 = vadd.f32 %v9841_v57, %v24071_v61  ;;  %v24113_v28 = vmax.f32 %v24112_v11, 0.0 }
 0xa94   : > { %v22139_v62 = vadd.f32 %v9843_v17, %v24068_v32  ;;  %v9847_v2 = vadd.f32 %v9846_v10, %v22004_v7  ;;  %10310 = vmatprep.mubr.bf16.mxu1 %v10094_v51  ;;  %v24079_v10 = vld [vmem:[#allocation44_spill] sm:$0xff] }
 0xa95   : > { %24072 = vst [vmem:[#allocation38_spill] sm:$0xff] %v22144_v49  ;;  %v22148_v15 = vadd.f32 %v9845_v6, %v24074_v12  ;;  %10311 = vmatmul.mubr.bf16.gmra.mrb[44].mxu1 %v10093_v37  ;;  %v23711_v43 = vmax.f32 %v22144_v49, 0.0  ;;  %v24080_v37 = vmax.f32 %v24079_v10, 0.0  ;;  %v24086_v12 = vmax.f32 %v24085_v41, 0.0 }
 0xa96   : > { %24069 = vst [vmem:[#allocation40_spill] sm:$0xff] %v22139_v62  ;;  %v22152_v59 = vadd.f32 %v9847_v2, %v24077_v26  ;;  %v23710_v0 = vmax.f32 %v22139_v62, 0.0  ;;  %v24082_v2 = vld [vmem:[#allocation43_spill] sm:$0xff]  ;;  %v24088_v26 = vld [vmem:[#allocation46_spill] sm:$0xff] }
 0xa97   : > { %24075 = vst [vmem:[#allocation41_spill] sm:$0xff] %v22148_v15  ;;  %v23707_v25 = vmax.f32 %v22148_v15, 0.0  ;;  %v24083_v21 = vmax.f32 %v24082_v2, 0.0 }
 0xa98   : > { %24078 = vst [vmem:[#allocation42_spill] sm:$0xff] %v22152_v59  ;;  %v23706_v48 = vmax.f32 %v22152_v59, 0.0  ;;  %v9850_v50 = vpop.f32.mrb[20].mxu0 }
 0xa99   : > { %v9851_v27 = vadd.f32 %v9850_v50, %v22001_v46  ;;  %v9852_v63 = vpop.f32.mrb[21].mxu0  ;;  %v10095_v6 = vpack.c.bf16 %v23707_v25, %v23711_v43  ;;  %v24089_v50 = vmax.f32 %v24088_v26, 0.0 }
 0xa9a   : > { %v9853_v57 = vadd.f32 %v9852_v63, %v22004_v7  ;;  %v9854_v22 = vpop.f32.mrb[22].mxu0  ;;  %v10096_v17 = vpack.c.bf16 %v23706_v48, %v23710_v0  ;;  %v24100_v0 = vld [vmem:[#allocation68_spill] sm:$0xff] }
 0xa9b   : > { %v9855_v60 = vadd.f32 %v9854_v22, %v22001_v46  ;;  %v9856_v51 = vpop.f32.mrb[23].mxu0  ;;  %v22176_v61 = vadd.f32 %v9851_v27, %v24083_v21  ;;  %v24101_v43 = vmax.f32 %v24100_v0, 0.0 }
 0xa9c   : > { %v22171_v55 = vadd.f32 %v9853_v57, %v24080_v37  ;;  %v9857_v32 = vadd.f32 %v9856_v51, %v22004_v7  ;;  %10318 = vmatprep.mubr.bf16.mxu1 %v10096_v17 }
 0xa9d   : > { %24084 = vst [vmem:[#allocation43_spill] sm:$0xff] %v22176_v61  ;;  %v22180_v53 = vadd.f32 %v9855_v60, %v24086_v12  ;;  %10319 = vmatmul.mubr.bf16.gmra.mrb[48].mxu1 %v10095_v6  ;;  %v23714_v10 = vmax.f32 %v22176_v61, 0.0  ;;  %v24091_v12 = vld [vmem:[#allocation48_spill] sm:$0xff] }
 0xa9e   : > { %24081 = vst [vmem:[#allocation44_spill] sm:$0xff] %v22171_v55  ;;  %v22184_v63 = vadd.f32 %v9857_v32, %v24089_v50  ;;  %v23709_v57 = vmax.f32 %v22171_v55, 0.0  ;;  %v24092_v26 = vmax.f32 %v24091_v12, 0.0 }
 0xa9f   : > { %24087 = vst [vmem:[#allocation45_spill] sm:$0xff] %v22180_v53  ;;  %v23713_v22 = vmax.f32 %v22180_v53, 0.0 }
 0xaa0   : > { %24090 = vst [vmem:[#allocation46_spill] sm:$0xff] %v22184_v63  ;;  %v23708_v51 = vmax.f32 %v22184_v63, 0.0  ;;  %v9860_v17 = vpop.f32.mrb[24].mxu0 }
 0xaa1   : > { %v9861_v27 = vadd.f32 %v9860_v17, %v22001_v46  ;;  %v9862_v37 = vpop.f32.mrb[25].mxu0  ;;  %v10097_v41 = vpack.c.bf16 %v23713_v22, %v23714_v10  ;;  %v24106_v22 = vld [vmem:[#allocation50_spill] sm:$0xff] }
 0xaa2   : > { %v9863_v60 = vadd.f32 %v9862_v37, %v22004_v7  ;;  %v9864_v2 = vpop.f32.mrb[26].mxu0  ;;  %v10098_v6 = vpack.c.bf16 %v23708_v51, %v23709_v57  ;;  %v24094_v37 = vld [vmem:[#allocation47_spill] sm:$0xff]  ;;  %v24097_v51 = vld [vmem:[#allocation49_spill] sm:$0xff]  ;;  %v24107_v10 = vmax.f32 %v24106_v22, 0.0 }
 0xaa3   : > { %v9865_v32 = vadd.f32 %v9864_v2, %v22001_v46  ;;  %v9866_v21 = vpop.f32.mrb[27].mxu0  ;;  %v24095_v48 = vmax.f32 %v24094_v37, 0.0  ;;  %v24098_v57 = vmax.f32 %v24097_v51, 0.0 }
 0xaa4   : > { %v22203_v50 = vadd.f32 %v9863_v60, %v24092_v26  ;;  %v9867_v17 = vadd.f32 %v9866_v21, %v22004_v7  ;;  %10326 = vmatprep.mubr.bf16.mxu1 %v10098_v6 }
 0xaa5   : > { %v22208_v25 = vadd.f32 %v9861_v27, %v24095_v48  ;;  %v22212_v2 = vadd.f32 %v9865_v32, %v24098_v57  ;;  %10327 = vmatmul.mubr.bf16.gmra.mrb[52].mxu1 %v10097_v41 }
 0xaa6   : > { %24093 = vst [vmem:[#allocation48_spill] sm:$0xff] %v22203_v50  ;;  %v22216_v14 = vadd.f32 %v9867_v17, %v24101_v43  ;;  %v23717_v60 = vmax.f32 %v22203_v50, 0.0  ;;  %v24103_v17 = vld [vmem:[#allocation51_spill] sm:$0xff]  ;;  %v10684_v50 = vld [vmem:[#allocation2 + $0xe0] sm:$0xff] }
 0xaa7   : > { %24096 = vst [vmem:[#allocation47_spill] sm:$0xff] %v22208_v25  ;;  %24099 = vst [vmem:[#allocation49_spill] sm:$0xff] %v22212_v2  ;;  %v23721_v12 = vmax.f32 %v22212_v2, 0.0  ;;  %v23722_v26 = vmax.f32 %v22208_v25, 0.0  ;;  %v24104_v37 = vmax.f32 %v24103_v17, 0.0 }
 0xaa8   : > { %24102 = vst [vmem:[#allocation68_spill] sm:$0xff] %v22216_v14  ;;  %v23716_v21 = vmax.f32 %v22216_v14, 0.0  ;;  %v9870_v6 = vpop.f32.mrb[28].mxu0 }
 0xaa9   : > { %v9871_v48 = vadd.f32 %v9870_v6, %v22001_v46  ;;  %v9872_v27 = vpop.f32.mrb[29].mxu0  ;;  %v10099_v41 = vpack.c.bf16 %v23721_v12, %v23722_v26  ;;  %v24118_v12 = vld [vmem:[#allocation52_spill] sm:$0xff] }
 0xaaa   : > { %v9873_v57 = vadd.f32 %v9872_v27, %v22004_v7  ;;  %v9874_v51 = vpop.f32.mrb[30].mxu0  ;;  %v10100_v0 = vpack.c.bf16 %v23716_v21, %v23717_v60  ;;  %v24109_v21 = vld [vmem:[#allocation69_spill] sm:$0xff]  ;;  %v24119_v26 = vmax.f32 %v24118_v12, 0.0 }
 0xaab   : > { %v9875_v43 = vadd.f32 %v9874_v51, %v22001_v46  ;;  %v9876_v32 = vpop.f32.mrb[31].mxu0  ;;  %v22240_v3 = vadd.f32 %v9871_v48, %v24107_v10  ;;  %v24110_v60 = vmax.f32 %v24109_v21, 0.0 }
 0xaac   : > { %v22235_v6 = vadd.f32 %v9873_v57, %v24104_v37  ;;  %v9877_v27 = vadd.f32 %v9876_v32, %v22004_v7  ;;  %10334 = vmatprep.mubr.bf16.mxu1 %v10100_v0  ;;  %v24115_v37 = vld [vmem:[#allocation53_spill] sm:$0xff] }
 0xaad   : > { %24108 = vst [vmem:[#allocation50_spill] sm:$0xff] %v22240_v3  ;;  %v22244_v51 = vadd.f32 %v9875_v43, %v24110_v60  ;;  %10335 = vmatmul.mubr.bf16.gmra.mrb[56].mxu1 %v10099_v41  ;;  %v23730_v22 = vmax.f32 %v22240_v3, 0.0 }
 0xaae   : > { %24105 = vst [vmem:[#allocation51_spill] sm:$0xff] %v22235_v6  ;;  %v22248_v35 = vadd.f32 %v9877_v27, %v24113_v28  ;;  %v23725_v57 = vmax.f32 %v22235_v6, 0.0  ;;  %v24116_v27 = vmax.f32 %v24115_v37, 0.0 }
 0xaaf   : > { %24111 = vst [vmem:[#allocation69_spill] sm:$0xff] %v22244_v51  ;;  %v23729_v17 = vmax.f32 %v22244_v51, 0.0 }
 0xab0   : > { %24114 = vst [vmem:[#allocation70_spill] sm:$0xff] %v22248_v35  ;;  %v23724_v32 = vmax.f32 %v22248_v35, 0.0  ;;  %v9880_v0 = vpop.f32.mrb[32].mxu0 }
 0xab1   : > { %v9881_v10 = vadd.f32 %v9880_v0, %v22001_v46  ;;  %v9882_v48 = vpop.f32.mrb[33].mxu0  ;;  %v10101_v41 = vpack.c.bf16 %v23729_v17, %v23730_v22  ;;  %v24130_v17 = vld [vmem:[#allocation54_spill] sm:$0xff] }
 0xab2   : > { %v9883_v60 = vadd.f32 %v9882_v48, %v22004_v7  ;;  %v9884_v21 = vpop.f32.mrb[34].mxu0  ;;  %v10102_v11 = vpack.c.bf16 %v23724_v32, %v23725_v57  ;;  %v24121_v32 = vld [vmem:[#allocation71_spill] sm:$0xff]  ;;  %v24131_v22 = vmax.f32 %v24130_v17, 0.0 }
 0xab3   : > { %v9885_v28 = vadd.f32 %v9884_v21, %v22001_v46  ;;  %v9886_v43 = vpop.f32.mrb[35].mxu0  ;;  %v22272_v56 = vadd.f32 %v9881_v10, %v24119_v26  ;;  %v24122_v57 = vmax.f32 %v24121_v32, 0.0 }
 0xab4   : > { %v22267_v0 = vadd.f32 %v9883_v60, %v24116_v27  ;;  %v9887_v48 = vadd.f32 %v9886_v43, %v22004_v7  ;;  %10342 = vmatprep.mubr.bf16.mxu1 %v10102_v11  ;;  %v24127_v27 = vld [vmem:[#allocation55_spill] sm:$0xff] }
 0xab5   : > { %24120 = vst [vmem:[#allocation52_spill] sm:$0xff] %v22272_v56  ;;  %v22276_v21 = vadd.f32 %v9885_v28, %v24122_v57  ;;  %10343 = vmatmul.mubr.bf16.gmra.mrb[60].mxu1 %v10101_v41  ;;  %v23738_v12 = vmax.f32 %v22272_v56, 0.0 }
 0xab6   : > { %24117 = vst [vmem:[#allocation53_spill] sm:$0xff] %v22267_v0  ;;  %v22280_v36 = vadd.f32 %v9887_v48, %v24125_v42  ;;  %v23733_v60 = vmax.f32 %v22267_v0, 0.0  ;;  %v24128_v48 = vmax.f32 %v24127_v27, 0.0 }
 0xab7   : > { %24123 = vst [vmem:[#allocation71_spill] sm:$0xff] %v22276_v21  ;;  %v23737_v37 = vmax.f32 %v22276_v21, 0.0  ;;  %v10630_v21 = vld [vmem:[#allocation2 + $0x50] sm:$0xff] }
 0xab8   : > { %24126 = vst [vmem:[#allocation72_spill] sm:$0xff] %v22280_v36  ;;  %v23732_v43 = vmax.f32 %v22280_v36, 0.0  ;;  %v9890_v11 = vpop.f32.mrb[36].mxu0  ;;  %v10624_v36 = vld [vmem:[#allocation2 + $0x40] sm:$0xff] }
 0xab9   : > { %v9891_v26 = vadd.f32 %v9890_v11, %v22001_v46  ;;  %v9892_v10 = vpop.f32.mrb[37].mxu0  ;;  %v10103_v41 = vpack.c.bf16 %v23737_v37, %v23738_v12  ;;  %v24142_v37 = vld [vmem:[#allocation56_spill] sm:$0xff] }
 0xaba   : > { %v9893_v57 = vadd.f32 %v9892_v10, %v22004_v7  ;;  %v9894_v32 = vpop.f32.mrb[38].mxu0  ;;  %v10104_v44 = vpack.c.bf16 %v23732_v43, %v23733_v60  ;;  %v24133_v43 = vld [vmem:[#allocation73_spill] sm:$0xff]  ;;  %v24143_v12 = vmax.f32 %v24142_v37, 0.0 }
 0xabb   : > { %v9895_v42 = vadd.f32 %v9894_v32, %v22001_v46  ;;  %v9896_v28 = vpop.f32.mrb[39].mxu0  ;;  %v22304_v9 = vadd.f32 %v9891_v26, %v24131_v22  ;;  %v24134_v60 = vmax.f32 %v24133_v43, 0.0 }
 0xabc   : > { %v22299_v11 = vadd.f32 %v9893_v57, %v24128_v48  ;;  %v9897_v10 = vadd.f32 %v9896_v28, %v22004_v7  ;;  %10350 = vmatprep.mubr.bf16.mxu1 %v10104_v44  ;;  %v24139_v48 = vld [vmem:[#allocation57_spill] sm:$0xff] }
 0xabd   : > { %24132 = vst [vmem:[#allocation54_spill] sm:$0xff] %v22304_v9  ;;  %v22308_v32 = vadd.f32 %v9895_v42, %v24134_v60  ;;  %10351 = vmatmul.mubr.bf16.gmra.mrb[64].mxu1 %v10103_v41  ;;  %v23746_v17 = vmax.f32 %v22304_v9, 0.0  ;;  %v10618_v9 = vld [vmem:[#allocation2 + $0x30] sm:$0xff] }
 0xabe   : > { %24129 = vst [vmem:[#allocation55_spill] sm:$0xff] %v22299_v11  ;;  %v22312_v8 = vadd.f32 %v9897_v10, %v24137_v13  ;;  %v23741_v57 = vmax.f32 %v22299_v11, 0.0  ;;  %v24140_v10 = vmax.f32 %v24139_v48, 0.0  ;;  %v10612_v11 = vld [vmem:[#allocation2 + $0x20] sm:$0xff] }
 0xabf   : > { %24135 = vst [vmem:[#allocation73_spill] sm:$0xff] %v22308_v32  ;;  %v23745_v27 = vmax.f32 %v22308_v32, 0.0 }
 0xac0   : > { %24138 = vst [vmem:[#allocation74_spill] sm:$0xff] %v22312_v8  ;;  %v23740_v28 = vmax.f32 %v22312_v8, 0.0  ;;  %v9900_v44 = vpop.f32.mrb[40].mxu0 }
 0xac1   : > { %v9901_v22 = vadd.f32 %v9900_v44, %v22001_v46  ;;  %v9902_v26 = vpop.f32.mrb[41].mxu0  ;;  %v10105_v41 = vpack.c.bf16 %v23745_v27, %v23746_v17  ;;  %v24154_v27 = vld [vmem:[#allocation58_spill] sm:$0xff] }
 0xac2   : > { %v9903_v60 = vadd.f32 %v9902_v26, %v22004_v7  ;;  %v9904_v43 = vpop.f32.mrb[42].mxu0  ;;  %v10106_v33 = vpack.c.bf16 %v23740_v28, %v23741_v57  ;;  %v24145_v28 = vld [vmem:[#allocation75_spill] sm:$0xff]  ;;  %v24155_v17 = vmax.f32 %v24154_v27, 0.0 }
 0xac3   : > { %v9905_v13 = vadd.f32 %v9904_v43, %v22001_v46  ;;  %v9906_v42 = vpop.f32.mrb[43].mxu0  ;;  %v22336_v23 = vadd.f32 %v9901_v22, %v24143_v12  ;;  %v24146_v57 = vmax.f32 %v24145_v28, 0.0 }
 0xac4   : > { %v22331_v44 = vadd.f32 %v9903_v60, %v24140_v10  ;;  %v9907_v26 = vadd.f32 %v9906_v42, %v22004_v7  ;;  %10358 = vmatprep.mubr.bf16.mxu1 %v10106_v33  ;;  %v24151_v10 = vld [vmem:[#allocation59_spill] sm:$0xff] }
 0xac5   : > { %24144 = vst [vmem:[#allocation56_spill] sm:$0xff] %v22336_v23  ;;  %v22340_v43 = vadd.f32 %v9905_v13, %v24146_v57  ;;  %10359 = vmatmul.mubr.bf16.gmra.mrb[68].mxu1 %v10105_v41  ;;  %v23754_v37 = vmax.f32 %v22336_v23, 0.0 }
 0xac6   : > { %24141 = vst [vmem:[#allocation57_spill] sm:$0xff] %v22331_v44  ;;  %v22344_v8 = vadd.f32 %v9907_v26, %v24149_v4  ;;  %v23749_v60 = vmax.f32 %v22331_v44, 0.0  ;;  %v24152_v26 = vmax.f32 %v24151_v10, 0.0 }
 0xac7   : > { %24147 = vst [vmem:[#allocation75_spill] sm:$0xff] %v22340_v43  ;;  %v23753_v48 = vmax.f32 %v22340_v43, 0.0 }
 0xac8   : > { %24150 = vst [vmem:[#allocation76_spill] sm:$0xff] %v22344_v8  ;;  %v23748_v42 = vmax.f32 %v22344_v8, 0.0  ;;  %v9910_v33 = vpop.f32.mrb[44].mxu0  ;;  %v24160_v8 = vld [vmem:[#allocation78_spill] sm:$0xff] }
 0xac9   : > { %v9911_v12 = vadd.f32 %v9910_v33, %v22001_v46  ;;  %v9912_v22 = vpop.f32.mrb[45].mxu0  ;;  %v10107_v41 = vpack.c.bf16 %v23753_v48, %v23754_v37  ;;  %v24161_v23 = vmax.f32 %v24160_v8, 0.0  ;;  %v24166_v48 = vld [vmem:[#allocation60_spill] sm:$0xff] }
 0xaca   : > { %v9913_v57 = vadd.f32 %v9912_v22, %v22004_v7  ;;  %v9914_v28 = vpop.f32.mrb[46].mxu0  ;;  %v10108_v18 = vpack.c.bf16 %v23748_v42, %v23749_v60  ;;  %v24157_v42 = vld [vmem:[#allocation77_spill] sm:$0xff]  ;;  %v24167_v37 = vmax.f32 %v24166_v48, 0.0 }
 0xacb   : > { %v9915_v4 = vadd.f32 %v9914_v28, %v22001_v46  ;;  %v9916_v13 = vpop.f32.mrb[47].mxu0  ;;  %v22368_v44 = vadd.f32 %v9911_v12, %v24155_v17  ;;  %v24158_v60 = vmax.f32 %v24157_v42, 0.0 }
 0xacc   : > { %v22363_v33 = vadd.f32 %v9913_v57, %v24152_v26  ;;  %v9917_v22 = vadd.f32 %v9916_v13, %v22004_v7  ;;  %10366 = vmatprep.mubr.bf16.mxu1 %v10108_v18  ;;  %v24163_v26 = vld [vmem:[#allocation61_spill] sm:$0xff] }
 0xacd   : > { %24156 = vst [vmem:[#allocation58_spill] sm:$0xff] %v22368_v44  ;;  %v22372_v28 = vadd.f32 %v9915_v4, %v24158_v60  ;;  %10367 = vmatmul.mubr.bf16.gmra.mrb[72].mxu1 %v10107_v41  ;;  %v23762_v27 = vmax.f32 %v22368_v44, 0.0 }
 0xace   : > { %24153 = vst [vmem:[#allocation59_spill] sm:$0xff] %v22363_v33  ;;  %v22376_v43 = vadd.f32 %v9917_v22, %v24161_v23  ;;  %v23757_v57 = vmax.f32 %v22363_v33, 0.0  ;;  %v24164_v22 = vmax.f32 %v24163_v26, 0.0 }
 0xacf   : > { %24159 = vst [vmem:[#allocation77_spill] sm:$0xff] %v22372_v28  ;;  %v23761_v10 = vmax.f32 %v22372_v28, 0.0 }
 0xad0   : > { %24162 = vst [vmem:[#allocation78_spill] sm:$0xff] %v22376_v43  ;;  %v23756_v13 = vmax.f32 %v22376_v43, 0.0  ;;  %v9920_v18 = vpop.f32.mrb[48].mxu0  ;;  %v24172_v43 = vld [vmem:[#allocation80_spill] sm:$0xff] }
 0xad1   : > { %v9921_v17 = vadd.f32 %v9920_v18, %v22001_v46  ;;  %v9922_v12 = vpop.f32.mrb[49].mxu0  ;;  %v10109_v41 = vpack.c.bf16 %v23761_v10, %v23762_v27  ;;  %v24173_v44 = vmax.f32 %v24172_v43, 0.0  ;;  %v18738_v10 = vld [vmem:[#allocation9 + $0x18] sm:$0xff]  }
 0xad2   : > { %v9923_v60 = vadd.f32 %v9922_v12, %v22004_v7  ;;  %v9924_v42 = vpop.f32.mrb[50].mxu0  ;;  %v10110_v23 = vpack.c.bf16 %v23756_v13, %v23757_v57  ;;  %v24169_v13 = vld [vmem:[#allocation79_spill] sm:$0xff]  ;;  %17092 = vmatprep.subr.bf16.mxu1 %v18738_v10 }
 0xad3   : > { %v9925_v8 = vadd.f32 %v9924_v42, %v22001_v46  ;;  %v9926_v4 = vpop.f32.mrb[51].mxu0  ;;  %v22400_v33 = vadd.f32 %v9921_v17, %v24167_v37  ;;  %v24170_v57 = vmax.f32 %v24169_v13, 0.0  ;;  %17093 = vmatpush3.bf16.msra.mxu1 %v18738_v10 }
 0xad4   : > { %v22395_v18 = vadd.f32 %v9923_v60, %v24164_v22  ;;  %v9927_v12 = vadd.f32 %v9926_v4, %v22004_v7  ;;  %10374 = vmatprep.mubr.bf16.mxu1 %v10110_v23  ;;  %v24175_v22 = vld [vmem:[#allocation63_spill] sm:$0xff] }
 0xad5   : > { %24168 = vst [vmem:[#allocation60_spill] sm:$0xff] %v22400_v33  ;;  %v22404_v42 = vadd.f32 %v9925_v8, %v24170_v57  ;;  %10375 = vmatmul.mubr.bf16.gmra.mrb[76].mxu1 %v10109_v41  ;;  %v23770_v48 = vmax.f32 %v22400_v33, 0.0 }
 0xad6   : > { %24165 = vst [vmem:[#allocation61_spill] sm:$0xff] %v22395_v18  ;;  %v22408_v28 = vadd.f32 %v9927_v12, %v24173_v44  ;;  %v23765_v26 = vmax.f32 %v22395_v18, 0.0  ;;  %v24176_v12 = vmax.f32 %v24175_v22, 0.0 }
 0xad7   : > { %24171 = vst [vmem:[#allocation79_spill] sm:$0xff] %v22404_v42  ;;  %v23769_v60 = vmax.f32 %v22404_v42, 0.0 }
 0xad8   : > { %24174 = vst [vmem:[#allocation80_spill] sm:$0xff] %v22408_v28  ;;  %v23764_v23 = vmax.f32 %v22408_v28, 0.0  ;;  %v9930_v4 = vpop.f32.mrb[52].mxu0  ;;  %v24184_v28 = vld [vmem:[#allocation82_spill] sm:$0xff] }
 0xad9   : > { %v9931_v37 = vadd.f32 %v9930_v4, %v22001_v46  ;;  %v9932_v57 = vpop.f32.mrb[53].mxu0  ;;  %v10111_v41 = vpack.c.bf16 %v23769_v60, %v23770_v48  ;;  %v24185_v33 = vmax.f32 %v24184_v28, 0.0  ;;  %v24190_v60 = vld [vmem:[#allocation64_spill] sm:$0xff] }
 0xada   : > { %v9933_v13 = vadd.f32 %v9932_v57, %v22004_v7  ;;  %v9934_v43 = vpop.f32.mrb[54].mxu0  ;;  %v10112_v44 = vpack.c.bf16 %v23764_v23, %v23765_v26  ;;  %v24178_v57 = vld [vmem:[#allocation62_spill] sm:$0xff]  ;;  %v24181_v23 = vld [vmem:[#allocation81_spill] sm:$0xff]  ;;  %v24191_v48 = vmax.f32 %v24190_v60, 0.0 }
 0xadb   : > { %v9935_v17 = vadd.f32 %v9934_v43, %v22001_v46  ;;  %v9936_v8 = vpop.f32.mrb[55].mxu0  ;;  %v24179_v27 = vmax.f32 %v24178_v57, 0.0  ;;  %v24182_v26 = vmax.f32 %v24181_v23, 0.0 }
 0xadc   : > { %v22427_v4 = vadd.f32 %v9933_v13, %v24176_v12  ;;  %v9937_v10 = vadd.f32 %v9936_v8, %v22004_v7  ;;  %10382 = vmatprep.mubr.bf16.mxu1 %v10112_v44 }
 0xadd   : > { %v22432_v18 = vadd.f32 %v9931_v37, %v24179_v27  ;;  %v22436_v43 = vadd.f32 %v9935_v17, %v24182_v26  ;;  %10383 = vmatmul.mubr.bf16.gmra.mrb[80].mxu1 %v10111_v41 }
 0xade   : > { %24177 = vst [vmem:[#allocation63_spill] sm:$0xff] %v22427_v4  ;;  %v22440_v42 = vadd.f32 %v9937_v10, %v24185_v33  ;;  %v23773_v13 = vmax.f32 %v22427_v4, 0.0  ;;  %v24187_v10 = vld [vmem:[#allocation65_spill] sm:$0xff] }
 0xadf   : > { %24180 = vst [vmem:[#allocation62_spill] sm:$0xff] %v22432_v18  ;;  %24183 = vst [vmem:[#allocation81_spill] sm:$0xff] %v22436_v43  ;;  %v23777_v22 = vmax.f32 %v22436_v43, 0.0  ;;  %v23778_v12 = vmax.f32 %v22432_v18, 0.0  ;;  %v24188_v57 = vmax.f32 %v24187_v10, 0.0 }
 0xae0   : > { %24186 = vst [vmem:[#allocation82_spill] sm:$0xff] %v22440_v42  ;;  %v23772_v8 = vmax.f32 %v22440_v42, 0.0  ;;  %v9940_v44 = vpop.f32.mrb[56].mxu0  ;;  %v24196_v42 = vld [vmem:[#allocation84_spill] sm:$0xff] }
 0xae1   : > { %v9941_v27 = vadd.f32 %v9940_v44, %v22001_v46  ;;  %v9942_v37 = vpop.f32.mrb[57].mxu0  ;;  %v10113_v41 = vpack.c.bf16 %v23777_v22, %v23778_v12  ;;  %v24197_v18 = vmax.f32 %v24196_v42, 0.0 }
 0xae2   : > { %v9943_v26 = vadd.f32 %v9942_v37, %v22004_v7  ;;  %v9944_v23 = vpop.f32.mrb[58].mxu0  ;;  %v10114_v33 = vpack.c.bf16 %v23772_v8, %v23773_v13  ;;  %v24193_v8 = vld [vmem:[#allocation83_spill] sm:$0xff] }
 0xae3   : > { %v9945_v28 = vadd.f32 %v9944_v23, %v22001_v46  ;;  %v9946_v17 = vpop.f32.mrb[59].mxu0  ;;  %v22464_v4 = vadd.f32 %v9941_v27, %v24191_v48  ;;  %v24194_v13 = vmax.f32 %v24193_v8, 0.0 }
 0xae4   : > { %v22459_v44 = vadd.f32 %v9943_v26, %v24188_v57  ;;  %v9947_v37 = vadd.f32 %v9946_v17, %v22004_v7  ;;  %10390 = vmatprep.mubr.bf16.mxu1 %v10114_v33  ;;  %v18739_v57 = vld [vmem:[#allocation9 + $0x20] sm:$0xff]  }
 0xae5   : > { %24192 = vst [vmem:[#allocation64_spill] sm:$0xff] %v22464_v4  ;;  %v22468_v23 = vadd.f32 %v9945_v28, %v24194_v13  ;;  %10391 = vmatmul.mubr.bf16.gmra.mrb[84].mxu1 %v10113_v41  ;;  %v23784_v60 = vmax.f32 %v22464_v4, 0.0  ;;  %17094 = vmatprep.subr.bf16.mxu1 %v18739_v57 }
 0xae6   : > { %24189 = vst [vmem:[#allocation65_spill] sm:$0xff] %v22459_v44  ;;  %v22472_v43 = vadd.f32 %v9947_v37, %v24197_v18  ;;  %v23782_v26 = vmax.f32 %v22459_v44, 0.0  ;;  %v18740_v37 = vld [vmem:[#allocation9 + $0x28] sm:$0xff]   ;;  %17095 = vmatpush3.bf16.msra.mxu1 %v18739_v57 }
 0xae7   : > { %24195 = vst [vmem:[#allocation83_spill] sm:$0xff] %v22468_v23  ;;  %v23783_v10 = vmax.f32 %v22468_v23, 0.0  ;;  %v24202_v44 = vld [vmem:[#allocation66_spill] sm:$0xff]  ;;  %17096 = vmatprep.subr.bf16.mxu1 %v18740_v37 }
 0xae8   : > { %24198 = vst [vmem:[#allocation84_spill] sm:$0xff] %v22472_v43  ;;  %v23781_v17 = vmax.f32 %v22472_v43, 0.0  ;;  %v9950_v33 = vpop.f32.mrb[60].mxu0  ;;  %v24203_v43 = vmax.f32 %v24202_v44, 0.0 }
 0xae9   : > { %v9951_v48 = vadd.f32 %v9950_v33, %v22001_v46  ;;  %v9952_v27 = vpop.f32.mrb[61].mxu0  ;;  %v10115_v41 = vpack.c.bf16 %v23783_v10, %v23784_v60  ;;  %v24199_v33 = vld [vmem:[#allocation67_spill] sm:$0xff]  ;;  %v24208_v10 = vld [vmem:[#allocation86_spill] sm:$0xff] }
 0xaea   : > { %v9953_v13 = vadd.f32 %v9952_v27, %v22004_v7  ;;  %v9954_v8 = vpop.f32.mrb[62].mxu0  ;;  %v10116_v18 = vpack.c.bf16 %v23781_v17, %v23782_v26  ;;  %v24200_v22 = vmax.f32 %v24199_v33, 0.0  ;;  %v24209_v60 = vmax.f32 %v24208_v10, 0.0  ;;  %17097 = vmatpush3.bf16.msra.mxu1 %v18740_v37 }
 0xaeb   : > { %v9955_v42 = vadd.f32 %v9954_v8, %v22001_v46  ;;  %v9956_v28 = vpop.f32.mrb[63].mxu0  ;;  %v22496_v17 = vadd.f32 %v9951_v48, %v24203_v43  ;;  %v24205_v46 = vld [vmem:[#allocation85_spill] sm:$0xff] }
 0xaec   : > { %v22491_v12 = vadd.f32 %v9953_v13, %v24200_v22  ;;  %v9957_v27 = vadd.f32 %v9956_v28, %v22004_v7  ;;  %10398 = vmatprep.mubr.bf16.mxu1 %v10116_v18  ;;  %v24206_v8 = vmax.f32 %v24205_v46, 0.0  ;;  %v18742_v13 = vld [vmem:[#allocation9 + $0x38] sm:$0xff]   ;;  %v22518_v18 = vld [vmem:[#allocation2] sm:$0xff] }
 0xaed   : > { %24204 = vst [vmem:[#allocation66_spill] sm:$0xff] %v22496_v17  ;;  %10399 = vmatmul.mubr.bf16.gmra.mrb[88].mxu1 %v10115_v41  ;;  %v23789_v43 = vmax.f32 %v22496_v17, 0.0  ;;  %v22524_v41 = vld [vmem:[%s24211_s16] ss:$0 sm:$0xff] }
 0xaee   : > { %24201 = vst [vmem:[#allocation67_spill] sm:$0xff] %v22491_v12  ;;  %v22500_v26 = vadd.f32 %v9955_v42, %v24206_v8  ;;  %v22504_v23 = vadd.f32 %v9957_v27, %v24209_v60  ;;  %v23788_v7 = vmax.f32 %v22491_v12, 0.0  ;;  %v18741_v60 = vld [vmem:[#allocation9 + $0x30] sm:$0xff]   ;;  %v18743_v42 = vld [vmem:[#allocation9 + $0x40] sm:$0xff]  }
 0xaef   : > { %17098 = vmatprep.subr.bf16.mxu1 %v18741_v60 }
 0xaf0   : > { %24207 = vst [vmem:[#allocation85_spill] sm:$0xff] %v22500_v26  ;;  %24210 = vst [vmem:[#allocation86_spill] sm:$0xff] %v22504_v23  ;;  %v23787_v22 = vmax.f32 %v22500_v26, 0.0  ;;  %v23786_v44 = vmax.f32 %v22504_v23, 0.0  ;;  %17099 = vmatpush3.bf16.msra.mxu1 %v18741_v60 }
 0xaf1   : > { %17100 = vmatprep.subr.bf16.mxu1 %v18742_v13 }
 0xaf2   : > { %v10118_v48 = vpack.c.bf16 %v23786_v44, %v23788_v7  ;;  %v10117_v10 = vpack.c.bf16 %v23787_v22, %v23789_v43 }
 0xaf4   : > { %10406 = vmatprep.mubr.bf16.mxu1 %v10118_v48  ;;  %17101 = vmatpush3.bf16.msra.mxu1 %v18742_v13 }
 0xaf5   : > { %10407 = vmatmul.mubr.bf16.gmra.mrb[92].mxu1 %v10117_v10  ;;  %17134 = vmatprep.subr.bf16.mxu1 %v18743_v42 }
 0xaf6   : > { %17102 = vmatprep.mubr.bf16.mxu1 %v22518_v18 }
 0xb50   : > { %v15862_v28 = vpop.f32.mrb[32].mxu1 }
 0xb51   : > { %v15863_v57 = vpop.f32.mrb[33].mxu1 }
 0xb52   : > { %v15864_v37 = vadd.f32 %v15863_v57, %v15862_v28  ;;  %v15865_v33 = vpop.f32.mrb[34].mxu1 }
 0xb53   : > { %v15866_v27 = vpop.f32.mrb[35].mxu1 }
 0xb54   : > { %v10289_v46 = vadd.f32 %v15864_v37, %v22524_v41  ;;  %v15867_v8 = vadd.f32 %v15866_v27, %v15865_v33  ;;  %v10609_v37 = vld [vmem:[#allocation2 + $0x18] sm:$0x1] }
 0xb56   : > { %v10292_v48 = vadd.f32 %v15867_v8, %v22524_v41  ;;  %v10415_v10 = vmax.f32 %v10289_v46, 0.0 }
 0xb58   : > { %v10416_v60 = vmax.f32 %v10292_v48, 0.0  ;;  %v15868_v13 = vpop.f32.mrb[36].mxu1 }
 0xb59   : > { %v15869_v44 = vpop.f32.mrb[37].mxu1 }
 0xb5a   : > { %v10447_v22 = vpack.c.bf16 %v10416_v60, %v10415_v10  ;;  %v15870_v7 = vadd.f32 %v15869_v44, %v15868_v13  ;;  %v15871_v43 = vpop.f32.mrb[38].mxu1  ;;  %v18744_v10 = vld [vmem:[#allocation9 + $0x48] sm:$0xff]   ;;  %v18840_v60 = vld [vmem:[#allocation2 + $0x10] sm:$0xff] }
 0xb5b   : > { %v15872_v23 = vpop.f32.mrb[39].mxu1  ;;  %v18753_v13 = vld [vmem:[#allocation9 + $0x90] sm:$0xff]  }
 0xb5c   : > { %v10464_v26 = vshrl.u32 %v10447_v22, 16  ;;  %v10297_v12 = vadd.f32 %v15870_v7, %v22524_v41  ;;  %v15873_v17 = vadd.f32 %v15872_v23, %v15871_v43  ;;  %v10467_v57 = vshll.u32 %v10447_v22, 16 }
 0xb5e   : > { %v10466_v28 = vrot.slane %v10464_v26, 7  ;;  %v10300_v4 = vadd.f32 %v15873_v17, %v22524_v41  ;;  %v10417_v8 = vmax.f32 %v10297_v12, 0.0 }
 0xb60   : > { %v10469_v33 = vor.u32 %v10467_v57, %v10466_v28  ;;  %v10610_v46 = vsel %vm19513_vm4, %v10466_v28, %v10609_v37  ;;  %v10418_v48 = vmax.f32 %v10300_v4, 0.0  ;;  %v15874_v32 = vpop.f32.mrb[40].mxu1  ;;  %v18745_v28 = vld [vmem:[#allocation9 + $0x50] sm:$0xff]  }
 0xb61   : > { %10611 = vst [vmem:[#allocation2 + $0x18] sm:$0x1] %v10610_v46  ;;  %v15875_v44 = vpop.f32.mrb[41].mxu1  ;;  %v10615_v46 = vld [vmem:[#allocation2 + $0x28] sm:$0x1] }
 0xb62   : > { %v22534_v7 = vsel %vm19636_vm6, %v10469_v33, %v18840_v60  ;;  %v10448_v23 = vpack.c.bf16 %v10418_v48, %v10417_v8  ;;  %v15876_v26 = vadd.f32 %v15875_v44, %v15874_v32  ;;  %v15877_v22 = vpop.f32.mrb[42].mxu1 }
 0xb63   : > { %10608 = vst [vmem:[#allocation2 + $0x10] sm:$0xff] %v22534_v7  ;;  %v15878_v17 = vpop.f32.mrb[43].mxu1  ;;  %17103 = vmatmul.mubr.bf16.vlgmr.msra.gmra.mrb[96].mxu1 %v22534_v7 }
 0xb64   : > { %v10471_v43 = vshrl.u32 %v10448_v23, 16  ;;  %v10305_v4 = vadd.f32 %v15876_v26, %v22524_v41  ;;  %v15879_v12 = vadd.f32 %v15878_v17, %v15877_v22  ;;  %17135 = vmatpush3.bf16.msra.mxu1 %v18743_v42  ;;  %v10474_v37 = vshll.u32 %v10448_v23, 16  ;;  %v18746_v42 = vld [vmem:[#allocation9 + $0x58] sm:$0xff]  }
 0xb65   : > { %17136 = vmatprep.subr.bf16.mxu1 %v18744_v10 }
 0xb66   : > { %v10473_v57 = vrot.slane %v10471_v43, 7  ;;  %v10308_v33 = vadd.f32 %v15879_v12, %v22524_v41  ;;  %v10419_v48 = vmax.f32 %v10305_v4, 0.0 }
 0xb68   : > { %v10476_v8 = vor.u32 %v10474_v37, %v10473_v57  ;;  %v10616_v32 = vsel %vm19513_vm4, %v10473_v57, %v10615_v46  ;;  %v10420_v44 = vmax.f32 %v10308_v33, 0.0  ;;  %v15880_v60 = vpop.f32.mrb[44].mxu1  ;;  %17137 = vmatpush3.bf16.msra.mxu1 %v18744_v10  ;;  %v18747_v37 = vld [vmem:[#allocation9 + $0x60] sm:$0xff]  }
 0xb69   : > { %10617 = vst [vmem:[#allocation2 + $0x28] sm:$0x1] %v10616_v32  ;;  %v15881_v26 = vpop.f32.mrb[45].mxu1  ;;  %17138 = vmatprep.subr.bf16.mxu1 %v18745_v28 }
 0xb6a   : > { %v22544_v22 = vsel %vm19636_vm6, %v10476_v8, %v10612_v11  ;;  %v10449_v23 = vpack.c.bf16 %v10420_v44, %v10419_v48  ;;  %v15882_v17 = vadd.f32 %v15881_v26, %v15880_v60  ;;  %v15883_v43 = vpop.f32.mrb[46].mxu1  ;;  %v10621_v8 = vld [vmem:[#allocation2 + $0x38] sm:$0x1]  ;;  %v12622_v47 = vld [vmem:[#allocation2 + $0x10] sm:$0xfe] }
 0xb6b   : > { %10614 = vst [vmem:[#allocation2 + $0x20] sm:$0xff] %v22544_v22  ;;  %v15884_v12 = vpop.f32.mrb[47].mxu1  ;;  %17106 = vmatprep.mubr.bf16.mxu1 %v22544_v22 }
 0xb6c   : > { %v10478_v4 = vshrl.u32 %v10449_v23, 16  ;;  %v10313_v10 = vadd.f32 %v15882_v17, %v22524_v41  ;;  %v15885_v57 = vadd.f32 %v15884_v12, %v15883_v43  ;;  %17139 = vmatpush3.bf16.msra.mxu1 %v18745_v28  ;;  %v10481_v46 = vshll.u32 %v10449_v23, 16  ;;  %v18748_v28 = vld [vmem:[#allocation9 + $0x68] sm:$0xff]  }
 0xb6d   : > { %17140 = vmatprep.subr.bf16.mxu1 %v18746_v42 }
 0xb6e   : > { %v10480_v33 = vrot.slane %v10478_v4, 7  ;;  %v10316_v11 = vadd.f32 %v15885_v57, %v22524_v41  ;;  %v10421_v44 = vmax.f32 %v10313_v10, 0.0 }
 0xb70   : > { %v10483_v32 = vor.u32 %v10481_v46, %v10480_v33  ;;  %v10622_v48 = vsel %vm19513_vm4, %v10480_v33, %v10621_v8  ;;  %v10422_v60 = vmax.f32 %v10316_v11, 0.0  ;;  %v15886_v26 = vpop.f32.mrb[48].mxu1  ;;  %17141 = vmatpush3.bf16.msra.mxu1 %v18746_v42  ;;  %v18749_v46 = vld [vmem:[#allocation9 + $0x70] sm:$0xff]   ;;  %v22683_v61 = vld [vmem:[#allocation2 + $0x28] sm:$0x1] }
 0xb71   : > { %10623 = vst [vmem:[#allocation2 + $0x38] sm:$0x1] %v10622_v48  ;;  %v15887_v17 = vpop.f32.mrb[49].mxu1  ;;  %17142 = vmatprep.subr.bf16.mxu1 %v18747_v37 }
 0xb72   : > { %v22554_v43 = vsel %vm19636_vm6, %v10483_v32, %v10618_v9  ;;  %v10450_v23 = vpack.c.bf16 %v10422_v60, %v10421_v44  ;;  %v15888_v12 = vadd.f32 %v15887_v17, %v15886_v26  ;;  %v15889_v4 = vpop.f32.mrb[50].mxu1  ;;  %v10627_v32 = vld [vmem:[#allocation2 + $0x48] sm:$0x1] }
 0xb73   : > { %10620 = vst [vmem:[#allocation2 + $0x30] sm:$0xff] %v22554_v43  ;;  %v15890_v57 = vpop.f32.mrb[51].mxu1  ;;  %17107 = vmatmul.mubr.bf16.gmra.mrb[100].mxu1 %v22554_v43 }
 0xb74   : > { %v10485_v10 = vshrl.u32 %v10450_v23, 16  ;;  %v10321_v42 = vadd.f32 %v15888_v12, %v22524_v41  ;;  %v15891_v33 = vadd.f32 %v15890_v57, %v15889_v4  ;;  %17143 = vmatpush3.bf16.msra.mxu1 %v18747_v37  ;;  %v10488_v8 = vshll.u32 %v10450_v23, 16  ;;  %v18750_v37 = vld [vmem:[#allocation9 + $0x78] sm:$0xff]  }
 0xb75   : > { %17144 = vmatprep.subr.bf16.mxu1 %v18748_v28 }
 0xb76   : > { %v10487_v11 = vrot.slane %v10485_v10, 7  ;;  %v10324_v9 = vadd.f32 %v15891_v33, %v22524_v41  ;;  %v10423_v60 = vmax.f32 %v10321_v42, 0.0 }
 0xb78   : > { %v10490_v48 = vor.u32 %v10488_v8, %v10487_v11  ;;  %v10628_v44 = vsel %vm19513_vm4, %v10487_v11, %v10627_v32  ;;  %v10424_v26 = vmax.f32 %v10324_v9, 0.0  ;;  %v15892_v17 = vpop.f32.mrb[52].mxu1  ;;  %17145 = vmatpush3.bf16.msra.mxu1 %v18748_v28  ;;  %v22569_v8 = vld [vmem:[#allocation9 + $0x80] sm:$0xff]  }
 0xb79   : > { %10629 = vst [vmem:[#allocation2 + $0x48] sm:$0x1] %v10628_v44  ;;  %v15893_v12 = vpop.f32.mrb[53].mxu1  ;;  %17146 = vmatprep.subr.bf16.mxu1 %v18749_v46 }
 0xb7a   : > { %v22564_v4 = vsel %vm19636_vm6, %v10490_v48, %v10624_v36  ;;  %v10451_v23 = vpack.c.bf16 %v10424_v26, %v10423_v60  ;;  %v15894_v57 = vadd.f32 %v15893_v12, %v15892_v17  ;;  %v15895_v10 = vpop.f32.mrb[54].mxu1  ;;  %v10633_v48 = vld [vmem:[#allocation2 + $0x58] sm:$0x1] }
 0xb7b   : > { %10626 = vst [vmem:[#allocation2 + $0x40] sm:$0xff] %v22564_v4  ;;  %v15896_v33 = vpop.f32.mrb[55].mxu1  ;;  %17110 = vmatprep.mubr.bf16.mxu1 %v22564_v4 }
 0xb7c   : > { %v10492_v42 = vshrl.u32 %v10451_v23, 16  ;;  %v10329_v28 = vadd.f32 %v15894_v57, %v22524_v41  ;;  %v15897_v11 = vadd.f32 %v15896_v33, %v15895_v10  ;;  %17147 = vmatpush3.bf16.msra.mxu1 %v18749_v46  ;;  %v10495_v32 = vshll.u32 %v10451_v23, 16 }
 0xb7d   : > { %17148 = vmatprep.subr.bf16.mxu1 %v18750_v37 }
 0xb7e   : > { %v10494_v9 = vrot.slane %v10492_v42, 7  ;;  %v10332_v36 = vadd.f32 %v15897_v11, %v22524_v41  ;;  %v10425_v26 = vmax.f32 %v10329_v28, 0.0 }
 0xb80   : > { %v10497_v44 = vor.u32 %v10495_v32, %v10494_v9  ;;  %v10634_v60 = vsel %vm19513_vm4, %v10494_v9, %v10633_v48  ;;  %v10426_v17 = vmax.f32 %v10332_v36, 0.0  ;;  %v15898_v12 = vpop.f32.mrb[56].mxu1  ;;  %17149 = vmatpush3.bf16.msra.mxu1 %v18750_v37  ;;  %v10639_v48 = vld [vmem:[#allocation2 + $0x68] sm:$0x1] }
 0xb81   : > { %10635 = vst [vmem:[#allocation2 + $0x58] sm:$0x1] %v10634_v60  ;;  %v15899_v57 = vpop.f32.mrb[57].mxu1  ;;  %17182 = vmatprep.subr.bf16.mxu1 %v22569_v8 }
 0xb82   : > { %v22577_v46 = vsel %vm19636_vm6, %v10497_v44, %v10630_v21  ;;  %v10452_v23 = vpack.c.bf16 %v10426_v17, %v10425_v26  ;;  %v15900_v10 = vadd.f32 %v15899_v57, %v15898_v12  ;;  %v15901_v33 = vpop.f32.mrb[58].mxu1  ;;  %v10636_v12 = vld [vmem:[#allocation2 + $0x60] sm:$0xff] }
 0xb83   : > { %10632 = vst [vmem:[#allocation2 + $0x50] sm:$0xff] %v22577_v46  ;;  %v15902_v42 = vpop.f32.mrb[59].mxu1  ;;  %17111 = vmatmul.mubr.bf16.gmra.mrb[104].mxu1 %v22577_v46 }
 0xb84   : > { %v10499_v28 = vshrl.u32 %v10452_v23, 16  ;;  %v10337_v37 = vadd.f32 %v15900_v10, %v22524_v41  ;;  %v15903_v11 = vadd.f32 %v15902_v42, %v15901_v33  ;;  %v10502_v32 = vshll.u32 %v10452_v23, 16 }
 0xb86   : > { %v10501_v9 = vrot.slane %v10499_v28, 7  ;;  %v10340_v36 = vadd.f32 %v15903_v11, %v22524_v41  ;;  %v10427_v44 = vmax.f32 %v10337_v37, 0.0 }
 0xb88   : > { %v10504_v60 = vor.u32 %v10502_v32, %v10501_v9  ;;  %v10640_v21 = vsel %vm19513_vm4, %v10501_v9, %v10639_v48  ;;  %v10428_v26 = vmax.f32 %v10340_v36, 0.0  ;;  %v15904_v17 = vpop.f32.mrb[60].mxu1  ;;  %v10645_v48 = vld [vmem:[#allocation2 + $0x78] sm:$0x1] }
 0xb89   : > { %10641 = vst [vmem:[#allocation2 + $0x68] sm:$0x1] %v10640_v21  ;;  %v15905_v57 = vpop.f32.mrb[61].mxu1 }
 0xb8a   : > { %v22587_v0 = vsel %vm19636_vm6, %v10504_v60, %v10636_v12  ;;  %v10453_v10 = vpack.c.bf16 %v10428_v26, %v10427_v44  ;;  %v15906_v33 = vadd.f32 %v15905_v57, %v15904_v17  ;;  %v15907_v23 = vpop.f32.mrb[62].mxu1  ;;  %v10642_v12 = vld [vmem:[#allocation2 + $0x70] sm:$0xff] }
 0xb8b   : > { %10638 = vst [vmem:[#allocation2 + $0x60] sm:$0xff] %v22587_v0  ;;  %v15908_v42 = vpop.f32.mrb[63].mxu1  ;;  %17114 = vmatprep.mubr.bf16.mxu1 %v22587_v0 }
 0xb8c   : > { %v10506_v28 = vshrl.u32 %v10453_v10, 16  ;;  %v10345_v37 = vadd.f32 %v15906_v33, %v22524_v41  ;;  %v15909_v11 = vadd.f32 %v15908_v42, %v15907_v23  ;;  %v10509_v32 = vshll.u32 %v10453_v10, 16 }
 0xb8e   : > { %v10508_v9 = vrot.slane %v10506_v28, 7  ;;  %v10348_v36 = vadd.f32 %v15909_v11, %v22524_v41  ;;  %v10429_v44 = vmax.f32 %v10345_v37, 0.0 }
 0xb90   : > { %v10511_v21 = vor.u32 %v10509_v32, %v10508_v9  ;;  %v10646_v60 = vsel %vm19513_vm4, %v10508_v9, %v10645_v48  ;;  %v10430_v26 = vmax.f32 %v10348_v36, 0.0  ;;  %v15910_v17 = vpop.f32.mrb[64].mxu1  ;;  %v10651_v48 = vld [vmem:[#allocation2 + $0x88] sm:$0x1] }
 0xb91   : > { %10647 = vst [vmem:[#allocation2 + $0x78] sm:$0x1] %v10646_v60  ;;  %v15911_v57 = vpop.f32.mrb[65].mxu1 }
 0xb92   : > { %v22597_v56 = vsel %vm19636_vm6, %v10511_v21, %v10642_v12  ;;  %v10454_v33 = vpack.c.bf16 %v10430_v26, %v10429_v44  ;;  %v15912_v23 = vadd.f32 %v15911_v57, %v15910_v17  ;;  %v15913_v10 = vpop.f32.mrb[66].mxu1  ;;  %v10648_v12 = vld [vmem:[#allocation2 + $0x80] sm:$0xff] }
 0xb93   : > { %10644 = vst [vmem:[#allocation2 + $0x70] sm:$0xff] %v22597_v56  ;;  %v15914_v42 = vpop.f32.mrb[67].mxu1  ;;  %17115 = vmatmul.mubr.bf16.gmra.mrb[108].mxu1 %v22597_v56 }
 0xb94   : > { %v10513_v28 = vshrl.u32 %v10454_v33, 16  ;;  %v10353_v37 = vadd.f32 %v15912_v23, %v22524_v41  ;;  %v15915_v11 = vadd.f32 %v15914_v42, %v15913_v10  ;;  %v10516_v32 = vshll.u32 %v10454_v33, 16 }
 0xb96   : > { %v10515_v9 = vrot.slane %v10513_v28, 7  ;;  %v10356_v36 = vadd.f32 %v15915_v11, %v22524_v41  ;;  %v10431_v44 = vmax.f32 %v10353_v37, 0.0 }
 0xb98   : > { %v10518_v60 = vor.u32 %v10516_v32, %v10515_v9  ;;  %v10652_v21 = vsel %vm19513_vm4, %v10515_v9, %v10651_v48  ;;  %v10432_v26 = vmax.f32 %v10356_v36, 0.0  ;;  %v15916_v17 = vpop.f32.mrb[68].mxu1  ;;  %v10657_v48 = vld [vmem:[#allocation2 + $0x98] sm:$0x1] }
 0xb99   : > { %10653 = vst [vmem:[#allocation2 + $0x88] sm:$0x1] %v10652_v21  ;;  %v15917_v57 = vpop.f32.mrb[69].mxu1 }
 0xb9a   : > { %v22607_v35 = vsel %vm19636_vm6, %v10518_v60, %v10648_v12  ;;  %v10455_v23 = vpack.c.bf16 %v10432_v26, %v10431_v44  ;;  %v15918_v10 = vadd.f32 %v15917_v57, %v15916_v17  ;;  %v15919_v33 = vpop.f32.mrb[70].mxu1  ;;  %v10654_v12 = vld [vmem:[#allocation2 + $0x90] sm:$0xff] }
 0xb9b   : > { %10650 = vst [vmem:[#allocation2 + $0x80] sm:$0xff] %v22607_v35  ;;  %v15920_v42 = vpop.f32.mrb[71].mxu1  ;;  %17118 = vmatprep.mubr.bf16.mxu1 %v22607_v35 }
 0xb9c   : > { %v10520_v28 = vshrl.u32 %v10455_v23, 16  ;;  %v10361_v37 = vadd.f32 %v15918_v10, %v22524_v41  ;;  %v15921_v11 = vadd.f32 %v15920_v42, %v15919_v33  ;;  %v10523_v32 = vshll.u32 %v10455_v23, 16 }
 0xb9e   : > { %v10522_v9 = vrot.slane %v10520_v28, 7  ;;  %v10364_v36 = vadd.f32 %v15921_v11, %v22524_v41  ;;  %v10433_v44 = vmax.f32 %v10361_v37, 0.0 }
 0xba0   : > { %v10525_v21 = vor.u32 %v10523_v32, %v10522_v9  ;;  %v10658_v60 = vsel %vm19513_vm4, %v10522_v9, %v10657_v48  ;;  %v10434_v26 = vmax.f32 %v10364_v36, 0.0  ;;  %v15922_v17 = vpop.f32.mrb[72].mxu1  ;;  %v10663_v48 = vld [vmem:[#allocation2 + $0xa8] sm:$0x1] }
 0xba1   : > { %10659 = vst [vmem:[#allocation2 + $0x98] sm:$0x1] %v10658_v60  ;;  %v15923_v57 = vpop.f32.mrb[73].mxu1 }
 0xba2   : > { %v22617_v51 = vsel %vm19636_vm6, %v10525_v21, %v10654_v12  ;;  %v10456_v10 = vpack.c.bf16 %v10434_v26, %v10433_v44  ;;  %v15924_v33 = vadd.f32 %v15923_v57, %v15922_v17  ;;  %v15925_v23 = vpop.f32.mrb[74].mxu1  ;;  %v10660_v12 = vld [vmem:[#allocation2 + $0xa0] sm:$0xff] }
 0xba3   : > { %10656 = vst [vmem:[#allocation2 + $0x90] sm:$0xff] %v22617_v51  ;;  %v15926_v42 = vpop.f32.mrb[75].mxu1  ;;  %17119 = vmatmul.mubr.bf16.gmra.mrb[112].mxu1 %v22617_v51 }
 0xba4   : > { %v10527_v28 = vshrl.u32 %v10456_v10, 16  ;;  %v10369_v37 = vadd.f32 %v15924_v33, %v22524_v41  ;;  %v15927_v11 = vadd.f32 %v15926_v42, %v15925_v23  ;;  %v10530_v32 = vshll.u32 %v10456_v10, 16 }
 0xba6   : > { %v10529_v9 = vrot.slane %v10527_v28, 7  ;;  %v10372_v36 = vadd.f32 %v15927_v11, %v22524_v41  ;;  %v10435_v44 = vmax.f32 %v10369_v37, 0.0 }
 0xba8   : > { %v10532_v60 = vor.u32 %v10530_v32, %v10529_v9  ;;  %v10664_v21 = vsel %vm19513_vm4, %v10529_v9, %v10663_v48  ;;  %v10436_v26 = vmax.f32 %v10372_v36, 0.0  ;;  %v15928_v17 = vpop.f32.mrb[76].mxu1  ;;  %v10669_v48 = vld [vmem:[#allocation2 + $0xb8] sm:$0x1] }
 0xba9   : > { %10665 = vst [vmem:[#allocation2 + $0xa8] sm:$0x1] %v10664_v21  ;;  %v15929_v57 = vpop.f32.mrb[77].mxu1 }
 0xbaa   : > { %v22627_v6 = vsel %vm19636_vm6, %v10532_v60, %v10660_v12  ;;  %v10457_v33 = vpack.c.bf16 %v10436_v26, %v10435_v44  ;;  %v15930_v23 = vadd.f32 %v15929_v57, %v15928_v17  ;;  %v15931_v10 = vpop.f32.mrb[78].mxu1  ;;  %v10666_v12 = vld [vmem:[#allocation2 + $0xb0] sm:$0xff] }
 0xbab   : > { %10662 = vst [vmem:[#allocation2 + $0xa0] sm:$0xff] %v22627_v6  ;;  %v15932_v42 = vpop.f32.mrb[79].mxu1  ;;  %17122 = vmatprep.mubr.bf16.mxu1 %v22627_v6 }
 0xbac   : > { %v10534_v28 = vshrl.u32 %v10457_v33, 16  ;;  %v10377_v37 = vadd.f32 %v15930_v23, %v22524_v41  ;;  %v15933_v11 = vadd.f32 %v15932_v42, %v15931_v10  ;;  %v10537_v32 = vshll.u32 %v10457_v33, 16 }
 0xbae   : > { %v10536_v9 = vrot.slane %v10534_v28, 7  ;;  %v10380_v36 = vadd.f32 %v15933_v11, %v22524_v41  ;;  %v10437_v44 = vmax.f32 %v10377_v37, 0.0 }
 0xbb0   : > { %v10539_v21 = vor.u32 %v10537_v32, %v10536_v9  ;;  %v10670_v60 = vsel %vm19513_vm4, %v10536_v9, %v10669_v48  ;;  %v10438_v26 = vmax.f32 %v10380_v36, 0.0  ;;  %v15934_v17 = vpop.f32.mrb[80].mxu1  ;;  %v10675_v48 = vld [vmem:[#allocation2 + $0xc8] sm:$0x1] }
 0xbb1   : > { %10671 = vst [vmem:[#allocation2 + $0xb8] sm:$0x1] %v10670_v60  ;;  %v15935_v57 = vpop.f32.mrb[81].mxu1 }
 0xbb2   : > { %v22637_v3 = vsel %vm19636_vm6, %v10539_v21, %v10666_v12  ;;  %v10458_v23 = vpack.c.bf16 %v10438_v26, %v10437_v44  ;;  %v15936_v10 = vadd.f32 %v15935_v57, %v15934_v17  ;;  %v15937_v33 = vpop.f32.mrb[82].mxu1  ;;  %v10672_v12 = vld [vmem:[#allocation2 + $0xc0] sm:$0xff] }
 0xbb3   : > { %10668 = vst [vmem:[#allocation2 + $0xb0] sm:$0xff] %v22637_v3  ;;  %v15938_v42 = vpop.f32.mrb[83].mxu1  ;;  %17123 = vmatmul.mubr.bf16.gmra.mrb[116].mxu1 %v22637_v3 }
 0xbb4   : > { %v10541_v28 = vshrl.u32 %v10458_v23, 16  ;;  %v10385_v37 = vadd.f32 %v15936_v10, %v22524_v41  ;;  %v15939_v11 = vadd.f32 %v15938_v42, %v15937_v33  ;;  %v10544_v32 = vshll.u32 %v10458_v23, 16 }
 0xbb6   : > { %v10543_v9 = vrot.slane %v10541_v28, 7  ;;  %v10388_v36 = vadd.f32 %v15939_v11, %v22524_v41  ;;  %v10439_v44 = vmax.f32 %v10385_v37, 0.0 }
 0xbb8   : > { %v10546_v60 = vor.u32 %v10544_v32, %v10543_v9  ;;  %v10676_v21 = vsel %vm19513_vm4, %v10543_v9, %v10675_v48  ;;  %v10440_v26 = vmax.f32 %v10388_v36, 0.0  ;;  %v15940_v17 = vpop.f32.mrb[84].mxu1  ;;  %v10681_v48 = vld [vmem:[#allocation2 + $0xd8] sm:$0x1] }
 0xbb9   : > { %10677 = vst [vmem:[#allocation2 + $0xc8] sm:$0x1] %v10676_v21  ;;  %v15941_v57 = vpop.f32.mrb[85].mxu1  ;;  %v22932_v15 = vld [vmem:[#allocation2 + $0xb8] sm:$0x1] }
 0xbba   : > { %v22647_v14 = vsel %vm19636_vm6, %v10546_v60, %v10672_v12  ;;  %v10459_v10 = vpack.c.bf16 %v10440_v26, %v10439_v44  ;;  %v15942_v33 = vadd.f32 %v15941_v57, %v15940_v17  ;;  %v15943_v23 = vpop.f32.mrb[86].mxu1  ;;  %v10678_v12 = vld [vmem:[#allocation2 + $0xd0] sm:$0xff] }
 0xbbb   : > { %10674 = vst [vmem:[#allocation2 + $0xc0] sm:$0xff] %v22647_v14  ;;  %v15944_v42 = vpop.f32.mrb[87].mxu1  ;;  %17126 = vmatprep.mubr.bf16.mxu1 %v22647_v14 }
 0xbbc   : > { %v10548_v28 = vshrl.u32 %v10459_v10, 16  ;;  %v10393_v37 = vadd.f32 %v15942_v33, %v22524_v41  ;;  %v15945_v11 = vadd.f32 %v15944_v42, %v15943_v23  ;;  %v10551_v32 = vshll.u32 %v10459_v10, 16 }
 0xbbe   : > { %v10550_v9 = vrot.slane %v10548_v28, 7  ;;  %v10396_v36 = vadd.f32 %v15945_v11, %v22524_v41  ;;  %v10441_v44 = vmax.f32 %v10393_v37, 0.0 }
 0xbc0   : > { %v10553_v21 = vor.u32 %v10551_v32, %v10550_v9  ;;  %v10682_v60 = vsel %vm19513_vm4, %v10550_v9, %v10681_v48  ;;  %v10442_v26 = vmax.f32 %v10396_v36, 0.0  ;;  %v15946_v17 = vpop.f32.mrb[88].mxu1  ;;  %v11017_v9 = vshll.u32 %v22518_v18, 16  ;;  %v22947_v49 = vld [vmem:[#allocation2 + $0xc8] sm:$0x1] }
 0xbc1   : > { %10683 = vst [vmem:[#allocation2 + $0xd8] sm:$0x1] %v10682_v60  ;;  %v15947_v57 = vpop.f32.mrb[89].mxu1  ;;  %v10687_v60 = vld [vmem:[#allocation2 + $0xe8] sm:$0x1] }
 0xbc2   : > { %v22657_v2 = vsel %vm19636_vm6, %v10553_v21, %v10678_v12  ;;  %v10460_v33 = vpack.c.bf16 %v10442_v26, %v10441_v44  ;;  %v15948_v23 = vadd.f32 %v15947_v57, %v15946_v17  ;;  %v15949_v10 = vpop.f32.mrb[90].mxu1  ;;  %v22664_v21 = vld [vmem:[#allocation2 + $0x8] sm:$0x1] }
 0xbc3   : > { %10680 = vst [vmem:[#allocation2 + $0xd0] sm:$0xff] %v22657_v2  ;;  %v15950_v42 = vpop.f32.mrb[91].mxu1  ;;  %17127 = vmatmul.mubr.bf16.gmra.mrb[120].mxu1 %v22657_v2 }
 0xbc4   : > { %v10555_v28 = vshrl.u32 %v10460_v33, 16  ;;  %v10401_v37 = vadd.f32 %v15948_v23, %v22524_v41  ;;  %v15951_v11 = vadd.f32 %v15950_v42, %v15949_v10  ;;  %v10558_v36 = vshll.u32 %v10460_v33, 16 }
 0xbc5   : > { %v11015_v10 = vshrl.u32 %v22518_v18, 16  ;;  %v11019_v42 = vrot.slane %v11017_v9, 1  ;;  %v11022_v33 = vshll.u32 %v22664_v21, 16 }
 0xbc6   : > { %v10557_v32 = vrot.slane %v10555_v28, 7  ;;  %v10404_v48 = vadd.f32 %v15951_v11, %v22524_v41  ;;  %v10443_v17 = vmax.f32 %v10401_v37, 0.0 }
 0xbc7   : > { %v11020_v18 = vor.u32 %v11019_v42, %v11015_v10  ;;  %v11024_v9 = vrot.slane %v11022_v33, 1  ;;  %v11041_v42 = vshll.u32 %v22544_v22, 16 }
 0xbc8   : > { %v10560_v44 = vor.u32 %v10558_v36, %v10557_v32  ;;  %v10688_v26 = vsel %vm19513_vm4, %v10557_v32, %v10687_v60  ;;  %v10444_v12 = vmax.f32 %v10404_v48, 0.0  ;;  %v15952_v57 = vpop.f32.mrb[92].mxu1  ;;  %v22951_v52 = vld [vmem:[#allocation2 + $0xd8] sm:$0x1] }
 0xbc9   : > { %10689 = vst [vmem:[#allocation2 + $0xe8] sm:$0x1] %v10688_v26  ;;  %v15953_v23 = vpop.f32.mrb[93].mxu1  ;;  %v11025_v10 = vsel %vm1963_vm7, %v11020_v18, %v11024_v9  ;;  %v10699_v9 = vld [vmem:[#allocation2 + $0x108] sm:$0x1] }
 0xbca   : > { %v22672_v28 = vsel %vm19636_vm6, %v10560_v44, %v10684_v50  ;;  %v10461_v11 = vpack.c.bf16 %v10444_v12, %v10443_v17  ;;  %v15954_v36 = vadd.f32 %v15953_v23, %v15952_v57  ;;  %v15955_v25 = vpop.f32.mrb[94].mxu1  ;;  %v10693_v50 = vld [vmem:[#allocation2 + $0xf8] sm:$0x1]  ;;  %v11029_v17 = vshll.u32 %v22534_v7, 16 }
 0xbcb   : > { %10686 = vst [vmem:[#allocation2 + $0xe0] sm:$0xff] %v22672_v28  ;;  %v15956_v37 = vpop.f32.mrb[95].mxu1  ;;  %17130 = vmatprep.mubr.bf16.mxu1 %v22672_v28  ;;  %v22678_v44 = vld [vmem:[#allocation2 + $0x18] sm:$0x1] }
 0xbcc   : > { %v10562_v32 = vshrl.u32 %v10461_v11, 16  ;;  %v10409_v48 = vadd.f32 %v15954_v36, %v22524_v41  ;;  %v15957_v60 = vadd.f32 %v15956_v37, %v15955_v25  ;;  %v10565_v63 = vshll.u32 %v10461_v11, 16  ;;  %v10690_v25 = vld [vmem:[#allocation2 + $0xf0] sm:$0xff] }
 0xbcd   : > { %v11031_v36 = vrot.slane %v11029_v17, 1  ;;  %v11043_v37 = vrot.slane %v11041_v42, 1  ;;  %v22702_v17 = vld [vmem:[#allocation2 + $0x48] sm:$0x1] }
 0xbce   : > { %v10564_v26 = vrot.slane %v10562_v32, 7  ;;  %v10412_v53 = vadd.f32 %v15957_v60, %v22524_v41  ;;  %v10445_v23 = vmax.f32 %v10409_v48, 0.0  ;;  %v11027_v60 = vshrl.u32 %v22534_v7, 16  ;;  %v18752_v7 = vld [vmem:[#allocation9 + $0x88] sm:$0xff]  }
 0xbd0   : > { %v10567_v12 = vor.u32 %v10565_v63, %v10564_v26  ;;  %v10694_v57 = vsel %vm19513_vm4, %v10564_v26, %v10693_v50  ;;  %v10446_v55 = vmax.f32 %v10412_v53, 0.0  ;;  %v11034_v63 = vshll.u32 %v22678_v44, 16  ;;  %v22697_v50 = vld [vmem:[#allocation2 + $0x38] sm:$0x1] }
 0xbd1   : > { %10695 = vst [vmem:[#allocation2 + $0xf8] sm:$0x1] %v10694_v57  ;;  %v11046_v53 = vshll.u32 %v22683_v61, 16  ;;  %v11058_v27 = vshll.u32 %v22697_v50, 16 }
 0xbd2   : > { %v22689_v41 = vsel %vm19636_vm6, %v10567_v12, %v10690_v25  ;;  %v10462_v33 = vpack.c.bf16 %v10446_v55, %v10445_v23  ;;  %v11036_v18 = vrot.slane %v11034_v63, 1  ;;  %v11039_v55 = vshrl.u32 %v22544_v22, 16  ;;  %v22954_v24 = vld [vmem:[#allocation2 + $0xe0] sm:$0xff] }
 0xbd3   : > { %10692 = vst [vmem:[#allocation2 + $0xf0] sm:$0xff] %v22689_v41  ;;  %17131 = vmatmul.mubr.bf16.gmra.mrb[124].mxu1 %v22689_v41  ;;  %v11048_v26 = vrot.slane %v11046_v53, 1  ;;  %v11032_v23 = vor.u32 %v11031_v36, %v11027_v60  ;;  %v11053_v25 = vshll.u32 %v22554_v43, 16  ;;  %v11063_v60 = vshrl.u32 %v22564_v4, 16 }
 0xbd4   : > { %v10569_v11 = vshrl.u32 %v10462_v33, 16  ;;  %17150 = vmatprep.mubr.bf16.mxu1 %v11025_v10  ;;  %v10572_v48 = vshll.u32 %v10462_v33, 16  ;;  %v10696_v10 = vld [vmem:[#allocation2 + $0x100] sm:$0xff]  ;;  %v11044_v42 = vor.u32 %v11043_v37, %v11039_v55  ;;  %v11065_v33 = vshll.u32 %v22564_v4, 16 }
 0xbd5   : > { %v11037_v63 = vsel %vm1963_vm7, %v11032_v23, %v11036_v18  ;;  %v11055_v36 = vrot.slane %v11053_v25, 1  ;;  %v18754_v23 = vld [vmem:[#allocation9 + $0x98] sm:$0xff]  }
 0xbd6   : > { %v10571_v32 = vrot.slane %v10569_v11, 7  ;;  %v11049_v53 = vsel %vm1963_vm7, %v11044_v42, %v11048_v26  ;;  %v11070_v11 = vshll.u32 %v22702_v17, 16  ;;  %v11067_v37 = vrot.slane %v11065_v33, 1  ;;  %v18755_v33 = vld [vmem:[#allocation9 + $0xa0] sm:$0xff]  }
 0xbd7   : > { %v11077_v26 = vshll.u32 %v22577_v46, 16 }
 0xbd8   : > { %v10574_v12 = vor.u32 %v10572_v48, %v10571_v32  ;;  %v10700_v57 = vsel %vm19513_vm4, %v10571_v32, %v10699_v9  ;;  %v11051_v32 = vshrl.u32 %v22554_v43, 16  ;;  %v11060_v48 = vrot.slane %v11058_v27, 1  ;;  %v22717_v9 = vld [vmem:[#allocation2 + $0x58] sm:$0x1] }
 0xbd9   : > { %10701 = vst [vmem:[#allocation2 + $0x108] sm:$0x1] %v10700_v57  ;;  %v11072_v18 = vrot.slane %v11070_v11, 1  ;;  %v11089_v57 = vshll.u32 %v22587_v0, 16  ;;  %v11082_v43 = vshll.u32 %v22717_v9, 16  ;;  %v11079_v42 = vrot.slane %v11077_v26, 1 }
 0xbda   : > { %v22707_v22 = vsel %vm19636_vm6, %v10574_v12, %v10696_v10  ;;  %v11056_v55 = vor.u32 %v11055_v36, %v11051_v32  ;;  %v22720_v12 = vld [vmem:[#allocation2 + $0x68] sm:$0x1]  ;;  %v22729_v36 = vld [vmem:[#allocation2 + $0x78] sm:$0x1]  ;;  %v11101_v32 = vshll.u32 %v22597_v56, 16 }
 0xbdb   : > { %10698 = vst [vmem:[#allocation2 + $0x100] sm:$0xff] %v22707_v22  ;;  %17151 = vmatmul.mubr.bf16.vlgmr.msra.gmra.mrb[96].mxu1 %v11037_v63  ;;  %v11094_v10 = vshll.u32 %v22720_v12, 16  ;;  %v11075_v63 = vshrl.u32 %v22577_v46, 16  ;;  %v11084_v27 = vrot.slane %v11082_v43, 1  ;;  %v11106_v46 = vshll.u32 %v22729_v36, 16 }
 0xbdc   : > { %17183 = vmatpush3.bf16.msra.mxu1 %v22569_v8  ;;  %17154 = vmatprep.mubr.bf16.mxu1 %v11049_v53  ;;  %v11068_v8 = vor.u32 %v11067_v37, %v11063_v60  ;;  %v11061_v25 = vsel %vm1963_vm7, %v11056_v55, %v11060_v48  ;;  %v11087_v53 = vshrl.u32 %v22587_v0, 16  ;;  %v22732_v48 = vld [vmem:[#allocation2 + $0x88] sm:$0x1]  ;;  %v22972_v20 = vld [vmem:[#allocation2 + $0xf8] sm:$0x1] }
 0xbdd   : > { %17184 = vmatprep.subr.bf16.mxu1 %v18752_v7  ;;  %v11096_v11 = vrot.slane %v11094_v10, 1  ;;  %v11080_v37 = vor.u32 %v11079_v42, %v11075_v63  ;;  %v11118_v26 = vshll.u32 %v22732_v48, 16  ;;  %v11108_v43 = vrot.slane %v11106_v46, 1  ;;  %v22741_v42 = vld [vmem:[#allocation2 + $0x98] sm:$0x1] }
 0xbde   : > { %v11073_v4 = vsel %vm1963_vm7, %v11068_v8, %v11072_v18  ;;  %v18756_v18 = vld [vmem:[#allocation9 + $0xa8] sm:$0xff]   ;;  %v11103_v8 = vrot.slane %v11101_v32, 1  ;;  %v11125_v63 = vshll.u32 %v22617_v51, 16 }
 0xbdf   : > { %v11085_v55 = vsel %vm1963_vm7, %v11080_v37, %v11084_v27  ;;  %v11120_v10 = vrot.slane %v11118_v26, 1  ;;  %v22744_v27 = vld [vmem:[#allocation2 + $0xa8] sm:$0x1] }
 0xbe0   : > { %17185 = vmatpush3.bf16.msra.mxu1 %v18752_v7  ;;  %v11091_v7 = vrot.slane %v11089_v57, 1  ;;  %v11142_v32 = vshll.u32 %v22744_v27, 16 }
 0xbe1   : > { %17186 = vmatprep.subr.bf16.mxu1 %v18753_v13 }
 0xbe2   : > { %v11092_v60 = vor.u32 %v11091_v7, %v11087_v53  ;;  %v11144_v26 = vrot.slane %v11142_v32, 1  ;;  %v22976_v45 = vld [vmem:[#allocation2 + $0x100] sm:$0xff] }
 0xbe3   : > { %17155 = vmatmul.mubr.bf16.gmra.mrb[100].mxu1 %v11061_v25  ;;  %v11099_v25 = vshrl.u32 %v22597_v56, 16  ;;  %v11130_v56 = vshll.u32 %v22741_v42, 16 }
 0xbe4   : > { %17158 = vmatprep.mubr.bf16.mxu1 %v11073_v4  ;;  %17187 = vmatpush3.bf16.msra.mxu1 %v18753_v13  ;;  %v11113_v13 = vshll.u32 %v22607_v35, 16  ;;  %v11097_v0 = vsel %vm1963_vm7, %v11092_v60, %v11096_v11  ;;  %v11111_v4 = vshrl.u32 %v22607_v35, 16  ;;  %v18758_v11 = vld [vmem:[#allocation9 + $0xb8] sm:$0xff]   ;;  %v11127_v60 = vrot.slane %v11125_v63, 1 }
 0xbe5   : > { %17188 = vmatprep.subr.bf16.mxu1 %v18754_v23  ;;  %v11104_v7 = vor.u32 %v11103_v8, %v11099_v25  ;;  %v11132_v46 = vrot.slane %v11130_v56, 1  ;;  %v22755_v8 = vld [vmem:[#allocation2 + $0xb8] sm:$0x1]  ;;  %v11149_v25 = vshll.u32 %v22637_v3, 16 }
 0xbe6   : > { %v11115_v57 = vrot.slane %v11113_v13, 1 }
 0xbe7   : > { %v11109_v37 = vsel %vm1963_vm7, %v11104_v7, %v11108_v43  ;;  %v22758_v43 = vld [vmem:[#allocation2 + $0xc8] sm:$0x1]  ;;  %v11151_v63 = vrot.slane %v11149_v25, 1 }
 0xbe8   : > { %17189 = vmatpush3.bf16.msra.mxu1 %v18754_v23  ;;  %v18757_v23 = vld [vmem:[#allocation9 + $0xb0] sm:$0xff]   ;;  %v11116_v53 = vor.u32 %v11115_v57, %v11111_v4  ;;  %v11166_v7 = vshll.u32 %v22758_v43, 16 }
 0xbe9   : > { %17190 = vmatprep.subr.bf16.mxu1 %v18755_v33 }
 0xbea   : > { %v11121_v35 = vsel %vm1963_vm7, %v11116_v53, %v11120_v10  ;;  %v11168_v56 = vrot.slane %v11166_v7, 1  ;;  %v22780_v7 = vld [vmem:[#allocation2 + $0xf8] sm:$0x1] }
 0xbeb   : > { %17159 = vmatmul.mubr.bf16.gmra.mrb[104].mxu1 %v11085_v55  ;;  %v11123_v55 = vshrl.u32 %v22617_v51, 16  ;;  %v11154_v51 = vshll.u32 %v22755_v8, 16 }
 0xbec   : > { %17162 = vmatprep.mubr.bf16.mxu1 %v11097_v0  ;;  %17191 = vmatpush3.bf16.msra.mxu1 %v18755_v33  ;;  %v11137_v33 = vshll.u32 %v22627_v6, 16  ;;  %v11135_v0 = vshrl.u32 %v22627_v6, 16 }
 0xbed   : > { %17192 = vmatprep.subr.bf16.mxu1 %v18756_v18  ;;  %v11128_v57 = vor.u32 %v11127_v60, %v11123_v55  ;;  %v11173_v60 = vshll.u32 %v22657_v2, 16 }
 0xbee   : > { %v11139_v13 = vrot.slane %v11137_v33, 1  ;;  %v11147_v33 = vshrl.u32 %v22637_v3, 16 }
 0xbef   : > { %v11133_v10 = vsel %vm1963_vm7, %v11128_v57, %v11132_v46  ;;  %v11185_v46 = vshll.u32 %v22672_v28, 16  ;;  %v11175_v25 = vrot.slane %v11173_v60, 1 }
 0xbf0   : > { %17193 = vmatpush3.bf16.msra.mxu1 %v18756_v18  ;;  %v22751_v18 = vld [vmem:[#allocation9 + $0xc0] sm:$0xff]   ;;  %v11140_v4 = vor.u32 %v11139_v13, %v11135_v0  ;;  %v11152_v32 = vor.u32 %v11151_v63, %v11147_v33  ;;  %v22771_v13 = vld [vmem:[#allocation2 + $0xe8] sm:$0x1] }
 0xbf1   : > { %17194 = vmatprep.subr.bf16.mxu1 %v18757_v23  ;;  %v11190_v57 = vshll.u32 %v22771_v13, 16 }
 0xbf2   : > { %v11145_v6 = vsel %vm1963_vm7, %v11140_v4, %v11144_v26  ;;  %v11187_v4 = vrot.slane %v11185_v46, 1  ;;  %v11529_v46 = vrot.slane %v22664_v21, 1 }
 0xbf3   : > { %17163 = vmatmul.mubr.bf16.gmra.mrb[108].mxu1 %v11109_v37  ;;  %v11159_v37 = vshrl.u32 %v22647_v14, 16 }
 0xbf4   : > { %17166 = vmatprep.mubr.bf16.mxu1 %v11121_v35  ;;  %17195 = vmatpush3.bf16.msra.mxu1 %v18757_v23  ;;  %v11161_v23 = vshll.u32 %v22647_v14, 16  ;;  %v22768_v35 = vld [vmem:[#allocation2 + $0xd8] sm:$0x1] }
 0xbf5   : > { %17196 = vmatprep.subr.bf16.mxu1 %v18758_v11  ;;  %v11178_v26 = vshll.u32 %v22768_v35, 16 }
 0xbf6   : > { %v11163_v53 = vrot.slane %v11161_v23, 1  ;;  %v11171_v23 = vshrl.u32 %v22657_v2, 16 }
 0xbf8   : > { %17197 = vmatpush3.bf16.msra.mxu1 %v18758_v11  ;;  %v11156_v11 = vrot.slane %v11154_v51, 1  ;;  %v11164_v55 = vor.u32 %v11163_v53, %v11159_v37  ;;  %v11183_v51 = vshrl.u32 %v22672_v28, 16  ;;  %v11176_v63 = vor.u32 %v11175_v25, %v11171_v23  ;;  %v11482_v23 = vld [vmem:[#allocation2 + $0x20] sm:$0xfe] }
 0xbf9   : > { %17230 = vmatprep.subr.bf16.mxu1 %v22751_v18  ;;  %v11197_v53 = vshll.u32 %v22689_v41, 16  ;;  %v11202_v37 = vshll.u32 %v22780_v7, 16 }
 0xbfa   : > { %v11157_v0 = vsel %vm1963_vm7, %v11152_v32, %v11156_v11  ;;  %v11169_v3 = vsel %vm1963_vm7, %v11164_v55, %v11168_v56  ;;  %v11188_v33 = vor.u32 %v11187_v4, %v11183_v51  ;;  %v11480_v56 = vld [vmem:[#allocation2] sm:$0xfe]  ;;  %v11481_v4 = vld [vmem:[#allocation2 + $0x10] sm:$0xfe]  ;;  %v11534_v51 = vrot.slane %v11482_v23, 1 }
 0xbfb   : > { %17167 = vmatmul.mubr.bf16.gmra.mrb[112].mxu1 %v11133_v10  ;;  %v11180_v10 = vrot.slane %v11178_v26, 1  ;;  %v11199_v60 = vrot.slane %v11197_v53, 1  ;;  %v11528_v55 = vrot.slane %v11480_v56, 1  ;;  %v11204_v26 = vrot.slane %v11202_v37, 1  ;;  %v18760_v53 = vld [vmem:[#allocation9 + $0xc8] sm:$0xff]   ;;  %v18761_v56 = vld [vmem:[#allocation9 + $0xd0] sm:$0xff]  }
 0xbfc   : > { %17170 = vmatprep.mubr.bf16.mxu1 %v11145_v6  ;;  %v11192_v6 = vrot.slane %v11190_v57, 1  ;;  %v11484_v37 = vld [vmem:[#allocation2 + $0x40] sm:$0xfe] }
 0xbfd   : > { %v11181_v11 = vsel %vm1963_vm7, %v11176_v63, %v11180_v10  ;;  %v11530_v57 = vsel %vm2478_vm8, %v11528_v55, %v11529_v46  ;;  %v11531_v10 = vrot.slane %v11481_v4, 1  ;;  %v11535_v63 = vrot.slane %v22683_v61, 1  ;;  %v18764_v4 = vld [vmem:[#allocation9 + $0xe8] sm:$0xff]  }
 0xbfe   : > { %v11193_v32 = vsel %vm1963_vm7, %v11188_v33, %v11192_v6  ;;  %v11532_v6 = vrot.slane %v22678_v44, 1  ;;  %v11538_v55 = vrot.slane %v22697_v50, 1  ;;  %v11541_v61 = vrot.slane %v22702_v17, 1  ;;  %v18762_v44 = vld [vmem:[#allocation9 + $0xd8] sm:$0xff]  }
 0xbff   : > { %v11536_v33 = vsel %vm2478_vm8, %v11534_v51, %v11535_v63  ;;  %v11544_v50 = vrot.slane %v22717_v9, 1  ;;  %v11547_v17 = vrot.slane %v22720_v12, 1  ;;  %v11487_v51 = vld [vmem:[#allocation2 + $0x70] sm:$0xfe]  ;;  %v11550_v9 = vrot.slane %v22729_v36, 1 }
 0xc00   : > { %v11533_v21 = vsel %vm2478_vm8, %v11531_v10, %v11532_v6  ;;  %v11488_v6 = vld [vmem:[#allocation2 + $0x80] sm:$0xfe]  ;;  %v18765_v63 = vld [vmem:[#allocation9 + $0xf0] sm:$0xff]   ;;  %v11553_v12 = vrot.slane %v22732_v48, 1  ;;  %v11556_v36 = vrot.slane %v22741_v42, 1  ;;  %v11559_v48 = vrot.slane %v22744_v27, 1 }
 0xc03   : > { %17171 = vmatmul.mubr.bf16.gmra.mrb[116].mxu1 %v11157_v0  ;;  %v11195_v0 = vshrl.u32 %v22689_v41, 16 }
 0xc04   : > { %17174 = vmatprep.mubr.bf16.mxu1 %v11169_v3 }
 0xc05   : > { %v11200_v3 = vor.u32 %v11199_v60, %v11195_v0  ;;  %v11540_v60 = vrot.slane %v11484_v37, 1 }
 0xc07   : > { %v11205_v25 = vsel %vm1963_vm7, %v11200_v3, %v11204_v26  ;;  %v11542_v0 = vsel %vm2478_vm8, %v11540_v60, %v11541_v61  ;;  %v11485_v26 = vld [vmem:[#allocation2 + $0x50] sm:$0xfe]  ;;  %v18763_v3 = vld [vmem:[#allocation9 + $0xe0] sm:$0xff]  }
 0xc08   : > { %v18767_v60 = vld [vmem:[#allocation9 + $0x100] sm:$0xff]  }
 0xc0b   : > { %17175 = vmatmul.mubr.bf16.gmra.mrb[120].mxu1 %v11181_v11  ;;  %v11483_v11 = vld [vmem:[#allocation2 + $0x30] sm:$0xfe] }
 0xc0c   : > { %17178 = vmatprep.mubr.bf16.mxu1 %v11193_v32  ;;  %v11537_v32 = vrot.slane %v11483_v11, 1 }
 0xc0e   : > { %v11539_v46 = vsel %vm2478_vm8, %v11537_v32, %v11538_v55  ;;  %v11490_v32 = vld [vmem:[#allocation2 + $0xa0] sm:$0xfe] }
 0xc0f   : > { %v11558_v61 = vrot.slane %v11490_v32, 1  ;;  %v18772_v32 = vld [vmem:[#allocation9 + $0x128] sm:$0xff]  }
 0xc13   : > { %17179 = vmatmul.mubr.bf16.gmra.mrb[124].mxu1 %v11205_v25 }
 0xc14   : > { %17198 = vmatprep.mubr.bf16.mxu1 %v11530_v57  ;;  %v11543_v57 = vrot.slane %v11485_v26, 1  ;;  %v11492_v26 = vld [vmem:[#allocation2 + $0xc0] sm:$0xfe] }
 0xc16   : > { %v11545_v23 = vsel %vm2478_vm8, %v11543_v57, %v11544_v50  ;;  %v11562_v57 = vrot.slane %v22755_v8, 1  ;;  %v11493_v50 = vld [vmem:[#allocation2 + $0xd0] sm:$0xfe] }
 0xc1b   : > { %17199 = vmatmul.mubr.bf16.vlgmr.msra.gmra.mrb[96].mxu1 %v11533_v21  ;;  %v11552_v21 = vrot.slane %v11488_v6, 1 }
 0xc1c   : > { %17231 = vmatpush3.bf16.msra.mxu1 %v22751_v18  ;;  %17202 = vmatprep.mubr.bf16.mxu1 %v11536_v33  ;;  %v11486_v18 = vld [vmem:[#allocation2 + $0x60] sm:$0xfe]  ;;  %v18766_v33 = vld [vmem:[#allocation9 + $0xf8] sm:$0xff]  }
 0xc1d   : > { %17232 = vmatprep.subr.bf16.mxu1 %v18760_v53  ;;  %v11546_v25 = vrot.slane %v11486_v18, 1  ;;  %v11554_v37 = vsel %vm2478_vm8, %v11552_v21, %v11553_v12  ;;  %v18768_v12 = vld [vmem:[#allocation9 + $0x108] sm:$0xff]  }
 0xc1f   : > { %v11548_v10 = vsel %vm2478_vm8, %v11546_v25, %v11547_v17  ;;  %v11565_v25 = vrot.slane %v22758_v43, 1  ;;  %v11494_v17 = vld [vmem:[#allocation2 + $0xe0] sm:$0xfe]  ;;  %v11495_v43 = vld [vmem:[#allocation2 + $0xf0] sm:$0xfe] }
 0xc20   : > { %17233 = vmatpush3.bf16.msra.mxu1 %v18760_v53  ;;  %v11549_v53 = vrot.slane %v11487_v51, 1  ;;  %v11571_v51 = vrot.slane %v22771_v13, 1  ;;  %v18769_v13 = vld [vmem:[#allocation9 + $0x110] sm:$0xff]  }
 0xc21   : > { %17234 = vmatprep.subr.bf16.mxu1 %v18761_v56 }
 0xc22   : > { %v11551_v11 = vsel %vm2478_vm8, %v11549_v53, %v11550_v9  ;;  %v11574_v53 = vrot.slane %v22780_v7, 1  ;;  %v11850_v9 = vld [vmem:[#allocation2 + $0x10] sm:$0xff]  ;;  %v18770_v7 = vld [vmem:[#allocation9 + $0x118] sm:$0xff]  }
 0xc23   : > { %17203 = vmatmul.mubr.bf16.gmra.mrb[100].mxu1 %v11539_v46  ;;  %v11560_v46 = vsel %vm2478_vm8, %v11558_v61, %v11559_v48  ;;  %v18773_v61 = vld [vmem:[#allocation9 + $0x130] sm:$0xff]   ;;  %v22839_v48 = vld [vmem:[#allocation2 + $0x80] sm:$0xff] }
 0xc24   : > { %17206 = vmatprep.mubr.bf16.mxu1 %v11542_v0  ;;  %17235 = vmatpush3.bf16.msra.mxu1 %v18761_v56  ;;  %v11489_v56 = vld [vmem:[#allocation2 + $0x90] sm:$0xfe] }
 0xc25   : > { %17236 = vmatprep.subr.bf16.mxu1 %v18762_v44  ;;  %v11555_v55 = vrot.slane %v11489_v56, 1  ;;  %v11491_v0 = vld [vmem:[#allocation2 + $0xb0] sm:$0xfe]  ;;  %v18771_v56 = vld [vmem:[#allocation9 + $0x120] sm:$0xff]  }
 0xc26   : > { %v11561_v18 = vrot.slane %v11491_v0, 1  ;;  %v22845_v0 = vld [vmem:[#allocation2 + $0xa0] sm:$0xff] }
 0xc28   : > { %17237 = vmatpush3.bf16.msra.mxu1 %v18762_v44  ;;  %v11557_v44 = vsel %vm2478_vm8, %v11555_v55, %v11556_v36  ;;  %v11563_v42 = vsel %vm2478_vm8, %v11561_v18, %v11562_v57  ;;  %v22836_v55 = vld [vmem:[#allocation2 + $0x70] sm:$0xff]  ;;  %v18774_v36 = vld [vmem:[#allocation9 + $0x138] sm:$0xff]   ;;  %v12159_v18 = vshll.u32 %v11850_v9, 16 }
 0xc29   : > { %17238 = vmatprep.subr.bf16.mxu1 %v18763_v3 }
 0xc2a   : > { %v12161_v57 = vrot.slane %v12159_v18, 1 }
 0xc2b   : > { %17207 = vmatmul.mubr.bf16.gmra.mrb[104].mxu1 %v11545_v23  ;;  %v11570_v23 = vrot.slane %v11494_v17, 1 }
 0xc2c   : > { %17210 = vmatprep.mubr.bf16.mxu1 %v11548_v10  ;;  %17239 = vmatpush3.bf16.msra.mxu1 %v18763_v3  ;;  %v11564_v3 = vrot.slane %v11492_v26, 1  ;;  %v11568_v10 = vrot.slane %v22768_v35, 1  ;;  %v22824_v35 = vld [vmem:[#allocation2 + $0x30] sm:$0xff] }
 0xc2d   : > { %17240 = vmatprep.subr.bf16.mxu1 %v18764_v4  ;;  %v11572_v8 = vsel %vm2478_vm8, %v11570_v23, %v11571_v51  ;;  %v22848_v26 = vld [vmem:[#allocation2 + $0xb0] sm:$0xff]  ;;  %v12183_v17 = vshll.u32 %v22824_v35, 16  ;;  %v22862_v23 = vld [vmem:[#allocation2 + $0x38] sm:$0x1] }
 0xc2e   : > { %v11566_v27 = vsel %vm2478_vm8, %v11564_v3, %v11565_v25  ;;  %v22853_v3 = vld [vmem:[#allocation2 + $0x18] sm:$0x1]  ;;  %v12157_v25 = vshrl.u32 %v11850_v9, 16 }
 0xc30   : > { %17241 = vmatpush3.bf16.msra.mxu1 %v18764_v4  ;;  %v11567_v4 = vrot.slane %v11493_v50, 1  ;;  %v12162_v50 = vor.u32 %v12161_v57, %v12157_v25 }
 0xc31   : > { %17242 = vmatprep.subr.bf16.mxu1 %v18765_v63 }
 0xc32   : > { %v11569_v6 = vsel %vm2478_vm8, %v11567_v4, %v11568_v10  ;;  %v12185_v10 = vrot.slane %v12183_v17, 1 }
 0xc33   : > { %17211 = vmatmul.mubr.bf16.gmra.mrb[108].mxu1 %v11551_v11  ;;  %v22827_v11 = vld [vmem:[#allocation2 + $0x40] sm:$0xff] }
 0xc34   : > { %17214 = vmatprep.mubr.bf16.mxu1 %v11554_v37  ;;  %17243 = vmatpush3.bf16.msra.mxu1 %v18765_v63  ;;  %v11573_v63 = vrot.slane %v11495_v43, 1  ;;  %v22830_v37 = vld [vmem:[#allocation2 + $0x50] sm:$0xff]  ;;  %v12193_v18 = vshrl.u32 %v22827_v11, 16 }
 0xc35   : > { %17244 = vmatprep.subr.bf16.mxu1 %v18766_v33  ;;  %v12205_v25 = vshrl.u32 %v22830_v37, 16 }
 0xc36   : > { %v11575_v21 = vsel %vm2478_vm8, %v11573_v63, %v11574_v53  ;;  %v12195_v63 = vshll.u32 %v22827_v11, 16 }
 0xc38   : > { %17245 = vmatpush3.bf16.msra.mxu1 %v18766_v33  ;;  %v22821_v33 = vld [vmem:[#allocation2 + $0x20] sm:$0xff] }
 0xc39   : > { %17278 = vmatprep.subr.bf16.mxu1 %v18767_v60 }
 0xc3b   : > { %17215 = vmatmul.mubr.bf16.gmra.mrb[112].mxu1 %v11557_v44  ;;  %v22842_v44 = vld [vmem:[#allocation2 + $0x90] sm:$0xff] }
 0xc3c   : > { %17218 = vmatprep.mubr.bf16.mxu1 %v11560_v46  ;;  %v18775_v46 = vld [vmem:[#allocation9 + $0x140] sm:$0xff]  }
 0xc43   : > { %17219 = vmatmul.mubr.bf16.gmra.mrb[116].mxu1 %v11563_v42  ;;  %v12164_v42 = vshll.u32 %v22853_v3, 16 }
 0xc44   : > { %17222 = vmatprep.mubr.bf16.mxu1 %v11566_v27  ;;  %v12171_v27 = vshll.u32 %v22821_v33, 16 }
 0xc45   : > { %v12166_v4 = vrot.slane %v12164_v42, 1 }
 0xc4b   : > { %17223 = vmatmul.mubr.bf16.gmra.mrb[120].mxu1 %v11569_v6  ;;  %v12181_v6 = vshrl.u32 %v22824_v35, 16 }
 0xc4c   : > { %17226 = vmatprep.mubr.bf16.mxu1 %v11572_v8  ;;  %v12188_v8 = vshll.u32 %v22862_v23, 16 }
 0xc4d   : > { %v22873_v53 = vor.u32 %v12185_v10, %v12181_v6  ;;  %v22894_v10 = vld [vmem:[#allocation2 + $0x68] sm:$0x1] }
 0xc53   : > { %17227 = vmatmul.mubr.bf16.gmra.mrb[124].mxu1 %v11575_v21 }
 0xc54   : > { %17246 = vmatprep.mubr.bf16.mxu1 %v11850_v9  ;;  %v12190_v9 = vrot.slane %v12188_v8, 1  ;;  %v22898_v8 = vld [vmem:[#allocation2 + $0x78] sm:$0x1] }
 0xc5b   : > { %17247 = vmatmul.mubr.bf16.vlgmr.msra.gmra.mrb[96].mxu1 %v22821_v33 }
 0xc5c   : > { %17279 = vmatpush3.bf16.msra.mxu1 %v18767_v60  ;;  %17250 = vmatprep.mubr.bf16.mxu1 %v22824_v35  ;;  %v22833_v60 = vld [vmem:[#allocation2 + $0x60] sm:$0xff] }
 0xc5d   : > { %17280 = vmatprep.subr.bf16.mxu1 %v18768_v12  ;;  %v12219_v17 = vshll.u32 %v22833_v60, 16 }
 0xc5f   : > { %v12221_v6 = vrot.slane %v12219_v17, 1  ;;  %v22912_v17 = vld [vmem:[#allocation2 + $0x88] sm:$0x1] }
 0xc60   : > { %17281 = vmatpush3.bf16.msra.mxu1 %v18768_v12  ;;  %v18776_v12 = vld [vmem:[#allocation9 + $0x148] sm:$0xff]  }
 0xc61   : > { %17282 = vmatprep.subr.bf16.mxu1 %v18769_v13 }
 0xc63   : > { %17251 = vmatmul.mubr.bf16.gmra.mrb[100].mxu1 %v22827_v11 }
 0xc64   : > { %17254 = vmatprep.mubr.bf16.mxu1 %v22830_v37  ;;  %17283 = vmatpush3.bf16.msra.mxu1 %v18769_v13  ;;  %v22876_v13 = vld [vmem:[#allocation2 + $0x48] sm:$0x1] }
 0xc65   : > { %17284 = vmatprep.subr.bf16.mxu1 %v18770_v7  ;;  %v12200_v57 = vshll.u32 %v22876_v13, 16 }
 0xc68   : > { %17285 = vmatpush3.bf16.msra.mxu1 %v18770_v7 }
 0xc69   : > { %17286 = vmatprep.subr.bf16.mxu1 %v18771_v56 }
 0xc6b   : > { %17255 = vmatmul.mubr.bf16.gmra.mrb[104].mxu1 %v22833_v60 }
 0xc6c   : > { %17258 = vmatprep.mubr.bf16.mxu1 %v22836_v55  ;;  %17287 = vmatpush3.bf16.msra.mxu1 %v18771_v56  ;;  %v12197_v56 = vrot.slane %v12195_v63, 1 }
 0xc6d   : > { %17288 = vmatprep.subr.bf16.mxu1 %v18772_v32 }
 0xc70   : > { %17289 = vmatpush3.bf16.msra.mxu1 %v18772_v32  ;;  %v22880_v32 = vld [vmem:[#allocation2 + $0x58] sm:$0x1] }
 0xc71   : > { %17290 = vmatprep.subr.bf16.mxu1 %v18773_v61  ;;  %v12212_v42 = vshll.u32 %v22880_v32, 16 }
 0xc73   : > { %17259 = vmatmul.mubr.bf16.gmra.mrb[108].mxu1 %v22839_v48 }
 0xc74   : > { %17262 = vmatprep.mubr.bf16.mxu1 %v22842_v44  ;;  %17291 = vmatpush3.bf16.msra.mxu1 %v18773_v61  ;;  %v12191_v61 = vsel %vm1963_vm7, %v22873_v53, %v12190_v9  ;;  %v12224_v9 = vshll.u32 %v22894_v10, 16 }
 0xc75   : > { %17292 = vmatprep.subr.bf16.mxu1 %v18774_v36 }
 0xc78   : > { %17293 = vmatpush3.bf16.msra.mxu1 %v18774_v36 }
 0xc79   : > { %17326 = vmatprep.subr.bf16.mxu1 %v18775_v46 }
 0xc7b   : > { %17263 = vmatmul.mubr.bf16.gmra.mrb[112].mxu1 %v22845_v0 }
 0xc7c   : > { %17266 = vmatprep.mubr.bf16.mxu1 %v22848_v26 }
 0xc83   : > { %17267 = vmatmul.mubr.bf16.gmra.mrb[116].mxu1 %v22647_v14  ;;  %v22860_v14 = vld [vmem:[#allocation2 + $0x28] sm:$0x1] }
 0xc84   : > { %17270 = vmatprep.mubr.bf16.mxu1 %v22657_v2  ;;  %v12173_v2 = vrot.slane %v12171_v27, 1  ;;  %v12176_v51 = vshll.u32 %v22860_v14, 16  ;;  %v18777_v27 = vld [vmem:[#allocation9 + $0x150] sm:$0xff]   ;;  %v12674_v16 = vrot.slane %v22860_v14, 1  ;;  %v12683_v14 = vrot.slane %v22880_v32, 1 }
 0xc85   : > { %v12689_v32 = vrot.slane %v22898_v8, 1 }
 0xc86   : > { %v12178_v21 = vrot.slane %v12176_v51, 1 }
 0xc8b   : > { %17271 = vmatmul.mubr.bf16.gmra.mrb[120].mxu1 %v22672_v28  ;;  %v12167_v28 = vsel %vm1963_vm7, %v12162_v50, %v12166_v4  ;;  %v22888_v50 = vor.u32 %v12197_v56, %v12193_v18  ;;  %v18779_v56 = vld [vmem:[#allocation9 + $0x160] sm:$0xff]  }
 0xc8c   : > { %17274 = vmatprep.mubr.bf16.mxu1 %v22689_v41  ;;  %v12169_v41 = vshrl.u32 %v22821_v33, 16 }
 0xc8e   : > { %v22870_v43 = vor.u32 %v12173_v2, %v12169_v41  ;;  %v12231_v2 = vshll.u32 %v22836_v55, 16  ;;  %v18778_v41 = vld [vmem:[#allocation9 + $0x158] sm:$0xff]  }
 0xc90   : > { %v12179_v7 = vsel %vm1963_vm7, %v22870_v43, %v12178_v21  ;;  %v12217_v21 = vshrl.u32 %v22833_v60, 16 }
 0xc93   : > { %17275 = vmatmul.mubr.bf16.gmra.mrb[124].mxu1 %v22707_v22  ;;  %v12207_v22 = vshll.u32 %v22830_v37, 16 }
 0xc94   : > { %17294 = vmatprep.mubr.bf16.mxu1 %v12167_v28  ;;  %v12214_v28 = vrot.slane %v12212_v42, 1 }
 0xc95   : > { %v12209_v36 = vrot.slane %v12207_v22, 1  ;;  %v12233_v22 = vrot.slane %v12231_v2, 1 }
 0xc97   : > { %v22891_v4 = vor.u32 %v12209_v36, %v12205_v25  ;;  %v12243_v36 = vshll.u32 %v22839_v48, 16  ;;  %v12226_v25 = vrot.slane %v12224_v9, 1  ;;  %v18781_v9 = vld [vmem:[#allocation9 + $0x170] sm:$0xff]  }
 0xc99   : > { %v12215_v63 = vsel %vm1963_vm7, %v22891_v4, %v12214_v28  ;;  %v22916_v28 = vld [vmem:[#allocation2 + $0x98] sm:$0x1] }
 0xc9b   : > { %17295 = vmatmul.mubr.bf16.vlgmr.msra.gmra.mrb[96].mxu1 %v12179_v7  ;;  %v12236_v7 = vshll.u32 %v22898_v8, 16  ;;  %v12695_v8 = vrot.slane %v22916_v28, 1 }
 0xc9c   : > { %17327 = vmatpush3.bf16.msra.mxu1 %v18775_v46  ;;  %17298 = vmatprep.mubr.bf16.mxu1 %v12191_v61  ;;  %v12202_v46 = vrot.slane %v12200_v57, 1  ;;  %v22906_v61 = vor.u32 %v12221_v6, %v12217_v21  ;;  %v12255_v57 = vshll.u32 %v22842_v44, 16  ;;  %v12260_v21 = vshll.u32 %v22916_v28, 16 }
 0xc9d   : > { %17328 = vmatprep.subr.bf16.mxu1 %v18776_v12  ;;  %v12238_v42 = vrot.slane %v12236_v7, 1  ;;  %v12267_v7 = vshll.u32 %v22845_v0, 16  ;;  %v12701_v28 = vrot.slane %v22932_v15, 1 }
 0xc9e   : > { %v12203_v51 = vsel %vm1963_vm7, %v22888_v50, %v12202_v46  ;;  %v12227_v2 = vsel %vm1963_vm7, %v22906_v61, %v12226_v25  ;;  %v12245_v46 = vrot.slane %v12243_v36, 1  ;;  %v12257_v6 = vrot.slane %v12255_v57, 1 }
 0xc9f   : > { %v12279_v25 = vshll.u32 %v22848_v26, 16  ;;  %v12269_v59 = vrot.slane %v12267_v7, 1  ;;  %v12284_v7 = vshll.u32 %v22932_v15, 16 }
 0xca0   : > { %17329 = vmatpush3.bf16.msra.mxu1 %v18776_v12  ;;  %v12229_v12 = vshrl.u32 %v22836_v55, 16 }
 0xca1   : > { %17330 = vmatprep.subr.bf16.mxu1 %v18777_v27  ;;  %v12286_v62 = vrot.slane %v12284_v7, 1  ;;  %v12308_v7 = vshll.u32 %v22951_v52, 16 }
 0xca2   : > { %v22909_v18 = vor.u32 %v12233_v22, %v12229_v12  ;;  %v12253_v22 = vshrl.u32 %v22842_v44, 16 }
 0xca3   : > { %17299 = vmatmul.mubr.bf16.gmra.mrb[100].mxu1 %v12203_v51 }
 0xca4   : > { %17302 = vmatprep.mubr.bf16.mxu1 %v12215_v63  ;;  %17331 = vmatpush3.bf16.msra.mxu1 %v18777_v27  ;;  %v18780_v27 = vld [vmem:[#allocation9 + $0x168] sm:$0xff]   ;;  %v12239_v51 = vsel %vm1963_vm7, %v22909_v18, %v12238_v42  ;;  %v12241_v63 = vshrl.u32 %v22839_v48, 16  ;;  %v12258_v36 = vor.u32 %v12257_v6, %v12253_v22  ;;  %v12262_v42 = vrot.slane %v12260_v21, 1  ;;  %v22935_v6 = vld [vmem:[#allocation2 + $0xc0] sm:$0xff]  ;;  %v22939_v22 = vld [vmem:[#allocation2 + $0xd0] sm:$0xff] }
 0xca5   : > { %17332 = vmatprep.subr.bf16.mxu1 %v18778_v41  ;;  %v12277_v21 = vshrl.u32 %v22848_v26, 16 }
 0xca6   : > { %v22924_v12 = vor.u32 %v12245_v46, %v12241_v63  ;;  %v12263_v46 = vsel %vm1963_vm7, %v12258_v36, %v12262_v42  ;;  %v12281_v63 = vrot.slane %v12279_v25, 1  ;;  %v12291_v36 = vshll.u32 %v22935_v6, 16 }
 0xca7   : > { %v12303_v42 = vshll.u32 %v22939_v22, 16 }
 0xca8   : > { %17333 = vmatpush3.bf16.msra.mxu1 %v18778_v41  ;;  %v12248_v41 = vshll.u32 %v22912_v17, 16  ;;  %v12282_v25 = vor.u32 %v12281_v63, %v12277_v21  ;;  %v12293_v39 = vrot.slane %v12291_v36, 1  ;;  %v12289_v63 = vshrl.u32 %v22935_v6, 16 }
 0xca9   : > { %17334 = vmatprep.subr.bf16.mxu1 %v18779_v56  ;;  %v12301_v21 = vshrl.u32 %v22939_v22, 16  ;;  %v12315_v36 = vshll.u32 %v22954_v24, 16 }
 0xcaa   : > { %v12250_v57 = vrot.slane %v12248_v41, 1 }
 0xcab   : > { %17303 = vmatmul.mubr.bf16.gmra.mrb[104].mxu1 %v12227_v2  ;;  %v22928_v2 = vld [vmem:[#allocation2 + $0xa8] sm:$0x1]  ;;  %v12317_v5 = vrot.slane %v12315_v36, 1  ;;  %v12339_v36 = vshll.u32 %v22976_v45, 16 }
 0xcac   : > { %17306 = vmatprep.mubr.bf16.mxu1 %v12239_v51  ;;  %17335 = vmatpush3.bf16.msra.mxu1 %v18779_v56  ;;  %v18782_v56 = vld [vmem:[#allocation9 + $0x178] sm:$0xff]   ;;  %v12251_v51 = vsel %vm1963_vm7, %v22924_v12, %v12250_v57  ;;  %v12272_v41 = vshll.u32 %v22928_v2, 16  ;;  %v22943_v57 = vld [vmem:[#allocation9 + $0x180] sm:$0xff]  }
 0xcad   : > { %17336 = vmatprep.subr.bf16.mxu1 %v18780_v27  ;;  %v12341_v30 = vrot.slane %v12339_v36, 1 }
 0xcb0   : > { %17337 = vmatpush3.bf16.msra.mxu1 %v18780_v27  ;;  %v12265_v27 = vshrl.u32 %v22845_v0, 16 }
 0xcb1   : > { %17338 = vmatprep.subr.bf16.mxu1 %v18781_v9 }
 0xcb3   : > { %17307 = vmatmul.mubr.bf16.gmra.mrb[108].mxu1 %v12251_v51  ;;  %v12270_v51 = vor.u32 %v12269_v59, %v12265_v27  ;;  %v12287_v59 = vsel %vm1963_vm7, %v12282_v25, %v12286_v62  ;;  %v12305_v27 = vrot.slane %v12303_v42, 1  ;;  %v12310_v42 = vrot.slane %v12308_v7, 1 }
 0xcb4   : > { %17310 = vmatprep.mubr.bf16.mxu1 %v12263_v46  ;;  %17339 = vmatpush3.bf16.msra.mxu1 %v18781_v9  ;;  %v12274_v46 = vrot.slane %v12272_v41, 1  ;;  %v22958_v41 = vld [vmem:[#allocation2 + $0xf0] sm:$0xff]  ;;  %v12332_v7 = vshll.u32 %v22972_v20, 16 }
 0xcb5   : > { %17340 = vmatprep.subr.bf16.mxu1 %v18782_v56  ;;  %v12327_v62 = vshll.u32 %v22958_v41, 16 }
 0xcb6   : > { %v12275_v9 = vsel %vm1963_vm7, %v12270_v51, %v12274_v46  ;;  %v22962_v51 = vor.u32 %v12293_v39, %v12289_v63  ;;  %v22965_v46 = vor.u32 %v12305_v27, %v12301_v21  ;;  %v12313_v27 = vshrl.u32 %v22954_v24, 16 }
 0xcb7   : > { %v12329_v63 = vrot.slane %v12327_v62, 1  ;;  %v12325_v21 = vshrl.u32 %v22958_v41, 16  ;;  %v22987_v62 = vld [vmem:[#allocation2 + $0x108] sm:$0x1] }
 0xcb8   : > { %17341 = vmatpush3.bf16.msra.mxu1 %v18782_v56  ;;  %v12296_v56 = vshll.u32 %v22947_v49, 16  ;;  %v12311_v39 = vsel %vm1963_vm7, %v22965_v46, %v12310_v42  ;;  %v12334_v42 = vrot.slane %v12332_v7, 1  ;;  %v12671_v7 = vrot.slane %v22853_v3, 1 }
 0xcb9   : > { %17374 = vmatprep.subr.bf16.mxu1 %v22943_v57 }
 0xcba   : > { %v12298_v25 = vrot.slane %v12296_v56, 1 }
 0xcbb   : > { %17311 = vmatmul.mubr.bf16.gmra.mrb[112].mxu1 %v12275_v9  ;;  %v22968_v9 = vld [vmem:[#allocation2 + $0xe8] sm:$0x1] }
 0xcbc   : > { %17314 = vmatprep.mubr.bf16.mxu1 %v12287_v59  ;;  %v12299_v59 = vsel %vm1963_vm7, %v22962_v51, %v12298_v25  ;;  %v12320_v56 = vshll.u32 %v22968_v9, 16  ;;  %v22982_v25 = vor.u32 %v12317_v5, %v12313_v27  ;;  %v12337_v5 = vshrl.u32 %v22976_v45, 16 }
 0xcbd   : > { %v12344_v27 = vshll.u32 %v22987_v62, 16 }
 0xcbe   : > { %v12322_v40 = vrot.slane %v12320_v56, 1  ;;  %v12670_v56 = vrot.slane %v12622_v47, 1 }
 0xcc0   : > { %v12672_v36 = vsel %vm2478_vm8, %v12670_v56, %v12671_v7  ;;  %v12626_v56 = vld [vmem:[#allocation2 + $0x50] sm:$0xfe] }
 0xcc3   : > { %17315 = vmatmul.mubr.bf16.gmra.mrb[116].mxu1 %v12299_v59  ;;  %v22985_v59 = vor.u32 %v12329_v63, %v12325_v21  ;;  %v22995_v63 = vor.u32 %v12341_v30, %v12337_v5  ;;  %v12346_v21 = vrot.slane %v12344_v27, 1  ;;  %v12677_v30 = vrot.slane %v22862_v23, 1  ;;  %v18784_v5 = vld [vmem:[#allocation9 + $0x188] sm:$0xff]   ;;  %v12625_v27 = vld [vmem:[#allocation2 + $0x40] sm:$0xfe]  ;;  %v18786_v23 = vld [vmem:[#allocation9 + $0x198] sm:$0xff]  }
 0xcc4   : > { %17318 = vmatprep.mubr.bf16.mxu1 %v12311_v39  ;;  %v12323_v39 = vsel %vm1963_vm7, %v22982_v25, %v12322_v40  ;;  %v12679_v7 = vrot.slane %v12625_v27, 1  ;;  %v12629_v27 = vld [vmem:[#allocation2 + $0x80] sm:$0xfe] }
 0xcc5   : > { %v12335_v58 = vsel %vm1963_vm7, %v22985_v59, %v12334_v42  ;;  %v12347_v40 = vsel %vm1963_vm7, %v22995_v63, %v12346_v21  ;;  %v18785_v21 = vld [vmem:[#allocation9 + $0x190] sm:$0xff]  }
 0xccb   : > { %17319 = vmatmul.mubr.bf16.gmra.mrb[120].mxu1 %v12323_v39  ;;  %v12623_v39 = vld [vmem:[#allocation2 + $0x20] sm:$0xfe] }
 0xccc   : > { %17322 = vmatprep.mubr.bf16.mxu1 %v12335_v58  ;;  %v12624_v58 = vld [vmem:[#allocation2 + $0x30] sm:$0xfe]  ;;  %v12673_v42 = vrot.slane %v12623_v39, 1  ;;  %v12627_v39 = vld [vmem:[#allocation2 + $0x60] sm:$0xfe] }
 0xccd   : > { %v12676_v38 = vrot.slane %v12624_v58, 1  ;;  %v18787_v58 = vld [vmem:[#allocation9 + $0x1a0] sm:$0xff]  }
 0xcce   : > { %v12675_v47 = vsel %vm2478_vm8, %v12673_v42, %v12674_v16  ;;  %v12685_v42 = vrot.slane %v12627_v39, 1  ;;  %v18791_v39 = vld [vmem:[#allocation9 + $0x1c0] sm:$0xff]  }
 0xccf   : > { %v12678_v3 = vsel %vm2478_vm8, %v12676_v38, %v12677_v30 }
 0xcd3   : > { %17323 = vmatmul.mubr.bf16.gmra.mrb[124].mxu1 %v12347_v40  ;;  %v12682_v40 = vrot.slane %v12626_v56, 1  ;;  %v12630_v56 = vld [vmem:[#allocation2 + $0x90] sm:$0xfe] }
 0xcd4   : > { %17342 = vmatprep.mubr.bf16.mxu1 %v12672_v36  ;;  %v12680_v36 = vrot.slane %v22876_v13, 1  ;;  %v12686_v13 = vrot.slane %v22894_v10, 1  ;;  %v12692_v10 = vrot.slane %v22912_v17, 1  ;;  %v12698_v17 = vrot.slane %v22928_v2, 1 }
 0xcd5   : > { %v12684_v38 = vsel %vm2478_vm8, %v12682_v40, %v12683_v14  ;;  %v12694_v40 = vrot.slane %v12630_v56, 1  ;;  %v12635_v56 = vld [vmem:[#allocation2 + $0xe0] sm:$0xfe] }
 0xcd6   : > { %v12681_v16 = vsel %vm2478_vm8, %v12679_v7, %v12680_v36  ;;  %v12691_v7 = vrot.slane %v12629_v27, 1  ;;  %v18790_v36 = vld [vmem:[#allocation9 + $0x1b8] sm:$0xff]   ;;  %v12707_v27 = vrot.slane %v22951_v52, 1  ;;  %v12637_v52 = vld [vmem:[#allocation2 + $0x100] sm:$0xfe] }
 0xcd8   : > { %v12693_v14 = vsel %vm2478_vm8, %v12691_v7, %v12692_v10  ;;  %v12709_v7 = vrot.slane %v12635_v56, 1  ;;  %v12710_v10 = vrot.slane %v22968_v9, 1  ;;  %v18794_v9 = vld [vmem:[#allocation9 + $0x1d8] sm:$0xff]  }
 0xcdb   : > { %17343 = vmatmul.mubr.bf16.vlgmr.msra.gmra.mrb[96].mxu1 %v12675_v47  ;;  %v12687_v47 = vsel %vm2478_vm8, %v12685_v42, %v12686_v13  ;;  %v12633_v13 = vld [vmem:[#allocation2 + $0xc0] sm:$0xfe] }
 0xcdc   : > { %17375 = vmatpush3.bf16.msra.mxu1 %v22943_v57  ;;  %17346 = vmatprep.mubr.bf16.mxu1 %v12678_v3  ;;  %v12628_v57 = vld [vmem:[#allocation2 + $0x70] sm:$0xfe] }
 0xcdd   : > { %17376 = vmatprep.subr.bf16.mxu1 %v18784_v5  ;;  %v12688_v30 = vrot.slane %v12628_v57, 1 }
 0xcdf   : > { %v12690_v3 = vsel %vm2478_vm8, %v12688_v30, %v12689_v32  ;;  %v12634_v32 = vld [vmem:[#allocation2 + $0xd0] sm:$0xfe] }
 0xce0   : > { %17377 = vmatpush3.bf16.msra.mxu1 %v18784_v5  ;;  %v18788_v5 = vld [vmem:[#allocation9 + $0x1a8] sm:$0xff]  }
 0xce1   : > { %17378 = vmatprep.subr.bf16.mxu1 %v18785_v21 }
 0xce3   : > { %17347 = vmatmul.mubr.bf16.gmra.mrb[100].mxu1 %v12681_v16  ;;  %v12631_v16 = vld [vmem:[#allocation2 + $0xa0] sm:$0xfe] }
 0xce4   : > { %17350 = vmatprep.mubr.bf16.mxu1 %v12684_v38  ;;  %17379 = vmatpush3.bf16.msra.mxu1 %v18785_v21  ;;  %v18789_v21 = vld [vmem:[#allocation9 + $0x1b0] sm:$0xff]   ;;  %v12697_v57 = vrot.slane %v12631_v16, 1 }
 0xce5   : > { %17380 = vmatprep.subr.bf16.mxu1 %v18786_v23  ;;  %v12632_v38 = vld [vmem:[#allocation2 + $0xb0] sm:$0xfe] }
 0xce6   : > { %v12699_v42 = vsel %vm2478_vm8, %v12697_v57, %v12698_v17  ;;  %v18810_v57 = vld [vmem:[#allocation11 + $0x10] ss:$8 sps:$4 sm:$0xff]  }
 0xce8   : > { %17381 = vmatpush3.bf16.msra.mxu1 %v18786_v23  ;;  %v12696_v23 = vsel %vm2478_vm8, %v12694_v40, %v12695_v8  ;;  %v12713_v8 = vrot.slane %v22972_v20, 1  ;;  %v18793_v20 = vld [vmem:[#allocation9 + $0x1d0] sm:$0xff]  }
 0xce9   : > { %17382 = vmatprep.subr.bf16.mxu1 %v18787_v58 }
 0xceb   : > { %17351 = vmatmul.mubr.bf16.gmra.mrb[104].mxu1 %v12687_v47  ;;  %v12706_v47 = vrot.slane %v12634_v32, 1  ;;  %v18813_v32 = vld [vmem:[#allocation11 + $0x20] ss:$8 sps:$4 sm:$0xff]  }
 0xcec   : > { %17354 = vmatprep.mubr.bf16.mxu1 %v12690_v3  ;;  %17383 = vmatpush3.bf16.msra.mxu1 %v18787_v58  ;;  %v12700_v58 = vrot.slane %v12632_v38, 1  ;;  %v12704_v3 = vrot.slane %v22947_v49, 1  ;;  %v18792_v38 = vld [vmem:[#allocation9 + $0x1c8] sm:$0xff]  }
 0xced   : > { %17384 = vmatprep.subr.bf16.mxu1 %v18788_v5  ;;  %v12708_v15 = vsel %vm2478_vm8, %v12706_v47, %v12707_v27  ;;  %v18818_v47 = vld [vmem:[#allocation11 + $0x34] ss:$8 sps:$4 sm:$0xff]  }
 0xcee   : > { %v12702_v30 = vsel %vm2478_vm8, %v12700_v58, %v12701_v28  ;;  %v18815_v58 = vld [vmem:[#allocation11 + $0x24] ss:$8 sps:$4 sm:$0xff]  }
 0xcf0   : > { %17385 = vmatpush3.bf16.msra.mxu1 %v18788_v5  ;;  %v12703_v5 = vrot.slane %v12633_v13, 1  ;;  %v23065_v13 = vld [vmem:[#allocation2 + $0x68] sm:$0x1] }
 0xcf1   : > { %17386 = vmatprep.subr.bf16.mxu1 %v18789_v21  ;;  %v13354_v27 = vshll.u32 %v23065_v13, 16 }
 0xcf2   : > { %v12705_v2 = vsel %vm2478_vm8, %v12703_v5, %v12704_v3 }
 0xcf3   : > { %17355 = vmatmul.mubr.bf16.gmra.mrb[108].mxu1 %v12693_v14  ;;  %v12715_v14 = vrot.slane %v12637_v52, 1  ;;  %v18824_v52 = vld [vmem:[#allocation11 + $0x54] ss:$8 sps:$4 sm:$0xff]  }
 0xcf4   : > { %17358 = vmatprep.mubr.bf16.mxu1 %v12696_v23  ;;  %17387 = vmatpush3.bf16.msra.mxu1 %v18789_v21  ;;  %v12636_v21 = vld [vmem:[#allocation2 + $0xf0] sm:$0xfe]  ;;  %v12716_v23 = vrot.slane %v22987_v62, 1  ;;  %v18795_v62 = vld [vmem:[#allocation9 + $0x1e0] sm:$0xff]  }
 0xcf5   : > { %17388 = vmatprep.subr.bf16.mxu1 %v18790_v36  ;;  %v12712_v40 = vrot.slane %v12636_v21, 1  ;;  %v13356_v21 = vrot.slane %v13354_v27, 1 }
 0xcf6   : > { %v12717_v16 = vsel %vm2478_vm8, %v12715_v14, %v12716_v23  ;;  %v13282_v23 = vld [vmem:[#allocation2 + $0xa0] sm:$0xff] }
 0xcf7   : > { %v12714_v49 = vsel %vm2478_vm8, %v12712_v40, %v12713_v8  ;;  %v18819_v8 = vld [vmem:[#allocation11 + $0x40] ss:$8 sps:$4 sm:$0xff]  }
 0xcf8   : > { %17389 = vmatpush3.bf16.msra.mxu1 %v18790_v36  ;;  %v12711_v36 = vsel %vm2478_vm8, %v12709_v7, %v12710_v10  ;;  %v23071_v7 = vld [vmem:[#allocation2 + $0x78] sm:$0x1]  ;;  %v23075_v10 = vld [vmem:[#allocation2 + $0x88] sm:$0x1] }
 0xcf9   : > { %17422 = vmatprep.subr.bf16.mxu1 %v18791_v39  ;;  %v13366_v14 = vshll.u32 %v23071_v7, 16 }
 0xcfb   : > { %17359 = vmatmul.mubr.bf16.gmra.mrb[112].mxu1 %v12699_v42  ;;  %v18800_v42 = vld [vmem:[#allocation9 + $0x208] sm:$0xff]  }
 0xcfc   : > { %17362 = vmatprep.mubr.bf16.mxu1 %v12702_v30  ;;  %v23061_v30 = vld [vmem:[#allocation2 + $0x58] sm:$0x1] }
 0xcfd   : > { %v13342_v3 = vshll.u32 %v23061_v30, 16 }
 0xcff   : > { %v13344_v56 = vrot.slane %v13342_v3, 1  ;;  %v18806_v3 = vld [vmem:[#allocation9 + $0x238] sm:$0xff]  }
 0xd01   : > { %v13345_v40 = vsel %vm1963_vm7, %v22891_v4, %v13344_v56  ;;  %v18803_v4 = vld [vmem:[#allocation9 + $0x220] sm:$0xff]  }
 0xd03   : > { %17363 = vmatmul.mubr.bf16.gmra.mrb[116].mxu1 %v12705_v2  ;;  %v18801_v2 = vld [vmem:[#allocation9 + $0x210] sm:$0xff]  }
 0xd04   : > { %17366 = vmatprep.mubr.bf16.mxu1 %v12708_v15  ;;  %v18821_v15 = vld [vmem:[#allocation11 + $0x44] ss:$8 sps:$4 sm:$0xff]  }
 0xd0b   : > { %17367 = vmatmul.mubr.bf16.gmra.mrb[120].mxu1 %v12711_v36  ;;  %v13357_v36 = vsel %vm1963_vm7, %v22906_v61, %v13356_v21 }
 0xd0c   : > { %17370 = vmatprep.mubr.bf16.mxu1 %v12714_v49  ;;  %v13280_v49 = vld [vmem:[#allocation2 + $0x90] sm:$0xff] }
 0xd13   : > { %17371 = vmatmul.mubr.bf16.gmra.mrb[124].mxu1 %v12717_v16  ;;  %v13378_v16 = vshll.u32 %v23075_v10, 16 }
 0xd14   : > { %17390 = vmatprep.mubr.bf16.mxu1 %v22821_v33  ;;  %v18796_v33 = vld [vmem:[#allocation9 + $0x1e8] sm:$0xff]  }
 0xd15   : > { %v13380_v61 = vrot.slane %v13378_v16, 1 }
 0xd1b   : > { %17391 = vmatmul.mubr.bf16.vlgmr.msra.gmra.mrb[96].mxu1 %v22824_v35  ;;  %v18797_v35 = vld [vmem:[#allocation9 + $0x1f0] sm:$0xff]  }
 0xd1c   : > { %17423 = vmatpush3.bf16.msra.mxu1 %v18791_v39  ;;  %17394 = vmatprep.mubr.bf16.mxu1 %v22827_v11  ;;  %v18798_v11 = vld [vmem:[#allocation9 + $0x1f8] sm:$0xff]  }
 0xd1d   : > { %17424 = vmatprep.subr.bf16.mxu1 %v18792_v38 }
 0xd20   : > { %17425 = vmatpush3.bf16.msra.mxu1 %v18792_v38  ;;  %v13385_v38 = vshll.u32 %v13280_v49, 16 }
 0xd21   : > { %17426 = vmatprep.subr.bf16.mxu1 %v18793_v20 }
 0xd23   : > { %17395 = vmatmul.mubr.bf16.gmra.mrb[100].mxu1 %v22830_v37  ;;  %v18799_v37 = vld [vmem:[#allocation9 + $0x200] sm:$0xff]  }
 0xd24   : > { %17398 = vmatprep.mubr.bf16.mxu1 %v22833_v60  ;;  %17427 = vmatpush3.bf16.msra.mxu1 %v18793_v20  ;;  %v23045_v60 = vld [vmem:[#allocation2 + $0x28] sm:$0x1]  ;;  %v18822_v20 = vld [vmem:[#allocation11 + $0x50] ss:$8 sps:$4 sm:$0xff]  }
 0xd25   : > { %17428 = vmatprep.subr.bf16.mxu1 %v18794_v9 }
 0xd28   : > { %17429 = vmatpush3.bf16.msra.mxu1 %v18794_v9  ;;  %v13397_v9 = vshll.u32 %v13282_v23, 16 }
 0xd29   : > { %17430 = vmatprep.subr.bf16.mxu1 %v18795_v62 }
 0xd2b   : > { %17399 = vmatmul.mubr.bf16.gmra.mrb[104].mxu1 %v22836_v55  ;;  %v13306_v55 = vshll.u32 %v23045_v60, 16 }
 0xd2c   : > { %17402 = vmatprep.mubr.bf16.mxu1 %v22839_v48  ;;  %17431 = vmatpush3.bf16.msra.mxu1 %v18795_v62  ;;  %v18827_v62 = vld [vmem:[#allocation11 + $0x64] ss:$8 sps:$4 sm:$0xff]  }
 0xd2d   : > { %17432 = vmatprep.subr.bf16.mxu1 %v18796_v33  ;;  %v13308_v48 = vrot.slane %v13306_v55, 1  ;;  %v13387_v55 = vrot.slane %v13385_v38, 1 }
 0xd30   : > { %17433 = vmatpush3.bf16.msra.mxu1 %v18796_v33  ;;  %v13368_v33 = vrot.slane %v13366_v14, 1  ;;  %v23102_v14 = vld [vmem:[#allocation2 + $0xe8] sm:$0x1] }
 0xd31   : > { %17434 = vmatprep.subr.bf16.mxu1 %v18797_v35 }
 0xd33   : > { %17403 = vmatmul.mubr.bf16.gmra.mrb[108].mxu1 %v22842_v44  ;;  %v23050_v44 = vld [vmem:[#allocation2 + $0x38] sm:$0x1] }
 0xd34   : > { %17406 = vmatprep.mubr.bf16.mxu1 %v22845_v0  ;;  %17435 = vmatpush3.bf16.msra.mxu1 %v18797_v35  ;;  %v23052_v0 = vld [vmem:[#allocation2 + $0x48] sm:$0x1]  ;;  %v23081_v35 = vld [vmem:[#allocation2 + $0x98] sm:$0x1] }
 0xd35   : > { %17436 = vmatprep.subr.bf16.mxu1 %v18798_v11  ;;  %v13330_v39 = vshll.u32 %v23052_v0, 16 }
 0xd37   : > { %v13332_v28 = vrot.slane %v13330_v39, 1  ;;  %v13383_v39 = vshrl.u32 %v13280_v49, 16  ;;  %v23099_v49 = vld [vmem:[#allocation2 + $0xd8] sm:$0x1] }
 0xd38   : > { %17437 = vmatpush3.bf16.msra.mxu1 %v18798_v11  ;;  %v18804_v11 = vld [vmem:[#allocation9 + $0x228] sm:$0xff]   ;;  %v13438_v16 = vshll.u32 %v23099_v49, 16 }
 0xd39   : > { %17470 = vmatprep.subr.bf16.mxu1 %v18799_v37  ;;  %v13333_v5 = vsel %vm1963_vm7, %v22888_v50, %v13332_v28  ;;  %v18802_v50 = vld [vmem:[#allocation9 + $0x218] sm:$0xff]   ;;  %v13388_v28 = vor.u32 %v13387_v55, %v13383_v39 }
 0xd3a   : > { %v13440_v38 = vrot.slane %v13438_v16, 1  ;;  %v23119_v55 = vld [vmem:[#allocation2 + $0x118] sm:$0x1]  ;;  %v13831_v16 = vrot.slane %v23075_v10, 1  ;;  %v13773_v10 = vld [vmem:[#allocation2 + $0xb0] sm:$0xfe] }
 0xd3b   : > { %17407 = vmatmul.mubr.bf16.gmra.mrb[112].mxu1 %v22848_v26  ;;  %v23054_v26 = vld [vmem:[#allocation2] sm:$0xff] }
 0xd3c   : > { %17410 = vmatprep.mubr.bf16.mxu1 %v22935_v6  ;;  %v18807_v6 = vld [vmem:[#allocation11] ss:$8 sps:$4 sm:$0xff]  }
 0xd43   : > { %17411 = vmatmul.mubr.bf16.gmra.mrb[116].mxu1 %v22939_v22  ;;  %v18809_v22 = vld [vmem:[#allocation11 + $0x4] ss:$8 sps:$4 sm:$0xff]  }
 0xd44   : > { %17414 = vmatprep.mubr.bf16.mxu1 %v22954_v24  ;;  %v13309_v24 = vsel %vm1963_vm7, %v22870_v43, %v13308_v48  ;;  %14290 = vmatprep.subr.bf16.mxu0 %v18809_v22  ;;  %v23085_v48 = vld [vmem:[#allocation2 + $0xa8] sm:$0x1]  ;;  %v13399_v22 = vrot.slane %v13397_v9, 1  ;;  %v23108_v9 = vld [vmem:[#allocation2 + $0xf8] sm:$0x1] }
 0xd45   : > { %14291 = vmatpush1.bf16.msra.mxu0 %v18807_v6  ;;  %v13381_v6 = vsel %vm1963_vm7, %v22924_v12, %v13380_v61 }
 0xd4b   : > { %17415 = vmatmul.mubr.bf16.gmra.mrb[120].mxu1 %v22958_v41  ;;  %v13318_v41 = vshll.u32 %v23050_v44, 16 }
 0xd4c   : > { %17418 = vmatprep.mubr.bf16.mxu1 %v22976_v45  ;;  %v18812_v45 = vld [vmem:[#allocation11 + $0x14] ss:$8 sps:$4 sm:$0xff]  }
 0xd4d   : > { %14292 = vmatprep.subr.bf16.mxu0 %v18812_v45  ;;  %v13320_v17 = vrot.slane %v13318_v41, 1  ;;  %v13284_v41 = vld [vmem:[#allocation2 + $0xb0] sm:$0xff] }
 0xd4e   : > { %14293 = vmatpush1.bf16.msra.mxu0 %v18810_v57  ;;  %v18830_v45 = vld [vmem:[#allocation11 + $0x74] ss:$8 sps:$4 sm:$0xff]   ;;  %v13390_v57 = vshll.u32 %v23081_v35, 16  ;;  %v13407_v56 = vshrl.u32 %v13284_v41, 16 }
 0xd4f   : > { %v13321_v43 = vsel %vm1963_vm7, %v22873_v53, %v13320_v17  ;;  %14294 = vmatprep.subr.bf16.mxu0 %v18815_v58  ;;  %v18816_v53 = vld [vmem:[#allocation11 + $0x30] ss:$8 sps:$4 sm:$0xff]   ;;  %v13395_v58 = vshrl.u32 %v13282_v23, 16 }
 0xd50   : > { %v18805_v17 = vld [vmem:[#allocation9 + $0x230] sm:$0xff]   ;;  %v13392_v12 = vrot.slane %v13390_v57, 1 }
 0xd52   : > { %14295 = vmatpush1.bf16.msra.mxu0 %v18813_v32  ;;  %v13400_v32 = vor.u32 %v13399_v22, %v13395_v58  ;;  %v13393_v27 = vsel %vm1963_vm7, %v13388_v28, %v13392_v12  ;;  %v13764_v58 = vld [vmem:[#allocation2 + $0x20] sm:$0xfe]  ;;  %v13813_v28 = vrot.slane %v23045_v60, 1 }
 0xd53   : > { %17419 = vmatmul.mubr.bf16.gmra.mrb[124].mxu1 %v23054_v26  ;;  %14296 = vmatprep.subr.bf16.mxu0 %v18818_v47  ;;  %v23091_v47 = vld [vmem:[#allocation2 + $0xb8] sm:$0x1]  ;;  %v13768_v60 = vld [vmem:[#allocation2 + $0x60] sm:$0xfe] }
 0xd54   : > { %17438 = vmatprep.mubr.bf16.mxu1 %v13309_v24  ;;  %v18825_v24 = vld [vmem:[#allocation11 + $0x60] ss:$8 sps:$4 sm:$0xff]   ;;  %v13414_v21 = vshll.u32 %v23091_v47, 16 }
 0xd56   : > { %14297 = vmatpush1.bf16.msra.mxu0 %v18816_v53  ;;  %v23094_v53 = vld [vmem:[#allocation2 + $0xc8] sm:$0x1] }
 0xd57   : > { %14298 = vmatprep.subr.bf16.mxu0 %v18821_v15 }
 0xd5a   : > { %14299 = vmatpush1.bf16.msra.mxu0 %v18819_v8  ;;  %v13416_v8 = vrot.slane %v13414_v21, 1  ;;  %v13822_v21 = vrot.slane %v23061_v30, 1 }
 0xd5b   : > { %17439 = vmatmul.mubr.bf16.vlgmr.msra.gmra.mrb[96].mxu1 %v13321_v43  ;;  %14300 = vmatprep.subr.bf16.mxu0 %v18824_v52  ;;  %v18828_v43 = vld [vmem:[#allocation11 + $0x70] ss:$8 sps:$4 sm:$0xff]  }
 0xd5c   : > { %17471 = vmatpush3.bf16.msra.mxu1 %v18799_v37  ;;  %17442 = vmatprep.mubr.bf16.mxu1 %v13333_v5  ;;  %v13369_v37 = vsel %vm1963_vm7, %v22909_v18, %v13368_v33  ;;  %v13402_v18 = vshll.u32 %v23085_v48, 16  ;;  %v23112_v33 = vld [vmem:[#allocation2 + $0x108] sm:$0x1] }
 0xd5d   : > { %17472 = vmatprep.subr.bf16.mxu1 %v18800_v42 }
 0xd5e   : > { %14301 = vmatpush1.bf16.msra.mxu0 %v18822_v20  ;;  %v13404_v5 = vrot.slane %v13402_v18, 1  ;;  %v13812_v18 = vrot.slane %v13764_v58, 1  ;;  %v13849_v58 = vrot.slane %v23102_v14, 1 }
 0xd5f   : > { %14302 = vmatprep.subr.bf16.mxu0 %v18827_v62  ;;  %v13441_v62 = vsel %vm1963_vm7, %v22965_v46, %v13440_v38  ;;  %v13486_v46 = vshll.u32 %v23119_v55, 16  ;;  %v13772_v38 = vld [vmem:[#allocation2 + $0xa0] sm:$0xfe] }
 0xd60   : > { %17473 = vmatpush3.bf16.msra.mxu1 %v18800_v42  ;;  %v13409_v42 = vshll.u32 %v13284_v41, 16  ;;  %v13405_v15 = vsel %vm1963_vm7, %v13400_v32, %v13404_v5  ;;  %v13766_v32 = vld [vmem:[#allocation2 + $0x40] sm:$0xfe]  ;;  %v13816_v5 = vrot.slane %v23050_v44, 1 }
 0xd61   : > { %17474 = vmatprep.subr.bf16.mxu1 %v18801_v2  ;;  %v13488_v57 = vrot.slane %v13486_v46, 1  ;;  %v13818_v12 = vrot.slane %v13766_v32, 1  ;;  %v13843_v46 = vrot.slane %v23094_v53, 1  ;;  %v13855_v32 = vrot.slane %v23112_v33, 1 }
 0xd62   : > { %14303 = vmatpush1.bf16.msra.mxu0 %v18825_v24 }
 0xd63   : > { %17443 = vmatmul.mubr.bf16.gmra.mrb[100].mxu1 %v13345_v40  ;;  %14304 = vmatprep.subr.bf16.mxu0 %v18830_v45 }
 0xd64   : > { %17446 = vmatprep.mubr.bf16.mxu1 %v13357_v36  ;;  %17475 = vmatpush3.bf16.msra.mxu1 %v18801_v2  ;;  %v13411_v2 = vrot.slane %v13409_v42, 1  ;;  %v13814_v42 = vsel %vm2478_vm8, %v13812_v18, %v13813_v28 }
 0xd65   : > { %17476 = vmatprep.subr.bf16.mxu1 %v18802_v50 }
 0xd66   : > { %14305 = vmatpush1.bf16.msra.mxu0 %v18828_v43  ;;  %v13412_v40 = vor.u32 %v13411_v2, %v13407_v56  ;;  %v13765_v43 = vld [vmem:[#allocation2 + $0x30] sm:$0xfe]  ;;  %v13824_v56 = vrot.slane %v13768_v60, 1 }
 0xd67   : > { %v13767_v2 = vld [vmem:[#allocation2 + $0x50] sm:$0xfe] }
 0xd68   : > { %17477 = vmatpush3.bf16.msra.mxu1 %v18802_v50  ;;  %v13426_v50 = vshll.u32 %v23094_v53, 16  ;;  %v13417_v52 = vsel %vm1963_vm7, %v13412_v40, %v13416_v8  ;;  %v13770_v8 = vld [vmem:[#allocation2 + $0x80] sm:$0xfe]  ;;  %v13777_v53 = vld [vmem:[#allocation2 + $0xf0] sm:$0xfe] }
 0xd69   : > { %17478 = vmatprep.subr.bf16.mxu1 %v18803_v4  ;;  %v13851_v28 = vrot.slane %v13777_v53, 1 }
 0xd6a   : > { %v13428_v36 = vrot.slane %v13426_v50, 1  ;;  %v13825_v50 = vrot.slane %v23065_v13, 1  ;;  %v13771_v13 = vld [vmem:[#allocation2 + $0x90] sm:$0xfe] }
 0xd6b   : > { %17447 = vmatmul.mubr.bf16.gmra.mrb[104].mxu1 %v13369_v37  ;;  %v13474_v37 = vshll.u32 %v23112_v33, 16 }
 0xd6c   : > { %17450 = vmatprep.mubr.bf16.mxu1 %v13381_v6  ;;  %17479 = vmatpush3.bf16.msra.mxu1 %v18803_v4  ;;  %v13429_v23 = vsel %vm1963_vm7, %v22962_v51, %v13428_v36  ;;  %v13450_v4 = vshll.u32 %v23102_v14, 16  ;;  %v13462_v51 = vshll.u32 %v23108_v9, 16  ;;  %v13479_v6 = vshrl.u32 %v23054_v26, 16 }
 0xd6d   : > { %17480 = vmatprep.subr.bf16.mxu1 %v18804_v11  ;;  %v13476_v41 = vrot.slane %v13474_v37, 1  ;;  %v13826_v44 = vsel %vm2478_vm8, %v13824_v56, %v13825_v50  ;;  %v13774_v37 = vld [vmem:[#allocation2 + $0xc0] sm:$0xfe] }
 0xd6e   : > { %v13452_v20 = vrot.slane %v13450_v4, 1  ;;  %v13464_v24 = vrot.slane %v13462_v51, 1  ;;  %v13837_v51 = vrot.slane %v23085_v48, 1  ;;  %v13775_v48 = vld [vmem:[#allocation2 + $0xd0] sm:$0xfe] }
 0xd70   : > { %17481 = vmatpush3.bf16.msra.mxu1 %v18804_v11  ;;  %v13453_v61 = vsel %vm1963_vm7, %v22982_v25, %v13452_v20  ;;  %v13481_v11 = vshll.u32 %v23054_v26, 16  ;;  %v13465_v45 = vsel %vm1963_vm7, %v22985_v59, %v13464_v24  ;;  %v13477_v25 = vsel %vm1963_vm7, %v22995_v63, %v13476_v41 }
 0xd71   : > { %17482 = vmatprep.subr.bf16.mxu1 %v18805_v17  ;;  %v13815_v59 = vrot.slane %v13765_v43, 1  ;;  %v13819_v63 = vrot.slane %v23052_v0, 1  ;;  %v13769_v0 = vld [vmem:[#allocation2 + $0x70] sm:$0xfe]  ;;  %v13833_v20 = vrot.slane %v13771_v13, 1  ;;  %v13839_v24 = vrot.slane %v13773_v10, 1 }
 0xd72   : > { %v13483_v22 = vrot.slane %v13481_v11, 1  ;;  %v13827_v36 = vrot.slane %v13769_v0, 1  ;;  %v13852_v43 = vrot.slane %v23108_v9, 1 }
 0xd73   : > { %17451 = vmatmul.mubr.bf16.gmra.mrb[108].mxu1 %v13393_v27  ;;  %v13820_v27 = vsel %vm2478_vm8, %v13818_v12, %v13819_v63 }
 0xd74   : > { %17454 = vmatprep.mubr.bf16.mxu1 %v13405_v15  ;;  %17483 = vmatpush3.bf16.msra.mxu1 %v18805_v17  ;;  %v13484_v39 = vor.u32 %v13483_v22, %v13479_v6  ;;  %v13821_v15 = vrot.slane %v13767_v2, 1  ;;  %v13842_v6 = vrot.slane %v13774_v37, 1  ;;  %v13840_v22 = vrot.slane %v23091_v47, 1 }
 0xd75   : > { %17484 = vmatprep.subr.bf16.mxu1 %v18806_v3  ;;  %v13853_v12 = vsel %vm2478_vm8, %v13851_v28, %v13852_v43 }
 0xd76   : > { %v13489_v17 = vsel %vm1963_vm7, %v13484_v39, %v13488_v57  ;;  %v13823_v40 = vsel %vm2478_vm8, %v13821_v15, %v13822_v21  ;;  %v13841_v41 = vsel %vm2478_vm8, %v13839_v24, %v13840_v22  ;;  %v13846_v57 = vrot.slane %v23099_v49, 1 }
 0xd78   : > { %17485 = vmatpush3.bf16.msra.mxu1 %v18806_v3  ;;  %v13817_v3 = vsel %vm2478_vm8, %v13815_v59, %v13816_v5  ;;  %v13779_v59 = vld [vmem:[#allocation2 + $0x110] sm:$0xfe]  ;;  %v13858_v5 = vrot.slane %v23119_v55, 1 }
 0xd79   : > { %v13857_v14 = vrot.slane %v13779_v59, 1 }
 0xd7b   : > { %17455 = vmatmul.mubr.bf16.gmra.mrb[112].mxu1 %v13417_v52  ;;  %v13830_v52 = vrot.slane %v13770_v8, 1  ;;  %v13859_v63 = vsel %vm2478_vm8, %v13857_v14, %v13858_v5 }
 0xd7c   : > { %17458 = vmatprep.mubr.bf16.mxu1 %v13429_v23  ;;  %v13828_v23 = vrot.slane %v23071_v7, 1 }
 0xd7d   : > { %v13832_v30 = vsel %vm2478_vm8, %v13830_v52, %v13831_v16 }
 0xd7e   : > { %v13829_v4 = vsel %vm2478_vm8, %v13827_v36, %v13828_v23 }
 0xd83   : > { %17459 = vmatmul.mubr.bf16.gmra.mrb[116].mxu1 %v13441_v62  ;;  %v13836_v62 = vrot.slane %v13772_v38, 1 }
 0xd84   : > { %17462 = vmatprep.mubr.bf16.mxu1 %v13453_v61  ;;  %v13834_v61 = vrot.slane %v23081_v35, 1  ;;  %v13844_v35 = vsel %vm2478_vm8, %v13842_v6, %v13843_v46 }
 0xd85   : > { %v13838_v7 = vsel %vm2478_vm8, %v13836_v62, %v13837_v51 }
 0xd86   : > { %v13835_v11 = vsel %vm2478_vm8, %v13833_v20, %v13834_v61 }
 0xd8b   : > { %17463 = vmatmul.mubr.bf16.gmra.mrb[120].mxu1 %v13465_v45  ;;  %v13776_v45 = vld [vmem:[#allocation2 + $0xe0] sm:$0xfe] }
 0xd8c   : > { %17466 = vmatprep.mubr.bf16.mxu1 %v13477_v25  ;;  %v13845_v25 = vrot.slane %v13775_v48, 1  ;;  %v13848_v39 = vrot.slane %v13776_v45, 1 }
 0xd8e   : > { %v13847_v18 = vsel %vm2478_vm8, %v13845_v25, %v13846_v57  ;;  %v13850_v47 = vsel %vm2478_vm8, %v13848_v39, %v13849_v58 }
 0xd93   : > { %17467 = vmatmul.mubr.bf16.gmra.mrb[124].mxu1 %v13489_v17  ;;  %v13778_v17 = vld [vmem:[#allocation2 + $0x100] sm:$0xfe] }
 0xd94   : > { %17486 = vmatprep.mubr.bf16.mxu1 %v13814_v42  ;;  %v13854_v42 = vrot.slane %v13778_v17, 1 }
 0xd96   : > { %v13856_v49 = vsel %vm2478_vm8, %v13854_v42, %v13855_v32 }
 0xd9b   : > { %17487 = vmatmul.mubr.bf16.vlgmr.msra.gmra.mrb[96].mxu1 %v13817_v3  ;;  %v23163_v3 = vld [vmem:[%s24214_s25] ss:$0 sm:$0xff]  ;;  %s18982_s25 = scalar_lea.vmem %s23489_s22, 8192 }
 0xd9c   : > { %17490 = vmatprep.mubr.bf16.mxu1 %v13820_v27  ;;  %p18983_p2 = scmp.ne.s32.totalorder %s23489_s22, %s18982_s25 }
 0xd9e   : > { %p18984_p4 = pnand %p18983_p2, %p24343_p3 }
 0xda0   : > { %p18985_p7 = pneg %p18984_p4 }
 0xda3   : > { %17491 = vmatmul.mubr.bf16.gmra.mrb[100].mxu1 %v13823_v40 }
 0xda4   : > { %17494 = vmatprep.mubr.bf16.mxu1 %v13826_v44 }
 0xdab   : > { %17495 = vmatmul.mubr.bf16.gmra.mrb[104].mxu1 %v13829_v4 }
 0xdac   : > { %17498 = vmatprep.mubr.bf16.mxu1 %v13832_v30 }
 0xdb3   : > { %17499 = vmatmul.mubr.bf16.gmra.mrb[108].mxu1 %v13835_v11 }
 0xdb4   : > { %17502 = vmatprep.mubr.bf16.mxu1 %v13838_v7 }
 0xdbb   : > { %17503 = vmatmul.mubr.bf16.gmra.mrb[112].mxu1 %v13841_v41 }
 0xdbc   : > { %17506 = vmatprep.mubr.bf16.mxu1 %v13844_v35 }
 0xdc3   : > { %17507 = vmatmul.mubr.bf16.gmra.mrb[116].mxu1 %v13847_v18 }
 0xdc4   : > { %17510 = vmatprep.mubr.bf16.mxu1 %v13850_v47 }
 0xdcb   : > { %17511 = vmatmul.mubr.bf16.gmra.mrb[120].mxu1 %v13853_v12 }
 0xdcc   : > { %17514 = vmatprep.mubr.bf16.mxu1 %v13856_v49 }
 0xdd3   : > { %17515 = vmatmul.mubr.bf16.gmra.mrb[124].mxu1 %v13859_v63 }
 0xe6e   : > { %v17488_v9 = vpop.f32.mrb[96].mxu1 }
 0xe6f   : > { %v17582_v33 = vadd.f32 %v17488_v9, %v23163_v3  ;;  %v13975_v27 = vpop.f32.mrb[97].mxu1 }
 0xe70   : > { %v17583_v2 = vadd.f32 %v23163_v3, %v13975_v27  ;;  %v17489_v60 = vpop.f32.mrb[98].mxu1 }
 0xe71   : > { %v17584_v15 = vadd.f32 %v17489_v60, %v23163_v3  ;;  %v13978_v56 = vpop.f32.mrb[99].mxu1  ;;  %v14136_v21 = vmax.f32 %v17582_v33, 0.0 }
 0xe72   : > { %v17585_v55 = vadd.f32 %v23163_v3, %v13978_v56  ;;  %v14134_v40 = vmax.f32 %v17583_v2, 0.0 }
 0xe73   : > { %v14137_v50 = vmax.f32 %v17584_v15, 0.0 }
 0xe74   : > { %v14135_v44 = vmax.f32 %v17585_v55, 0.0 }
 0xe75   : > { %v14167_v0 = vpack.c.bf16 %v14137_v50, %v14136_v21 }
 0xe76   : > { %v14166_v8 = vpack.c.bf16 %v14135_v44, %v14134_v40  ;;  %v17492_v36 = vpop.f32.mrb[100].mxu1 }
 0xe77   : > { %v17586_v52 = vadd.f32 %v17492_v36, %v23163_v3  ;;  %v13991_v23 = vpop.f32.mrb[101].mxu1 }
 0xe78   : > { %v17587_v16 = vadd.f32 %v23163_v3, %v13991_v23  ;;  %v17493_v4 = vpop.f32.mrb[102].mxu1  ;;  %14323 = vmatmul.mubr.bf16.vlgmr.msra.gmra.mrb[64].mxu0 %v14166_v8 }
 0xe79   : > { %v17588_v30 = vadd.f32 %v17493_v4, %v23163_v3  ;;  %v13994_v13 = vpop.f32.mrb[103].mxu1  ;;  %14332 = vmatprep.mubr.bf16.mxu0 %v23054_v26  ;;  %v14140_v20 = vmax.f32 %v17586_v52, 0.0 }
 0xe7a   : > { %v17589_v38 = vadd.f32 %v23163_v3, %v13994_v13  ;;  %v14138_v61 = vmax.f32 %v17587_v16, 0.0 }
 0xe7b   : > { %v14141_v62 = vmax.f32 %v17588_v30, 0.0 }
 0xe7c   : > { %v14139_v51 = vmax.f32 %v17589_v38, 0.0 }
 0xe7d   : > { %v14169_v11 = vpack.c.bf16 %v14141_v62, %v14140_v20 }
 0xe7e   : > { %v14168_v7 = vpack.c.bf16 %v14139_v51, %v14138_v61  ;;  %v17496_v10 = vpop.f32.mrb[104].mxu1 }
 0xe7f   : > { %v17590_v37 = vadd.f32 %v17496_v10, %v23163_v3  ;;  %v14007_v24 = vpop.f32.mrb[105].mxu1 }
 0xe80   : > { %v17591_v6 = vadd.f32 %v23163_v3, %v14007_v24  ;;  %v17497_v22 = vpop.f32.mrb[106].mxu1  ;;  %14333 = vmatmul.mubr.bf16.gmra.mrb[68].mxu0 %v14167_v0 }
 0xe81   : > { %v17592_v46 = vadd.f32 %v17497_v22, %v23163_v3  ;;  %v14010_v41 = vpop.f32.mrb[107].mxu1  ;;  %14342 = vmatprep.mubr.bf16.mxu0 %v23054_v26  ;;  %v14144_v48 = vmax.f32 %v17590_v37, 0.0 }
 0xe82   : > { %v17593_v35 = vadd.f32 %v23163_v3, %v14010_v41  ;;  %v14142_v25 = vmax.f32 %v17591_v6, 0.0 }
 0xe83   : > { %v14145_v45 = vmax.f32 %v17592_v46, 0.0 }
 0xe84   : > { %v14143_v39 = vmax.f32 %v17593_v35, 0.0 }
 0xe85   : > { %v14171_v57 = vpack.c.bf16 %v14145_v45, %v14144_v48 }
 0xe86   : > { %v14170_v58 = vpack.c.bf16 %v14143_v39, %v14142_v25  ;;  %v17500_v18 = vpop.f32.mrb[108].mxu1 }
 0xe87   : > { %v17594_v47 = vadd.f32 %v17500_v18, %v23163_v3  ;;  %v14023_v53 = vpop.f32.mrb[109].mxu1 }
 0xe88   : > { %v17595_v17 = vadd.f32 %v23163_v3, %v14023_v53  ;;  %v17501_v28 = vpop.f32.mrb[110].mxu1  ;;  %14343 = vmatmul.mubr.bf16.gmra.mrb[72].mxu0 %v14168_v7 }
 0xe89   : > { %v17596_v42 = vadd.f32 %v17501_v28, %v23163_v3  ;;  %v14026_v43 = vpop.f32.mrb[111].mxu1  ;;  %14352 = vmatprep.mubr.bf16.mxu0 %v23054_v26  ;;  %v14148_v59 = vmax.f32 %v17594_v47, 0.0 }
 0xe8a   : > { %v17597_v32 = vadd.f32 %v23163_v3, %v14026_v43  ;;  %v14146_v49 = vmax.f32 %v17595_v17, 0.0 }
 0xe8b   : > { %v14149_v12 = vmax.f32 %v17596_v42, 0.0 }
 0xe8c   : > { %v14147_v14 = vmax.f32 %v17597_v32, 0.0 }
 0xe8d   : > { %v23184_v5 = vpack.c.bf16 %v14149_v12, %v14148_v59 }
 0xe8e   : > { %v14172_v63 = vpack.c.bf16 %v14147_v14, %v14146_v49  ;;  %v17504_v9 = vpop.f32.mrb[112].mxu1 }
 0xe8f   : > { %v17598_v33 = vadd.f32 %v17504_v9, %v23163_v3  ;;  %v14039_v27 = vpop.f32.mrb[113].mxu1 }
 0xe90   : > { %v17599_v2 = vadd.f32 %v23163_v3, %v14039_v27  ;;  %v17505_v60 = vpop.f32.mrb[114].mxu1  ;;  %14353 = vmatmul.mubr.bf16.gmra.mrb[76].mxu0 %v14169_v11 }
 0xe91   : > { %v17600_v15 = vadd.f32 %v17505_v60, %v23163_v3  ;;  %v14042_v56 = vpop.f32.mrb[115].mxu1  ;;  %14362 = vmatprep.mubr.bf16.mxu0 %v23054_v26  ;;  %v14152_v21 = vmax.f32 %v17598_v33, 0.0 }
 0xe92   : > { %v17601_v55 = vadd.f32 %v23163_v3, %v14042_v56  ;;  %v14150_v40 = vmax.f32 %v17599_v2, 0.0  ;;  %v24217_v56 = vmax.f32 %v22016_v54, 0.0 }
 0xe93   : > { %v14153_v50 = vmax.f32 %v17600_v15, 0.0 }
 0xe94   : > { %v14151_v44 = vmax.f32 %v17601_v55, 0.0 }
 0xe95   : > { %v14175_v0 = vpack.c.bf16 %v14153_v50, %v14152_v21  ;;  %v24218_v50 = vmax.f32 %v22011_v1, 0.0 }
 0xe96   : > { %v14174_v8 = vpack.c.bf16 %v14151_v44, %v14150_v40  ;;  %v17508_v36 = vpop.f32.mrb[116].mxu1 }
 0xe97   : > { %v17602_v52 = vadd.f32 %v17508_v36, %v23163_v3  ;;  %v14055_v23 = vpop.f32.mrb[117].mxu1 }
 0xe98   : > { %v17603_v16 = vadd.f32 %v23163_v3, %v14055_v23  ;;  %v17509_v4 = vpop.f32.mrb[118].mxu1  ;;  %14363 = vmatmul.mubr.bf16.gmra.mrb[80].mxu0 %v14170_v58 }
 0xe99   : > { %v17604_v30 = vadd.f32 %v17509_v4, %v23163_v3  ;;  %v14058_v13 = vpop.f32.mrb[119].mxu1  ;;  %14372 = vmatprep.mubr.bf16.mxu0 %v23054_v26  ;;  %v14156_v20 = vmax.f32 %v17602_v52, 0.0  ;;  %v24220_v52 = vmax.f32 %v22024_v31, 0.0 }
 0xe9a   : > { %v17605_v38 = vadd.f32 %v23163_v3, %v14058_v13  ;;  %v14154_v61 = vmax.f32 %v17603_v16, 0.0  ;;  %v24221_v13 = vld [vmem:[#allocation25_spill] sm:$0xff] }
 0xe9b   : > { %v14157_v62 = vmax.f32 %v17604_v30, 0.0 }
 0xe9c   : > { %v14155_v51 = vmax.f32 %v17605_v38, 0.0  ;;  %v24222_v38 = vmax.f32 %v24221_v13, 0.0  ;;  %v24243_v13 = vld [vmem:[#allocation37_spill] sm:$0xff] }
 0xe9d   : > { %v14177_v11 = vpack.c.bf16 %v14157_v62, %v14156_v20 }
 0xe9e   : > { %v14176_v7 = vpack.c.bf16 %v14155_v51, %v14154_v61  ;;  %v17512_v10 = vpop.f32.mrb[120].mxu1  ;;  %v24223_v51 = vld [vmem:[#allocation26_spill] sm:$0xff] }
 0xe9f   : > { %v17606_v37 = vadd.f32 %v17512_v10, %v23163_v3  ;;  %v14071_v24 = vpop.f32.mrb[121].mxu1 }
 0xea0   : > { %v17607_v6 = vadd.f32 %v23163_v3, %v14071_v24  ;;  %v17513_v22 = vpop.f32.mrb[122].mxu1  ;;  %14373 = vmatmul.mubr.bf16.gmra.mrb[84].mxu0 %v14171_v57  ;;  %v24225_v24 = vld [vmem:[#allocation27_spill] sm:$0xff] }
 0xea1   : > { %v17608_v46 = vadd.f32 %v17513_v22, %v23163_v3  ;;  %v14074_v41 = vpop.f32.mrb[123].mxu1  ;;  %14382 = vmatprep.mubr.bf16.mxu0 %v23054_v26  ;;  %v14160_v48 = vmax.f32 %v17606_v37, 0.0 }
 0xea2   : > { %v17609_v35 = vadd.f32 %v23163_v3, %v14074_v41  ;;  %v14158_v25 = vmax.f32 %v17607_v6, 0.0  ;;  %v24226_v6 = vmax.f32 %v24225_v24, 0.0  ;;  %v24227_v41 = vld [vmem:[#allocation29_spill] sm:$0xff]  ;;  %v24245_v24 = vld [vmem:[#allocation38_spill] sm:$0xff] }
 0xea3   : > { %v14161_v45 = vmax.f32 %v17608_v46, 0.0 }
 0xea4   : > { %v14159_v39 = vmax.f32 %v17609_v35, 0.0  ;;  %v24228_v35 = vmax.f32 %v24227_v41, 0.0 }
 0xea5   : > { %v14179_v58 = vpack.c.bf16 %v14161_v45, %v14160_v48 }
 0xea6   : > { %v14178_v18 = vpack.c.bf16 %v14159_v39, %v14158_v25  ;;  %v17516_v47 = vpop.f32.mrb[124].mxu1 }
 0xea7   : > { %v17610_v53 = vadd.f32 %v17516_v47, %v23163_v3  ;;  %v14087_v17 = vpop.f32.mrb[125].mxu1 }
 0xea8   : > { %v17611_v28 = vadd.f32 %v23163_v3, %v14087_v17  ;;  %v17517_v57 = vpop.f32.mrb[126].mxu1  ;;  %14383 = vmatmul.mubr.bf16.gmra.mrb[88].mxu0 %v14172_v63  ;;  %v24229_v17 = vld [vmem:[#allocation30_spill] sm:$0xff] }
 0xea9   : > { %v17612_v42 = vadd.f32 %v17517_v57, %v23163_v3  ;;  %v14090_v43 = vpop.f32.mrb[127].mxu1  ;;  %14392 = vmatprep.mubr.bf16.mxu0 %v23054_v26  ;;  %v14164_v59 = vmax.f32 %v17610_v53, 0.0 }
 0xeaa   : > { %v17613_v32 = vadd.f32 %v23163_v3, %v14090_v43  ;;  %v14162_v49 = vmax.f32 %v17611_v28, 0.0  ;;  %v14198_v3 = vld [vmem:[%s24216_s24] sm:$0x3]  ;;  %v24230_v28 = vmax.f32 %v24229_v17, 0.0  ;;  %v24251_v17 = vld [vmem:[#allocation42_spill] sm:$0xff]  ;;  %s18988_s24 = scalar_lea.vmem %s18987_s14, 16384 }
 0xeab   : > { %v14165_v12 = vmax.f32 %v17612_v42, 0.0  ;;  %v23223_v63 = vrot.slane %v14198_v3, %v20791_v34  ;;  %p18990_p11 = scmp.lt.s32.totalorder %s18988_s24, %s18982_s25 }
 0xeac   : > { %v14163_v14 = vmax.f32 %v17613_v32, 0.0  ;;  %v24231_v32 = vld [vmem:[#allocation31_spill] sm:$0xff] }
 0xead   : > { %v14181_v9 = vpack.c.bf16 %v14165_v12, %v14164_v59  ;;  %v24232_v59 = vmax.f32 %v24231_v32, 0.0  ;;  %p18991_p5 = por %p18990_p11, %p18989_p8 }
 0xeae   : > { %v14180_v33 = vpack.c.bf16 %v14163_v14, %v14162_v49 }
 0xeaf   : > { %p18992_p0 = pnand %p18991_p5, %p18985_p7 }
 0xeb0   : > { %14393 = vmatmul.mubr.bf16.gmra.mrb[92].mxu0 %v23184_v5  ;;  %v23219_v5 = vrot.slane %v14198_v3, %v23921_v29 }
 0xeb1   : > { %14402 = vmatprep.mubr.bf16.mxu0 %v23054_v26 }
 0xeb8   : > { %14403 = vmatmul.mubr.bf16.gmra.mrb[96].mxu0 %v14174_v8 }
 0xeb9   : > { %14412 = vmatprep.mubr.bf16.mxu0 %v23054_v26 }
 0xec0   : > { %14413 = vmatmul.mubr.bf16.gmra.mrb[100].mxu0 %v14175_v0  ;;  %v24219_v0 = vmax.f32 %v22020_v19, 0.0 }
 0xec1   : > { %14422 = vmatprep.mubr.bf16.mxu0 %v23054_v26 }
 0xec8   : > { %14423 = vmatmul.mubr.bf16.gmra.mrb[104].mxu0 %v14176_v7 }
 0xec9   : > { %14432 = vmatprep.mubr.bf16.mxu0 %v23054_v26 }
 0xed0   : > { %14433 = vmatmul.mubr.bf16.gmra.mrb[108].mxu0 %v14177_v11  ;;  %v24224_v11 = vmax.f32 %v24223_v51, 0.0 }
 0xed1   : > { %14442 = vmatprep.mubr.bf16.mxu0 %v23054_v26 }
 0xed8   : > { %14443 = vmatmul.mubr.bf16.gmra.mrb[112].mxu0 %v14178_v18 }
 0xed9   : > { %14452 = vmatprep.mubr.bf16.mxu0 %v23054_v26 }
 0xee0   : > { %14453 = vmatmul.mubr.bf16.gmra.mrb[116].mxu0 %v14179_v58 }
 0xee1   : > { %14462 = vmatprep.mubr.bf16.mxu0 %v23054_v26 }
 0xee8   : > { %14463 = vmatmul.mubr.bf16.gmra.mrb[120].mxu0 %v14180_v33 }
 0xee9   : > { %14472 = vmatprep.mubr.bf16.mxu0 %v23054_v26 }
 0xef0   : > { %14473 = vmatmul.mubr.bf16.gmra.mrb[124].mxu0 %v14181_v9  ;;  %v24233_v9 = vld [vmem:[#allocation32_spill] sm:$0xff] }
 0xef1   : > { %v24234_v33 = vmax.f32 %v24233_v9, 0.0  ;;  %v24253_v9 = vld [vmem:[#allocation43_spill] sm:$0xff] }
 0xf4b   : > { %v14324_v27 = vpop.f32.mrb[64].mxu0 }
 0xf4c   : > { %v14325_v2 = vadd.f32 %v14324_v27, %v23219_v5  ;;  %v14326_v60 = vpop.f32.mrb[65].mxu0 }
 0xf4d   : > { %v14327_v26 = vadd.f32 %v14326_v60, %v23223_v63  ;;  %v14328_v15 = vpop.f32.mrb[66].mxu0 }
 0xf4e   : > { %v14483_v55 = vadd.f32 %v14325_v2, %v24217_v56  ;;  %v14329_v21 = vadd.f32 %v14328_v15, %v23219_v5  ;;  %v14330_v29 = vpop.f32.mrb[67].mxu0  ;;  %v24235_v2 = vld [vmem:[#allocation33_spill] sm:$0xff] }
 0xf4f   : > { %v14484_v40 = vadd.f32 %v14327_v26, %v24218_v50  ;;  %v14331_v34 = vadd.f32 %v14330_v29, %v23223_v63  ;;  %v24236_v60 = vmax.f32 %v24235_v2, 0.0 }
 0xf50   : > { %v14547_v44 = vmax.f32 %v14483_v55, 0.0  ;;  %v14485_v8 = vadd.f32 %v14329_v21, %v24219_v0 }
 0xf51   : > { %v14548_v36 = vmax.f32 %v14484_v40, 0.0  ;;  %v14486_v23 = vadd.f32 %v14331_v34, %v24220_v52  ;;  %v24237_v34 = vld [vmem:[#allocation34_spill] sm:$0xff]  ;;  %v24239_v52 = vld [vmem:[#allocation35_spill] sm:$0xff] }
 0xf52   : > { %14611 = vst [vmem:[%s23239_s26] sm:$0xff] %v14547_v44  ;;  %v14549_v54 = vmax.f32 %v14485_v8, 0.0  ;;  %v24238_v44 = vmax.f32 %v24237_v34, 0.0  ;;  %v24259_v34 = vld [vmem:[#allocation46_spill] sm:$0xff] }
 0xf53   : > { %14612 = vst [vmem:[%s23239_s26 + $0x8] sm:$0xff] %v14548_v36  ;;  %v14550_v1 = vmax.f32 %v14486_v23, 0.0  ;;  %v14334_v16 = vpop.f32.mrb[68].mxu0  ;;  %v24240_v23 = vmax.f32 %v24239_v52, 0.0 }
 0xf54   : > { %14613 = vst [vmem:[%s23239_s26 + $0x10] sm:$0xff] %v14549_v54  ;;  %v14335_v19 = vadd.f32 %v14334_v16, %v23219_v5  ;;  %v14336_v4 = vpop.f32.mrb[69].mxu0 }
 0xf55   : > { %14614 = vst [vmem:[%s23239_s26 + $0x18] sm:$0xff] %v14550_v1  ;;  %v14337_v31 = vadd.f32 %v14336_v4, %v23223_v63  ;;  %v14338_v30 = vpop.f32.mrb[70].mxu0 }
 0xf56   : > { %v14487_v20 = vadd.f32 %v14335_v19, %v24222_v38  ;;  %v14339_v62 = vadd.f32 %v14338_v30, %v23219_v5  ;;  %v14340_v61 = vpop.f32.mrb[71].mxu0  ;;  %v24241_v19 = vld [vmem:[#allocation36_spill] sm:$0xff]  ;;  %v24244_v38 = vmax.f32 %v24243_v13, 0.0 }
 0xf57   : > { %v14488_v7 = vadd.f32 %v14337_v31, %v24224_v11  ;;  %v14341_v10 = vadd.f32 %v14340_v61, %v23223_v63  ;;  %v24242_v4 = vmax.f32 %v24241_v19, 0.0  ;;  %v24261_v19 = vld [vmem:[#allocation47_spill] sm:$0xff] }
 0xf58   : > { %v14551_v37 = vmax.f32 %v14487_v20, 0.0  ;;  %v14489_v22 = vadd.f32 %v14339_v62, %v24226_v6  ;;  %v24246_v6 = vmax.f32 %v24245_v24, 0.0  ;;  %v24267_v24 = vld [vmem:[#allocation68_spill] sm:$0xff] }
 0xf59   : > { %v14552_v46 = vmax.f32 %v14488_v7, 0.0  ;;  %v14490_v48 = vadd.f32 %v14341_v10, %v24228_v35  ;;  %v24247_v35 = vld [vmem:[#allocation40_spill] sm:$0xff] }
 0xf5a   : > { %14615 = vst [vmem:[%s23239_s26 + $0x20] sm:$0xff] %v14551_v37  ;;  %v14553_v45 = vmax.f32 %v14489_v22, 0.0 }
 0xf5b   : > { %14616 = vst [vmem:[%s23239_s26 + $0x28] sm:$0xff] %v14552_v46  ;;  %v14554_v25 = vmax.f32 %v14490_v48, 0.0  ;;  %v14344_v39 = vpop.f32.mrb[72].mxu0  ;;  %v24248_v48 = vmax.f32 %v24247_v35, 0.0 }
 0xf5c   : > { %14617 = vst [vmem:[%s23239_s26 + $0x30] sm:$0xff] %v14553_v45  ;;  %v14345_v58 = vadd.f32 %v14344_v39, %v23219_v5  ;;  %v14346_v18 = vpop.f32.mrb[73].mxu0 }
 0xf5d   : > { %14618 = vst [vmem:[%s23239_s26 + $0x38] sm:$0xff] %v14554_v25  ;;  %v14347_v47 = vadd.f32 %v14346_v18, %v23223_v63  ;;  %v14348_v53 = vpop.f32.mrb[74].mxu0 }
 0xf5e   : > { %v14491_v57 = vadd.f32 %v14345_v58, %v24230_v28  ;;  %v14349_v42 = vadd.f32 %v14348_v53, %v23219_v5  ;;  %v14350_v43 = vpop.f32.mrb[75].mxu0  ;;  %v24249_v58 = vld [vmem:[#allocation41_spill] sm:$0xff]  ;;  %v24252_v28 = vmax.f32 %v24251_v17, 0.0 }
 0xf5f   : > { %v14492_v12 = vadd.f32 %v14347_v47, %v24232_v59  ;;  %v14351_v49 = vadd.f32 %v14350_v43, %v23223_v63  ;;  %v24250_v18 = vmax.f32 %v24249_v58, 0.0  ;;  %v24269_v58 = vld [vmem:[#allocation50_spill] sm:$0xff] }
 0xf60   : > { %v14555_v14 = vmax.f32 %v14491_v57, 0.0  ;;  %v14493_v3 = vadd.f32 %v14349_v42, %v24234_v33  ;;  %v24254_v33 = vmax.f32 %v24253_v9, 0.0  ;;  %v24275_v9 = vld [vmem:[#allocation70_spill] sm:$0xff] }
 0xf61   : > { %v14556_v27 = vmax.f32 %v14492_v12, 0.0  ;;  %v14494_v26 = vadd.f32 %v14351_v49, %v24236_v60  ;;  %v24255_v60 = vld [vmem:[#allocation44_spill] sm:$0xff] }
 0xf62   : > { %14619 = vst [vmem:[%s23239_s26 + $0x40] sm:$0xff] %v14555_v14  ;;  %v14557_v15 = vmax.f32 %v14493_v3, 0.0 }
 0xf63   : > { %14620 = vst [vmem:[%s23239_s26 + $0x48] sm:$0xff] %v14556_v27  ;;  %v14558_v56 = vmax.f32 %v14494_v26, 0.0  ;;  %v14354_v55 = vpop.f32.mrb[76].mxu0  ;;  %v24256_v26 = vmax.f32 %v24255_v60, 0.0 }
 0xf64   : > { %14621 = vst [vmem:[%s23239_s26 + $0x50] sm:$0xff] %v14557_v15  ;;  %v14355_v21 = vadd.f32 %v14354_v55, %v23219_v5  ;;  %v14356_v29 = vpop.f32.mrb[77].mxu0 }
 0xf65   : > { %14622 = vst [vmem:[%s23239_s26 + $0x58] sm:$0xff] %v14558_v56  ;;  %v14357_v50 = vadd.f32 %v14356_v29, %v23223_v63  ;;  %v14358_v40 = vpop.f32.mrb[78].mxu0 }
 0xf66   : > { %v14495_v0 = vadd.f32 %v14355_v21, %v24238_v44  ;;  %v14359_v8 = vadd.f32 %v14358_v40, %v23219_v5  ;;  %v14360_v36 = vpop.f32.mrb[79].mxu0  ;;  %v24257_v21 = vld [vmem:[#allocation45_spill] sm:$0xff]  ;;  %v24260_v44 = vmax.f32 %v24259_v34, 0.0 }
 0xf67   : > { %v14496_v54 = vadd.f32 %v14357_v50, %v24240_v23  ;;  %v14361_v1 = vadd.f32 %v14360_v36, %v23223_v63  ;;  %v24258_v29 = vmax.f32 %v24257_v21, 0.0  ;;  %v24277_v21 = vld [vmem:[#allocation52_spill] sm:$0xff] }
 0xf68   : > { %v14559_v16 = vmax.f32 %v14495_v0, 0.0  ;;  %v14497_v31 = vadd.f32 %v14359_v8, %v24242_v4  ;;  %v24262_v4 = vmax.f32 %v24261_v19, 0.0  ;;  %v24283_v19 = vld [vmem:[#allocation72_spill] sm:$0xff] }
 0xf69   : > { %v14560_v30 = vmax.f32 %v14496_v54, 0.0  ;;  %v14498_v20 = vadd.f32 %v14361_v1, %v24244_v38  ;;  %v24263_v38 = vld [vmem:[#allocation48_spill] sm:$0xff] }
 0xf6a   : > { %14623 = vst [vmem:[%s23239_s26 + $0x60] sm:$0xff] %v14559_v16  ;;  %v14561_v62 = vmax.f32 %v14497_v31, 0.0 }
 0xf6b   : > { %14624 = vst [vmem:[%s23239_s26 + $0x68] sm:$0xff] %v14560_v30  ;;  %v14562_v61 = vmax.f32 %v14498_v20, 0.0  ;;  %v14364_v51 = vpop.f32.mrb[80].mxu0  ;;  %v24264_v20 = vmax.f32 %v24263_v38, 0.0 }
 0xf6c   : > { %14625 = vst [vmem:[%s23239_s26 + $0x70] sm:$0xff] %v14561_v62  ;;  %v14365_v11 = vadd.f32 %v14364_v51, %v23219_v5  ;;  %v14366_v7 = vpop.f32.mrb[81].mxu0 }
 0xf6d   : > { %14626 = vst [vmem:[%s23239_s26 + $0x78] sm:$0xff] %v14562_v61  ;;  %v14367_v10 = vadd.f32 %v14366_v7, %v23223_v63  ;;  %v14368_v37 = vpop.f32.mrb[82].mxu0 }
 0xf6e   : > { %v14499_v22 = vadd.f32 %v14365_v11, %v24246_v6  ;;  %v14369_v46 = vadd.f32 %v14368_v37, %v23219_v5  ;;  %v14370_v41 = vpop.f32.mrb[83].mxu0  ;;  %v24265_v11 = vld [vmem:[#allocation49_spill] sm:$0xff]  ;;  %v24268_v6 = vmax.f32 %v24267_v24, 0.0 }
 0xf6f   : > { %v14500_v45 = vadd.f32 %v14367_v10, %v24248_v48  ;;  %v14371_v25 = vadd.f32 %v14370_v41, %v23223_v63  ;;  %v24266_v7 = vmax.f32 %v24265_v11, 0.0  ;;  %v24285_v11 = vld [vmem:[#allocation54_spill] sm:$0xff] }
 0xf70   : > { %v14563_v39 = vmax.f32 %v14499_v22, 0.0  ;;  %v14501_v47 = vadd.f32 %v14369_v46, %v24250_v18  ;;  %v24270_v18 = vmax.f32 %v24269_v58, 0.0  ;;  %v24291_v58 = vld [vmem:[#allocation74_spill] sm:$0xff] }
 0xf71   : > { %v14564_v53 = vmax.f32 %v14500_v45, 0.0  ;;  %v14502_v57 = vadd.f32 %v14371_v25, %v24252_v28  ;;  %v24271_v28 = vld [vmem:[#allocation51_spill] sm:$0xff] }
 0xf72   : > { %14627 = vst [vmem:[%s23239_s26 + $0x80] sm:$0xff] %v14563_v39  ;;  %v14565_v42 = vmax.f32 %v14501_v47, 0.0 }
 0xf73   : > { %14628 = vst [vmem:[%s23239_s26 + $0x88] sm:$0xff] %v14564_v53  ;;  %v14566_v43 = vmax.f32 %v14502_v57, 0.0  ;;  %v14374_v32 = vpop.f32.mrb[84].mxu0  ;;  %v24272_v57 = vmax.f32 %v24271_v28, 0.0 }
 0xf74   : > { %14629 = vst [vmem:[%s23239_s26 + $0x90] sm:$0xff] %v14565_v42  ;;  %v14375_v59 = vadd.f32 %v14374_v32, %v23219_v5  ;;  %v14376_v12 = vpop.f32.mrb[85].mxu0 }
 0xf75   : > { %14630 = vst [vmem:[%s23239_s26 + $0x98] sm:$0xff] %v14566_v43  ;;  %v14377_v49 = vadd.f32 %v14376_v12, %v23223_v63  ;;  %v14378_v14 = vpop.f32.mrb[86].mxu0 }
 0xf76   : > { %v14503_v3 = vadd.f32 %v14375_v59, %v24254_v33  ;;  %v14379_v27 = vadd.f32 %v14378_v14, %v23219_v5  ;;  %v14380_v2 = vpop.f32.mrb[87].mxu0  ;;  %v24273_v59 = vld [vmem:[#allocation69_spill] sm:$0xff]  ;;  %v24276_v33 = vmax.f32 %v24275_v9, 0.0 }
 0xf77   : > { %v14504_v15 = vadd.f32 %v14377_v49, %v24256_v26  ;;  %v14381_v56 = vadd.f32 %v14380_v2, %v23223_v63  ;;  %v24274_v12 = vmax.f32 %v24273_v59, 0.0  ;;  %v24293_v59 = vld [vmem:[#allocation56_spill] sm:$0xff] }
 0xf78   : > { %v14567_v55 = vmax.f32 %v14503_v3, 0.0  ;;  %v14505_v50 = vadd.f32 %v14379_v27, %v24258_v29  ;;  %v24278_v29 = vmax.f32 %v24277_v21, 0.0  ;;  %v24299_v21 = vld [vmem:[#allocation76_spill] sm:$0xff] }
 0xf79   : > { %v14568_v40 = vmax.f32 %v14504_v15, 0.0  ;;  %v14506_v0 = vadd.f32 %v14381_v56, %v24260_v44  ;;  %v24279_v44 = vld [vmem:[#allocation53_spill] sm:$0xff] }
 0xf7a   : > { %14631 = vst [vmem:[%s23239_s26 + $0xa0] sm:$0xff] %v14567_v55  ;;  %v14569_v8 = vmax.f32 %v14505_v50, 0.0 }
 0xf7b   : > { %14632 = vst [vmem:[%s23239_s26 + $0xa8] sm:$0xff] %v14568_v40  ;;  %v14570_v36 = vmax.f32 %v14506_v0, 0.0  ;;  %v14384_v52 = vpop.f32.mrb[88].mxu0  ;;  %v24280_v0 = vmax.f32 %v24279_v44, 0.0 }
 0xf7c   : > { %14633 = vst [vmem:[%s23239_s26 + $0xb0] sm:$0xff] %v14569_v8  ;;  %v14385_v23 = vadd.f32 %v14384_v52, %v23219_v5  ;;  %v14386_v54 = vpop.f32.mrb[89].mxu0 }
 0xf7d   : > { %14634 = vst [vmem:[%s23239_s26 + $0xb8] sm:$0xff] %v14570_v36  ;;  %v14387_v1 = vadd.f32 %v14386_v54, %v23223_v63  ;;  %v14388_v16 = vpop.f32.mrb[90].mxu0 }
 0xf7e   : > { %v14507_v31 = vadd.f32 %v14385_v23, %v24262_v4  ;;  %v14389_v30 = vadd.f32 %v14388_v16, %v23219_v5  ;;  %v14390_v13 = vpop.f32.mrb[91].mxu0  ;;  %v24281_v23 = vld [vmem:[#allocation71_spill] sm:$0xff]  ;;  %v24284_v4 = vmax.f32 %v24283_v19, 0.0 }
 0xf7f   : > { %v14508_v62 = vadd.f32 %v14387_v1, %v24264_v20  ;;  %v14391_v61 = vadd.f32 %v14390_v13, %v23223_v63  ;;  %v24282_v54 = vmax.f32 %v24281_v23, 0.0  ;;  %v24301_v23 = vld [vmem:[#allocation58_spill] sm:$0xff] }
 0xf80   : > { %v14571_v51 = vmax.f32 %v14507_v31, 0.0  ;;  %v14509_v10 = vadd.f32 %v14389_v30, %v24266_v7  ;;  %v24286_v7 = vmax.f32 %v24285_v11, 0.0  ;;  %v24307_v11 = vld [vmem:[#allocation78_spill] sm:$0xff] }
 0xf81   : > { %v14572_v37 = vmax.f32 %v14508_v62, 0.0  ;;  %v14510_v22 = vadd.f32 %v14391_v61, %v24268_v6  ;;  %v24287_v6 = vld [vmem:[#allocation55_spill] sm:$0xff] }
 0xf82   : > { %14635 = vst [vmem:[%s23239_s26 + $0xc0] sm:$0xff] %v14571_v51  ;;  %v14573_v46 = vmax.f32 %v14509_v10, 0.0 }
 0xf83   : > { %14636 = vst [vmem:[%s23239_s26 + $0xc8] sm:$0xff] %v14572_v37  ;;  %v14574_v41 = vmax.f32 %v14510_v22, 0.0  ;;  %v14394_v35 = vpop.f32.mrb[92].mxu0  ;;  %v24288_v22 = vmax.f32 %v24287_v6, 0.0 }
 0xf84   : > { %14637 = vst [vmem:[%s23239_s26 + $0xd0] sm:$0xff] %v14573_v46  ;;  %v14395_v48 = vadd.f32 %v14394_v35, %v23219_v5  ;;  %v14396_v45 = vpop.f32.mrb[93].mxu0 }
 0xf85   : > { %14638 = vst [vmem:[%s23239_s26 + $0xd8] sm:$0xff] %v14574_v41  ;;  %v14397_v25 = vadd.f32 %v14396_v45, %v23223_v63  ;;  %v14398_v39 = vpop.f32.mrb[94].mxu0 }
 0xf86   : > { %v14511_v47 = vadd.f32 %v14395_v48, %v24270_v18  ;;  %v14399_v53 = vadd.f32 %v14398_v39, %v23219_v5  ;;  %v14400_v17 = vpop.f32.mrb[95].mxu0  ;;  %v24289_v48 = vld [vmem:[#allocation73_spill] sm:$0xff]  ;;  %v24292_v18 = vmax.f32 %v24291_v58, 0.0 }
 0xf87   : > { %v14512_v42 = vadd.f32 %v14397_v25, %v24272_v57  ;;  %v14401_v43 = vadd.f32 %v14400_v17, %v23223_v63  ;;  %v24290_v45 = vmax.f32 %v24289_v48, 0.0  ;;  %v24309_v48 = vld [vmem:[#allocation60_spill] sm:$0xff] }
 0xf88   : > { %v14575_v32 = vmax.f32 %v14511_v47, 0.0  ;;  %v14513_v49 = vadd.f32 %v14399_v53, %v24274_v12  ;;  %v24294_v12 = vmax.f32 %v24293_v59, 0.0  ;;  %v24315_v59 = vld [vmem:[#allocation80_spill] sm:$0xff] }
 0xf89   : > { %v14576_v14 = vmax.f32 %v14512_v42, 0.0  ;;  %v14514_v3 = vadd.f32 %v14401_v43, %v24276_v33  ;;  %v24295_v33 = vld [vmem:[#allocation57_spill] sm:$0xff] }
 0xf8a   : > { %14639 = vst [vmem:[%s23239_s26 + $0xe0] sm:$0xff] %v14575_v32  ;;  %v14577_v27 = vmax.f32 %v14513_v49, 0.0 }
 0xf8b   : > { %14640 = vst [vmem:[%s23239_s26 + $0xe8] sm:$0xff] %v14576_v14  ;;  %v14578_v2 = vmax.f32 %v14514_v3, 0.0  ;;  %v14404_v60 = vpop.f32.mrb[96].mxu0  ;;  %v24296_v3 = vmax.f32 %v24295_v33, 0.0 }
 0xf8c   : > { %14641 = vst [vmem:[%s23239_s26 + $0xf0] sm:$0xff] %v14577_v27  ;;  %v14405_v26 = vadd.f32 %v14404_v60, %v23219_v5  ;;  %v14406_v15 = vpop.f32.mrb[97].mxu0 }
 0xf8d   : > { %14642 = vst [vmem:[%s23239_s26 + $0xf8] sm:$0xff] %v14578_v2  ;;  %v14407_v56 = vadd.f32 %v14406_v15, %v23223_v63  ;;  %v14408_v55 = vpop.f32.mrb[98].mxu0 }
 0xf8e   : > { %v14515_v50 = vadd.f32 %v14405_v26, %v24278_v29  ;;  %v14409_v40 = vadd.f32 %v14408_v55, %v23219_v5  ;;  %v14410_v34 = vpop.f32.mrb[99].mxu0  ;;  %v24297_v26 = vld [vmem:[#allocation75_spill] sm:$0xff]  ;;  %v24300_v29 = vmax.f32 %v24299_v21, 0.0 }
 0xf8f   : > { %v14516_v8 = vadd.f32 %v14407_v56, %v24280_v0  ;;  %v14411_v36 = vadd.f32 %v14410_v34, %v23223_v63  ;;  %v24298_v15 = vmax.f32 %v24297_v26, 0.0  ;;  %v24317_v26 = vld [vmem:[#allocation62_spill] sm:$0xff] }
 0xf90   : > { %v14579_v52 = vmax.f32 %v14515_v50, 0.0  ;;  %v14517_v1 = vadd.f32 %v14409_v40, %v24282_v54  ;;  %v24302_v54 = vmax.f32 %v24301_v23, 0.0  ;;  %v24323_v23 = vld [vmem:[#allocation82_spill] sm:$0xff] }
 0xf91   : > { %v14580_v16 = vmax.f32 %v14516_v8, 0.0  ;;  %v14518_v31 = vadd.f32 %v14411_v36, %v24284_v4  ;;  %v24303_v4 = vld [vmem:[#allocation59_spill] sm:$0xff] }
 0xf92   : > { %14643 = vst [vmem:[%s23239_s26 + $0x100] sm:$0xff] %v14579_v52  ;;  %v14581_v30 = vmax.f32 %v14517_v1, 0.0 }
 0xf93   : > { %14644 = vst [vmem:[%s23239_s26 + $0x108] sm:$0xff] %v14580_v16  ;;  %v14582_v13 = vmax.f32 %v14518_v31, 0.0  ;;  %v14414_v38 = vpop.f32.mrb[100].mxu0  ;;  %v24304_v31 = vmax.f32 %v24303_v4, 0.0 }
 0xf94   : > { %14645 = vst [vmem:[%s23239_s26 + $0x110] sm:$0xff] %v14581_v30  ;;  %v14415_v20 = vadd.f32 %v14414_v38, %v23219_v5  ;;  %v14416_v62 = vpop.f32.mrb[101].mxu0 }
 0xf95   : > { %14646 = vst [vmem:[%s23239_s26 + $0x118] sm:$0xff] %v14582_v13  ;;  %v14417_v61 = vadd.f32 %v14416_v62, %v23223_v63  ;;  %v14418_v51 = vpop.f32.mrb[102].mxu0 }
 0xf96   : > { %v14519_v10 = vadd.f32 %v14415_v20, %v24286_v7  ;;  %v14419_v37 = vadd.f32 %v14418_v51, %v23219_v5  ;;  %v14420_v24 = vpop.f32.mrb[103].mxu0  ;;  %v24305_v20 = vld [vmem:[#allocation77_spill] sm:$0xff]  ;;  %v24308_v7 = vmax.f32 %v24307_v11, 0.0 }
 0xf97   : > { %v14520_v46 = vadd.f32 %v14417_v61, %v24288_v22  ;;  %v14421_v41 = vadd.f32 %v14420_v24, %v23223_v63  ;;  %v24306_v62 = vmax.f32 %v24305_v20, 0.0  ;;  %v24325_v20 = vld [vmem:[#allocation64_spill] sm:$0xff] }
 0xf98   : > { %v14583_v35 = vmax.f32 %v14519_v10, 0.0  ;;  %v14521_v25 = vadd.f32 %v14419_v37, %v24290_v45  ;;  %v24310_v45 = vmax.f32 %v24309_v48, 0.0  ;;  %v24331_v48 = vld [vmem:[#allocation84_spill] sm:$0xff] }
 0xf99   : > { %v14584_v39 = vmax.f32 %v14520_v46, 0.0  ;;  %v14522_v47 = vadd.f32 %v14421_v41, %v24292_v18  ;;  %v24311_v18 = vld [vmem:[#allocation61_spill] sm:$0xff] }
 0xf9a   : > { %14647 = vst [vmem:[%s23239_s26 + $0x120] sm:$0xff] %v14583_v35  ;;  %v14585_v53 = vmax.f32 %v14521_v25, 0.0 }
 0xf9b   : > { %14648 = vst [vmem:[%s23239_s26 + $0x128] sm:$0xff] %v14584_v39  ;;  %v14586_v17 = vmax.f32 %v14522_v47, 0.0  ;;  %v14424_v28 = vpop.f32.mrb[104].mxu0  ;;  %v24312_v47 = vmax.f32 %v24311_v18, 0.0 }
 0xf9c   : > { %14649 = vst [vmem:[%s23239_s26 + $0x130] sm:$0xff] %v14585_v53  ;;  %v14425_v57 = vadd.f32 %v14424_v28, %v23219_v5  ;;  %v14426_v42 = vpop.f32.mrb[105].mxu0 }
 0xf9d   : > { %14650 = vst [vmem:[%s23239_s26 + $0x138] sm:$0xff] %v14586_v17  ;;  %v14427_v43 = vadd.f32 %v14426_v42, %v23223_v63  ;;  %v14428_v32 = vpop.f32.mrb[106].mxu0 }
 0xf9e   : > { %v14523_v49 = vadd.f32 %v14425_v57, %v24294_v12  ;;  %v14429_v14 = vadd.f32 %v14428_v32, %v23219_v5  ;;  %v14430_v9 = vpop.f32.mrb[107].mxu0  ;;  %v24313_v57 = vld [vmem:[#allocation79_spill] sm:$0xff]  ;;  %v24316_v12 = vmax.f32 %v24315_v59, 0.0 }
 0xf9f   : > { %v14524_v27 = vadd.f32 %v14427_v43, %v24296_v3  ;;  %v14431_v2 = vadd.f32 %v14430_v9, %v23223_v63  ;;  %v24314_v42 = vmax.f32 %v24313_v57, 0.0  ;;  %v24333_v57 = vld [vmem:[#allocation66_spill] sm:$0xff] }
 0xfa0   : > { %v14587_v60 = vmax.f32 %v14523_v49, 0.0  ;;  %v14525_v56 = vadd.f32 %v14429_v14, %v24298_v15  ;;  %v24318_v15 = vmax.f32 %v24317_v26, 0.0  ;;  %v24340_v26 = vld [vmem:[#allocation86_spill] sm:$0xff] }
 0xfa1   : > { %v14588_v55 = vmax.f32 %v14524_v27, 0.0  ;;  %v14526_v50 = vadd.f32 %v14431_v2, %v24300_v29  ;;  %v24319_v29 = vld [vmem:[#allocation63_spill] sm:$0xff] }
 0xfa2   : > { %14651 = vst [vmem:[%s23239_s26 + $0x140] sm:$0xff] %v14587_v60  ;;  %v14589_v40 = vmax.f32 %v14525_v56, 0.0 }
 0xfa3   : > { %14652 = vst [vmem:[%s23239_s26 + $0x148] sm:$0xff] %v14588_v55  ;;  %v14590_v34 = vmax.f32 %v14526_v50, 0.0  ;;  %v14434_v44 = vpop.f32.mrb[108].mxu0  ;;  %v24320_v50 = vmax.f32 %v24319_v29, 0.0 }
 0xfa4   : > { %14653 = vst [vmem:[%s23239_s26 + $0x150] sm:$0xff] %v14589_v40  ;;  %v14435_v0 = vadd.f32 %v14434_v44, %v23219_v5  ;;  %v14436_v8 = vpop.f32.mrb[109].mxu0 }
 0xfa5   : > { %14654 = vst [vmem:[%s23239_s26 + $0x158] sm:$0xff] %v14590_v34  ;;  %v14437_v36 = vadd.f32 %v14436_v8, %v23223_v63  ;;  %v14438_v52 = vpop.f32.mrb[110].mxu0 }
 0xfa6   : > { %v14527_v1 = vadd.f32 %v14435_v0, %v24302_v54  ;;  %v14439_v16 = vadd.f32 %v14438_v52, %v23219_v5  ;;  %v14440_v19 = vpop.f32.mrb[111].mxu0  ;;  %v24321_v0 = vld [vmem:[#allocation81_spill] sm:$0xff]  ;;  %v24324_v54 = vmax.f32 %v24323_v23, 0.0 }
 0xfa7   : > { %v14528_v30 = vadd.f32 %v14437_v36, %v24304_v31  ;;  %v14441_v13 = vadd.f32 %v14440_v19, %v23223_v63  ;;  %v24322_v8 = vmax.f32 %v24321_v0, 0.0 }
 0xfa8   : > { %v14591_v38 = vmax.f32 %v14527_v1, 0.0  ;;  %v14529_v61 = vadd.f32 %v14439_v16, %v24306_v62  ;;  %v24326_v62 = vmax.f32 %v24325_v20, 0.0 }
 0xfa9   : > { %v14592_v51 = vmax.f32 %v14528_v30, 0.0  ;;  %v14530_v10 = vadd.f32 %v14441_v13, %v24308_v7  ;;  %v24327_v7 = vld [vmem:[#allocation65_spill] sm:$0xff] }
 0xfaa   : > { %14655 = vst [vmem:[%s23239_s26 + $0x160] sm:$0xff] %v14591_v38  ;;  %v14593_v37 = vmax.f32 %v14529_v61, 0.0 }
 0xfab   : > { %14656 = vst [vmem:[%s23239_s26 + $0x168] sm:$0xff] %v14592_v51  ;;  %v14594_v24 = vmax.f32 %v14530_v10, 0.0  ;;  %v14444_v6 = vpop.f32.mrb[112].mxu0  ;;  %v24328_v10 = vmax.f32 %v24327_v7, 0.0 }
 0xfac   : > { %14657 = vst [vmem:[%s23239_s26 + $0x170] sm:$0xff] %v14593_v37  ;;  %v14445_v22 = vadd.f32 %v14444_v6, %v23219_v5  ;;  %v14446_v46 = vpop.f32.mrb[113].mxu0 }
 0xfad   : > { %14658 = vst [vmem:[%s23239_s26 + $0x178] sm:$0xff] %v14594_v24  ;;  %v14447_v41 = vadd.f32 %v14446_v46, %v23223_v63  ;;  %v14448_v35 = vpop.f32.mrb[114].mxu0 }
 0xfae   : > { %v14531_v25 = vadd.f32 %v14445_v22, %v24310_v45  ;;  %v14449_v39 = vadd.f32 %v14448_v35, %v23219_v5  ;;  %v14450_v58 = vpop.f32.mrb[115].mxu0  ;;  %v24329_v22 = vld [vmem:[#allocation83_spill] sm:$0xff]  ;;  %v24332_v45 = vmax.f32 %v24331_v48, 0.0 }
 0xfaf   : > { %v14532_v53 = vadd.f32 %v14447_v41, %v24312_v47  ;;  %v14451_v17 = vadd.f32 %v14450_v58, %v23223_v63  ;;  %v24330_v46 = vmax.f32 %v24329_v22, 0.0 }
 0xfb0   : > { %v14595_v28 = vmax.f32 %v14531_v25, 0.0  ;;  %v14533_v43 = vadd.f32 %v14449_v39, %v24314_v42  ;;  %v24334_v42 = vmax.f32 %v24333_v57, 0.0 }
 0xfb1   : > { %v14596_v32 = vmax.f32 %v14532_v53, 0.0  ;;  %v14534_v49 = vadd.f32 %v14451_v17, %v24316_v12  ;;  %v24335_v12 = vld [vmem:[#allocation67_spill] sm:$0xff] }
 0xfb2   : > { %14659 = vst [vmem:[%s23239_s26 + $0x180] sm:$0xff] %v14595_v28  ;;  %v14597_v14 = vmax.f32 %v14533_v43, 0.0 }
 0xfb3   : > { %14660 = vst [vmem:[%s23239_s26 + $0x188] sm:$0xff] %v14596_v32  ;;  %v14598_v9 = vmax.f32 %v14534_v49, 0.0  ;;  %v14454_v33 = vpop.f32.mrb[116].mxu0  ;;  %v24336_v49 = vmax.f32 %v24335_v12, 0.0 }
 0xfb4   : > { %14661 = vst [vmem:[%s23239_s26 + $0x190] sm:$0xff] %v14597_v14  ;;  %v14455_v3 = vadd.f32 %v14454_v33, %v23219_v5  ;;  %v14456_v27 = vpop.f32.mrb[117].mxu0 }
 0xfb5   : > { %14662 = vst [vmem:[%s23239_s26 + $0x198] sm:$0xff] %v14598_v9  ;;  %v14457_v2 = vadd.f32 %v14456_v27, %v23223_v63  ;;  %v14458_v60 = vpop.f32.mrb[118].mxu0 }
 0xfb6   : > { %v14535_v56 = vadd.f32 %v14455_v3, %v24318_v15  ;;  %v14459_v55 = vadd.f32 %v14458_v60, %v23219_v5  ;;  %v14460_v21 = vpop.f32.mrb[119].mxu0  ;;  %v24338_v3 = vld [vmem:[#allocation85_spill] sm:$0xff]  ;;  %v24341_v15 = vmax.f32 %v24340_v26, 0.0 }
 0xfb7   : > { %v14536_v40 = vadd.f32 %v14457_v2, %v24320_v50  ;;  %v14461_v34 = vadd.f32 %v14460_v21, %v23223_v63  ;;  %v24339_v27 = vmax.f32 %v24338_v3, 0.0 }
 0xfb8   : > { %v14599_v44 = vmax.f32 %v14535_v56, 0.0  ;;  %v14537_v36 = vadd.f32 %v14459_v55, %v24322_v8 }
 0xfb9   : > { %v14600_v52 = vmax.f32 %v14536_v40, 0.0  ;;  %v14538_v1 = vadd.f32 %v14461_v34, %v24324_v54 }
 0xfba   : > { %14663 = vst [vmem:[%s23239_s26 + $0x1a0] sm:$0xff] %v14599_v44  ;;  %v14601_v16 = vmax.f32 %v14537_v36, 0.0 }
 0xfbb   : > { %14664 = vst [vmem:[%s23239_s26 + $0x1a8] sm:$0xff] %v14600_v52  ;;  %v14602_v19 = vmax.f32 %v14538_v1, 0.0  ;;  %v14464_v4 = vpop.f32.mrb[120].mxu0 }
 0xfbc   : > { %14665 = vst [vmem:[%s23239_s26 + $0x1b0] sm:$0xff] %v14601_v16  ;;  %v14465_v31 = vadd.f32 %v14464_v4, %v23219_v5  ;;  %v14466_v30 = vpop.f32.mrb[121].mxu0 }
 0xfbd   : > { %14666 = vst [vmem:[%s23239_s26 + $0x1b8] sm:$0xff] %v14602_v19  ;;  %v14467_v13 = vadd.f32 %v14466_v30, %v23223_v63  ;;  %v14468_v38 = vpop.f32.mrb[122].mxu0 }
 0xfbe   : > { %v14539_v61 = vadd.f32 %v14465_v31, %v24326_v62  ;;  %v14469_v51 = vadd.f32 %v14468_v38, %v23219_v5  ;;  %v14470_v11 = vpop.f32.mrb[123].mxu0 }
 0xfbf   : > { %v14540_v37 = vadd.f32 %v14467_v13, %v24328_v10  ;;  %v14471_v24 = vadd.f32 %v14470_v11, %v23223_v63 }
 0xfc0   : > { %v14603_v6 = vmax.f32 %v14539_v61, 0.0  ;;  %v14541_v41 = vadd.f32 %v14469_v51, %v24330_v46 }
 0xfc1   : > { %v14604_v35 = vmax.f32 %v14540_v37, 0.0  ;;  %v14542_v25 = vadd.f32 %v14471_v24, %v24332_v45 }
 0xfc2   : > { %14667 = vst [vmem:[%s23239_s26 + $0x1c0] sm:$0xff] %v14603_v6  ;;  %v14605_v39 = vmax.f32 %v14541_v41, 0.0 }
 0xfc3   : > { %14668 = vst [vmem:[%s23239_s26 + $0x1c8] sm:$0xff] %v14604_v35  ;;  %v14606_v58 = vmax.f32 %v14542_v25, 0.0  ;;  %v14474_v18 = vpop.f32.mrb[124].mxu0 }
 0xfc4   : > { %14669 = vst [vmem:[%s23239_s26 + $0x1d0] sm:$0xff] %v14605_v39  ;;  %v14475_v47 = vadd.f32 %v14474_v18, %v23219_v5  ;;  %v14476_v53 = vpop.f32.mrb[125].mxu0 }
 0xfc5   : > { %14670 = vst [vmem:[%s23239_s26 + $0x1d8] sm:$0xff] %v14606_v58  ;;  %v14477_v17 = vadd.f32 %v14476_v53, %v23223_v63  ;;  %v14478_v28 = vpop.f32.mrb[126].mxu0 }
 0xfc6   : > { %v14543_v43 = vadd.f32 %v14475_v47, %v24334_v42  ;;  %v14479_v32 = vadd.f32 %v14478_v28, %v23219_v5  ;;  %v14480_v59 = vpop.f32.mrb[127].mxu0 }
 0xfc7   : > { %v14544_v14 = vadd.f32 %v14477_v17, %v24336_v49  ;;  %v14481_v9 = vadd.f32 %v14480_v59, %v23223_v63 }
 0xfc8   : > { %v14607_v33 = vmax.f32 %v14543_v43, 0.0  ;;  %v14545_v2 = vadd.f32 %v14479_v32, %v24339_v27 }
 0xfc9   : > { %v14608_v60 = vmax.f32 %v14544_v14, 0.0  ;;  %v14546_v5 = vadd.f32 %v14481_v9, %v24341_v15 }
 0xfca   : > { %14671 = vst [vmem:[%s23239_s26 + $0x1e0] sm:$0xff] %v14607_v33  ;;  %v14609_v56 = vmax.f32 %v14545_v2, 0.0 }
 0xfcb   : > { %14672 = vst [vmem:[%s23239_s26 + $0x1e8] sm:$0xff] %v14608_v60  ;;  %v14610_v63 = vmax.f32 %v14546_v5, 0.0 }
 0xfcc   : > { %14673 = vst [vmem:[%s23239_s26 + $0x1f0] sm:$0xff] %v14609_v56 }
 0xfcd   : > { %14674 = vst [vmem:[%s23239_s26 + $0x1f8] sm:$0xff] %v14610_v63 }
 0xfce   : > { %18995 = shalt.err (!%p18992_p0)
}
 0xfcf   : > { %s18996_s20 = scalar_lea.hbm %s23487_s21, 8192  ;;  %s19000_s26 = scalar_lea.hbm %s24342_s3, 16384 }
 0xfd0   : > { %p18997_p6 = scmp.ne.s32.totalorder %s23487_s21, %s18996_s20  ;;  %p19001_p13 = scmp.lt.u32.totalorder %s23487_s21, %s24342_s3 }
 0xfd1   : > { %p19002_p12 = scmp.lt.u32.totalorder %s19000_s26, %s18996_s20  ;;  %p19004_p2 = scmp.lt.u32.totalorder %s18996_s20, %s23487_s21 }
 0xfd2   : > { %p18998_p9 = pnand %p18997_p6, %p24343_p3 }
 0xfd3   : > { %p19003_p1 = por %p19002_p12, %p19001_p13 }
 0xfd4   : > { %p18999_p10 = pneg %p18998_p9 }
 0xfd5   : > { %p19005_p4 = por %p19004_p2, %p19003_p1 }
 0xfd7   : > { %p19006_p7 = pnand %p19005_p4, %p18999_p10 }
 0xfd9   : > { %19009 = shalt.err (!%p19006_p7)
}
 0xfda   : > { %s19069_s16 = smov 256   ;;  %s19070_s25 = smov 16  }
 0xfdb   : > { %18402 = dma.vmem_to_hbm [thread:$0]  (%p24343_p3), %s23489_s22, 8192, %s23487_s21, %s23496_s1, %s19069_s16, %s19069_s16, %s19070_s25  }
 0xfdc PF: > { %s24344_s29 = sld [smem:[#allocation20_spill]]  ;;  %s24345_s14 = sld [smem:[#allocation17_spill]] }
 0xfdd   : > { %s24346_s24 = sld [smem:[#allocation24_spill]] }
 0xfe2   : > { %p18434_p8 = scmp.ge.s32.totalorder %s24344_s29, 2  ;;  %s14704_s18 = sand.u32 1, %s24345_s14  }
 0xfe3   : > { %p24347_p11 = scmp.ne.s32.totalorder %s24346_s24, 0  ;;  %s14705_s20 = scalar_lea.sflag [#allocation5], %s14704_s18 }
 0xfe5   : > { %p18421_p5 = pnand %p18434_p8, %p24347_p11 }
 0xfe7   : > { %19039 = dma.done.wait (!%p18421_p5), %s14705_s20, 8192  }
 0xfe8   : > { %19041 = vsyncadd (!%p18421_p5), %s14705_s20, 4294959104  ;;  %s24348_s21 = sld [smem:[#allocation21_spill]]  ;;  %s24349_s0 = sld [smem:[#allocation18_spill]] }
 0xfe9   : > { %s24350_s30 = sld [smem:[#allocation19_spill]]  ;;  %s24351_s20 = sld [smem:[#allocation22_spill]] }
 0xfee   : > { %p32_p0 = scmp.ge.s32.totalorder %s24348_s21, 4  }
 0xff0   :  { %34 = sbr.rel (!%p32_p0) target bundleno = 15 (0xf), region = 179 }
 0xff7   :  { %14710 = vsyncpa [#allocation4], 1 }
 0xff8   :  { %14712 = vsyncpa [#allocation4 + $0x1], 1 }
 0xff9   :  { %14713 = vsyncpa [#allocation7], 1 }
 0xffa   :  { %14714 = vsyncpa [#allocation10], 1 }
 0xffb   :  { %14715 = vsyncpa [#allocation5], 1 }
 0xffc   :  { %14717 = vsyncpa [#allocation5 + $0x1], 1 }

</bundles_post_ra>
